<compile_context>
chip_gen: v7x
topology: tpu7x:2x2x1
jax: 0.10.0
libtpu: 0.0.40
codegen_flags: <defaults>
</compile_context>

<pallas_src>
import functools

import jax
import jax.numpy as jnp
from jax.experimental import pallas as pl
from jax.experimental.pallas import tpu as pltpu

_EPS = 1e-5                      # PyTorch BatchNorm2d default eps


def _round_up(v, m):
    return ((v + m - 1) // m) * m


def _tpu_vmem_capacity():
    try:
        return int(pltpu.get_tpu_info().vmem_capacity_bytes)
    except Exception:
        return 64 * 1024 * 1024          # conservative fallback (v7x per-TC)


_VMEM_CAP = _tpu_vmem_capacity()
# Leave compiler headroom: ~48 MiB on v7x (64 MiB physical), ~96 MiB on v5e/v6e.
_VMEM_LIMIT = min(_VMEM_CAP * 3 // 4, 100 * 1024 * 1024)
# 512-row tiles already reach ~85% of HBM roofline; use 1024 only where VMEM is big.
_DEFAULT_TILE_M = 1024 if _VMEM_CAP >= (100 << 20) else 512


def _fold_bn(bn):
    """Fold eval-mode BatchNorm into (scale, bias) per channel."""
    gamma, beta, mean, var = bn
    scale = gamma / jnp.sqrt(var + _EPS)
    return scale, beta - mean * scale


def _silu(t, approx):
    # exp and reciprocal both run on the EUP slot; approx=True (bf16 production
    # path) drops the Newton-refine VALU ops, approx=False keeps the f32
    # validation path exact.
    return t * pl.reciprocal(1.0 + jnp.exp(-t), approx=approx)


def _pad_vec(a, n):
    return jnp.pad(a, (0, n - a.shape[0]))


def _pad_mat(a, r, c):
    return jnp.pad(a, ((0, r - a.shape[0]), (0, c - a.shape[1])))


# ---------------------------------------------------------------------------
# Kernel A: fused conv1 (CBA, BN scale pre-folded) + conv2.  One read of x.
# ---------------------------------------------------------------------------
def _split_kernel(x_ref, w1_ref, b1_ref, w2_ref, h_ref, y2_ref, *, approx):
    x = x_ref[...]
    t = jnp.dot(x, w1_ref[...], preferred_element_type=jnp.float32) + b1_ref[...]
    h_ref[...] = _silu(t, approx).astype(h_ref.dtype)
    y2_ref[...] = jnp.dot(x, w2_ref[...],
                          preferred_element_type=jnp.float32).astype(y2_ref.dtype)


def conv1_conv2(xf, w1, b1, w2, *, act_dtype, tile_m, approx):
    P, cin = xf.shape
    mid = w1.shape[1]
    tile = min(tile_m, _round_up(P, 8))
    Pp = _round_up(P, tile)
    if Pp != P:
        xf = jnp.pad(xf, ((0, Pp - P), (0, 0)))
    h, y2 = pl.pallas_call(
        functools.partial(_split_kernel, approx=approx),
        out_shape=(jax.ShapeDtypeStruct((Pp, mid), act_dtype),
                   jax.ShapeDtypeStruct((Pp, mid), act_dtype)),
        grid_spec=pltpu.PrefetchScalarGridSpec(
            num_scalar_prefetch=0,
            grid=(Pp // tile,),
            in_specs=[
                pl.BlockSpec((tile, cin), lambda i: (i, 0)),
                pl.BlockSpec((cin, mid), lambda i: (0, 0)),
                pl.BlockSpec((1, mid), lambda i: (0, 0)),
                pl.BlockSpec((cin, mid), lambda i: (0, 0)),
            ],
            out_specs=[pl.BlockSpec((tile, mid), lambda i: (i, 0)),
                       pl.BlockSpec((tile, mid), lambda i: (i, 0))],
        ),
        compiler_params=pltpu.CompilerParams(
            dimension_semantics=("parallel",),
            vmem_limit_bytes=_VMEM_LIMIT),
    )(xf, w1, b1, w2)
    return h[:P], y2[:P]


# ---------------------------------------------------------------------------
# Kernel B: n chained ResBlocks: h <- h + SiLU(conv3x3(SiLU(h @ w1 + b1)) + b2).
# grid=(N, n): outer axis over images ("parallel"), inner axis over blocks
# ("arbitrary").  The image lives in an f32 VMEM carry across the block axis
# (HBM is touched once per image), the zero-halo copy of the intermediate `a`
# lives in act_dtype VMEM, and the 3x3 conv is nine per-tap accumulating
# matmuls (same MXU FLOPs as a big-K contraction, ~1x activation of VMEM).
# ---------------------------------------------------------------------------
def _resblock_kernel(h_ref, w1_ref, b1_ref, w9_ref, b2_ref, o_ref,
                     carry_ref, ap_ref, *, H, W, C, approx):
    blk = pl.program_id(1)

    @pl.when(blk == 0)
    def _():
        # Fresh image: load the residual carry and zero ONLY the 1-pixel halo
        # (the interior of ap_ref is fully overwritten every block).
        carry_ref[...] = h_ref[...].astype(carry_ref.dtype)
        zrow = jnp.zeros((1, W + 2, C), ap_ref.dtype)
        ap_ref[pl.ds(0, 1), :, :] = zrow
        ap_ref[pl.ds(H + 1, 1), :, :] = zrow
        zcol = jnp.zeros((H + 2, 1, C), ap_ref.dtype)
        ap_ref[:, pl.ds(0, 1), :] = zcol
        ap_ref[:, pl.ds(W + 1, 1), :] = zcol

    h2 = carry_ref[...].reshape(H * W, C)                         # f32 residual
    t = jnp.dot(h2.astype(w1_ref.dtype), w1_ref[...],
                preferred_element_type=jnp.float32) + b1_ref[...]
    a = _silu(t, approx)

    # Interior of the zero-halo copy (SAME 3x3 conv), held in VMEM only.
    ap_ref[pl.ds(1, H), pl.ds(1, W), :] = a.reshape(H, W, C).astype(ap_ref.dtype)

    # 3x3 conv as nine per-tap accumulating matmuls -- no (H*W, 9C) concat.
    # TODO(synk): dx=1,2 windows are sublane-misaligned; use pltpu.roll on the
    # W axis (XLU slot) to make them aligned when C/W get large.
    acc = jnp.zeros((H * W, C), jnp.float32)
    k = 0
    for dy in range(3):
        for dx in range(3):
            tap = ap_ref[pl.ds(dy, H), pl.ds(dx, W), :].reshape(H * W, C)
            acc = acc + jnp.dot(tap, w9_ref[pl.ds(k * C, C), :],
                                preferred_element_type=jnp.float32)
            k += 1

    y = _silu(acc + b2_ref[...], approx) + h2                      # SiLU + shortcut
    carry_ref[...] = y.reshape(H, W, C)

    @pl.when(blk == pl.num_programs(1) - 1)
    def _():
        o_ref[...] = carry_ref[...].astype(o_ref.dtype)


def resblocks(h_img, w1s, b1s, w9s, b2s, *, act_dtype, approx):
    N, H, W, C = h_img.shape
    n = w1s.shape[0]
    kernel = functools.partial(_resblock_kernel, H=H, W=W, C=C, approx=approx)
    return pl.pallas_call(
        kernel,
        out_shape=jax.ShapeDtypeStruct((N, H, W, C), act_dtype),
        grid_spec=pltpu.PrefetchScalarGridSpec(
            num_scalar_prefetch=0,
            grid=(N, n),
            in_specs=[
                pl.BlockSpec((None, H, W, C), lambda i, b: (i, 0, 0, 0)),
                pl.BlockSpec((None, C, C), lambda i, b: (b, 0, 0)),
                pl.BlockSpec((None, 1, C), lambda i, b: (b, 0, 0)),
                pl.BlockSpec((None, 9 * C, C), lambda i, b: (b, 0, 0)),
                pl.BlockSpec((None, 1, C), lambda i, b: (b, 0, 0)),
            ],
            out_specs=pl.BlockSpec((None, H, W, C), lambda i, b: (i, 0, 0, 0)),
            scratch_shapes=[
                pltpu.VMEM((H, W, C), jnp.float32),        # f32 residual carry
                pltpu.VMEM((H + 2, W + 2, C), act_dtype),  # zero-halo activation
            ],
        ),
        compiler_params=pltpu.CompilerParams(
            dimension_semantics=("parallel", "arbitrary"),
            vmem_limit_bytes=_VMEM_LIMIT),
    )(h_img, w1s, b1s, w9s, b2s)


# ---------------------------------------------------------------------------
# Kernel C: fused conv3 + BN(cat)+SiLU (per half) + conv4 (CBA).
# The channel concat never exists in HBM: y1 = h @ w3 is computed in-kernel and
# w4 is split into its y1/y2 halves.  BN scales are pre-folded into the weights.
# ---------------------------------------------------------------------------
def _tail_kernel(h_ref, y2_ref, w3_ref, bc1_ref, bc2_ref,
                 w4a_ref, w4b_ref, b4_ref, o_ref, *, approx):
    t1 = jnp.dot(h_ref[...], w3_ref[...],
                 preferred_element_type=jnp.float32) + bc1_ref[...]
    z1 = _silu(t1, approx)                                        # SiLU(BN(y1))
    t2 = y2_ref[...].astype(jnp.float32) + bc2_ref[...]
    z2 = _silu(t2, approx)                                        # SiLU(BN(y2))
    o = (jnp.dot(z1.astype(w4a_ref.dtype), w4a_ref[...],
                 preferred_element_type=jnp.float32)
         + jnp.dot(z2.astype(w4b_ref.dtype), w4b_ref[...],
                   preferred_element_type=jnp.float32)
         + b4_ref[...])
    o_ref[...] = _silu(o, approx).astype(o_ref.dtype)             # SiLU


def conv3_cat_conv4(h, y2, w3, bc1, bc2, w4a, w4b, b4, *, act_dtype, tile_m,
                    approx):
    P, mid = h.shape
    out_c = w4a.shape[1]
    tile = min(tile_m, _round_up(P, 8))
    Pp = _round_up(P, tile)
    if Pp != P:
        h = jnp.pad(h, ((0, Pp - P), (0, 0)))
        y2 = jnp.pad(y2, ((0, Pp - P), (0, 0)))
    out = pl.pallas_call(
        functools.partial(_tail_kernel, approx=approx),
        out_shape=jax.ShapeDtypeStruct((Pp, out_c), act_dtype),
        grid_spec=pltpu.PrefetchScalarGridSpec(
            num_scalar_prefetch=0,
            grid=(Pp // tile,),
            in_specs=[
                pl.BlockSpec((tile, mid), lambda i: (i, 0)),
                pl.BlockSpec((tile, mid), lambda i: (i, 0)),
                pl.BlockSpec((mid, mid), lambda i: (0, 0)),
                pl.BlockSpec((1, mid), lambda i: (0, 0)),
                pl.BlockSpec((1, mid), lambda i: (0, 0)),
                pl.BlockSpec((mid, out_c), lambda i: (0, 0)),
                pl.BlockSpec((mid, out_c), lambda i: (0, 0)),
                pl.BlockSpec((1, out_c), lambda i: (0, 0)),
            ],
            out_specs=pl.BlockSpec((tile, out_c), lambda i: (i, 0)),
        ),
        compiler_params=pltpu.CompilerParams(
            dimension_semantics=("parallel",),
            vmem_limit_bytes=_VMEM_LIMIT),
    )(h, y2, w3, bc1, bc2, w4a, w4b, b4)
    return out[:P]


# ---------------------------------------------------------------------------
# CSP forward (wrapper, NCHW in / NCHW out).  Channels are zero-padded to a
# multiple of 128 (lane-dense matmuls and stores); padded channels carry exact
# zeros through every stage and are sliced off at the end.
# ---------------------------------------------------------------------------
def csp_forward(x_nchw, params, *, act_dtype=jnp.bfloat16, tile_m=None,
                lane_multiple=128):
    if tile_m is None:
        tile_m = _DEFAULT_TILE_M
    approx = act_dtype != jnp.float32          # approx SiLU only on the bf16 path

    x = jnp.transpose(x_nchw, (0, 2, 3, 1))                     # NCHW -> NHWC
    N, H, W, in_c = x.shape
    P = N * H * W
    mid_c = params['w1'].shape[1]
    out_c = params['w4'].shape[1]
    cd = act_dtype

    in_cp = _round_up(in_c, lane_multiple)
    mid_cp = _round_up(mid_c, lane_multiple)
    out_cp = _round_up(out_c, lane_multiple)

    s1, b1 = _fold_bn(params['bn1'])
    sc, bc = _fold_bn(params['bn_cat'])
    s4, b4 = _fold_bn(params['bn4'])

    # BN scales folded into the adjacent conv weights (trace-time, per-channel),
    # then zero-padded to lane-dense channel counts.
    w1 = _pad_mat(params['w1'] * s1[None, :], in_cp, mid_cp).astype(cd)
    w2 = _pad_mat(params['w2'] * sc[None, mid_c:], in_cp, mid_cp).astype(cd)
    w3 = _pad_mat(params['w3'] * sc[None, :mid_c], mid_cp, mid_cp).astype(cd)
    w4a = _pad_mat(params['w4'][:mid_c] * s4[None, :], mid_cp, out_cp).astype(cd)
    w4b = _pad_mat(params['w4'][mid_c:] * s4[None, :], mid_cp, out_cp).astype(cd)

    b1p = _pad_vec(b1, mid_cp).reshape(1, mid_cp).astype(jnp.float32)
    bc1 = _pad_vec(bc[:mid_c], mid_cp).reshape(1, mid_cp).astype(jnp.float32)
    bc2 = _pad_vec(bc[mid_c:], mid_cp).reshape(1, mid_cp).astype(jnp.float32)
    b4p = _pad_vec(b4, out_cp).reshape(1, out_cp).astype(jnp.float32)

    xf = jnp.pad(x, ((0, 0), (0, 0), (0, 0), (0, in_cp - in_c)))
    xf = xf.astype(cd).reshape(P, in_cp)

    # Fused conv1 (CBA) + conv2: x read once.
    h, y2 = conv1_conv2(xf, w1, b1p, w2, act_dtype=cd, tile_m=tile_m,
                        approx=approx)

    # All ResBlocks chained in one pallas_call (image resident in VMEM).
    if params['res']:
        rw1s, rb1s, rw9s, rb2s = [], [], [], []
        for blk in params['res']:
            rs1, rb1 = _fold_bn(blk['bn1'])
            rs2, rb2 = _fold_bn(blk['bn2'])
            rw1s.append(_pad_mat(blk['w1'] * rs1[None, :], mid_cp, mid_cp))
            wf = blk['w2'] * rs2[None, None, None, :]            # (3,3,mid,mid) HWIO
            wf = jnp.pad(wf, ((0, 0), (0, 0),
                              (0, mid_cp - mid_c), (0, mid_cp - mid_c)))
            rw9s.append(wf.reshape(9 * mid_cp, mid_cp))
            rb1s.append(_pad_vec(rb1, mid_cp).reshape(1, mid_cp))
            rb2s.append(_pad_vec(rb2, mid_cp).reshape(1, mid_cp))
        h_img = resblocks(h.reshape(N, H, W, mid_cp),
                          jnp.stack(rw1s).astype(cd),
                          jnp.stack(rb1s).astype(jnp.float32),
                          jnp.stack(rw9s).astype(cd),
                          jnp.stack(rb2s).astype(jnp.float32),
                          act_dtype=cd, approx=approx)
        h = h_img.reshape(P, mid_cp)

    # Fused conv3 + SiLU(BN(cat)) + conv4 (CBA); the concat is never materialized.
    out = conv3_cat_conv4(h, y2, w3, bc1, bc2, w4a, w4b, b4p,
                          act_dtype=cd, tile_m=tile_m, approx=approx)
    out = out[:, :out_c].reshape(N, H, W, out_c)
    return jnp.transpose(out, (0, 3, 1, 2))


# ---------------------------------------------------------------------------
# Deterministic parameter construction (shapes follow CSP.__init__)
# ---------------------------------------------------------------------------
def init_params(key, in_c, out_c, n=1, expansion=0.5):
    mid_c = int(out_c * expansion)
    keys = iter(jax.random.split(key, 64))

    def conv_w(cin, cout, k=1):
        w = jax.random.normal(next(keys), (k, k, cin, cout), jnp.float32)
        w = w / jnp.sqrt(float(cin * k * k))
        return w[0, 0] if k == 1 else w          # 1x1 -> (cin, cout)

    def bn_p(c):
        return (1.0 + 0.1 * jax.random.normal(next(keys), (c,), jnp.float32),   # gamma
                0.1 * jax.random.normal(next(keys), (c,), jnp.float32),         # beta
                0.1 * jax.random.normal(next(keys), (c,), jnp.float32),         # running_mean
                0.5 + 0.5 * jnp.abs(jax.random.normal(next(keys), (c,), jnp.float32)))  # var

    return {
        'w1': conv_w(in_c, mid_c), 'bn1': bn_p(mid_c),          # conv1 = CBA
        'w2': conv_w(in_c, mid_c),                              # conv2 (no bias)
        'w3': conv_w(mid_c, mid_c),                             # conv3 (no bias)
        'bn_cat': bn_p(2 * mid_c),                              # self.bn
        'w4': conv_w(2 * mid_c, out_c), 'bn4': bn_p(out_c),     # conv4 = CBA
        'res': [{'w1': conv_w(mid_c, mid_c), 'bn1': bn_p(mid_c),
                 'w2': conv_w(mid_c, mid_c, 3), 'bn2': bn_p(mid_c)}
                for _ in range(n)],
    }


# ---------------------------------------------------------------------------
# Pure-JAX reference (for correctness check only)
# ---------------------------------------------------------------------------
def csp_reference(x_nchw, params):
    silu = lambda v: v * jax.nn.sigmoid(v)

    def bn(v, p):
        g, b, m, var = p
        return (v - m) / jnp.sqrt(var + _EPS) * g + b

    c1 = lambda v, w: jnp.einsum('nhwc,co->nhwo', v, w)
    c3 = lambda v, w: jax.lax.conv_general_dilated(
        v, w, (1, 1), 'SAME', dimension_numbers=('NHWC', 'HWIO', 'NHWC'))

    x = jnp.transpose(x_nchw, (0, 2, 3, 1)).astype(jnp.float32)
    h = silu(bn(c1(x, params['w1']), params['bn1']))
    for blk in params['res']:
        a = silu(bn(c1(h, blk['w1']), blk['bn1']))
        h = h + silu(bn(c3(a, blk['w2']), blk['bn2']))
    y1 = c1(h, params['w3'])
    y2 = c1(x, params['w2'])
    cat = jnp.concatenate([y1, y2], axis=-1)
    out = silu(bn(c1(silu(bn(cat, params['bn_cat'])), params['w4']), params['bn4']))
    return jnp.transpose(out, (0, 3, 1, 2))


if __name__ == "__main__":
    root = jax.random.PRNGKey(0)
    kx, kp = jax.random.split(root)

    in_c, out_c, n, expansion = 4, 8, 2, 0.5
    N, H, W = 2, 16, 16

    x = jax.random.normal(kx, (N, in_c, H, W), jnp.float32)
    params = init_params(kp, in_c, out_c, n, expansion)
    ref = csp_reference(x, params)

    # f32 path: strict correctness check against the pure-JAX reference.
    out_f32 = jax.jit(functools.partial(csp_forward, params=params,
                                        act_dtype=jnp.float32))(x)
    out_f32 = jax.block_until_ready(out_f32)
    assert out_f32.shape == (N, out_c, H, W), out_f32.shape
    err = float(jnp.max(jnp.abs(out_f32 - ref)))
    assert err < 2e-2, f"f32 max abs error {err}"

    # bf16 path (production default: bf16 storage + bf16 MXU, f32 accumulation,
    # f32 residual carry inside the ResBlock chain).
    out_bf16 = jax.jit(functools.partial(csp_forward, params=params,
                                         act_dtype=jnp.bfloat16))(x)
    out_bf16 = jax.block_until_ready(out_bf16)
    rel = float(jnp.max(jnp.abs(out_bf16 - ref)) / (jnp.max(jnp.abs(ref)) + 1e-6))
    assert rel < 0.2, f"bf16 relative error {rel}"

    print("KERNEL_OK")
</pallas_src>

<mosaic_0001>
module attributes {stable_mosaic.version = 11 : i64} {
  func.func @_split_kernel(%arg0: i32, %arg1: memref<512x128xf32, #tpu.memory_space<vmem>>, %arg2: memref<128x128xf32, #tpu.memory_space<vmem>>, %arg3: memref<1x128xf32, #tpu.memory_space<vmem>>, %arg4: memref<128x128xf32, #tpu.memory_space<vmem>>, %arg5: memref<512x128xf32, #tpu.memory_space<vmem>>, %arg6: memref<512x128xf32, #tpu.memory_space<vmem>>) attributes {dimension_semantics = [#tpu.dimension_semantics<parallel>], iteration_bounds = array<i64: 1>, scalar_prefetch = 0 : i64, scratch_operands = 0 : i64, tpu.core_type = #tpu.core_type<tc>, window_params = [{transform_indices = @transform_0, window_bounds = array<i64: 512, 128>}, {pipeline_mode = #tpu.pipeline_mode<synchronous>, transform_indices = @transform_1, window_bounds = array<i64: 128, 128>}, {pipeline_mode = #tpu.pipeline_mode<synchronous>, transform_indices = @transform_2, window_bounds = array<i64: 1, 128>}, {pipeline_mode = #tpu.pipeline_mode<synchronous>, transform_indices = @transform_3, window_bounds = array<i64: 128, 128>}, {transform_indices = @transform_4, window_bounds = array<i64: 512, 128>}, {transform_indices = @transform_5, window_bounds = array<i64: 512, 128>}]} {
    %c0 = arith.constant 0 : index
    %c0_0 = arith.constant 0 : index
    %0 = vector.load %arg1[%c0, %c0_0] : memref<512x128xf32, #tpu.memory_space<vmem>>, vector<512x128xf32>
    %c0_1 = arith.constant 0 : index
    %c0_2 = arith.constant 0 : index
    %1 = vector.load %arg2[%c0_1, %c0_2] : memref<128x128xf32, #tpu.memory_space<vmem>>, vector<128x128xf32>
    %cst = arith.constant dense<0.000000e+00> : vector<512x128xf32>
    %2 = tpu.matmul %0, %1, %cst {dimension_numbers = #tpu.dot_dimension_numbers<[1], [0], [0], [1], [0, 0, 1, 1], [], []>} : vector<512x128xf32>, vector<128x128xf32>, vector<512x128xf32> -> vector<512x128xf32>
    %c0_3 = arith.constant 0 : index
    %c0_4 = arith.constant 0 : index
    %3 = vector.load %arg3[%c0_3, %c0_4] : memref<1x128xf32, #tpu.memory_space<vmem>>, vector<1x128xf32>
    %4 = vector.broadcast %3 : vector<1x128xf32> to vector<512x128xf32>
    %5 = arith.addf %2, %4 : vector<512x128xf32>
    %cst_5 = arith.constant 0.000000e+00 : f32
    %6 = vector.broadcast %cst_5 : f32 to vector<512x128xf32>
    %7 = arith.subf %6, %5 : vector<512x128xf32>
    %8 = math.exp %7 : vector<512x128xf32>
    %cst_6 = arith.constant 1.000000e+00 : f32
    %9 = vector.broadcast %cst_6 : f32 to vector<512x128xf32>
    %10 = arith.addf %9, %8 : vector<512x128xf32>
    %11 = tpu.reciprocal %10 : vector<512x128xf32> -> vector<512x128xf32>
    %12 = arith.mulf %5, %11 : vector<512x128xf32>
    %c0_7 = arith.constant 0 : index
    %c0_8 = arith.constant 0 : index
    %13 = vector.load %arg5[%c0_7, %c0_8] : memref<512x128xf32, #tpu.memory_space<vmem>>, vector<512x128xf32>
    tpu.vector_store %arg5[%c0_7, %c0_8], %12 {strides = array<i32>} : memref<512x128xf32, #tpu.memory_space<vmem>>, vector<512x128xf32>,
    %c0_9 = arith.constant 0 : index
    %c0_10 = arith.constant 0 : index
    %14 = vector.load %arg4[%c0_9, %c0_10] : memref<128x128xf32, #tpu.memory_space<vmem>>, vector<128x128xf32>
    %cst_11 = arith.constant dense<0.000000e+00> : vector<512x128xf32>
    %15 = tpu.matmul %0, %14, %cst_11 {dimension_numbers = #tpu.dot_dimension_numbers<[1], [0], [0], [1], [0, 0, 1, 1], [], []>} : vector<512x128xf32>, vector<128x128xf32>, vector<512x128xf32> -> vector<512x128xf32>
    %c0_12 = arith.constant 0 : index
    %c0_13 = arith.constant 0 : index
    %16 = vector.load %arg6[%c0_12, %c0_13] : memref<512x128xf32, #tpu.memory_space<vmem>>, vector<512x128xf32>
    tpu.vector_store %arg6[%c0_12, %c0_13], %15 {strides = array<i32>} : memref<512x128xf32, #tpu.memory_space<vmem>>, vector<512x128xf32>,
    return
  }
  func.func @transform_0(%arg0: i32) -> (i32, i32) {
    %c0_i32 = arith.constant 0 : i32
    %c0_i32_0 = arith.constant 0 : i32
    return %arg0, %c0_i32 : i32, i32
  }
  func.func @transform_1(%arg0: i32) -> (i32, i32) {
    %c0_i32 = arith.constant 0 : i32
    %c0_i32_0 = arith.constant 0 : i32
    %c0_i32_1 = arith.constant 0 : i32
    return %c0_i32, %c0_i32_0 : i32, i32
  }
  func.func @transform_2(%arg0: i32) -> (i32, i32) {
    %c0_i32 = arith.constant 0 : i32
    %c0_i32_0 = arith.constant 0 : i32
    %c0_i32_1 = arith.constant 0 : i32
    return %c0_i32, %c0_i32_0 : i32, i32
  }
  func.func @transform_3(%arg0: i32) -> (i32, i32) {
    %c0_i32 = arith.constant 0 : i32
    %c0_i32_0 = arith.constant 0 : i32
    %c0_i32_1 = arith.constant 0 : i32
    return %c0_i32, %c0_i32_0 : i32, i32
  }
  func.func @transform_4(%arg0: i32) -> (i32, i32) {
    %c0_i32 = arith.constant 0 : i32
    %c0_i32_0 = arith.constant 0 : i32
    return %arg0, %c0_i32 : i32, i32
  }
  func.func @transform_5(%arg0: i32) -> (i32, i32) {
    %c0_i32 = arith.constant 0 : i32
    %c0_i32_0 = arith.constant 0 : i32
    return %arg0, %c0_i32 : i32, i32
  }
}

module attributes {stable_mosaic.version = 11 : i64} {
  func.func @_resblock_kernel(%arg0: i32, %arg1: i32, %arg2: memref<1x16x16x128xf32, #tpu.memory_space<vmem>>, %arg3: memref<1x128x128xf32, #tpu.memory_space<vmem>>, %arg4: memref<1x1x128xf32, #tpu.memory_space<vmem>>, %arg5: memref<1x1152x128xf32, #tpu.memory_space<vmem>>, %arg6: memref<1x1x128xf32, #tpu.memory_space<vmem>>, %arg7: memref<1x16x16x128xf32, #tpu.memory_space<vmem>>, %arg8: memref<16x16x128xf32, #tpu.memory_space<vmem>>, %arg9: memref<18x18x128xf32, #tpu.memory_space<vmem>>) attributes {dimension_semantics = [#tpu.dimension_semantics<parallel>, #tpu.dimension_semantics<arbitrary>], iteration_bounds = array<i64: 2, 2>, scalar_prefetch = 0 : i64, scratch_operands = 2 : i64, tpu.core_type = #tpu.core_type<tc>, window_params = [{transform_indices = @transform_0, window_bounds = array<i64: 1, 16, 16, 128>}, {transform_indices = @transform_1, window_bounds = array<i64: 1, 128, 128>}, {transform_indices = @transform_2, window_bounds = array<i64: 1, 1, 128>}, {transform_indices = @transform_3, window_bounds = array<i64: 1, 1152, 128>}, {transform_indices = @transform_4, window_bounds = array<i64: 1, 1, 128>}, {transform_indices = @transform_5, window_bounds = array<i64: 1, 16, 16, 128>}]} {
    %c0_i32 = arith.constant 0 : i32
    %0 = arith.cmpi eq, %arg1, %c0_i32 : i32
    %1 = arith.extui %0 : i1 to i32
    %c0_i32_0 = arith.constant 0 : i32
    %2 = arith.cmpi ne, %1, %c0_i32_0 : i32
    scf.if %2 {
      %c0_77 = arith.constant 0 : index
      %c0_78 = arith.constant 0 : index
      %c0_79 = arith.constant 0 : index
      %c0_80 = arith.constant 0 : index
      %93 = vector.load %arg2[%c0_77, %c0_78, %c0_79, %c0_80] : memref<1x16x16x128xf32, #tpu.memory_space<vmem>>, vector<1x16x16x128xf32>
      %94 = vector.shape_cast %93 : vector<1x16x16x128xf32> to vector<16x16x128xf32>
      %c0_81 = arith.constant 0 : index
      %c0_82 = arith.constant 0 : index
      %c0_83 = arith.constant 0 : index
      %95 = vector.load %arg8[%c0_81, %c0_82, %c0_83] : memref<16x16x128xf32, #tpu.memory_space<vmem>>, vector<16x16x128xf32>
      tpu.vector_store %arg8[%c0_81, %c0_82, %c0_83], %94 {strides = array<i32>} : memref<16x16x128xf32, #tpu.memory_space<vmem>>, vector<16x16x128xf32>,
      %cst_84 = arith.constant 0.000000e+00 : f32
      %96 = vector.broadcast %cst_84 : f32 to vector<1x18x128xf32>
      %c0_85 = arith.constant 0 : index
      %c0_86 = arith.constant 0 : index
      %c0_87 = arith.constant 0 : index
      %97 = vector.load %arg9[%c0_85, %c0_86, %c0_87] : memref<18x18x128xf32, #tpu.memory_space<vmem>>, vector<1x18x128xf32>
      tpu.vector_store %arg9[%c0_85, %c0_86, %c0_87], %96 {strides = array<i32>} : memref<18x18x128xf32, #tpu.memory_space<vmem>>, vector<1x18x128xf32>,
      %c17 = arith.constant 17 : index
      %c0_88 = arith.constant 0 : index
      %c0_89 = arith.constant 0 : index
      %98 = vector.load %arg9[%c17, %c0_88, %c0_89] : memref<18x18x128xf32, #tpu.memory_space<vmem>>, vector<1x18x128xf32>
      tpu.vector_store %arg9[%c17, %c0_88, %c0_89], %96 {strides = array<i32>} : memref<18x18x128xf32, #tpu.memory_space<vmem>>, vector<1x18x128xf32>,
      %cst_90 = arith.constant 0.000000e+00 : f32
      %99 = vector.broadcast %cst_90 : f32 to vector<18x1x128xf32>
      %c0_91 = arith.constant 0 : index
      %c0_92 = arith.constant 0 : index
      %c0_93 = arith.constant 0 : index
      %100 = vector.load %arg9[%c0_91, %c0_92, %c0_93] : memref<18x18x128xf32, #tpu.memory_space<vmem>>, vector<18x1x128xf32>
      tpu.vector_store %arg9[%c0_91, %c0_92, %c0_93], %99 {strides = array<i32>} : memref<18x18x128xf32, #tpu.memory_space<vmem>>, vector<18x1x128xf32>,
      %c0_94 = arith.constant 0 : index
      %c17_95 = arith.constant 17 : index
      %c0_96 = arith.constant 0 : index
      %101 = vector.load %arg9[%c0_94, %c17_95, %c0_96] : memref<18x18x128xf32, #tpu.memory_space<vmem>>, vector<18x1x128xf32>
      tpu.vector_store %arg9[%c0_94, %c17_95, %c0_96], %99 {strides = array<i32>} : memref<18x18x128xf32, #tpu.memory_space<vmem>>, vector<18x1x128xf32>,
    } else {
    }
    %c0 = arith.constant 0 : index
    %c0_1 = arith.constant 0 : index
    %c0_2 = arith.constant 0 : index
    %3 = vector.load %arg8[%c0, %c0_1, %c0_2] : memref<16x16x128xf32, #tpu.memory_space<vmem>>, vector<16x16x128xf32>
    %4 = vector.shape_cast %3 : vector<16x16x128xf32> to vector<256x128xf32>
    %c0_3 = arith.constant 0 : index
    %c0_4 = arith.constant 0 : index
    %c0_5 = arith.constant 0 : index
    %5 = vector.load %arg3[%c0_3, %c0_4, %c0_5] : memref<1x128x128xf32, #tpu.memory_space<vmem>>, vector<1x128x128xf32>
    %6 = vector.shape_cast %5 : vector<1x128x128xf32> to vector<128x128xf32>
    %cst = arith.constant dense<0.000000e+00> : vector<256x128xf32>
    %7 = tpu.matmul %4, %6, %cst {dimension_numbers = #tpu.dot_dimension_numbers<[1], [0], [0], [1], [0, 0, 1, 1], [], []>} : vector<256x128xf32>, vector<128x128xf32>, vector<256x128xf32> -> vector<256x128xf32>
    %c0_6 = arith.constant 0 : index
    %c0_7 = arith.constant 0 : index
    %c0_8 = arith.constant 0 : index
    %8 = vector.load %arg4[%c0_6, %c0_7, %c0_8] : memref<1x1x128xf32, #tpu.memory_space<vmem>>, vector<1x1x128xf32>
    %9 = vector.shape_cast %8 : vector<1x1x128xf32> to vector<1x128xf32>
    %10 = vector.broadcast %9 : vector<1x128xf32> to vector<256x128xf32>
    %11 = arith.addf %7, %10 : vector<256x128xf32>
    %cst_9 = arith.constant 0.000000e+00 : f32
    %12 = vector.broadcast %cst_9 : f32 to vector<256x128xf32>
    %13 = arith.subf %12, %11 : vector<256x128xf32>
    %14 = math.exp %13 : vector<256x128xf32>
    %cst_10 = arith.constant 1.000000e+00 : f32
    %15 = vector.broadcast %cst_10 : f32 to vector<256x128xf32>
    %16 = arith.addf %15, %14 : vector<256x128xf32>
    %17 = tpu.reciprocal %16 : vector<256x128xf32> -> vector<256x128xf32>
    %18 = arith.mulf %11, %17 : vector<256x128xf32>
    %19 = vector.shape_cast %18 : vector<256x128xf32> to vector<16x16x128xf32>
    %c1 = arith.constant 1 : index
    %c1_11 = arith.constant 1 : index
    %c0_12 = arith.constant 0 : index
    %20 = vector.load %arg9[%c1, %c1_11, %c0_12] : memref<18x18x128xf32, #tpu.memory_space<vmem>>, vector<16x16x128xf32>
    tpu.vector_store %arg9[%c1, %c1_11, %c0_12], %19 {strides = array<i32>} : memref<18x18x128xf32, #tpu.memory_space<vmem>>, vector<16x16x128xf32>,
    %cst_13 = arith.constant 0.000000e+00 : f32
    %21 = vector.broadcast %cst_13 : f32 to vector<256x128xf32>
    %c0_14 = arith.constant 0 : index
    %c0_15 = arith.constant 0 : index
    %c0_16 = arith.constant 0 : index
    %22 = vector.load %arg9[%c0_14, %c0_15, %c0_16] : memref<18x18x128xf32, #tpu.memory_space<vmem>>, vector<16x16x128xf32>
    %23 = vector.shape_cast %22 : vector<16x16x128xf32> to vector<256x128xf32>
    %c0_17 = arith.constant 0 : index
    %c0_18 = arith.constant 0 : index
    %c0_19 = arith.constant 0 : index
    %24 = vector.load %arg5[%c0_17, %c0_18, %c0_19] : memref<1x1152x128xf32, #tpu.memory_space<vmem>>, vector<1x128x128xf32>
    %25 = vector.shape_cast %24 : vector<1x128x128xf32> to vector<128x128xf32>
    %cst_20 = arith.constant dense<0.000000e+00> : vector<256x128xf32>
    %26 = tpu.matmul %23, %25, %cst_20 {dimension_numbers = #tpu.dot_dimension_numbers<[1], [0], [0], [1], [0, 0, 1, 1], [], []>} : vector<256x128xf32>, vector<128x128xf32>, vector<256x128xf32> -> vector<256x128xf32>
    %27 = arith.addf %21, %26 : vector<256x128xf32>
    %c0_21 = arith.constant 0 : index
    %c1_22 = arith.constant 1 : index
    %c0_23 = arith.constant 0 : index
    %28 = vector.load %arg9[%c0_21, %c1_22, %c0_23] : memref<18x18x128xf32, #tpu.memory_space<vmem>>, vector<16x16x128xf32>
    %29 = vector.shape_cast %28 : vector<16x16x128xf32> to vector<256x128xf32>
    %c0_24 = arith.constant 0 : index
    %c128 = arith.constant 128 : index
    %c0_25 = arith.constant 0 : index
    %30 = vector.load %arg5[%c0_24, %c128, %c0_25] : memref<1x1152x128xf32, #tpu.memory_space<vmem>>, vector<1x128x128xf32>
    %31 = vector.shape_cast %30 : vector<1x128x128xf32> to vector<128x128xf32>
    %cst_26 = arith.constant dense<0.000000e+00> : vector<256x128xf32>
    %32 = tpu.matmul %29, %31, %cst_26 {dimension_numbers = #tpu.dot_dimension_numbers<[1], [0], [0], [1], [0, 0, 1, 1], [], []>} : vector<256x128xf32>, vector<128x128xf32>, vector<256x128xf32> -> vector<256x128xf32>
    %33 = arith.addf %27, %32 : vector<256x128xf32>
    %c0_27 = arith.constant 0 : index
    %c2 = arith.constant 2 : index
    %c0_28 = arith.constant 0 : index
    %34 = vector.load %arg9[%c0_27, %c2, %c0_28] : memref<18x18x128xf32, #tpu.memory_space<vmem>>, vector<16x16x128xf32>
    %35 = vector.shape_cast %34 : vector<16x16x128xf32> to vector<256x128xf32>
    %c0_29 = arith.constant 0 : index
    %c256 = arith.constant 256 : index
    %c0_30 = arith.constant 0 : index
    %36 = vector.load %arg5[%c0_29, %c256, %c0_30] : memref<1x1152x128xf32, #tpu.memory_space<vmem>>, vector<1x128x128xf32>
    %37 = vector.shape_cast %36 : vector<1x128x128xf32> to vector<128x128xf32>
    %cst_31 = arith.constant dense<0.000000e+00> : vector<256x128xf32>
    %38 = tpu.matmul %35, %37, %cst_31 {dimension_numbers = #tpu.dot_dimension_numbers<[1], [0], [0], [1], [0, 0, 1, 1], [], []>} : vector<256x128xf32>, vector<128x128xf32>, vector<256x128xf32> -> vector<256x128xf32>
    %39 = arith.addf %33, %38 : vector<256x128xf32>
    %c1_32 = arith.constant 1 : index
    %c0_33 = arith.constant 0 : index
    %c0_34 = arith.constant 0 : index
    %40 = vector.load %arg9[%c1_32, %c0_33, %c0_34] : memref<18x18x128xf32, #tpu.memory_space<vmem>>, vector<16x16x128xf32>
    %41 = vector.shape_cast %40 : vector<16x16x128xf32> to vector<256x128xf32>
    %c0_35 = arith.constant 0 : index
    %c384 = arith.constant 384 : index
    %c0_36 = arith.constant 0 : index
    %42 = vector.load %arg5[%c0_35, %c384, %c0_36] : memref<1x1152x128xf32, #tpu.memory_space<vmem>>, vector<1x128x128xf32>
    %43 = vector.shape_cast %42 : vector<1x128x128xf32> to vector<128x128xf32>
    %cst_37 = arith.constant dense<0.000000e+00> : vector<256x128xf32>
    %44 = tpu.matmul %41, %43, %cst_37 {dimension_numbers = #tpu.dot_dimension_numbers<[1], [0], [0], [1], [0, 0, 1, 1], [], []>} : vector<256x128xf32>, vector<128x128xf32>, vector<256x128xf32> -> vector<256x128xf32>
    %45 = arith.addf %39, %44 : vector<256x128xf32>
    %c1_38 = arith.constant 1 : index
    %c1_39 = arith.constant 1 : index
    %c0_40 = arith.constant 0 : index
    %46 = vector.load %arg9[%c1_38, %c1_39, %c0_40] : memref<18x18x128xf32, #tpu.memory_space<vmem>>, vector<16x16x128xf32>
    %47 = vector.shape_cast %46 : vector<16x16x128xf32> to vector<256x128xf32>
    %c0_41 = arith.constant 0 : index
    %c512 = arith.constant 512 : index
    %c0_42 = arith.constant 0 : index
    %48 = vector.load %arg5[%c0_41, %c512, %c0_42] : memref<1x1152x128xf32, #tpu.memory_space<vmem>>, vector<1x128x128xf32>
    %49 = vector.shape_cast %48 : vector<1x128x128xf32> to vector<128x128xf32>
    %cst_43 = arith.constant dense<0.000000e+00> : vector<256x128xf32>
    %50 = tpu.matmul %47, %49, %cst_43 {dimension_numbers = #tpu.dot_dimension_numbers<[1], [0], [0], [1], [0, 0, 1, 1], [], []>} : vector<256x128xf32>, vector<128x128xf32>, vector<256x128xf32> -> vector<256x128xf32>
    %51 = arith.addf %45, %50 : vector<256x128xf32>
    %c1_44 = arith.constant 1 : index
    %c2_45 = arith.constant 2 : index
    %c0_46 = arith.constant 0 : index
    %52 = vector.load %arg9[%c1_44, %c2_45, %c0_46] : memref<18x18x128xf32, #tpu.memory_space<vmem>>, vector<16x16x128xf32>
    %53 = vector.shape_cast %52 : vector<16x16x128xf32> to vector<256x128xf32>
    %c0_47 = arith.constant 0 : index
    %c640 = arith.constant 640 : index
    %c0_48 = arith.constant 0 : index
    %54 = vector.load %arg5[%c0_47, %c640, %c0_48] : memref<1x1152x128xf32, #tpu.memory_space<vmem>>, vector<1x128x128xf32>
    %55 = vector.shape_cast %54 : vector<1x128x128xf32> to vector<128x128xf32>
    %cst_49 = arith.constant dense<0.000000e+00> : vector<256x128xf32>
    %56 = tpu.matmul %53, %55, %cst_49 {dimension_numbers = #tpu.dot_dimension_numbers<[1], [0], [0], [1], [0, 0, 1, 1], [], []>} : vector<256x128xf32>, vector<128x128xf32>, vector<256x128xf32> -> vector<256x128xf32>
    %57 = arith.addf %51, %56 : vector<256x128xf32>
    %c2_50 = arith.constant 2 : index
    %c0_51 = arith.constant 0 : index
    %c0_52 = arith.constant 0 : index
    %58 = vector.load %arg9[%c2_50, %c0_51, %c0_52] : memref<18x18x128xf32, #tpu.memory_space<vmem>>, vector<16x16x128xf32>
    %59 = vector.shape_cast %58 : vector<16x16x128xf32> to vector<256x128xf32>
    %c0_53 = arith.constant 0 : index
    %c768 = arith.constant 768 : index
    %c0_54 = arith.constant 0 : index
    %60 = vector.load %arg5[%c0_53, %c768, %c0_54] : memref<1x1152x128xf32, #tpu.memory_space<vmem>>, vector<1x128x128xf32>
    %61 = vector.shape_cast %60 : vector<1x128x128xf32> to vector<128x128xf32>
    %cst_55 = arith.constant dense<0.000000e+00> : vector<256x128xf32>
    %62 = tpu.matmul %59, %61, %cst_55 {dimension_numbers = #tpu.dot_dimension_numbers<[1], [0], [0], [1], [0, 0, 1, 1], [], []>} : vector<256x128xf32>, vector<128x128xf32>, vector<256x128xf32> -> vector<256x128xf32>
    %63 = arith.addf %57, %62 : vector<256x128xf32>
    %c2_56 = arith.constant 2 : index
    %c1_57 = arith.constant 1 : index
    %c0_58 = arith.constant 0 : index
    %64 = vector.load %arg9[%c2_56, %c1_57, %c0_58] : memref<18x18x128xf32, #tpu.memory_space<vmem>>, vector<16x16x128xf32>
    %65 = vector.shape_cast %64 : vector<16x16x128xf32> to vector<256x128xf32>
    %c0_59 = arith.constant 0 : index
    %c896 = arith.constant 896 : index
    %c0_60 = arith.constant 0 : index
    %66 = vector.load %arg5[%c0_59, %c896, %c0_60] : memref<1x1152x128xf32, #tpu.memory_space<vmem>>, vector<1x128x128xf32>
    %67 = vector.shape_cast %66 : vector<1x128x128xf32> to vector<128x128xf32>
    %cst_61 = arith.constant dense<0.000000e+00> : vector<256x128xf32>
    %68 = tpu.matmul %65, %67, %cst_61 {dimension_numbers = #tpu.dot_dimension_numbers<[1], [0], [0], [1], [0, 0, 1, 1], [], []>} : vector<256x128xf32>, vector<128x128xf32>, vector<256x128xf32> -> vector<256x128xf32>
    %69 = arith.addf %63, %68 : vector<256x128xf32>
    %c2_62 = arith.constant 2 : index
    %c2_63 = arith.constant 2 : index
    %c0_64 = arith.constant 0 : index
    %70 = vector.load %arg9[%c2_62, %c2_63, %c0_64] : memref<18x18x128xf32, #tpu.memory_space<vmem>>, vector<16x16x128xf32>
    %71 = vector.shape_cast %70 : vector<16x16x128xf32> to vector<256x128xf32>
    %c0_65 = arith.constant 0 : index
    %c1024 = arith.constant 1024 : index
    %c0_66 = arith.constant 0 : index
    %72 = vector.load %arg5[%c0_65, %c1024, %c0_66] : memref<1x1152x128xf32, #tpu.memory_space<vmem>>, vector<1x128x128xf32>
    %73 = vector.shape_cast %72 : vector<1x128x128xf32> to vector<128x128xf32>
    %cst_67 = arith.constant dense<0.000000e+00> : vector<256x128xf32>
    %74 = tpu.matmul %71, %73, %cst_67 {dimension_numbers = #tpu.dot_dimension_numbers<[1], [0], [0], [1], [0, 0, 1, 1], [], []>} : vector<256x128xf32>, vector<128x128xf32>, vector<256x128xf32> -> vector<256x128xf32>
    %75 = arith.addf %69, %74 : vector<256x128xf32>
    %c0_68 = arith.constant 0 : index
    %c0_69 = arith.constant 0 : index
    %c0_70 = arith.constant 0 : index
    %76 = vector.load %arg6[%c0_68, %c0_69, %c0_70] : memref<1x1x128xf32, #tpu.memory_space<vmem>>, vector<1x1x128xf32>
    %77 = vector.shape_cast %76 : vector<1x1x128xf32> to vector<1x128xf32>
    %78 = vector.broadcast %77 : vector<1x128xf32> to vector<256x128xf32>
    %79 = arith.addf %75, %78 : vector<256x128xf32>
    %cst_71 = arith.constant 0.000000e+00 : f32
    %80 = vector.broadcast %cst_71 : f32 to vector<256x128xf32>
    %81 = arith.subf %80, %79 : vector<256x128xf32>
    %82 = math.exp %81 : vector<256x128xf32>
    %cst_72 = arith.constant 1.000000e+00 : f32
    %83 = vector.broadcast %cst_72 : f32 to vector<256x128xf32>
    %84 = arith.addf %83, %82 : vector<256x128xf32>
    %85 = tpu.reciprocal %84 : vector<256x128xf32> -> vector<256x128xf32>
    %86 = arith.mulf %79, %85 : vector<256x128xf32>
    %87 = arith.addf %86, %4 : vector<256x128xf32>
    %88 = vector.shape_cast %87 : vector<256x128xf32> to vector<16x16x128xf32>
    %c0_73 = arith.constant 0 : index
    %c0_74 = arith.constant 0 : index
    %c0_75 = arith.constant 0 : index
    %89 = vector.load %arg8[%c0_73, %c0_74, %c0_75] : memref<16x16x128xf32, #tpu.memory_space<vmem>>, vector<16x16x128xf32>
    tpu.vector_store %arg8[%c0_73, %c0_74, %c0_75], %88 {strides = array<i32>} : memref<16x16x128xf32, #tpu.memory_space<vmem>>, vector<16x16x128xf32>,
    %c1_i32 = arith.constant 1 : i32
    %90 = arith.cmpi eq, %arg1, %c1_i32 : i32
    %91 = arith.extui %90 : i1 to i32
    %c0_i32_76 = arith.constant 0 : i32
    %92 = arith.cmpi ne, %91, %c0_i32_76 : i32
    scf.if %92 {
      %c0_77 = arith.constant 0 : index
      %c0_78 = arith.constant 0 : index
      %c0_79 = arith.constant 0 : index
      %93 = vector.load %arg8[%c0_77, %c0_78, %c0_79] : memref<16x16x128xf32, #tpu.memory_space<vmem>>, vector<16x16x128xf32>
      %c0_80 = arith.constant 0 : index
      %c0_81 = arith.constant 0 : index
      %c0_82 = arith.constant 0 : index
      %c0_83 = arith.constant 0 : index
      %94 = vector.load %arg7[%c0_80, %c0_81, %c0_82, %c0_83] : memref<1x16x16x128xf32, #tpu.memory_space<vmem>>, vector<1x16x16x128xf32>
      %95 = vector.shape_cast %94 : vector<1x16x16x128xf32> to vector<16x16x128xf32>
      %96 = vector.shape_cast %93 : vector<16x16x128xf32> to vector<1x16x16x128xf32>
      tpu.vector_store %arg7[%c0_80, %c0_81, %c0_82, %c0_83], %96 {strides = array<i32>} : memref<1x16x16x128xf32, #tpu.memory_space<vmem>>, vector<1x16x16x128xf32>,
    } else {
    }
    return
  }
  func.func @transform_0(%arg0: i32, %arg1: i32) -> (i32, i32, i32, i32) {
    %c0_i32 = arith.constant 0 : i32
    %c0_i32_0 = arith.constant 0 : i32
    %c0_i32_1 = arith.constant 0 : i32
    %c0_i32_2 = arith.constant 0 : i32
    return %arg0, %c0_i32, %c0_i32_0, %c0_i32_1 : i32, i32, i32, i32
  }
  func.func @transform_1(%arg0: i32, %arg1: i32) -> (i32, i32, i32) {
    %c0_i32 = arith.constant 0 : i32
    %c0_i32_0 = arith.constant 0 : i32
    %c0_i32_1 = arith.constant 0 : i32
    return %arg1, %c0_i32, %c0_i32_0 : i32, i32, i32
  }
  func.func @transform_2(%arg0: i32, %arg1: i32) -> (i32, i32, i32) {
    %c0_i32 = arith.constant 0 : i32
    %c0_i32_0 = arith.constant 0 : i32
    %c0_i32_1 = arith.constant 0 : i32
    return %arg1, %c0_i32, %c0_i32_0 : i32, i32, i32
  }
  func.func @transform_3(%arg0: i32, %arg1: i32) -> (i32, i32, i32) {
    %c0_i32 = arith.constant 0 : i32
    %c0_i32_0 = arith.constant 0 : i32
    %c0_i32_1 = arith.constant 0 : i32
    return %arg1, %c0_i32, %c0_i32_0 : i32, i32, i32
  }
  func.func @transform_4(%arg0: i32, %arg1: i32) -> (i32, i32, i32) {
    %c0_i32 = arith.constant 0 : i32
    %c0_i32_0 = arith.constant 0 : i32
    %c0_i32_1 = arith.constant 0 : i32
    return %arg1, %c0_i32, %c0_i32_0 : i32, i32, i32
  }
  func.func @transform_5(%arg0: i32, %arg1: i32) -> (i32, i32, i32, i32) {
    %c0_i32 = arith.constant 0 : i32
    %c0_i32_0 = arith.constant 0 : i32
    %c0_i32_1 = arith.constant 0 : i32
    %c0_i32_2 = arith.constant 0 : i32
    return %arg0, %c0_i32, %c0_i32_0, %c0_i32_1 : i32, i32, i32, i32
  }
}

module attributes {stable_mosaic.version = 11 : i64} {
  func.func @_tail_kernel(%arg0: i32, %arg1: memref<512x128xf32, #tpu.memory_space<vmem>>, %arg2: memref<512x128xf32, #tpu.memory_space<vmem>>, %arg3: memref<128x128xf32, #tpu.memory_space<vmem>>, %arg4: memref<1x128xf32, #tpu.memory_space<vmem>>, %arg5: memref<1x128xf32, #tpu.memory_space<vmem>>, %arg6: memref<128x128xf32, #tpu.memory_space<vmem>>, %arg7: memref<128x128xf32, #tpu.memory_space<vmem>>, %arg8: memref<1x128xf32, #tpu.memory_space<vmem>>, %arg9: memref<512x128xf32, #tpu.memory_space<vmem>>) attributes {dimension_semantics = [#tpu.dimension_semantics<parallel>], iteration_bounds = array<i64: 1>, scalar_prefetch = 0 : i64, scratch_operands = 0 : i64, tpu.core_type = #tpu.core_type<tc>, window_params = [{transform_indices = @transform_0, window_bounds = array<i64: 512, 128>}, {transform_indices = @transform_1, window_bounds = array<i64: 512, 128>}, {pipeline_mode = #tpu.pipeline_mode<synchronous>, transform_indices = @transform_2, window_bounds = array<i64: 128, 128>}, {pipeline_mode = #tpu.pipeline_mode<synchronous>, transform_indices = @transform_3, window_bounds = array<i64: 1, 128>}, {pipeline_mode = #tpu.pipeline_mode<synchronous>, transform_indices = @transform_4, window_bounds = array<i64: 1, 128>}, {pipeline_mode = #tpu.pipeline_mode<synchronous>, transform_indices = @transform_5, window_bounds = array<i64: 128, 128>}, {pipeline_mode = #tpu.pipeline_mode<synchronous>, transform_indices = @transform_6, window_bounds = array<i64: 128, 128>}, {pipeline_mode = #tpu.pipeline_mode<synchronous>, transform_indices = @transform_7, window_bounds = array<i64: 1, 128>}, {transform_indices = @transform_8, window_bounds = array<i64: 512, 128>}]} {
    %c0 = arith.constant 0 : index
    %c0_0 = arith.constant 0 : index
    %0 = vector.load %arg1[%c0, %c0_0] : memref<512x128xf32, #tpu.memory_space<vmem>>, vector<512x128xf32>
    %c0_1 = arith.constant 0 : index
    %c0_2 = arith.constant 0 : index
    %1 = vector.load %arg3[%c0_1, %c0_2] : memref<128x128xf32, #tpu.memory_space<vmem>>, vector<128x128xf32>
    %cst = arith.constant dense<0.000000e+00> : vector<512x128xf32>
    %2 = tpu.matmul %0, %1, %cst {dimension_numbers = #tpu.dot_dimension_numbers<[1], [0], [0], [1], [0, 0, 1, 1], [], []>} : vector<512x128xf32>, vector<128x128xf32>, vector<512x128xf32> -> vector<512x128xf32>
    %c0_3 = arith.constant 0 : index
    %c0_4 = arith.constant 0 : index
    %3 = vector.load %arg4[%c0_3, %c0_4] : memref<1x128xf32, #tpu.memory_space<vmem>>, vector<1x128xf32>
    %4 = vector.broadcast %3 : vector<1x128xf32> to vector<512x128xf32>
    %5 = arith.addf %2, %4 : vector<512x128xf32>
    %cst_5 = arith.constant 0.000000e+00 : f32
    %6 = vector.broadcast %cst_5 : f32 to vector<512x128xf32>
    %7 = arith.subf %6, %5 : vector<512x128xf32>
    %8 = math.exp %7 : vector<512x128xf32>
    %cst_6 = arith.constant 1.000000e+00 : f32
    %9 = vector.broadcast %cst_6 : f32 to vector<512x128xf32>
    %10 = arith.addf %9, %8 : vector<512x128xf32>
    %11 = tpu.reciprocal %10 : vector<512x128xf32> -> vector<512x128xf32>
    %12 = arith.mulf %5, %11 : vector<512x128xf32>
    %c0_7 = arith.constant 0 : index
    %c0_8 = arith.constant 0 : index
    %13 = vector.load %arg2[%c0_7, %c0_8] : memref<512x128xf32, #tpu.memory_space<vmem>>, vector<512x128xf32>
    %c0_9 = arith.constant 0 : index
    %c0_10 = arith.constant 0 : index
    %14 = vector.load %arg5[%c0_9, %c0_10] : memref<1x128xf32, #tpu.memory_space<vmem>>, vector<1x128xf32>
    %15 = vector.broadcast %14 : vector<1x128xf32> to vector<512x128xf32>
    %16 = arith.addf %13, %15 : vector<512x128xf32>
    %cst_11 = arith.constant 0.000000e+00 : f32
    %17 = vector.broadcast %cst_11 : f32 to vector<512x128xf32>
    %18 = arith.subf %17, %16 : vector<512x128xf32>
    %19 = math.exp %18 : vector<512x128xf32>
    %cst_12 = arith.constant 1.000000e+00 : f32
    %20 = vector.broadcast %cst_12 : f32 to vector<512x128xf32>
    %21 = arith.addf %20, %19 : vector<512x128xf32>
    %22 = tpu.reciprocal %21 : vector<512x128xf32> -> vector<512x128xf32>
    %23 = arith.mulf %16, %22 : vector<512x128xf32>
    %c0_13 = arith.constant 0 : index
    %c0_14 = arith.constant 0 : index
    %24 = vector.load %arg6[%c0_13, %c0_14] : memref<128x128xf32, #tpu.memory_space<vmem>>, vector<128x128xf32>
    %cst_15 = arith.constant dense<0.000000e+00> : vector<512x128xf32>
    %25 = tpu.matmul %12, %24, %cst_15 {dimension_numbers = #tpu.dot_dimension_numbers<[1], [0], [0], [1], [0, 0, 1, 1], [], []>} : vector<512x128xf32>, vector<128x128xf32>, vector<512x128xf32> -> vector<512x128xf32>
    %c0_16 = arith.constant 0 : index
    %c0_17 = arith.constant 0 : index
    %26 = vector.load %arg7[%c0_16, %c0_17] : memref<128x128xf32, #tpu.memory_space<vmem>>, vector<128x128xf32>
    %cst_18 = arith.constant dense<0.000000e+00> : vector<512x128xf32>
    %27 = tpu.matmul %23, %26, %cst_18 {dimension_numbers = #tpu.dot_dimension_numbers<[1], [0], [0], [1], [0, 0, 1, 1], [], []>} : vector<512x128xf32>, vector<128x128xf32>, vector<512x128xf32> -> vector<512x128xf32>
    %28 = arith.addf %25, %27 : vector<512x128xf32>
    %c0_19 = arith.constant 0 : index
    %c0_20 = arith.constant 0 : index
    %29 = vector.load %arg8[%c0_19, %c0_20] : memref<1x128xf32, #tpu.memory_space<vmem>>, vector<1x128xf32>
    %30 = vector.broadcast %29 : vector<1x128xf32> to vector<512x128xf32>
    %31 = arith.addf %28, %30 : vector<512x128xf32>
    %cst_21 = arith.constant 0.000000e+00 : f32
    %32 = vector.broadcast %cst_21 : f32 to vector<512x128xf32>
    %33 = arith.subf %32, %31 : vector<512x128xf32>
    %34 = math.exp %33 : vector<512x128xf32>
    %cst_22 = arith.constant 1.000000e+00 : f32
    %35 = vector.broadcast %cst_22 : f32 to vector<512x128xf32>
    %36 = arith.addf %35, %34 : vector<512x128xf32>
    %37 = tpu.reciprocal %36 : vector<512x128xf32> -> vector<512x128xf32>
    %38 = arith.mulf %31, %37 : vector<512x128xf32>
    %c0_23 = arith.constant 0 : index
    %c0_24 = arith.constant 0 : index
    %39 = vector.load %arg9[%c0_23, %c0_24] : memref<512x128xf32, #tpu.memory_space<vmem>>, vector<512x128xf32>
    tpu.vector_store %arg9[%c0_23, %c0_24], %38 {strides = array<i32>} : memref<512x128xf32, #tpu.memory_space<vmem>>, vector<512x128xf32>,
    return
  }
  func.func @transform_0(%arg0: i32) -> (i32, i32) {
    %c0_i32 = arith.constant 0 : i32
    %c0_i32_0 = arith.constant 0 : i32
    return %arg0, %c0_i32 : i32, i32
  }
  func.func @transform_1(%arg0: i32) -> (i32, i32) {
    %c0_i32 = arith.constant 0 : i32
    %c0_i32_0 = arith.constant 0 : i32
    return %arg0, %c0_i32 : i32, i32
  }
  func.func @transform_2(%arg0: i32) -> (i32, i32) {
    %c0_i32 = arith.constant 0 : i32
    %c0_i32_0 = arith.constant 0 : i32
    %c0_i32_1 = arith.constant 0 : i32
    return %c0_i32, %c0_i32_0 : i32, i32
  }
  func.func @transform_3(%arg0: i32) -> (i32, i32) {
    %c0_i32 = arith.constant 0 : i32
    %c0_i32_0 = arith.constant 0 : i32
    %c0_i32_1 = arith.constant 0 : i32
    return %c0_i32, %c0_i32_0 : i32, i32
  }
  func.func @transform_4(%arg0: i32) -> (i32, i32) {
    %c0_i32 = arith.constant 0 : i32
    %c0_i32_0 = arith.constant 0 : i32
    %c0_i32_1 = arith.constant 0 : i32
    return %c0_i32, %c0_i32_0 : i32, i32
  }
  func.func @transform_5(%arg0: i32) -> (i32, i32) {
    %c0_i32 = arith.constant 0 : i32
    %c0_i32_0 = arith.constant 0 : i32
    %c0_i32_1 = arith.constant 0 : i32
    return %c0_i32, %c0_i32_0 : i32, i32
  }
  func.func @transform_6(%arg0: i32) -> (i32, i32) {
    %c0_i32 = arith.constant 0 : i32
    %c0_i32_0 = arith.constant 0 : i32
    %c0_i32_1 = arith.constant 0 : i32
    return %c0_i32, %c0_i32_0 : i32, i32
  }
  func.func @transform_7(%arg0: i32) -> (i32, i32) {
    %c0_i32 = arith.constant 0 : i32
    %c0_i32_0 = arith.constant 0 : i32
    %c0_i32_1 = arith.constant 0 : i32
    return %c0_i32, %c0_i32_0 : i32, i32
  }
  func.func @transform_8(%arg0: i32) -> (i32, i32) {
    %c0_i32 = arith.constant 0 : i32
    %c0_i32_0 = arith.constant 0 : i32
    return %arg0, %c0_i32 : i32, i32
  }
}

</mosaic_0001>

<bundles_post_ra>
// kernel: csp_forward.3
= control target key start
LH: loop header
LB: loop body
LE: loop exit
PB: predicated region body
PF: predicated region fallthrough
CT: control target
= control target key end

     0   :  { %11 = vsyncpa [#allocation3], 0  ;;  %s3244_s0 = inlined_call_operand.vmem [shape: f32[512,128], index: 0, kind: input, shape index: {}]   ;;  %s3245_s1 = inlined_call_operand.hbm [shape: f32[128,128], index: 1, kind: input, shape index: {}]   ;;  %s3246_s2 = inlined_call_operand.hbm [shape: f32[1,128], index: 2, kind: input, shape index: {}]   ;;  %s3247_s3 = inlined_call_operand.hbm [shape: f32[128,128], index: 3, kind: input, shape index: {}]   ;;  %s3248_s4 = inlined_call_operand.vmem [shape: f32[512,128], index: 4, kind: output, shape index: {0}]   ;;  %s3249_s5 = inlined_call_operand.vmem [shape: f32[512,128], index: 5, kind: output, shape index: {1}]  }
   0x1   :  { %12 = vsyncpa [#allocation5], 0  ;;  %s2266_s18 = smov [#allocation4]   ;;  %s2267_s20 = smov [#allocation2]  }
   0x2   :  { %s33_s19 = sshll.u32 %s2266_s18, 4  ;;  %s20_s21 = sshll.u32 %s2267_s20, 4  ;;  %s34_s19 = int_to_ptr.vmem [resolvable:$true] %s33_s19  ;;  %s2301_s21 = int_to_ptr.vmem [resolvable:$true] %s20_s21 }
   0x3   :  { %s2196_s24 = scalar_lea.hbm %s3246_s2, 16 }
   0x4   :  { %p2197_p0 = scmp.ne.s32.totalorder %s3246_s2, %s2196_s24  ;;  %p2200_p1 = scmp.lt.u32.totalorder %s2196_s24, %s3246_s2 }
   0x6   :  { %p2202_p2 = pnand %p2200_p1, %p2197_p0 }
   0x8   :  { %2205 = shalt.err (!%p2202_p2)
}
   0x9   :  { %s2206_s29 = scalar_lea.vmem %s34_s19, 16  ;;  %s2210_s30 = scalar_lea.vmem %s34_s19, 32 }
   0xa   :  { %p2207_p3 = scmp.ne.s32.totalorder %s34_s19, %s2206_s29  ;;  %p2211_p4 = scmp.lt.s32.totalorder %s34_s19, %s34_s19 }
   0xb   :  { %p2212_p5 = scmp.lt.s32.totalorder %s2210_s30, %s2206_s29 }
   0xd   :  { %p2213_p6 = por %p2212_p5, %p2211_p4 }
   0xf   :  { %p2214_p7 = pnand %p2213_p6, %p2207_p3 }
  0x11   :  { %2217 = shalt.err (!%p2214_p7)
}
  0x12   :  { %36 = dma.hbm_to_vmem [thread:$0]  %s3246_s2, 16, %s34_s19, [#allocation5]  }
  0x13   :  { %s2218_s10 = scalar_lea.hbm %s3245_s1, 2048 }
  0x14   :  { %p2219_p8 = scmp.ne.s32.totalorder %s3245_s1, %s2218_s10  ;;  %p2222_p9 = scmp.lt.u32.totalorder %s2218_s10, %s3245_s1 }
  0x16   :  { %p2224_p10 = pnand %p2222_p9, %p2219_p8 }
  0x18   :  { %2227 = shalt.err (!%p2224_p10)
}
  0x19   :  { %s2228_s15 = scalar_lea.vmem %s2301_s21, 2048  ;;  %p2233_p12 = scmp.lt.s32.totalorder %s2301_s21, %s2301_s21 }
  0x1a   :  { %p2229_p11 = scmp.ne.s32.totalorder %s2301_s21, %s2228_s15  ;;  %p2234_p13 = scmp.lt.s32.totalorder %s2228_s15, %s2228_s15 }
  0x1c   :  { %p2235_p0 = por %p2234_p13, %p2233_p12 }
  0x1e   :  { %p2236_p1 = pnand %p2235_p0, %p2229_p11 }
  0x20   :  { %2239 = shalt.err (!%p2236_p1)
}
  0x21   :  { %s2268_s2 = smov 128   ;;  %s2269_s16 = smov 8  }
  0x22   :  { %26 = dma.hbm_to_vmem [thread:$0]  %s3245_s1, 2048, %s2301_s21, [#allocation3], %s2268_s2, %s2268_s2, %s2269_s16  }
  0x23   :  { %s2270_s19 = smov [#allocation6]   ;;  %s2240_s24 = scalar_lea.hbm %s3247_s3, 2048 }
  0x24   :  { %s42_s20 = sshll.u32 %s2270_s19, 4  ;;  %p2241_p2 = scmp.ne.s32.totalorder %s3247_s3, %s2240_s24  ;;  %s43_s20 = int_to_ptr.vmem [resolvable:$true] %s42_s20 }
  0x25   :  { %p2244_p3 = scmp.lt.u32.totalorder %s2240_s24, %s3247_s3 }
  0x27   :  { %p2246_p4 = pnand %p2244_p3, %p2241_p2 }
  0x29   :  { %2249 = shalt.err (!%p2246_p4)
}
  0x2a   :  { %s2250_s29 = scalar_lea.vmem %s43_s20, 2048  ;;  %p2255_p6 = scmp.lt.s32.totalorder %s43_s20, %s43_s20 }
  0x2b   :  { %p2251_p5 = scmp.ne.s32.totalorder %s43_s20, %s2250_s29  ;;  %p2256_p7 = scmp.lt.s32.totalorder %s2250_s29, %s2250_s29 }
  0x2d   :  { %p2257_p8 = por %p2256_p7, %p2255_p6 }
  0x2f   :  { %p2258_p9 = pnand %p2257_p8, %p2251_p5 }
  0x31   :  { %2261 = shalt.err (!%p2258_p9)
}
  0x32   :  { %48 = dma.hbm_to_vmem [thread:$0]  %s3247_s3, 2048, %s43_s20, [#allocation5], %s2268_s2, %s2268_s2, %s2269_s16  }
  0x33   :  { %2262 = dma.done.wait [#allocation3], 2048  }
  0x34   :  { %2263 = vsyncadd [#allocation3], 4294965248 }
  0x35   :  { %2264 = dma.done.wait [#allocation5], 2064  }
  0x36   :  { %2265 = vsyncadd [#allocation5], 4294965232  ;;  %v122_v0 = vld [vmem:[#allocation2] sm:$0xff]  ;;  %v123_v1 = vld [vmem:[#allocation2 + $0x8] sm:$0xff] }
  0x37   :  { %v124_v2 = vld [vmem:[#allocation2 + $0x10] sm:$0xff]  ;;  %v1870_v3 = vpack.c.bf16 %v123_v1, %v122_v0  ;;  %v125_v4 = vld [vmem:[#allocation2 + $0x18] sm:$0xff]  ;;  %v126_v6 = vld [vmem:[#allocation2 + $0x20] sm:$0xff] }
  0x38   :  { %v1874_v5 = vpack.c.bf16 %v125_v4, %v124_v2  ;;  %v127_v7 = vld [vmem:[#allocation2 + $0x28] sm:$0xff]  ;;  %v58_v9 = vld [vmem:[%s3244_s0] sm:$0xff]  ;;  %v128_v11 = vld [vmem:[#allocation2 + $0x30] sm:$0xff] }
  0x39   :  { %1871 = vmatprep.subr.bf16.mxu0 %v1870_v3  ;;  %v1878_v8 = vpack.c.bf16 %v127_v7, %v126_v6  ;;  %v978_v10 = vld [vmem:[#allocation6] sm:$0xff]  ;;  %v129_v12 = vld [vmem:[#allocation2 + $0x38] sm:$0xff]  ;;  %1646 = vmatprep.mubr.f32.mxu0 %v58_v9  ;;  %v979_v13 = vld [vmem:[#allocation6 + $0x8] sm:$0xff] }
  0x3a   :  { %1873 = vmatpush3.bf16.msra.mxu0 %v1870_v3  ;;  %1774 = vmatprep.mubr.f32.mxu1 %v58_v9  ;;  %v1902_v14 = vpack.c.bf16 %v979_v13, %v978_v10  ;;  %v980_v15 = vld [vmem:[#allocation6 + $0x10] sm:$0xff]  ;;  %v981_v16 = vld [vmem:[#allocation6 + $0x18] sm:$0xff]  ;;  %v982_v18 = vld [vmem:[#allocation6 + $0x20] sm:$0xff]  ;;  %v1882_v20 = vpack.c.bf16 %v129_v12, %v128_v11 }
  0x3b   :  { %1875 = vmatprep.subr.bf16.mxu0 %v1874_v5  ;;  %v1906_v17 = vpack.c.bf16 %v981_v16, %v980_v15  ;;  %v983_v19 = vld [vmem:[#allocation6 + $0x28] sm:$0xff]  ;;  %v130_v21 = vld [vmem:[#allocation2 + $0x40] sm:$0xff]  ;;  %v984_v24 = vld [vmem:[#allocation6 + $0x30] sm:$0xff] }
  0x3c   :  { %1903 = vmatprep.subr.bf16.mxu1 %v1902_v14  ;;  %v131_v22 = vld [vmem:[#allocation2 + $0x48] sm:$0xff]  ;;  %v1910_v23 = vpack.c.bf16 %v983_v19, %v982_v18  ;;  %v985_v25 = vld [vmem:[#allocation6 + $0x38] sm:$0xff]  ;;  %v132_v27 = vld [vmem:[#allocation2 + $0x50] sm:$0xff] }
  0x3d   :  { %1905 = vmatpush3.bf16.msra.mxu1 %v1902_v14  ;;  %v1886_v26 = vpack.c.bf16 %v131_v22, %v130_v21  ;;  %v133_v28 = vld [vmem:[#allocation2 + $0x58] sm:$0xff]  ;;  %v1914_v29 = vpack.c.bf16 %v985_v25, %v984_v24  ;;  %v986_v30 = vld [vmem:[#allocation6 + $0x40] sm:$0xff]  ;;  %v987_v31 = vld [vmem:[#allocation6 + $0x48] sm:$0xff] }
  0x3e   :  { %1877 = vmatpush3.bf16.msra.mxu0 %v1874_v5  ;;  %1907 = vmatprep.subr.bf16.mxu1 %v1906_v17  ;;  %v1890_v32 = vpack.c.bf16 %v133_v28, %v132_v27  ;;  %v134_v33 = vld [vmem:[#allocation2 + $0x60] sm:$0xff]  ;;  %v135_v34 = vld [vmem:[#allocation2 + $0x68] sm:$0xff]  ;;  %v1918_v35 = vpack.c.bf16 %v987_v31, %v986_v30  ;;  %v988_v36 = vld [vmem:[#allocation6 + $0x50] sm:$0xff] }
  0x3f   :  { %1879 = vmatprep.subr.bf16.mxu0 %v1878_v8  ;;  %v989_v37 = vld [vmem:[#allocation6 + $0x58] sm:$0xff]  ;;  %v1894_v38 = vpack.c.bf16 %v135_v34, %v134_v33  ;;  %v136_v39 = vld [vmem:[#allocation2 + $0x70] sm:$0xff]  ;;  %v990_v42 = vld [vmem:[#allocation6 + $0x60] sm:$0xff] }
  0x40   :  { %v137_v40 = vld [vmem:[#allocation2 + $0x78] sm:$0xff]  ;;  %v1922_v41 = vpack.c.bf16 %v989_v37, %v988_v36  ;;  %v991_v43 = vld [vmem:[#allocation6 + $0x68] sm:$0xff]  ;;  %v62_v52 = vld [vmem:[%s3244_s0 + $0x20] sm:$0xff] }
  0x41   :  { %1909 = vmatpush3.bf16.msra.mxu1 %v1906_v17  ;;  %v1898_v44 = vpack.c.bf16 %v137_v40, %v136_v39  ;;  %v1926_v45 = vpack.c.bf16 %v991_v43, %v990_v42  ;;  %v992_v46 = vld [vmem:[#allocation6 + $0x70] sm:$0xff]  ;;  %v993_v47 = vld [vmem:[#allocation6 + $0x78] sm:$0xff]  ;;  %v59_v49 = vld [vmem:[%s3244_s0 + $0x8] sm:$0xff] }
  0x42   :  { %1881 = vmatpush3.bf16.msra.mxu0 %v1878_v8  ;;  %1911 = vmatprep.subr.bf16.mxu1 %v1910_v23  ;;  %v1930_v48 = vpack.c.bf16 %v993_v47, %v992_v46  ;;  %v60_v50 = vld [vmem:[%s3244_s0 + $0x10] sm:$0xff]  ;;  %v61_v51 = vld [vmem:[%s3244_s0 + $0x18] sm:$0xff]  ;;  %v63_v53 = vld [vmem:[%s3244_s0 + $0x28] sm:$0xff] }
  0x43   :  { %1883 = vmatprep.subr.bf16.mxu0 %v1882_v20  ;;  %v64_v54 = vld [vmem:[%s3244_s0 + $0x30] sm:$0xff]  ;;  %v65_v55 = vld [vmem:[%s3244_s0 + $0x38] sm:$0xff]  ;;  %v66_v56 = vld [vmem:[%s3244_s0 + $0x40] sm:$0xff] }
  0x44   :  { %v67_v57 = vld [vmem:[%s3244_s0 + $0x48] sm:$0xff]  ;;  %v68_v58 = vld [vmem:[%s3244_s0 + $0x50] sm:$0xff]  ;;  %v69_v59 = vld [vmem:[%s3244_s0 + $0x58] sm:$0xff] }
  0x45   :  { %1913 = vmatpush3.bf16.msra.mxu1 %v1910_v23  ;;  %v70_v60 = vld [vmem:[%s3244_s0 + $0x60] sm:$0xff]  ;;  %v71_v61 = vld [vmem:[%s3244_s0 + $0x68] sm:$0xff]  ;;  %v72_v62 = vld [vmem:[%s3244_s0 + $0x70] sm:$0xff] }
  0x46   :  { %1885 = vmatpush3.bf16.msra.mxu0 %v1882_v20  ;;  %1915 = vmatprep.subr.bf16.mxu1 %v1914_v29  ;;  %v73_v63 = vld [vmem:[%s3244_s0 + $0x78] sm:$0xff]  ;;  %v74_v0 = vld [vmem:[%s3244_s0 + $0x80] sm:$0xff]  ;;  %v75_v1 = vld [vmem:[%s3244_s0 + $0x88] sm:$0xff] }
  0x47   :  { %1887 = vmatprep.subr.bf16.mxu0 %v1886_v26  ;;  %v76_v2 = vld [vmem:[%s3244_s0 + $0x90] sm:$0xff]  ;;  %v77_v3 = vld [vmem:[%s3244_s0 + $0x98] sm:$0xff]  ;;  %v78_v4 = vld [vmem:[%s3244_s0 + $0xa0] sm:$0xff] }
  0x48   :  { %v79_v5 = vld [vmem:[%s3244_s0 + $0xa8] sm:$0xff]  ;;  %v80_v6 = vld [vmem:[%s3244_s0 + $0xb0] sm:$0xff]  ;;  %v81_v7 = vld [vmem:[%s3244_s0 + $0xb8] sm:$0xff] }
  0x49   :  { %1917 = vmatpush3.bf16.msra.mxu1 %v1914_v29  ;;  %v82_v8 = vld [vmem:[%s3244_s0 + $0xc0] sm:$0xff]  ;;  %v83_v9 = vld [vmem:[%s3244_s0 + $0xc8] sm:$0xff]  ;;  %v84_v10 = vld [vmem:[%s3244_s0 + $0xd0] sm:$0xff] }
  0x4a   :  { %1889 = vmatpush3.bf16.msra.mxu0 %v1886_v26  ;;  %1919 = vmatprep.subr.bf16.mxu1 %v1918_v35  ;;  %v85_v11 = vld [vmem:[%s3244_s0 + $0xd8] sm:$0xff]  ;;  %v86_v12 = vld [vmem:[%s3244_s0 + $0xe0] sm:$0xff]  ;;  %v87_v13 = vld [vmem:[%s3244_s0 + $0xe8] sm:$0xff] }
  0x4b   :  { %1891 = vmatprep.subr.bf16.mxu0 %v1890_v32  ;;  %v88_v14 = vld [vmem:[%s3244_s0 + $0xf0] sm:$0xff]  ;;  %v89_v15 = vld [vmem:[%s3244_s0 + $0xf8] sm:$0xff]  ;;  %v90_v16 = vld [vmem:[%s3244_s0 + $0x100] sm:$0xff] }
  0x4c   :  { %v91_v17 = vld [vmem:[%s3244_s0 + $0x108] sm:$0xff]  ;;  %v92_v18 = vld [vmem:[%s3244_s0 + $0x110] sm:$0xff]  ;;  %v93_v19 = vld [vmem:[%s3244_s0 + $0x118] sm:$0xff] }
  0x4d   :  { %1921 = vmatpush3.bf16.msra.mxu1 %v1918_v35  ;;  %v94_v20 = vld [vmem:[%s3244_s0 + $0x120] sm:$0xff]  ;;  %v95_v21 = vld [vmem:[%s3244_s0 + $0x128] sm:$0xff]  ;;  %v96_v22 = vld [vmem:[%s3244_s0 + $0x130] sm:$0xff] }
  0x4e   :  { %1893 = vmatpush3.bf16.msra.mxu0 %v1890_v32  ;;  %1923 = vmatprep.subr.bf16.mxu1 %v1922_v41  ;;  %v97_v23 = vld [vmem:[%s3244_s0 + $0x138] sm:$0xff]  ;;  %v98_v24 = vld [vmem:[%s3244_s0 + $0x140] sm:$0xff]  ;;  %v99_v25 = vld [vmem:[%s3244_s0 + $0x148] sm:$0xff] }
  0x4f   :  { %1895 = vmatprep.subr.bf16.mxu0 %v1894_v38  ;;  %v100_v26 = vld [vmem:[%s3244_s0 + $0x150] sm:$0xff]  ;;  %v101_v27 = vld [vmem:[%s3244_s0 + $0x158] sm:$0xff]  ;;  %v102_v28 = vld [vmem:[%s3244_s0 + $0x160] sm:$0xff] }
  0x50   :  { %v103_v29 = vld [vmem:[%s3244_s0 + $0x168] sm:$0xff]  ;;  %v104_v30 = vld [vmem:[%s3244_s0 + $0x170] sm:$0xff]  ;;  %v105_v31 = vld [vmem:[%s3244_s0 + $0x178] sm:$0xff] }
  0x51   :  { %1925 = vmatpush3.bf16.msra.mxu1 %v1922_v41  ;;  %v106_v32 = vld [vmem:[%s3244_s0 + $0x180] sm:$0xff]  ;;  %v107_v33 = vld [vmem:[%s3244_s0 + $0x188] sm:$0xff]  ;;  %v108_v34 = vld [vmem:[%s3244_s0 + $0x190] sm:$0xff] }
  0x52   :  { %1897 = vmatpush3.bf16.msra.mxu0 %v1894_v38  ;;  %1927 = vmatprep.subr.bf16.mxu1 %v1926_v45  ;;  %v109_v35 = vld [vmem:[%s3244_s0 + $0x198] sm:$0xff]  ;;  %v110_v36 = vld [vmem:[%s3244_s0 + $0x1a0] sm:$0xff]  ;;  %v111_v37 = vld [vmem:[%s3244_s0 + $0x1a8] sm:$0xff] }
  0x53   :  { %1899 = vmatprep.subr.bf16.mxu0 %v1898_v44  ;;  %v112_v38 = vld [vmem:[%s3244_s0 + $0x1b0] sm:$0xff]  ;;  %v113_v39 = vld [vmem:[%s3244_s0 + $0x1b8] sm:$0xff]  ;;  %v114_v40 = vld [vmem:[%s3244_s0 + $0x1c0] sm:$0xff] }
  0x54   :  { %v115_v41 = vld [vmem:[%s3244_s0 + $0x1c8] sm:$0xff]  ;;  %v116_v42 = vld [vmem:[%s3244_s0 + $0x1d0] sm:$0xff]  ;;  %v117_v43 = vld [vmem:[%s3244_s0 + $0x1d8] sm:$0xff] }
  0x55   :  { %1929 = vmatpush3.bf16.msra.mxu1 %v1926_v45  ;;  %v119_v45 = vld [vmem:[%s3244_s0 + $0x1e8] sm:$0xff]  ;;  %v120_v46 = vld [vmem:[%s3244_s0 + $0x1f0] sm:$0xff]  ;;  %v121_v47 = vld [vmem:[%s3244_s0 + $0x1f8] sm:$0xff] }
  0x56   :  { %1901 = vmatpush3.bf16.msra.mxu0 %v1898_v44  ;;  %1931 = vmatprep.subr.bf16.mxu1 %v1930_v48  ;;  %v118_v44 = vld [vmem:[%s3244_s0 + $0x1e0] sm:$0xff] }
  0x59   :  { %1647 = vmatmul.mubr.f32.vlgmr.msra.gmra.mrb[0].mxu0 %v59_v49  ;;  %1933 = vmatpush3.bf16.msra.mxu1 %v1930_v48  ;;  %v2536_v48 = vld [vmem:[#allocation4] ss:$0 sm:$0xff] }
  0x5a   :  { %1649 = vmatprep.mubr.f32.mxu0 %v60_v50 }
  0x5c   :  { %1775 = vmatmul.mubr.f32.vlgmr.msra.gmra.mrb[0].mxu1 %v59_v49 }
  0x5d   :  { %1650 = vmatmul.mubr.f32.gmra.mrb[2].mxu0 %v61_v51  ;;  %1777 = vmatprep.mubr.f32.mxu1 %v60_v50 }
  0x5e   :  { %1652 = vmatprep.mubr.f32.mxu0 %v62_v52 }
  0x60   :  { %1778 = vmatmul.mubr.f32.gmra.mrb[2].mxu1 %v61_v51 }
  0x61   :  { %1653 = vmatmul.mubr.f32.gmra.mrb[4].mxu0 %v63_v53  ;;  %1780 = vmatprep.mubr.f32.mxu1 %v62_v52 }
  0x62   :  { %1655 = vmatprep.mubr.f32.mxu0 %v64_v54 }
  0x64   :  { %1781 = vmatmul.mubr.f32.gmra.mrb[4].mxu1 %v63_v53 }
  0x65   :  { %1656 = vmatmul.mubr.f32.gmra.mrb[6].mxu0 %v65_v55  ;;  %1783 = vmatprep.mubr.f32.mxu1 %v64_v54 }
  0x66   :  { %1658 = vmatprep.mubr.f32.mxu0 %v66_v56 }
  0x68   :  { %1784 = vmatmul.mubr.f32.gmra.mrb[6].mxu1 %v65_v55 }
  0x69   :  { %1659 = vmatmul.mubr.f32.gmra.mrb[8].mxu0 %v67_v57  ;;  %1786 = vmatprep.mubr.f32.mxu1 %v66_v56 }
  0x6a   :  { %1661 = vmatprep.mubr.f32.mxu0 %v68_v58 }
  0x6c   :  { %1787 = vmatmul.mubr.f32.gmra.mrb[8].mxu1 %v67_v57 }
  0x6d   :  { %1662 = vmatmul.mubr.f32.gmra.mrb[10].mxu0 %v69_v59  ;;  %1789 = vmatprep.mubr.f32.mxu1 %v68_v58 }
  0x6e   :  { %1664 = vmatprep.mubr.f32.mxu0 %v70_v60 }
  0x70   :  { %1790 = vmatmul.mubr.f32.gmra.mrb[10].mxu1 %v69_v59 }
  0x71   :  { %1665 = vmatmul.mubr.f32.gmra.mrb[12].mxu0 %v71_v61  ;;  %1792 = vmatprep.mubr.f32.mxu1 %v70_v60 }
  0x72   :  { %1667 = vmatprep.mubr.f32.mxu0 %v72_v62 }
  0x74   :  { %1793 = vmatmul.mubr.f32.gmra.mrb[12].mxu1 %v71_v61 }
  0x75   :  { %1668 = vmatmul.mubr.f32.gmra.mrb[14].mxu0 %v73_v63  ;;  %1795 = vmatprep.mubr.f32.mxu1 %v72_v62 }
  0x76   :  { %1670 = vmatprep.mubr.f32.mxu0 %v74_v0 }
  0x78   :  { %1796 = vmatmul.mubr.f32.gmra.mrb[14].mxu1 %v73_v63 }
  0x79   :  { %1671 = vmatmul.mubr.f32.gmra.mrb[16].mxu0 %v75_v1  ;;  %1798 = vmatprep.mubr.f32.mxu1 %v74_v0 }
  0x7a   :  { %1673 = vmatprep.mubr.f32.mxu0 %v76_v2 }
  0x7c   :  { %1799 = vmatmul.mubr.f32.gmra.mrb[16].mxu1 %v75_v1 }
  0x7d   :  { %1674 = vmatmul.mubr.f32.gmra.mrb[18].mxu0 %v77_v3  ;;  %1801 = vmatprep.mubr.f32.mxu1 %v76_v2 }
  0x7e   :  { %1676 = vmatprep.mubr.f32.mxu0 %v78_v4 }
  0x80   :  { %1802 = vmatmul.mubr.f32.gmra.mrb[18].mxu1 %v77_v3 }
  0x81   :  { %1677 = vmatmul.mubr.f32.gmra.mrb[20].mxu0 %v79_v5  ;;  %1804 = vmatprep.mubr.f32.mxu1 %v78_v4 }
  0x82   :  { %1679 = vmatprep.mubr.f32.mxu0 %v80_v6 }
  0x84   :  { %1805 = vmatmul.mubr.f32.gmra.mrb[20].mxu1 %v79_v5 }
  0x85   :  { %1680 = vmatmul.mubr.f32.gmra.mrb[22].mxu0 %v81_v7  ;;  %1807 = vmatprep.mubr.f32.mxu1 %v80_v6 }
  0x86   :  { %1682 = vmatprep.mubr.f32.mxu0 %v82_v8 }
  0x88   :  { %1808 = vmatmul.mubr.f32.gmra.mrb[22].mxu1 %v81_v7 }
  0x89   :  { %1683 = vmatmul.mubr.f32.gmra.mrb[24].mxu0 %v83_v9  ;;  %1810 = vmatprep.mubr.f32.mxu1 %v82_v8 }
  0x8a   :  { %1685 = vmatprep.mubr.f32.mxu0 %v84_v10 }
  0x8c   :  { %1811 = vmatmul.mubr.f32.gmra.mrb[24].mxu1 %v83_v9 }
  0x8d   :  { %1686 = vmatmul.mubr.f32.gmra.mrb[26].mxu0 %v85_v11  ;;  %1813 = vmatprep.mubr.f32.mxu1 %v84_v10 }
  0x8e   :  { %1688 = vmatprep.mubr.f32.mxu0 %v86_v12 }
  0x90   :  { %1814 = vmatmul.mubr.f32.gmra.mrb[26].mxu1 %v85_v11 }
  0x91   :  { %1689 = vmatmul.mubr.f32.gmra.mrb[28].mxu0 %v87_v13  ;;  %1816 = vmatprep.mubr.f32.mxu1 %v86_v12 }
  0x92   :  { %1691 = vmatprep.mubr.f32.mxu0 %v88_v14 }
  0x94   :  { %1817 = vmatmul.mubr.f32.gmra.mrb[28].mxu1 %v87_v13 }
  0x95   :  { %1692 = vmatmul.mubr.f32.gmra.mrb[30].mxu0 %v89_v15  ;;  %1819 = vmatprep.mubr.f32.mxu1 %v88_v14 }
  0x96   :  { %1694 = vmatprep.mubr.f32.mxu0 %v90_v16 }
  0x98   :  { %1820 = vmatmul.mubr.f32.gmra.mrb[30].mxu1 %v89_v15 }
  0x99   :  { %1695 = vmatmul.mubr.f32.gmra.mrb[32].mxu0 %v91_v17  ;;  %1822 = vmatprep.mubr.f32.mxu1 %v90_v16 }
  0x9a   :  { %1697 = vmatprep.mubr.f32.mxu0 %v92_v18 }
  0x9c   :  { %1823 = vmatmul.mubr.f32.gmra.mrb[32].mxu1 %v91_v17 }
  0x9d   :  { %1698 = vmatmul.mubr.f32.gmra.mrb[34].mxu0 %v93_v19  ;;  %1825 = vmatprep.mubr.f32.mxu1 %v92_v18 }
  0x9e   :  { %1700 = vmatprep.mubr.f32.mxu0 %v94_v20 }
  0xa0   :  { %1826 = vmatmul.mubr.f32.gmra.mrb[34].mxu1 %v93_v19 }
  0xa1   :  { %1701 = vmatmul.mubr.f32.gmra.mrb[36].mxu0 %v95_v21  ;;  %1828 = vmatprep.mubr.f32.mxu1 %v94_v20 }
  0xa2   :  { %1703 = vmatprep.mubr.f32.mxu0 %v96_v22 }
  0xa4   :  { %1829 = vmatmul.mubr.f32.gmra.mrb[36].mxu1 %v95_v21 }
  0xa5   :  { %1704 = vmatmul.mubr.f32.gmra.mrb[38].mxu0 %v97_v23  ;;  %1831 = vmatprep.mubr.f32.mxu1 %v96_v22 }
  0xa6   :  { %1706 = vmatprep.mubr.f32.mxu0 %v98_v24 }
  0xa8   :  { %1832 = vmatmul.mubr.f32.gmra.mrb[38].mxu1 %v97_v23 }
  0xa9   :  { %1707 = vmatmul.mubr.f32.gmra.mrb[40].mxu0 %v99_v25  ;;  %1834 = vmatprep.mubr.f32.mxu1 %v98_v24 }
  0xaa   :  { %1709 = vmatprep.mubr.f32.mxu0 %v100_v26 }
  0xac   :  { %1835 = vmatmul.mubr.f32.gmra.mrb[40].mxu1 %v99_v25 }
  0xad   :  { %1710 = vmatmul.mubr.f32.gmra.mrb[42].mxu0 %v101_v27  ;;  %1837 = vmatprep.mubr.f32.mxu1 %v100_v26 }
  0xae   :  { %1712 = vmatprep.mubr.f32.mxu0 %v102_v28 }
  0xb0   :  { %1838 = vmatmul.mubr.f32.gmra.mrb[42].mxu1 %v101_v27 }
  0xb1   :  { %1713 = vmatmul.mubr.f32.gmra.mrb[44].mxu0 %v103_v29  ;;  %1840 = vmatprep.mubr.f32.mxu1 %v102_v28 }
  0xb2   :  { %1715 = vmatprep.mubr.f32.mxu0 %v104_v30 }
  0xb4   :  { %1841 = vmatmul.mubr.f32.gmra.mrb[44].mxu1 %v103_v29 }
  0xb5   :  { %1716 = vmatmul.mubr.f32.gmra.mrb[46].mxu0 %v105_v31  ;;  %1843 = vmatprep.mubr.f32.mxu1 %v104_v30 }
  0xb6   :  { %1718 = vmatprep.mubr.f32.mxu0 %v106_v32 }
  0xb8   :  { %1844 = vmatmul.mubr.f32.gmra.mrb[46].mxu1 %v105_v31 }
  0xb9   :  { %1719 = vmatmul.mubr.f32.gmra.mrb[48].mxu0 %v107_v33  ;;  %1846 = vmatprep.mubr.f32.mxu1 %v106_v32 }
  0xba   :  { %1721 = vmatprep.mubr.f32.mxu0 %v108_v34 }
  0xbc   :  { %1847 = vmatmul.mubr.f32.gmra.mrb[48].mxu1 %v107_v33 }
  0xbd   :  { %1722 = vmatmul.mubr.f32.gmra.mrb[50].mxu0 %v109_v35  ;;  %1849 = vmatprep.mubr.f32.mxu1 %v108_v34 }
  0xbe   :  { %1724 = vmatprep.mubr.f32.mxu0 %v110_v36 }
  0xc0   :  { %1850 = vmatmul.mubr.f32.gmra.mrb[50].mxu1 %v109_v35 }
  0xc1   :  { %1725 = vmatmul.mubr.f32.gmra.mrb[52].mxu0 %v111_v37  ;;  %1852 = vmatprep.mubr.f32.mxu1 %v110_v36 }
  0xc2   :  { %1727 = vmatprep.mubr.f32.mxu0 %v112_v38 }
  0xc4   :  { %1853 = vmatmul.mubr.f32.gmra.mrb[52].mxu1 %v111_v37 }
  0xc5   :  { %1728 = vmatmul.mubr.f32.gmra.mrb[54].mxu0 %v113_v39  ;;  %1855 = vmatprep.mubr.f32.mxu1 %v112_v38 }
  0xc6   :  { %1730 = vmatprep.mubr.f32.mxu0 %v114_v40 }
  0xc8   :  { %1856 = vmatmul.mubr.f32.gmra.mrb[54].mxu1 %v113_v39 }
  0xc9   :  { %1731 = vmatmul.mubr.f32.gmra.mrb[56].mxu0 %v115_v41  ;;  %1858 = vmatprep.mubr.f32.mxu1 %v114_v40 }
  0xca   :  { %1733 = vmatprep.mubr.f32.mxu0 %v116_v42 }
  0xcc   :  { %1859 = vmatmul.mubr.f32.gmra.mrb[56].mxu1 %v115_v41 }
  0xcd   :  { %1734 = vmatmul.mubr.f32.gmra.mrb[58].mxu0 %v117_v43  ;;  %1861 = vmatprep.mubr.f32.mxu1 %v116_v42 }
  0xce   :  { %1736 = vmatprep.mubr.f32.mxu0 %v118_v44 }
  0xd0   :  { %1862 = vmatmul.mubr.f32.gmra.mrb[58].mxu1 %v117_v43 }
  0xd1   :  { %1737 = vmatmul.mubr.f32.gmra.mrb[60].mxu0 %v119_v45  ;;  %1864 = vmatprep.mubr.f32.mxu1 %v118_v44 }
  0xd2   :  { %1739 = vmatprep.mubr.f32.mxu0 %v120_v46 }
  0xd4   :  { %1865 = vmatmul.mubr.f32.gmra.mrb[60].mxu1 %v119_v45 }
  0xd5   :  { %1740 = vmatmul.mubr.f32.gmra.mrb[62].mxu0 %v121_v47  ;;  %1867 = vmatprep.mubr.f32.mxu1 %v120_v46 }
  0xd8   :  { %1868 = vmatmul.mubr.f32.gmra.mrb[62].mxu1 %v121_v47 }
 0x12c   :  { %v1648_v49 = vpop.f32.mrb[0].mxu0 }
 0x12d   :  { %v2539_v50 = vadd.f32 %v1648_v49, %v2536_v48  ;;  %v211_v51 = vpop.f32.mrb[1].mxu0 }
 0x12e   :  { %v2542_v52 = vadd.f32 %v2536_v48, %v211_v51 }
 0x12f   :  { %v531_v53 = vsub.f32 0.0, %v2539_v50  ;;  %v1776_v61 = vpop.f32.mrb[0].mxu1 }
 0x130   :  { %v530_v54 = vsub.f32 0.0, %v2542_v52  ;;  %v1651_v55 = vpop.f32.mrb[2].mxu0  ;;  %1380 = vst [vmem:[%s3249_s5 + $0x8] sm:$0xff] %v1776_v61  ;;  %v1060_v63 = vpop.f32.mrb[1].mxu1 }
 0x131   :  { %v596_v56 = vmul.f32 1.442695, %v531_v53  ;;  %v2547_v57 = vadd.f32 %v1651_v55, %v2536_v48  ;;  %v221_v58 = vpop.f32.mrb[3].mxu0  ;;  %1379 = vst [vmem:[%s3249_s5] sm:$0xff] %v1060_v63 }
 0x132   :  { %v594_v59 = vmul.f32 1.442695, %v530_v54  ;;  %v2550_v60 = vadd.f32 %v2536_v48, %v221_v58 }
 0x133   :  { %1939 = vpow2.f32 %v596_v56  ;;  %v533_v62 = vsub.f32 0.0, %v2547_v57  ;;  %v1779_v7 = vpop.f32.mrb[2].mxu1 }
 0x134   :  { %1941 = vpow2.f32 %v594_v59  ;;  %v532_v0 = vsub.f32 0.0, %v2550_v60  ;;  %v1654_v1 = vpop.f32.mrb[4].mxu0  ;;  %1382 = vst [vmem:[%s3249_s5 + $0x18] sm:$0xff] %v1779_v7  ;;  %v1070_v9 = vpop.f32.mrb[3].mxu1 }
 0x135   :  { %v600_v2 = vmul.f32 1.442695, %v533_v62  ;;  %v2561_v3 = vadd.f32 %v1654_v1, %v2536_v48  ;;  %v231_v4 = vpop.f32.mrb[5].mxu0  ;;  %1381 = vst [vmem:[%s3249_s5 + $0x10] sm:$0xff] %v1070_v9 }
 0x136   :  { %v598_v5 = vmul.f32 1.442695, %v532_v0  ;;  %v2564_v6 = vadd.f32 %v2536_v48, %v231_v4 }
 0x137   :  { %1943 = vpow2.f32 %v600_v2  ;;  %v535_v8 = vsub.f32 0.0, %v2561_v3  ;;  %v1782_v17 = vpop.f32.mrb[4].mxu1 }
 0x138   :  { %1945 = vpow2.f32 %v598_v5  ;;  %v534_v10 = vsub.f32 0.0, %v2564_v6  ;;  %v1657_v11 = vpop.f32.mrb[6].mxu0  ;;  %1384 = vst [vmem:[%s3249_s5 + $0x28] sm:$0xff] %v1782_v17  ;;  %v1080_v19 = vpop.f32.mrb[5].mxu1 }
 0x139   :  { %v604_v12 = vmul.f32 1.442695, %v535_v8  ;;  %v2575_v13 = vadd.f32 %v1657_v11, %v2536_v48  ;;  %v241_v14 = vpop.f32.mrb[7].mxu0  ;;  %1383 = vst [vmem:[%s3249_s5 + $0x20] sm:$0xff] %v1080_v19 }
 0x13a   :  { %v602_v15 = vmul.f32 1.442695, %v534_v10  ;;  %v2578_v16 = vadd.f32 %v2536_v48, %v241_v14 }
 0x13b   :  { %1947 = vpow2.f32 %v604_v12  ;;  %v537_v18 = vsub.f32 0.0, %v2575_v13  ;;  %v1785_v30 = vpop.f32.mrb[6].mxu1 }
 0x13c   :  { %1949 = vpow2.f32 %v602_v15  ;;  %v536_v20 = vsub.f32 0.0, %v2578_v16  ;;  %v1660_v21 = vpop.f32.mrb[8].mxu0  ;;  %1386 = vst [vmem:[%s3249_s5 + $0x38] sm:$0xff] %v1785_v30  ;;  %v1090_v33 = vpop.f32.mrb[7].mxu1 }
 0x13d   :  { %v1940_v22 = vpop.eup %1939  ;;  %v608_v23 = vmul.f32 1.442695, %v537_v18  ;;  %v2589_v24 = vadd.f32 %v1660_v21, %v2536_v48  ;;  %v251_v25 = vpop.f32.mrb[9].mxu0  ;;  %1385 = vst [vmem:[%s3249_s5 + $0x30] sm:$0xff] %v1090_v33 }
 0x13e   :  { %v1942_v26 = vpop.eup %1941  ;;  %v723_v27 = vadd.f32 1.0, %v1940_v22  ;;  %v606_v28 = vmul.f32 1.442695, %v536_v20  ;;  %v2592_v29 = vadd.f32 %v2536_v48, %v251_v25 }
 0x13f   :  { %v722_v31 = vadd.f32 1.0, %v1942_v26  ;;  %1951 = vpow2.f32 %v608_v23  ;;  %v539_v32 = vsub.f32 0.0, %v2589_v24  ;;  %v1788_v44 = vpop.f32.mrb[8].mxu1 }
 0x140   :  { %1953 = vrcp.f32 %v723_v27  ;;  %v538_v34 = vsub.f32 0.0, %v2592_v29  ;;  %v1663_v35 = vpop.f32.mrb[10].mxu0  ;;  %1388 = vst [vmem:[%s3249_s5 + $0x48] sm:$0xff] %v1788_v44  ;;  %v1100_v47 = vpop.f32.mrb[9].mxu1 }
 0x141   :  { %v1944_v36 = vpop.eup %1943  ;;  %1955 = vrcp.f32 %v722_v31  ;;  %v612_v37 = vmul.f32 1.442695, %v539_v32  ;;  %v2603_v38 = vadd.f32 %v1663_v35, %v2536_v48  ;;  %v261_v39 = vpop.f32.mrb[11].mxu0  ;;  %1387 = vst [vmem:[%s3249_s5 + $0x40] sm:$0xff] %v1100_v47 }
 0x142   :  { %v1946_v40 = vpop.eup %1945  ;;  %v725_v41 = vadd.f32 1.0, %v1944_v36  ;;  %1957 = vpow2.f32 %v606_v28  ;;  %v610_v42 = vmul.f32 1.442695, %v538_v34  ;;  %v2606_v43 = vadd.f32 %v2536_v48, %v261_v39 }
 0x143   :  { %v724_v45 = vadd.f32 1.0, %v1946_v40  ;;  %1959 = vpow2.f32 %v612_v37  ;;  %v541_v46 = vsub.f32 0.0, %v2603_v38  ;;  %v1791_v63 = vpop.f32.mrb[10].mxu1 }
 0x144   :  { %1961 = vrcp.f32 %v725_v41  ;;  %v540_v49 = vsub.f32 0.0, %v2606_v43  ;;  %v1666_v51 = vpop.f32.mrb[12].mxu0  ;;  %1390 = vst [vmem:[%s3249_s5 + $0x58] sm:$0xff] %v1791_v63  ;;  %v1110_v2 = vpop.f32.mrb[11].mxu1 }
 0x145   :  { %v1948_v53 = vpop.eup %1947  ;;  %1963 = vrcp.f32 %v724_v45  ;;  %v616_v54 = vmul.f32 1.442695, %v541_v46  ;;  %v2617_v55 = vadd.f32 %v1666_v51, %v2536_v48  ;;  %v271_v56 = vpop.f32.mrb[13].mxu0  ;;  %1389 = vst [vmem:[%s3249_s5 + $0x50] sm:$0xff] %v1110_v2 }
 0x146   :  { %v1950_v58 = vpop.eup %1949  ;;  %v727_v59 = vadd.f32 1.0, %v1948_v53  ;;  %1965 = vpow2.f32 %v610_v42  ;;  %v614_v61 = vmul.f32 1.442695, %v540_v49  ;;  %v2620_v62 = vadd.f32 %v2536_v48, %v271_v56 }
 0x147   :  { %v726_v0 = vadd.f32 1.0, %v1950_v58  ;;  %1967 = vpow2.f32 %v616_v54  ;;  %v543_v1 = vsub.f32 0.0, %v2617_v55  ;;  %v1794_v17 = vpop.f32.mrb[12].mxu1 }
 0x148   :  { %1969 = vrcp.f32 %v727_v59  ;;  %v542_v4 = vsub.f32 0.0, %v2620_v62  ;;  %v1669_v5 = vpop.f32.mrb[14].mxu0  ;;  %1392 = vst [vmem:[%s3249_s5 + $0x68] sm:$0xff] %v1794_v17  ;;  %v1120_v21 = vpop.f32.mrb[13].mxu1 }
 0x149   :  { %v1952_v7 = vpop.eup %1951  ;;  %1971 = vrcp.f32 %v726_v0  ;;  %v620_v8 = vmul.f32 1.442695, %v543_v1  ;;  %v2631_v9 = vadd.f32 %v1669_v5, %v2536_v48  ;;  %v281_v10 = vpop.f32.mrb[15].mxu0  ;;  %1391 = vst [vmem:[%s3249_s5 + $0x60] sm:$0xff] %v1120_v21 }
 0x14a   :  { %v1954_v11 = vpop.eup %1953  ;;  %v729_v12 = vadd.f32 1.0, %v1952_v7  ;;  %1973 = vpow2.f32 %v614_v61  ;;  %v618_v14 = vmul.f32 1.442695, %v542_v4  ;;  %v2634_v15 = vadd.f32 %v2536_v48, %v281_v10 }
 0x14b   :  { %v1956_v18 = vpop.eup %1955  ;;  %v851_v19 = vmul.f32 %v1954_v11, %v2539_v50  ;;  %1975 = vpow2.f32 %v620_v8  ;;  %v545_v20 = vsub.f32 0.0, %v2631_v9  ;;  %v1797_v35 = vpop.f32.mrb[14].mxu1 }
 0x14c   :  { %v1958_v22 = vpop.eup %1957  ;;  %v850_v23 = vmul.f32 %v1956_v18, %v2542_v52  ;;  %1977 = vrcp.f32 %v729_v12  ;;  %v544_v25 = vsub.f32 0.0, %v2634_v15  ;;  %v1672_v26 = vpop.f32.mrb[16].mxu0  ;;  %1394 = vst [vmem:[%s3249_s5 + $0x78] sm:$0xff] %v1797_v35 }
 0x14d   :  { %v1960_v50 = vpop.eup %1959  ;;  %915 = vst [vmem:[%s3248_s4 + $0x8] sm:$0xff] %v851_v19  ;;  %v728_v27 = vadd.f32 1.0, %v1958_v22  ;;  %1979 = vpow2.f32 %v618_v14  ;;  %v624_v28 = vmul.f32 1.442695, %v545_v20  ;;  %v2650_v30 = vadd.f32 %v1672_v26, %v2536_v48  ;;  %v291_v52 = vpop.f32.mrb[17].mxu0 }
 0x14e   :  { %v1962_v31 = vpop.eup %1961  ;;  %914 = vst [vmem:[%s3248_s4] sm:$0xff] %v850_v23  ;;  %v731_v32 = vadd.f32 1.0, %v1960_v50  ;;  %v622_v33 = vmul.f32 1.442695, %v544_v25  ;;  %v2656_v34 = vadd.f32 %v2536_v48, %v291_v52  ;;  %v1130_v40 = vpop.f32.mrb[15].mxu1 }
 0x14f   :  { %v1964_v36 = vpop.eup %1963  ;;  %v853_v37 = vmul.f32 %v1962_v31, %v2547_v57  ;;  %1981 = vrcp.f32 %v728_v27  ;;  %v547_v39 = vsub.f32 0.0, %v2650_v30  ;;  %1393 = vst [vmem:[%s3249_s5 + $0x70] sm:$0xff] %v1130_v40  ;;  %v1800_v58 = vpop.f32.mrb[16].mxu1 }
 0x150   :  { %v1966_v41 = vpop.eup %1965  ;;  %v852_v42 = vmul.f32 %v1964_v36, %v2550_v60  ;;  %1983 = vrcp.f32 %v731_v32  ;;  %v546_v44 = vsub.f32 0.0, %v2656_v34  ;;  %v1675_v45 = vpop.f32.mrb[18].mxu0  ;;  %1396 = vst [vmem:[%s3249_s5 + $0x88] sm:$0xff] %v1800_v58 }
 0x151   :  { %v1968_v57 = vpop.eup %1967  ;;  %917 = vst [vmem:[%s3248_s4 + $0x18] sm:$0xff] %v853_v37  ;;  %v730_v46 = vadd.f32 1.0, %v1966_v41  ;;  %1985 = vpow2.f32 %v624_v28  ;;  %v628_v47 = vmul.f32 1.442695, %v547_v39  ;;  %v2672_v49 = vadd.f32 %v1675_v45, %v2536_v48  ;;  %v301_v60 = vpop.f32.mrb[19].mxu0 }
 0x152   :  { %v1970_v51 = vpop.eup %1969  ;;  %916 = vst [vmem:[%s3248_s4 + $0x10] sm:$0xff] %v852_v42  ;;  %v733_v53 = vadd.f32 1.0, %v1968_v57  ;;  %1987 = vpow2.f32 %v622_v33  ;;  %v626_v54 = vmul.f32 1.442695, %v546_v44  ;;  %v2678_v56 = vadd.f32 %v2536_v48, %v301_v60  ;;  %v1140_v0 = vpop.f32.mrb[17].mxu1 }
 0x153   :  { %v1972_v59 = vpop.eup %1971  ;;  %v855_v61 = vmul.f32 %v1970_v51, %v2561_v3  ;;  %1989 = vrcp.f32 %v730_v46  ;;  %v549_v63 = vsub.f32 0.0, %v2672_v49  ;;  %1395 = vst [vmem:[%s3249_s5 + $0x80] sm:$0xff] %v1140_v0  ;;  %v1803_v17 = vpop.f32.mrb[18].mxu1 }
 0x154   :  { %v1974_v1 = vpop.eup %1973  ;;  %v854_v2 = vmul.f32 %v1972_v59, %v2564_v6  ;;  %1991 = vrcp.f32 %v733_v53  ;;  %v548_v4 = vsub.f32 0.0, %v2678_v56  ;;  %v1678_v5 = vpop.f32.mrb[20].mxu0  ;;  %1398 = vst [vmem:[%s3249_s5 + $0x98] sm:$0xff] %v1803_v17 }
 0x155   :  { %v1976_v3 = vpop.eup %1975  ;;  %919 = vst [vmem:[%s3248_s4 + $0x28] sm:$0xff] %v855_v61  ;;  %v732_v7 = vadd.f32 1.0, %v1974_v1  ;;  %1993 = vpow2.f32 %v628_v47  ;;  %v632_v8 = vmul.f32 1.442695, %v549_v63  ;;  %v2694_v10 = vadd.f32 %v1678_v5, %v2536_v48  ;;  %v311_v6 = vpop.f32.mrb[21].mxu0 }
 0x156   :  { %v1978_v11 = vpop.eup %1977  ;;  %918 = vst [vmem:[%s3248_s4 + $0x20] sm:$0xff] %v854_v2  ;;  %v735_v12 = vadd.f32 1.0, %v1976_v3  ;;  %1995 = vpow2.f32 %v626_v54  ;;  %v2700_v14 = vadd.f32 %v2536_v48, %v311_v6  ;;  %v630_v20 = vmul.f32 1.442695, %v548_v4  ;;  %v1150_v22 = vpop.f32.mrb[19].mxu1 }
 0x157   :  { %v1980_v18 = vpop.eup %1979  ;;  %v857_v19 = vmul.f32 %v1978_v11, %v2575_v13  ;;  %1997 = vrcp.f32 %v732_v7  ;;  %v551_v21 = vsub.f32 0.0, %v2694_v10  ;;  %1397 = vst [vmem:[%s3249_s5 + $0x90] sm:$0xff] %v1150_v22  ;;  %v1806_v35 = vpop.f32.mrb[20].mxu1 }
 0x158   :  { %1999 = vrcp.f32 %v735_v12  ;;  %v734_v23 = vadd.f32 1.0, %v1980_v18  ;;  %v550_v25 = vsub.f32 0.0, %v2700_v14  ;;  %v1681_v26 = vpop.f32.mrb[22].mxu0  ;;  %1400 = vst [vmem:[%s3249_s5 + $0xa8] sm:$0xff] %v1806_v35  ;;  %v1160_v40 = vpop.f32.mrb[21].mxu1 }
 0x159   :  { %v1982_v50 = vpop.eup %1981  ;;  %921 = vst [vmem:[%s3248_s4 + $0x38] sm:$0xff] %v857_v19  ;;  %2001 = vpow2.f32 %v632_v8  ;;  %v636_v13 = vmul.f32 1.442695, %v551_v21  ;;  %v2715_v27 = vadd.f32 %v1681_v26, %v2536_v48  ;;  %v321_v28 = vpop.f32.mrb[23].mxu0  ;;  %1399 = vst [vmem:[%s3249_s5 + $0xa0] sm:$0xff] %v1160_v40 }
 0x15a   :  { %v1984_v52 = vpop.eup %1983  ;;  %v856_v31 = vmul.f32 %v1982_v50, %v2578_v16  ;;  %2003 = vrcp.f32 %v734_v23  ;;  %v634_v32 = vmul.f32 1.442695, %v550_v25  ;;  %v2719_v33 = vadd.f32 %v2536_v48, %v321_v28 }
 0x15b   :  { %v1986_v36 = vpop.eup %1985  ;;  %v859_v37 = vmul.f32 %v1984_v52, %v2589_v24  ;;  %2005 = vpow2.f32 %v630_v20  ;;  %v553_v39 = vsub.f32 0.0, %v2715_v27  ;;  %v1809_v58 = vpop.f32.mrb[22].mxu1 }
 0x15c   :  { %v1988_v41 = vpop.eup %1987  ;;  %920 = vst [vmem:[%s3248_s4 + $0x30] sm:$0xff] %v856_v31  ;;  %v737_v16 = vadd.f32 1.0, %v1986_v36  ;;  %2007 = vpow2.f32 %v636_v13  ;;  %v552_v42 = vsub.f32 0.0, %v2719_v33  ;;  %v1684_v44 = vpop.f32.mrb[24].mxu0  ;;  %1402 = vst [vmem:[%s3249_s5 + $0xb8] sm:$0xff] %v1809_v58 }
 0x15d   :  { %v1990_v24 = vpop.eup %1989  ;;  %923 = vst [vmem:[%s3248_s4 + $0x48] sm:$0xff] %v859_v37  ;;  %v736_v45 = vadd.f32 1.0, %v1988_v41  ;;  %2009 = vpow2.f32 %v634_v32  ;;  %v640_v57 = vmul.f32 1.442695, %v553_v39  ;;  %v2737_v46 = vadd.f32 %v1684_v44, %v2536_v48  ;;  %v331_v47 = vpop.f32.mrb[25].mxu0 }
 0x15e   :  { %v1992_v60 = vpop.eup %1991  ;;  %v858_v51 = vmul.f32 %v1990_v24, %v2592_v29  ;;  %2011 = vrcp.f32 %v737_v16  ;;  %v638_v53 = vmul.f32 1.442695, %v552_v42  ;;  %v2741_v54 = vadd.f32 %v2536_v48, %v331_v47  ;;  %v1170_v0 = vpop.f32.mrb[23].mxu1 }
 0x15f   :  { %v1994_v59 = vpop.eup %1993  ;;  %v861_v61 = vmul.f32 %v1992_v60, %v2603_v38  ;;  %2013 = vrcp.f32 %v736_v45  ;;  %v555_v63 = vsub.f32 0.0, %v2737_v46  ;;  %1401 = vst [vmem:[%s3249_s5 + $0xb0] sm:$0xff] %v1170_v0  ;;  %v1812_v18 = vpop.f32.mrb[24].mxu1 }
 0x160   :  { %v1996_v1 = vpop.eup %1995  ;;  %922 = vst [vmem:[%s3248_s4 + $0x40] sm:$0xff] %v858_v51  ;;  %v739_v29 = vadd.f32 1.0, %v1994_v59  ;;  %2015 = vpow2.f32 %v640_v57  ;;  %v554_v2 = vsub.f32 0.0, %v2741_v54  ;;  %v1687_v4 = vpop.f32.mrb[26].mxu0  ;;  %1404 = vst [vmem:[%s3249_s5 + $0xc8] sm:$0xff] %v1812_v18 }
 0x161   :  { %v1998_v38 = vpop.eup %1997  ;;  %925 = vst [vmem:[%s3248_s4 + $0x58] sm:$0xff] %v861_v61  ;;  %v738_v5 = vadd.f32 1.0, %v1996_v1  ;;  %2017 = vpow2.f32 %v638_v53  ;;  %v644_v3 = vmul.f32 1.442695, %v555_v63  ;;  %v2759_v7 = vadd.f32 %v1687_v4, %v2536_v48  ;;  %v341_v8 = vpop.f32.mrb[27].mxu0 }
 0x162   :  { %v2000_v6 = vpop.eup %1999  ;;  %v860_v11 = vmul.f32 %v1998_v38, %v2606_v43  ;;  %2019 = vrcp.f32 %v739_v29  ;;  %v642_v12 = vmul.f32 1.442695, %v554_v2  ;;  %v2763_v17 = vadd.f32 %v2536_v48, %v341_v8  ;;  %v1180_v22 = vpop.f32.mrb[25].mxu1 }
 0x163   :  { %v2002_v19 = vpop.eup %2001  ;;  %v863_v20 = vmul.f32 %v2000_v6, %v2617_v55  ;;  %2021 = vrcp.f32 %v738_v5  ;;  %v557_v21 = vsub.f32 0.0, %v2759_v7  ;;  %1403 = vst [vmem:[%s3249_s5 + $0xc0] sm:$0xff] %v1180_v22  ;;  %v1815_v36 = vpop.f32.mrb[26].mxu1 }
 0x164   :  { %v2004_v23 = vpop.eup %2003  ;;  %924 = vst [vmem:[%s3248_s4 + $0x50] sm:$0xff] %v860_v11  ;;  %v741_v43 = vadd.f32 1.0, %v2002_v19  ;;  %2023 = vpow2.f32 %v644_v3  ;;  %v556_v25 = vsub.f32 0.0, %v2763_v17  ;;  %v1690_v26 = vpop.f32.mrb[28].mxu0  ;;  %1406 = vst [vmem:[%s3249_s5 + $0xd8] sm:$0xff] %v1815_v36 }
 0x165   :  { %v2006_v55 = vpop.eup %2005  ;;  %927 = vst [vmem:[%s3248_s4 + $0x68] sm:$0xff] %v863_v20  ;;  %v862_v50 = vmul.f32 %v2004_v23, %v2620_v62  ;;  %2025 = vpow2.f32 %v642_v12  ;;  %v648_v13 = vmul.f32 1.442695, %v557_v21  ;;  %v2782_v28 = vadd.f32 %v1690_v26, %v2536_v48  ;;  %v351_v52 = vpop.f32.mrb[29].mxu0 }
 0x166   :  { %v2008_v31 = vpop.eup %2007  ;;  %2027 = vrcp.f32 %v741_v43  ;;  %v740_v32 = vadd.f32 1.0, %v2006_v55  ;;  %v2785_v35 = vadd.f32 %v2536_v48, %v351_v52  ;;  %v646_v62 = vmul.f32 1.442695, %v556_v25  ;;  %v1190_v41 = vpop.f32.mrb[27].mxu1 }
 0x167   :  { %v2010_v37 = vpop.eup %2009  ;;  %926 = vst [vmem:[%s3248_s4 + $0x60] sm:$0xff] %v862_v50  ;;  %v743_v39 = vadd.f32 1.0, %v2008_v31  ;;  %2029 = vpow2.f32 %v648_v13  ;;  %v559_v40 = vsub.f32 0.0, %v2782_v28  ;;  %1405 = vst [vmem:[%s3249_s5 + $0xd0] sm:$0xff] %v1190_v41  ;;  %v1818_v61 = vpop.f32.mrb[28].mxu1 }
 0x168   :  { %v2012_v16 = vpop.eup %2011  ;;  %2031 = vrcp.f32 %v740_v32  ;;  %v742_v42 = vadd.f32 1.0, %v2010_v37  ;;  %v558_v44 = vsub.f32 0.0, %v2785_v35  ;;  %v1693_v24 = vpop.f32.mrb[30].mxu0  ;;  %1408 = vst [vmem:[%s3249_s5 + $0xe8] sm:$0xff] %v1818_v61 }
 0x169   :  { %v2014_v45 = vpop.eup %2013  ;;  %v865_v57 = vmul.f32 %v2012_v16, %v2631_v9  ;;  %2033 = vrcp.f32 %v743_v39  ;;  %v652_v47 = vmul.f32 1.442695, %v559_v40  ;;  %v2800_v60 = vadd.f32 %v1693_v24, %v2536_v48  ;;  %v361_v51 = vpop.f32.mrb[31].mxu0 }
 0x16a   :  { %v2016_v53 = vpop.eup %2015  ;;  %v864_v58 = vmul.f32 %v2014_v45, %v2634_v15  ;;  %2035 = vrcp.f32 %v742_v42  ;;  %v2804_v59 = vadd.f32 %v2536_v48, %v361_v51  ;;  %v650_v0 = vmul.f32 1.442695, %v558_v44  ;;  %v1200_v15 = vpop.f32.mrb[29].mxu1 }
 0x16b   :  { %v2018_v63 = vpop.eup %2017  ;;  %929 = vst [vmem:[%s3248_s4 + $0x78] sm:$0xff] %v865_v57  ;;  %v745_v9 = vadd.f32 1.0, %v2016_v53  ;;  %2037 = vpow2.f32 %v646_v62  ;;  %v561_v1 = vsub.f32 0.0, %v2800_v60  ;;  %1407 = vst [vmem:[%s3249_s5 + $0xe0] sm:$0xff] %v1200_v15  ;;  %v1821_v20 = vpop.f32.mrb[30].mxu1 }
 0x16c   :  { %v2020_v29 = vpop.eup %2019  ;;  %928 = vst [vmem:[%s3248_s4 + $0x70] sm:$0xff] %v864_v58  ;;  %v744_v2 = vadd.f32 1.0, %v2018_v63  ;;  %2039 = vpow2.f32 %v652_v47  ;;  %v560_v4 = vsub.f32 0.0, %v2804_v59  ;;  %v1696_v38 = vpop.f32.mrb[32].mxu0  ;;  %1410 = vst [vmem:[%s3249_s5 + $0xf8] sm:$0xff] %v1821_v20 }
 0x16d   :  { %v2022_v5 = vpop.eup %2021  ;;  %v867_v3 = vmul.f32 %v2020_v29, %v2650_v30  ;;  %2041 = vrcp.f32 %v745_v9  ;;  %v656_v8 = vmul.f32 1.442695, %v561_v1  ;;  %v2822_v6 = vadd.f32 %v1696_v38, %v2536_v48  ;;  %v371_v11 = vpop.f32.mrb[33].mxu0 }
 0x16e   :  { %v2024_v12 = vpop.eup %2023  ;;  %v866_v18 = vmul.f32 %v2022_v5, %v2656_v34  ;;  %2043 = vrcp.f32 %v744_v2  ;;  %v2826_v19 = vadd.f32 %v2536_v48, %v371_v11  ;;  %v654_v22 = vmul.f32 1.442695, %v560_v4  ;;  %v1210_v34 = vpop.f32.mrb[31].mxu1 }
 0x16f   :  { %v2026_v21 = vpop.eup %2025  ;;  %931 = vst [vmem:[%s3248_s4 + $0x88] sm:$0xff] %v867_v3  ;;  %v747_v30 = vadd.f32 1.0, %v2024_v12  ;;  %2045 = vpow2.f32 %v650_v0  ;;  %v563_v23 = vsub.f32 0.0, %v2822_v6  ;;  %1409 = vst [vmem:[%s3249_s5 + $0xf0] sm:$0xff] %v1210_v34  ;;  %v1824_v40 = vpop.f32.mrb[32].mxu1 }
 0x170   :  { %v2028_v43 = vpop.eup %2027  ;;  %930 = vst [vmem:[%s3248_s4 + $0x80] sm:$0xff] %v866_v18  ;;  %v746_v25 = vadd.f32 1.0, %v2026_v21  ;;  %2047 = vpow2.f32 %v656_v8  ;;  %v562_v26 = vsub.f32 0.0, %v2826_v19  ;;  %v1699_v55 = vpop.f32.mrb[34].mxu0  ;;  %1412 = vst [vmem:[%s3249_s5 + $0x108] sm:$0xff] %v1824_v40 }
 0x171   :  { %v2030_v50 = vpop.eup %2029  ;;  %v869_v13 = vmul.f32 %v2028_v43, %v2672_v49  ;;  %2049 = vrcp.f32 %v747_v30  ;;  %v660_v52 = vmul.f32 1.442695, %v563_v23  ;;  %v2844_v31 = vadd.f32 %v1699_v55, %v2536_v48  ;;  %v381_v32 = vpop.f32.mrb[35].mxu0 }
 0x172   :  { %v2032_v36 = vpop.eup %2031  ;;  %2051 = vrcp.f32 %v746_v25  ;;  %v749_v37 = vadd.f32 1.0, %v2030_v50  ;;  %v658_v39 = vmul.f32 1.442695, %v562_v26  ;;  %v2847_v62 = vadd.f32 %v2536_v48, %v381_v32  ;;  %v1220_v42 = vpop.f32.mrb[33].mxu1 }
 0x173   :  { %v2034_v41 = vpop.eup %2033  ;;  %933 = vst [vmem:[%s3248_s4 + $0x98] sm:$0xff] %v869_v13  ;;  %v868_v49 = vmul.f32 %v2032_v36, %v2678_v56  ;;  %2053 = vpow2.f32 %v654_v22  ;;  %v565_v16 = vsub.f32 0.0, %v2844_v31  ;;  %1411 = vst [vmem:[%s3249_s5 + $0x100] sm:$0xff] %v1220_v42  ;;  %v1827_v0 = vpop.f32.mrb[34].mxu1 }
 0x174   :  { %v2036_v44 = vpop.eup %2035  ;;  %v871_v24 = vmul.f32 %v2034_v41, %v2694_v10  ;;  %2055 = vrcp.f32 %v749_v37  ;;  %v564_v45 = vsub.f32 0.0, %v2847_v62  ;;  %v1702_v57 = vpop.f32.mrb[36].mxu0  ;;  %1414 = vst [vmem:[%s3249_s5 + $0x118] sm:$0xff] %v1827_v0 }
 0x175   :  { %v2038_v56 = vpop.eup %2037  ;;  %932 = vst [vmem:[%s3248_s4 + $0x90] sm:$0xff] %v868_v49  ;;  %v870_v47 = vmul.f32 %v2036_v44, %v2700_v14  ;;  %2057 = vpow2.f32 %v660_v52  ;;  %v664_v51 = vmul.f32 1.442695, %v565_v16  ;;  %v2867_v53 = vadd.f32 %v1702_v57, %v2536_v48  ;;  %v391_v10 = vpop.f32.mrb[37].mxu0 }
 0x176   :  { %v2040_v58 = vpop.eup %2039  ;;  %935 = vst [vmem:[%s3248_s4 + $0xa8] sm:$0xff] %v871_v24  ;;  %v748_v61 = vadd.f32 1.0, %v2038_v56  ;;  %2059 = vpow2.f32 %v658_v39  ;;  %v662_v63 = vmul.f32 1.442695, %v564_v45  ;;  %v2873_v9 = vadd.f32 %v2536_v48, %v391_v10  ;;  %v1230_v29 = vpop.f32.mrb[35].mxu1 }
 0x177   :  { %v2042_v1 = vpop.eup %2041  ;;  %934 = vst [vmem:[%s3248_s4 + $0xa0] sm:$0xff] %v870_v47  ;;  %v751_v14 = vadd.f32 1.0, %v2040_v58  ;;  %2061 = vpow2.f32 %v664_v51  ;;  %v567_v15 = vsub.f32 0.0, %v2867_v53  ;;  %1413 = vst [vmem:[%s3249_s5 + $0x110] sm:$0xff] %v1230_v29  ;;  %v1830_v22 = vpop.f32.mrb[36].mxu1 }
 0x178   :  { %v2044_v2 = vpop.eup %2043  ;;  %v873_v4 = vmul.f32 %v2042_v1, %v2715_v27  ;;  %2063 = vrcp.f32 %v748_v61  ;;  %v566_v38 = vsub.f32 0.0, %v2873_v9  ;;  %v1705_v5 = vpop.f32.mrb[38].mxu0  ;;  %1416 = vst [vmem:[%s3249_s5 + $0x128] sm:$0xff] %v1830_v22 }
 0x179   :  { %v2046_v3 = vpop.eup %2045  ;;  %v872_v8 = vmul.f32 %v2044_v2, %v2719_v33  ;;  %2065 = vrcp.f32 %v751_v14  ;;  %v668_v11 = vmul.f32 1.442695, %v567_v15  ;;  %v2889_v12 = vadd.f32 %v1705_v5, %v2536_v48  ;;  %v401_v18 = vpop.f32.mrb[39].mxu0 }
 0x17a   :  { %v2048_v20 = vpop.eup %2047  ;;  %937 = vst [vmem:[%s3248_s4 + $0xb8] sm:$0xff] %v873_v4  ;;  %v750_v27 = vadd.f32 1.0, %v2046_v3  ;;  %2067 = vpow2.f32 %v662_v63  ;;  %v666_v21 = vmul.f32 1.442695, %v566_v38  ;;  %v2895_v30 = vadd.f32 %v2536_v48, %v401_v18  ;;  %v1240_v43 = vpop.f32.mrb[37].mxu1 }
 0x17b   :  { %v2050_v23 = vpop.eup %2049  ;;  %936 = vst [vmem:[%s3248_s4 + $0xb0] sm:$0xff] %v872_v8  ;;  %v753_v33 = vadd.f32 1.0, %v2048_v20  ;;  %2069 = vpow2.f32 %v668_v11  ;;  %v569_v34 = vsub.f32 0.0, %v2889_v12  ;;  %1415 = vst [vmem:[%s3249_s5 + $0x120] sm:$0xff] %v1240_v43  ;;  %v1833_v49 = vpop.f32.mrb[38].mxu1 }
 0x17c   :  { %v2052_v25 = vpop.eup %2051  ;;  %v875_v26 = vmul.f32 %v2050_v23, %v2737_v46  ;;  %2071 = vrcp.f32 %v750_v27  ;;  %v568_v55 = vsub.f32 0.0, %v2895_v30  ;;  %v1708_v50 = vpop.f32.mrb[40].mxu0  ;;  %1418 = vst [vmem:[%s3249_s5 + $0x138] sm:$0xff] %v1833_v49 }
 0x17d   :  { %v2054_v13 = vpop.eup %2053  ;;  %v874_v52 = vmul.f32 %v2052_v25, %v2741_v54  ;;  %2073 = vrcp.f32 %v753_v33  ;;  %v672_v32 = vmul.f32 1.442695, %v569_v34  ;;  %v2911_v36 = vadd.f32 %v1708_v50, %v2536_v48  ;;  %v411_v37 = vpop.f32.mrb[41].mxu0 }
 0x17e   :  { %v2056_v39 = vpop.eup %2055  ;;  %939 = vst [vmem:[%s3248_s4 + $0xc8] sm:$0xff] %v875_v26  ;;  %v752_v46 = vadd.f32 1.0, %v2054_v13  ;;  %2075 = vpow2.f32 %v666_v21  ;;  %v670_v40 = vmul.f32 1.442695, %v568_v55  ;;  %v2917_v41 = vadd.f32 %v2536_v48, %v411_v37  ;;  %v1250_v44 = vpop.f32.mrb[39].mxu1 }
 0x17f   :  { %v2058_v16 = vpop.eup %2057  ;;  %938 = vst [vmem:[%s3248_s4 + $0xc0] sm:$0xff] %v874_v52  ;;  %v877_v54 = vmul.f32 %v2056_v39, %v2759_v7  ;;  %2077 = vpow2.f32 %v672_v32  ;;  %v571_v42 = vsub.f32 0.0, %v2911_v36  ;;  %1417 = vst [vmem:[%s3249_s5 + $0x130] sm:$0xff] %v1250_v44  ;;  %v1836_v14 = vpop.f32.mrb[40].mxu1  ;;  %v2975_v37 = vld [vmem:[#allocation4] ss:$0 sm:$0xff] }
 0x180   :  { %v2060_v24 = vpop.eup %2059  ;;  %2079 = vrcp.f32 %v752_v46  ;;  %v755_v45 = vadd.f32 1.0, %v2058_v16  ;;  %v570_v57 = vsub.f32 0.0, %v2917_v41  ;;  %v1711_v56 = vpop.f32.mrb[42].mxu0  ;;  %1420 = vst [vmem:[%s3249_s5 + $0x148] sm:$0xff] %v1836_v14 }
 0x181   :  { %v2062_v47 = vpop.eup %2061  ;;  %941 = vst [vmem:[%s3248_s4 + $0xd8] sm:$0xff] %v877_v54  ;;  %v754_v7 = vadd.f32 1.0, %v2060_v24  ;;  %2081 = vpow2.f32 %v670_v40  ;;  %v676_v51 = vmul.f32 1.442695, %v571_v42  ;;  %v2935_v10 = vadd.f32 %v1711_v56, %v2536_v48  ;;  %v421_v58 = vpop.f32.mrb[43].mxu0 }
 0x182   :  { %v2064_v61 = vpop.eup %2063  ;;  %2083 = vrcp.f32 %v755_v45  ;;  %v757_v63 = vadd.f32 1.0, %v2062_v47  ;;  %v674_v0 = vmul.f32 1.442695, %v570_v57  ;;  %v2938_v1 = vadd.f32 %v2536_v48, %v421_v58  ;;  %v1260_v4 = vpop.f32.mrb[41].mxu1 }
 0x183   :  { %v2066_v15 = vpop.eup %2065  ;;  %v876_v29 = vmul.f32 %v2064_v61, %v2763_v17  ;;  %2085 = vrcp.f32 %v754_v7  ;;  %v573_v2 = vsub.f32 0.0, %v2935_v10  ;;  %1419 = vst [vmem:[%s3249_s5 + $0x140] sm:$0xff] %v1260_v4  ;;  %v1839_v33 = vpop.f32.mrb[42].mxu1 }
 0x184   :  { %v2068_v38 = vpop.eup %2067  ;;  %v879_v5 = vmul.f32 %v2066_v15, %v2782_v28  ;;  %2087 = vrcp.f32 %v757_v63  ;;  %v572_v3 = vsub.f32 0.0, %v2938_v1  ;;  %v1714_v8 = vpop.f32.mrb[44].mxu0  ;;  %1422 = vst [vmem:[%s3249_s5 + $0x158] sm:$0xff] %v1839_v33 }
 0x185   :  { %v2070_v17 = vpop.eup %2069  ;;  %940 = vst [vmem:[%s3248_s4 + $0xd0] sm:$0xff] %v876_v29  ;;  %v756_v11 = vadd.f32 1.0, %v2068_v38  ;;  %2089 = vpow2.f32 %v676_v51  ;;  %v680_v18 = vmul.f32 1.442695, %v573_v2  ;;  %v2954_v20 = vadd.f32 %v1714_v8, %v2536_v48  ;;  %v431_v28 = vpop.f32.mrb[45].mxu0 }
 0x186   :  { %v2072_v27 = vpop.eup %2071  ;;  %943 = vst [vmem:[%s3248_s4 + $0xe8] sm:$0xff] %v879_v5  ;;  %v759_v21 = vadd.f32 1.0, %v2070_v17  ;;  %2091 = vpow2.f32 %v674_v0  ;;  %v678_v22 = vmul.f32 1.442695, %v572_v3  ;;  %v2960_v23 = vadd.f32 %v2536_v48, %v431_v28  ;;  %v1270_v26 = vpop.f32.mrb[43].mxu1 }
 0x187   :  { %v2074_v34 = vpop.eup %2073  ;;  %v878_v43 = vmul.f32 %v2072_v27, %v2785_v35  ;;  %2093 = vrcp.f32 %v756_v11  ;;  %v575_v25 = vsub.f32 0.0, %v2954_v20  ;;  %1421 = vst [vmem:[%s3249_s5 + $0x150] sm:$0xff] %v1270_v26  ;;  %v1842_v16 = vpop.f32.mrb[44].mxu1 }
 0x188   :  { %v2076_v55 = vpop.eup %2075  ;;  %v881_v50 = vmul.f32 %v2074_v34, %v2800_v60  ;;  %2095 = vrcp.f32 %v759_v21  ;;  %v574_v13 = vsub.f32 0.0, %v2960_v23  ;;  %v1717_v48 = vpop.f32.mrb[46].mxu0  ;;  %1424 = vst [vmem:[%s3249_s5 + $0x168] sm:$0xff] %v1842_v16 }
 0x189   :  { %v2078_v35 = vpop.eup %2077  ;;  %942 = vst [vmem:[%s3248_s4 + $0xe0] sm:$0xff] %v878_v43  ;;  %v758_v52 = vadd.f32 1.0, %v2076_v55  ;;  %2097 = vpow2.f32 %v680_v18  ;;  %v684_v32 = vmul.f32 1.442695, %v575_v25  ;;  %v2978_v60 = vadd.f32 %v2975_v37, %v1717_v48  ;;  %v441_v39 = vpop.f32.mrb[47].mxu0 }
 0x18a   :  { %v2080_v46 = vpop.eup %2079  ;;  %945 = vst [vmem:[%s3248_s4 + $0xf8] sm:$0xff] %v881_v50  ;;  %v761_v40 = vadd.f32 1.0, %v2078_v35  ;;  %2099 = vpow2.f32 %v678_v22  ;;  %v2984_v49 = vadd.f32 %v2975_v37, %v441_v39  ;;  %v682_v44 = vmul.f32 1.442695, %v574_v13  ;;  %v1280_v45 = vpop.f32.mrb[45].mxu1 }
 0x18b   :  { %v2082_v54 = vpop.eup %2081  ;;  %v880_v42 = vmul.f32 %v2080_v46, %v2804_v59  ;;  %2101 = vrcp.f32 %v758_v52  ;;  %v577_v24 = vsub.f32 0.0, %v2978_v60  ;;  %1423 = vst [vmem:[%s3249_s5 + $0x160] sm:$0xff] %v1280_v45  ;;  %v1845_v2 = vpop.f32.mrb[46].mxu1 }
 0x18c   :  { %v2084_v57 = vpop.eup %2083  ;;  %2103 = vrcp.f32 %v761_v40  ;;  %v760_v56 = vadd.f32 1.0, %v2082_v54  ;;  %v576_v47 = vsub.f32 0.0, %v2984_v49  ;;  %v1720_v7 = vpop.f32.mrb[48].mxu0  ;;  %1426 = vst [vmem:[%s3249_s5 + $0x178] sm:$0xff] %v1845_v2 }
 0x18d   :  { %v2086_v59 = vpop.eup %2085  ;;  %944 = vst [vmem:[%s3248_s4 + $0xf0] sm:$0xff] %v880_v42  ;;  %v883_v51 = vmul.f32 %v2084_v57, %v2822_v6  ;;  %2105 = vpow2.f32 %v684_v32  ;;  %v688_v58 = vmul.f32 1.442695, %v577_v24  ;;  %v3000_v61 = vadd.f32 %v2975_v37, %v1720_v7  ;;  %v451_v63 = vpop.f32.mrb[49].mxu0 }
 0x18e   :  { %v2088_v0 = vpop.eup %2087  ;;  %v882_v14 = vmul.f32 %v2086_v59, %v2826_v19  ;;  %2107 = vrcp.f32 %v760_v56  ;;  %v686_v15 = vmul.f32 1.442695, %v576_v47  ;;  %v3004_v29 = vadd.f32 %v2975_v37, %v451_v63  ;;  %v1290_v19 = vpop.f32.mrb[47].mxu1 }
 0x18f   :  { %v2090_v4 = vpop.eup %2089  ;;  %947 = vst [vmem:[%s3248_s4 + $0x108] sm:$0xff] %v883_v51  ;;  %v885_v6 = vmul.f32 %v2088_v0, %v2844_v31  ;;  %2109 = vpow2.f32 %v682_v44  ;;  %v579_v38 = vsub.f32 0.0, %v3000_v61  ;;  %1425 = vst [vmem:[%s3249_s5 + $0x170] sm:$0xff] %v1290_v19  ;;  %v1848_v43 = vpop.f32.mrb[48].mxu1 }
 0x190   :  { %v2092_v5 = vpop.eup %2091  ;;  %946 = vst [vmem:[%s3248_s4 + $0x100] sm:$0xff] %v882_v14  ;;  %v763_v3 = vadd.f32 1.0, %v2090_v4  ;;  %2111 = vpow2.f32 %v688_v58  ;;  %v578_v8 = vsub.f32 0.0, %v3004_v29  ;;  %v1723_v17 = vpop.f32.mrb[50].mxu0  ;;  %1428 = vst [vmem:[%s3249_s5 + $0x188] sm:$0xff] %v1848_v43 }
 0x191   :  { %v2094_v31 = vpop.eup %2093  ;;  %949 = vst [vmem:[%s3248_s4 + $0x118] sm:$0xff] %v885_v6  ;;  %v762_v11 = vadd.f32 1.0, %v2092_v5  ;;  %2113 = vpow2.f32 %v686_v15  ;;  %v692_v18 = vmul.f32 1.442695, %v579_v38  ;;  %v3025_v28 = vadd.f32 %v2975_v37, %v1723_v17  ;;  %v461_v27 = vpop.f32.mrb[51].mxu0 }
 0x192   :  { %v2096_v21 = vpop.eup %2095  ;;  %v884_v22 = vmul.f32 %v2094_v31, %v2847_v62  ;;  %2115 = vrcp.f32 %v763_v3  ;;  %v690_v33 = vmul.f32 1.442695, %v578_v8  ;;  %v3029_v34 = vadd.f32 %v2975_v37, %v461_v27  ;;  %v1300_v50 = vpop.f32.mrb[49].mxu1 }
 0x193   :  { %v2098_v25 = vpop.eup %2097  ;;  %v887_v26 = vmul.f32 %v2096_v21, %v2867_v53  ;;  %2117 = vrcp.f32 %v762_v11  ;;  %v581_v55 = vsub.f32 0.0, %v3025_v28  ;;  %1427 = vst [vmem:[%s3249_s5 + $0x180] sm:$0xff] %v1300_v50  ;;  %v1851_v44 = vpop.f32.mrb[50].mxu1 }
 0x194   :  { %v2100_v13 = vpop.eup %2099  ;;  %948 = vst [vmem:[%s3248_s4 + $0x110] sm:$0xff] %v884_v22  ;;  %v765_v62 = vadd.f32 1.0, %v2098_v25  ;;  %2119 = vpow2.f32 %v692_v18  ;;  %v580_v48 = vsub.f32 0.0, %v3029_v34  ;;  %v1726_v35 = vpop.f32.mrb[52].mxu0  ;;  %1430 = vst [vmem:[%s3249_s5 + $0x198] sm:$0xff] %v1851_v44 }
 0x195   :  { %v2102_v53 = vpop.eup %2101  ;;  %951 = vst [vmem:[%s3248_s4 + $0x128] sm:$0xff] %v887_v26  ;;  %v764_v52 = vadd.f32 1.0, %v2100_v13  ;;  %2121 = vpow2.f32 %v690_v33  ;;  %v696_v32 = vmul.f32 1.442695, %v581_v55  ;;  %v3047_v39 = vadd.f32 %v2975_v37, %v1726_v35  ;;  %v471_v46 = vpop.f32.mrb[53].mxu0 }
 0x196   :  { %v2104_v40 = vpop.eup %2103  ;;  %v886_v16 = vmul.f32 %v2102_v53, %v2873_v9  ;;  %2123 = vrcp.f32 %v765_v62  ;;  %v694_v54 = vmul.f32 1.442695, %v580_v48  ;;  %v3051_v42 = vadd.f32 %v2975_v37, %v471_v46  ;;  %v1310_v56 = vpop.f32.mrb[51].mxu1 }
 0x197   :  { %v2106_v24 = vpop.eup %2105  ;;  %v889_v45 = vmul.f32 %v2104_v40, %v2889_v12  ;;  %2125 = vrcp.f32 %v764_v52  ;;  %v583_v57 = vsub.f32 0.0, %v3047_v39  ;;  %1429 = vst [vmem:[%s3249_s5 + $0x190] sm:$0xff] %v1310_v56  ;;  %v1854_v4 = vpop.f32.mrb[52].mxu1 }
 0x198   :  { %v2108_v47 = vpop.eup %2107  ;;  %950 = vst [vmem:[%s3248_s4 + $0x120] sm:$0xff] %v886_v16  ;;  %v767_v9 = vadd.f32 1.0, %v2106_v24  ;;  %2127 = vpow2.f32 %v696_v32  ;;  %v582_v7 = vsub.f32 0.0, %v3051_v42  ;;  %v1729_v59 = vpop.f32.mrb[54].mxu0  ;;  %1432 = vst [vmem:[%s3249_s5 + $0x1a8] sm:$0xff] %v1854_v4 }
 0x199   :  { %v2110_v12 = vpop.eup %2109  ;;  %953 = vst [vmem:[%s3248_s4 + $0x138] sm:$0xff] %v889_v45  ;;  %v888_v51 = vmul.f32 %v2108_v47, %v2895_v30  ;;  %2129 = vpow2.f32 %v694_v54  ;;  %v700_v58 = vmul.f32 1.442695, %v583_v57  ;;  %v3070_v63 = vadd.f32 %v2975_v37, %v1729_v59  ;;  %v481_v0 = vpop.f32.mrb[55].mxu0 }
 0x19a   :  { %v2112_v14 = vpop.eup %2111  ;;  %2131 = vrcp.f32 %v767_v9  ;;  %v766_v15 = vadd.f32 1.0, %v2110_v12  ;;  %v3073_v2 = vadd.f32 %v2975_v37, %v481_v0  ;;  %v698_v30 = vmul.f32 1.442695, %v582_v7  ;;  %v1320_v5 = vpop.f32.mrb[53].mxu1 }
 0x19b   :  { %v2114_v6 = vpop.eup %2113  ;;  %952 = vst [vmem:[%s3248_s4 + $0x130] sm:$0xff] %v888_v51  ;;  %v769_v38 = vadd.f32 1.0, %v2112_v14  ;;  %2133 = vpow2.f32 %v700_v58  ;;  %v585_v19 = vsub.f32 0.0, %v3070_v63  ;;  %1431 = vst [vmem:[%s3249_s5 + $0x1a0] sm:$0xff] %v1320_v5  ;;  %v1857_v26 = vpop.f32.mrb[54].mxu1 }
 0x19c   :  { %v2116_v3 = vpop.eup %2115  ;;  %2135 = vrcp.f32 %v766_v15  ;;  %v768_v8 = vadd.f32 1.0, %v2114_v6  ;;  %v584_v17 = vsub.f32 0.0, %v3073_v2  ;;  %v1732_v31 = vpop.f32.mrb[56].mxu0  ;;  %1434 = vst [vmem:[%s3249_s5 + $0x1b8] sm:$0xff] %v1857_v26 }
 0x19d   :  { %v2118_v11 = vpop.eup %2117  ;;  %v891_v18 = vmul.f32 %v2116_v3, %v2911_v36  ;;  %2137 = vrcp.f32 %v769_v38  ;;  %v704_v27 = vmul.f32 1.442695, %v585_v19  ;;  %v3088_v21 = vadd.f32 %v2975_v37, %v1732_v31  ;;  %v491_v22 = vpop.f32.mrb[57].mxu0 }
 0x19e   :  { %v2120_v33 = vpop.eup %2119  ;;  %v890_v43 = vmul.f32 %v2118_v11, %v2917_v41  ;;  %2139 = vrcp.f32 %v768_v8  ;;  %v3092_v25 = vadd.f32 %v2975_v37, %v491_v22  ;;  %v702_v50 = vmul.f32 1.442695, %v584_v17  ;;  %v1330_v41 = vpop.f32.mrb[55].mxu1 }
 0x19f   :  { %v2122_v55 = vpop.eup %2121  ;;  %955 = vst [vmem:[%s3248_s4 + $0x148] sm:$0xff] %v891_v18  ;;  %v771_v36 = vadd.f32 1.0, %v2120_v33  ;;  %2141 = vpow2.f32 %v698_v30  ;;  %v587_v13 = vsub.f32 0.0, %v3088_v21  ;;  %1433 = vst [vmem:[%s3249_s5 + $0x1b0] sm:$0xff] %v1330_v41  ;;  %v1860_v45 = vpop.f32.mrb[56].mxu1 }
 0x1a0   :  { %v2124_v62 = vpop.eup %2123  ;;  %954 = vst [vmem:[%s3248_s4 + $0x140] sm:$0xff] %v890_v43  ;;  %v770_v48 = vadd.f32 1.0, %v2122_v55  ;;  %2143 = vpow2.f32 %v704_v27  ;;  %v586_v35 = vsub.f32 0.0, %v3092_v25  ;;  %v1735_v53 = vpop.f32.mrb[58].mxu0  ;;  %1436 = vst [vmem:[%s3249_s5 + $0x1c8] sm:$0xff] %v1860_v45 }
 0x1a1   :  { %v2126_v52 = vpop.eup %2125  ;;  %v893_v32 = vmul.f32 %v2124_v62, %v2935_v10  ;;  %2145 = vrcp.f32 %v771_v36  ;;  %v708_v46 = vmul.f32 1.442695, %v587_v13  ;;  %v3110_v40 = vadd.f32 %v2975_v37, %v1735_v53  ;;  %v501_v16 = vpop.f32.mrb[59].mxu0 }
 0x1a2   :  { %v2128_v54 = vpop.eup %2127  ;;  %v892_v44 = vmul.f32 %v2126_v52, %v2938_v1  ;;  %2147 = vrcp.f32 %v770_v48  ;;  %v3114_v24 = vadd.f32 %v2975_v37, %v501_v16  ;;  %v706_v56 = vmul.f32 1.442695, %v586_v35  ;;  %v1340_v1 = vpop.f32.mrb[57].mxu1 }
 0x1a3   :  { %v2130_v57 = vpop.eup %2129  ;;  %957 = vst [vmem:[%s3248_s4 + $0x158] sm:$0xff] %v893_v32  ;;  %v773_v10 = vadd.f32 1.0, %v2128_v54  ;;  %2149 = vpow2.f32 %v702_v50  ;;  %v589_v47 = vsub.f32 0.0, %v3110_v40  ;;  %1435 = vst [vmem:[%s3249_s5 + $0x1c0] sm:$0xff] %v1340_v1  ;;  %v1863_v19 = vpop.f32.mrb[58].mxu1 }
 0x1a4   :  { %v2132_v9 = vpop.eup %2131  ;;  %956 = vst [vmem:[%s3248_s4 + $0x150] sm:$0xff] %v892_v44  ;;  %v772_v7 = vadd.f32 1.0, %v2130_v57  ;;  %2151 = vpow2.f32 %v708_v46  ;;  %v588_v59 = vsub.f32 0.0, %v3114_v24  ;;  %v1738_v12 = vpop.f32.mrb[60].mxu0  ;;  %1438 = vst [vmem:[%s3249_s5 + $0x1d8] sm:$0xff] %v1863_v19 }
 0x1a5   :  { %v2134_v51 = vpop.eup %2133  ;;  %v895_v58 = vmul.f32 %v2132_v9, %v2954_v20  ;;  %2153 = vrcp.f32 %v773_v10  ;;  %v712_v0 = vmul.f32 1.442695, %v589_v47  ;;  %v3132_v14 = vadd.f32 %v2975_v37, %v1738_v12  ;;  %v511_v15 = vpop.f32.mrb[61].mxu0 }
 0x1a6   :  { %v2136_v4 = vpop.eup %2135  ;;  %2155 = vrcp.f32 %v772_v7  ;;  %v775_v6 = vadd.f32 1.0, %v2134_v51  ;;  %v710_v38 = vmul.f32 1.442695, %v588_v59  ;;  %v3135_v30 = vadd.f32 %v2975_v37, %v511_v15  ;;  %v1350_v8 = vpop.f32.mrb[59].mxu1 }
 0x1a7   :  { %v2138_v5 = vpop.eup %2137  ;;  %959 = vst [vmem:[%s3248_s4 + $0x168] sm:$0xff] %v895_v58  ;;  %v894_v20 = vmul.f32 %v2136_v4, %v2960_v23  ;;  %2157 = vpow2.f32 %v706_v56  ;;  %v591_v3 = vsub.f32 0.0, %v3132_v14  ;;  %1437 = vst [vmem:[%s3249_s5 + $0x1d0] sm:$0xff] %v1350_v8  ;;  %v1866_v50 = vpop.f32.mrb[60].mxu1 }
 0x1a8   :  { %v2140_v17 = vpop.eup %2139  ;;  %v897_v31 = vmul.f32 %v2138_v5, %v2978_v60  ;;  %2159 = vrcp.f32 %v775_v6  ;;  %v590_v11 = vsub.f32 0.0, %v3135_v30  ;;  %v1741_v18 = vpop.f32.mrb[62].mxu0  ;;  %1440 = vst [vmem:[%s3249_s5 + $0x1e8] sm:$0xff] %v1866_v50 }
 0x1a9   :  { %v2142_v23 = vpop.eup %2141  ;;  %958 = vst [vmem:[%s3248_s4 + $0x160] sm:$0xff] %v894_v20  ;;  %v896_v27 = vmul.f32 %v2140_v17, %v2984_v49  ;;  %2161 = vpow2.f32 %v712_v0  ;;  %v716_v22 = vmul.f32 1.442695, %v591_v3  ;;  %v3155_v33 = vadd.f32 %v2975_v37, %v1741_v18  ;;  %v521_v60 = vpop.f32.mrb[63].mxu0 }
 0x1aa   :  { %v2144_v43 = vpop.eup %2143  ;;  %961 = vst [vmem:[%s3248_s4 + $0x178] sm:$0xff] %v897_v31  ;;  %v774_v26 = vadd.f32 1.0, %v2142_v23  ;;  %2163 = vpow2.f32 %v710_v38  ;;  %v714_v55 = vmul.f32 1.442695, %v590_v11  ;;  %v3161_v36 = vadd.f32 %v2975_v37, %v521_v60  ;;  %v1360_v62 = vpop.f32.mrb[61].mxu1 }
 0x1ab   :  { %v2146_v13 = vpop.eup %2145  ;;  %960 = vst [vmem:[%s3248_s4 + $0x170] sm:$0xff] %v896_v27  ;;  %v777_v49 = vadd.f32 1.0, %v2144_v43  ;;  %2165 = vpow2.f32 %v716_v22  ;;  %v593_v41 = vsub.f32 0.0, %v3155_v33  ;;  %1439 = vst [vmem:[%s3249_s5 + $0x1e0] sm:$0xff] %v1360_v62  ;;  %v1869_v54 = vpop.f32.mrb[62].mxu1 }
 0x1ac   :  { %v2148_v48 = vpop.eup %2147  ;;  %v899_v35 = vmul.f32 %v2146_v13, %v3000_v61  ;;  %2167 = vrcp.f32 %v774_v26  ;;  %v592_v37 = vsub.f32 0.0, %v3161_v36  ;;  %1442 = vst [vmem:[%s3249_s5 + $0x1f8] sm:$0xff] %v1869_v54 }
 0x1ad   :  { %v2150_v53 = vpop.eup %2149  ;;  %v898_v52 = vmul.f32 %v2148_v48, %v3004_v29  ;;  %2169 = vrcp.f32 %v777_v49  ;;  %v720_v32 = vmul.f32 1.442695, %v593_v41  ;;  %v1370_v29 = vpop.f32.mrb[63].mxu1 }
 0x1ae   :  { %v2152_v46 = vpop.eup %2151  ;;  %963 = vst [vmem:[%s3248_s4 + $0x188] sm:$0xff] %v899_v35  ;;  %v776_v16 = vadd.f32 1.0, %v2150_v53  ;;  %2171 = vpow2.f32 %v714_v55  ;;  %v718_v61 = vmul.f32 1.442695, %v592_v37  ;;  %1441 = vst [vmem:[%s3249_s5 + $0x1f0] sm:$0xff] %v1370_v29 }
 0x1af   :  { %v2154_v44 = vpop.eup %2153  ;;  %962 = vst [vmem:[%s3248_s4 + $0x180] sm:$0xff] %v898_v52  ;;  %v779_v45 = vadd.f32 1.0, %v2152_v46  ;;  %2173 = vpow2.f32 %v720_v32 }
 0x1b0   :  { %v2156_v57 = vpop.eup %2155  ;;  %v901_v10 = vmul.f32 %v2154_v44, %v3025_v28  ;;  %2175 = vrcp.f32 %v776_v16 }
 0x1b1   :  { %v2158_v56 = vpop.eup %2157  ;;  %v900_v47 = vmul.f32 %v2156_v57, %v3029_v34  ;;  %2177 = vrcp.f32 %v779_v45 }
 0x1b2   :  { %v2160_v1 = vpop.eup %2159  ;;  %965 = vst [vmem:[%s3248_s4 + $0x198] sm:$0xff] %v901_v10  ;;  %v778_v9 = vadd.f32 1.0, %v2158_v56  ;;  %2179 = vpow2.f32 %v718_v61 }
 0x1b3   :  { %v2162_v7 = vpop.eup %2161  ;;  %964 = vst [vmem:[%s3248_s4 + $0x190] sm:$0xff] %v900_v47  ;;  %v903_v28 = vmul.f32 %v2160_v1, %v3047_v39 }
 0x1b4   :  { %v2164_v59 = vpop.eup %2163  ;;  %2181 = vrcp.f32 %v778_v9  ;;  %v781_v12 = vadd.f32 1.0, %v2162_v7 }
 0x1b5   :  { %v2166_v51 = vpop.eup %2165  ;;  %967 = vst [vmem:[%s3248_s4 + $0x1a8] sm:$0xff] %v903_v28  ;;  %v780_v34 = vadd.f32 1.0, %v2164_v59 }
 0x1b6   :  { %v2168_v58 = vpop.eup %2167  ;;  %2183 = vrcp.f32 %v781_v12  ;;  %v783_v0 = vadd.f32 1.0, %v2166_v51 }
 0x1b7   :  { %v2170_v15 = vpop.eup %2169  ;;  %v902_v4 = vmul.f32 %v2168_v58, %v3051_v42  ;;  %2185 = vrcp.f32 %v780_v34 }
 0x1b8   :  { %v2172_v6 = vpop.eup %2171  ;;  %v905_v38 = vmul.f32 %v2170_v15, %v3070_v63  ;;  %2187 = vrcp.f32 %v783_v0 }
 0x1b9   :  { %v2174_v39 = vpop.eup %2173  ;;  %966 = vst [vmem:[%s3248_s4 + $0x1a0] sm:$0xff] %v902_v4  ;;  %v782_v19 = vadd.f32 1.0, %v2172_v6 }
 0x1ba   :  { %v2176_v5 = vpop.eup %2175  ;;  %969 = vst [vmem:[%s3248_s4 + $0x1b8] sm:$0xff] %v905_v38  ;;  %v785_v20 = vadd.f32 1.0, %v2174_v39 }
 0x1bb   :  { %v2178_v3 = vpop.eup %2177  ;;  %v904_v42 = vmul.f32 %v2176_v5, %v3073_v2  ;;  %2189 = vrcp.f32 %v782_v19 }
 0x1bc   :  { %v2180_v8 = vpop.eup %2179  ;;  %v907_v63 = vmul.f32 %v2178_v3, %v3088_v21  ;;  %2191 = vrcp.f32 %v785_v20 }
 0x1bd   :  { %968 = vst [vmem:[%s3248_s4 + $0x1b0] sm:$0xff] %v904_v42  ;;  %v784_v17 = vadd.f32 1.0, %v2180_v8 }
 0x1be   :  { %v2182_v31 = vpop.eup %2181  ;;  %971 = vst [vmem:[%s3248_s4 + $0x1c8] sm:$0xff] %v907_v63 }
 0x1bf   :  { %v906_v11 = vmul.f32 %v2182_v31, %v3092_v25  ;;  %2193 = vrcp.f32 %v784_v17 }
 0x1c0   :  { %v2184_v18 = vpop.eup %2183 }
 0x1c1   :  { %v2186_v2 = vpop.eup %2185  ;;  %970 = vst [vmem:[%s3248_s4 + $0x1c0] sm:$0xff] %v906_v11  ;;  %v909_v21 = vmul.f32 %v2184_v18, %v3110_v40 }
 0x1c2   :  { %v2188_v23 = vpop.eup %2187  ;;  %v908_v27 = vmul.f32 %v2186_v2, %v3114_v24 }
 0x1c3   :  { %973 = vst [vmem:[%s3248_s4 + $0x1d8] sm:$0xff] %v909_v21  ;;  %v911_v22 = vmul.f32 %v2188_v23, %v3132_v14 }
 0x1c4   :  { %972 = vst [vmem:[%s3248_s4 + $0x1d0] sm:$0xff] %v908_v27 }
 0x1c5   :  { %v2190_v25 = vpop.eup %2189  ;;  %975 = vst [vmem:[%s3248_s4 + $0x1e8] sm:$0xff] %v911_v22 }
 0x1c6   :  { %v2192_v60 = vpop.eup %2191  ;;  %v910_v40 = vmul.f32 %v2190_v25, %v3135_v30 }
 0x1c7   :  { %v913_v24 = vmul.f32 %v2192_v60, %v3155_v33 }
 0x1c8   :  { %974 = vst [vmem:[%s3248_s4 + $0x1e0] sm:$0xff] %v910_v40 }
 0x1c9   :  { %v2194_v43 = vpop.eup %2193  ;;  %977 = vst [vmem:[%s3248_s4 + $0x1f8] sm:$0xff] %v913_v24 }
 0x1ca   :  { %v912_v14 = vmul.f32 %v2194_v43, %v3161_v36 }
 0x1cc   :  { %976 = vst [vmem:[%s3248_s4 + $0x1f0] sm:$0xff] %v912_v14 }
 0x1cd   :  { %1451 = vsyncpa [#allocation3], 1 }
 0x1ce   :  { %1452 = vsyncpa [#allocation5], 1 }

// kernel: csp_forward.5
= control target key start
LH: loop header
LB: loop body
LE: loop exit
PB: predicated region body
PF: predicated region fallthrough
CT: control target
= control target key end

     0   :  { %s6172_s2 = inlined_call_operand.vmem [shape: f32[128,128], index: 2, kind: input, shape index: {}]   ;;  %s6173_s0 = inlined_call_operand.vmem [shape: f32[512,128], index: 0, kind: input, shape index: {}]   ;;  %s6174_s6 = inlined_call_operand.vmem [shape: f32[128,128], index: 6, kind: input, shape index: {}]   ;;  %s6175_s1 = inlined_call_operand.vmem [shape: f32[512,128], index: 1, kind: input, shape index: {}]   ;;  %s6176_s4 = inlined_call_operand.vmem [shape: f32[1,128], index: 4, kind: input, shape index: {}]   ;;  %s6177_s5 = inlined_call_operand.vmem [shape: f32[128,128], index: 5, kind: input, shape index: {}]   ;;  %s6178_s3 = inlined_call_operand.vmem [shape: f32[1,128], index: 3, kind: input, shape index: {}]   ;;  %s6179_s7 = inlined_call_operand.vmem [shape: f32[1,128], index: 7, kind: input, shape index: {}]   ;;  %s6180_s8 = inlined_call_operand.vmem [shape: f32[512,128], index: 8, kind: output, shape index: {}]  }
   0x1   :  { %v93_v0 = vld [vmem:[%s6172_s2] sm:$0xff]  ;;  %v94_v1 = vld [vmem:[%s6172_s2 + $0x8] sm:$0xff]  ;;  %v95_v2 = vld [vmem:[%s6172_s2 + $0x10] sm:$0xff] }
   0x2   :  { %v3356_v3 = vpack.c.bf16 %v94_v1, %v93_v0  ;;  %v96_v4 = vld [vmem:[%s6172_s2 + $0x18] sm:$0xff]  ;;  %v97_v6 = vld [vmem:[%s6172_s2 + $0x20] sm:$0xff]  ;;  %v98_v7 = vld [vmem:[%s6172_s2 + $0x28] sm:$0xff] }
   0x3   :  { %v3360_v5 = vpack.c.bf16 %v96_v4, %v95_v2  ;;  %v3364_v8 = vpack.c.bf16 %v98_v7, %v97_v6  ;;  %v29_v9 = vld [vmem:[%s6173_s0] sm:$0xff]  ;;  %v99_v10 = vld [vmem:[%s6172_s2 + $0x30] sm:$0xff]  ;;  %v100_v11 = vld [vmem:[%s6172_s2 + $0x38] sm:$0xff] }
   0x4   :  { %3357 = vmatprep.subr.bf16.mxu0 %v3356_v3  ;;  %3004 = vmatprep.mubr.f32.mxu0 %v29_v9  ;;  %v3368_v12 = vpack.c.bf16 %v100_v11, %v99_v10  ;;  %v101_v13 = vld [vmem:[%s6172_s2 + $0x40] sm:$0xff]  ;;  %v102_v14 = vld [vmem:[%s6172_s2 + $0x48] sm:$0xff]  ;;  %v103_v16 = vld [vmem:[%s6172_s2 + $0x50] sm:$0xff] }
   0x5   :  { %3359 = vmatpush3.bf16.msra.mxu0 %v3356_v3  ;;  %v3372_v15 = vpack.c.bf16 %v102_v14, %v101_v13  ;;  %v104_v17 = vld [vmem:[%s6172_s2 + $0x58] sm:$0xff]  ;;  %v105_v19 = vld [vmem:[%s6172_s2 + $0x60] sm:$0xff]  ;;  %v106_v20 = vld [vmem:[%s6172_s2 + $0x68] sm:$0xff] }
   0x6   :  { %3361 = vmatprep.subr.bf16.mxu0 %v3360_v5  ;;  %v3376_v18 = vpack.c.bf16 %v104_v17, %v103_v16  ;;  %v3380_v21 = vpack.c.bf16 %v106_v20, %v105_v19  ;;  %v107_v22 = vld [vmem:[%s6172_s2 + $0x70] sm:$0xff]  ;;  %v108_v23 = vld [vmem:[%s6172_s2 + $0x78] sm:$0xff]  ;;  %v30_v25 = vld [vmem:[%s6173_s0 + $0x8] sm:$0xff] }
   0x7   :  { %v3384_v24 = vpack.c.bf16 %v108_v23, %v107_v22  ;;  %v1420_v26 = vld [vmem:[%s6174_s6] sm:$0xff]  ;;  %v1421_v27 = vld [vmem:[%s6174_s6 + $0x8] sm:$0xff]  ;;  %v1422_v28 = vld [vmem:[%s6174_s6 + $0x10] sm:$0xff] }
   0x8   :  { %v31_v29 = vld [vmem:[%s6173_s0 + $0x10] sm:$0xff]  ;;  %v3388_v30 = vpack.c.bf16 %v1421_v27, %v1420_v26  ;;  %v1423_v31 = vld [vmem:[%s6174_s6 + $0x18] sm:$0xff]  ;;  %v1424_v33 = vld [vmem:[%s6174_s6 + $0x20] sm:$0xff] }
   0x9   :  { %3363 = vmatpush3.bf16.msra.mxu0 %v3360_v5  ;;  %v3392_v32 = vpack.c.bf16 %v1423_v31, %v1422_v28  ;;  %v1425_v34 = vld [vmem:[%s6174_s6 + $0x28] sm:$0xff]  ;;  %v32_v35 = vld [vmem:[%s6173_s0 + $0x18] sm:$0xff]  ;;  %v33_v36 = vld [vmem:[%s6173_s0 + $0x20] sm:$0xff] }
   0xa   :  { %3365 = vmatprep.subr.bf16.mxu0 %v3364_v8  ;;  %3452 = vmatprep.subr.bf16.mxu1 %v3388_v30  ;;  %v1426_v37 = vld [vmem:[%s6174_s6 + $0x30] sm:$0xff]  ;;  %v4432_v38 = vpack.c.bf16 %v1425_v34, %v1424_v33  ;;  %v1427_v39 = vld [vmem:[%s6174_s6 + $0x38] sm:$0xff]  ;;  %v917_v40 = vld [vmem:[%s6175_s1 + $0x100] sm:$0xff] }
   0xb   :  { %3460 = vmatpush3.bf16.msra.mxu1 %v3388_v30  ;;  %v4443_v41 = vld [vmem:[%s6176_s4] ss:$0 sm:$0xff]  ;;  %v1429_v43 = vld [vmem:[%s6174_s6 + $0x48] sm:$0xff]  ;;  %v919_v47 = vld [vmem:[%s6175_s1 + $0x110] sm:$0xff]  ;;  %v4489_v57 = vpack.c.bf16 %v1427_v39, %v1426_v37 }
   0xc   :  { %3453 = vmatprep.subr.bf16.mxu1 %v3392_v32  ;;  %v1428_v42 = vld [vmem:[%s6174_s6 + $0x40] sm:$0xff]  ;;  %v4452_v44 = vadd.f32 %v4443_v41, %v917_v40  ;;  %v918_v45 = vld [vmem:[%s6175_s1 + $0x108] sm:$0xff]  ;;  %v920_v48 = vld [vmem:[%s6175_s1 + $0x118] sm:$0xff]  ;;  %v4474_v52 = vadd.f32 %v4443_v41, %v919_v47 }
   0xd   :  { %3367 = vmatpush3.bf16.msra.mxu0 %v3364_v8  ;;  %v4458_v46 = vadd.f32 %v4443_v41, %v918_v45  ;;  %v921_v49 = vld [vmem:[%s6175_s1 + $0x120] sm:$0xff]  ;;  %v34_v50 = vld [vmem:[%s6173_s0 + $0x28] sm:$0xff]  ;;  %v4477_v53 = vadd.f32 %v4443_v41, %v920_v48  ;;  %v35_v56 = vld [vmem:[%s6173_s0 + $0x30] sm:$0xff]  ;;  %v4491_v58 = vpack.c.bf16 %v1429_v43, %v1428_v42 }
   0xe   :  { %3369 = vmatprep.subr.bf16.mxu0 %v3368_v12  ;;  %v1052_v51 = vsub.f32 0.0, %v4452_v44  ;;  %v4480_v54 = vadd.f32 %v4443_v41, %v921_v49  ;;  %v922_v55 = vld [vmem:[%s6175_s1 + $0x128] sm:$0xff]  ;;  %v923_v61 = vld [vmem:[%s6175_s1 + $0x130] sm:$0xff]  ;;  %v924_v62 = vld [vmem:[%s6175_s1 + $0x138] sm:$0xff]  ;;  %v1054_v1 = vsub.f32 0.0, %v4474_v52 }
   0xf   :  { %3461 = vmatpush3.bf16.msra.mxu1 %v3392_v32  ;;  %v1053_v59 = vsub.f32 0.0, %v4458_v46  ;;  %v4495_v60 = vadd.f32 %v4443_v41, %v922_v55  ;;  %v36_v63 = vld [vmem:[%s6173_s0 + $0x38] sm:$0xff]  ;;  %v1055_v2 = vsub.f32 0.0, %v4477_v53  ;;  %v4511_v6 = vadd.f32 %v4443_v41, %v923_v61  ;;  %v925_v8 = vld [vmem:[%s6175_s1 + $0x140] sm:$0xff]  ;;  %v926_v9 = vld [vmem:[%s6175_s1 + $0x148] sm:$0xff] }
  0x10   :  { %3454 = vmatprep.subr.bf16.mxu1 %v4432_v38  ;;  %v1148_v0 = vmul.f32 1.442695, %v1052_v51  ;;  %v1056_v3 = vsub.f32 0.0, %v4480_v54  ;;  %v4514_v7 = vadd.f32 %v4443_v41, %v924_v62  ;;  %v927_v10 = vld [vmem:[%s6175_s1 + $0x150] sm:$0xff]  ;;  %v1152_v11 = vmul.f32 1.442695, %v1054_v1 }
  0x11   :  { %3371 = vmatpush3.bf16.msra.mxu0 %v3368_v12  ;;  %v1150_v4 = vmul.f32 1.442695, %v1053_v59  ;;  %v1057_v5 = vsub.f32 0.0, %v4495_v60  ;;  %v1154_v12 = vmul.f32 1.442695, %v1055_v2  ;;  %v37_v14 = vld [vmem:[%s6173_s0 + $0x40] sm:$0xff]  ;;  %v4546_v22 = vadd.f32 %v4443_v41, %v926_v9 }
  0x12   :  { %3373 = vmatprep.subr.bf16.mxu0 %v3372_v15  ;;  %3532 = vpow2.f32 %v1148_v0  ;;  %v1156_v13 = vmul.f32 1.442695, %v1056_v3  ;;  %v1058_v16 = vsub.f32 0.0, %v4511_v6  ;;  %v1059_v17 = vsub.f32 0.0, %v4514_v7  ;;  %v1430_v19 = vld [vmem:[%s6174_s6 + $0x50] sm:$0xff]  ;;  %v1431_v20 = vld [vmem:[%s6174_s6 + $0x58] sm:$0xff] }
  0x13   :  { %3462 = vmatpush3.bf16.msra.mxu1 %v4432_v38  ;;  %3534 = vpow2.f32 %v1150_v4  ;;  %v929_v23 = vld [vmem:[%s6175_s1 + $0x160] sm:$0xff]  ;;  %v4553_v26 = vadd.f32 %v4443_v41, %v927_v10  ;;  %v38_v27 = vld [vmem:[%s6173_s0 + $0x48] sm:$0xff]  ;;  %v39_v31 = vld [vmem:[%s6173_s0 + $0x50] sm:$0xff] }
  0x14   :  { %3455 = vmatprep.subr.bf16.mxu1 %v4489_v57  ;;  %3536 = vpow2.f32 %v1152_v11  ;;  %v1432_v33 = vld [vmem:[%s6174_s6 + $0x60] sm:$0xff]  ;;  %v40_v43 = vld [vmem:[%s6173_s0 + $0x58] sm:$0xff]  ;;  %v1434_v51 = vld [vmem:[%s6174_s6 + $0x70] sm:$0xff] }
  0x15   :  { %3375 = vmatpush3.bf16.msra.mxu0 %v3372_v15  ;;  %v1158_v15 = vmul.f32 1.442695, %v1057_v5  ;;  %3538 = vpow2.f32 %v1154_v12  ;;  %v1062_v34 = vsub.f32 0.0, %v4553_v26  ;;  %v41_v47 = vld [vmem:[%s6173_s0 + $0x60] sm:$0xff]  ;;  %v1435_v55 = vld [vmem:[%s6174_s6 + $0x78] sm:$0xff]  ;;  %v930_v59 = vld [vmem:[%s6175_s1 + $0x168] sm:$0xff] }
  0x16   :  { %3377 = vmatprep.subr.bf16.mxu0 %v3376_v18  ;;  %3540 = vpow2.f32 %v1156_v13  ;;  %v42_v62 = vld [vmem:[%s6173_s0 + $0x68] sm:$0xff]  ;;  %v43_v1 = vld [vmem:[%s6173_s0 + $0x70] sm:$0xff]  ;;  %v3416_v2 = vpack.c.bf16 %v1435_v55, %v1434_v51  ;;  %v932_v4 = vld [vmem:[%s6175_s1 + $0x178] sm:$0xff]  ;;  %v4619_v11 = vadd.f32 %v4443_v41, %v930_v59 }
  0x17   :  { %3463 = vmatpush3.bf16.msra.mxu1 %v4489_v57  ;;  %3542 = vpow2.f32 %v1158_v15  ;;  %v1168_v40 = vmul.f32 1.442695, %v1062_v34  ;;  %v1405_v9 = vld [vmem:[%s6177_s5 + $0x8] sm:$0xff]  ;;  %v48_v51 = vld [vmem:[%s6173_s0 + $0x98] sm:$0xff]  ;;  %v49_v59 = vld [vmem:[%s6173_s0 + $0xa0] sm:$0xff] }
  0x18   :  { %3456 = vmatprep.subr.bf16.mxu1 %v4491_v58  ;;  %v46_v34 = vld [vmem:[%s6173_s0 + $0x88] sm:$0xff] }
  0x19   :  { %3379 = vmatpush3.bf16.msra.mxu0 %v3376_v18  ;;  %v928_v18 = vld [vmem:[%s6175_s1 + $0x158] sm:$0xff] }
  0x1a   :  { %3381 = vmatprep.subr.bf16.mxu0 %v3380_v21 }
  0x1b   :  { %3464 = vmatpush3.bf16.msra.mxu1 %v4491_v58 }
  0x1d   :  { %3383 = vmatpush3.bf16.msra.mxu0 %v3380_v21  ;;  %v4543_v21 = vadd.f32 %v4443_v41, %v925_v8  ;;  %v1404_v8 = vld [vmem:[%s6177_s5] sm:$0xff] }
  0x1e   :  { %3385 = vmatprep.subr.bf16.mxu0 %v3384_v24 }
  0x1f   :  { %v1060_v28 = vsub.f32 0.0, %v4543_v21 }
  0x21   :  { %3387 = vmatpush3.bf16.msra.mxu0 %v3384_v24  ;;  %v1160_v24 = vmul.f32 1.442695, %v1058_v16  ;;  %v1164_v37 = vmul.f32 1.442695, %v1060_v28  ;;  %v44_v16 = vld [vmem:[%s6173_s0 + $0x78] sm:$0xff]  ;;  %v1065_v28 = vsub.f32 0.0, %v4619_v11 }
  0x22   :  { %3389 = vmatprep.subr.bf16.mxu0 %v3388_v30 }
  0x23   :  { %3544 = vpow2.f32 %v1160_v24 }
  0x24   :  { %3005 = vmatmul.mubr.f32.vlgmr.msra.gmra.mrb[0].mxu0 %v30_v25  ;;  %v1162_v25 = vmul.f32 1.442695, %v1059_v17 }
  0x25   :  { %3007 = vmatprep.mubr.f32.mxu0 %v31_v29  ;;  %3391 = vmatpush3.bf16.msra.mxu0 %v3388_v30  ;;  %v1061_v29 = vsub.f32 0.0, %v4546_v22  ;;  %v4563_v30 = vadd.f32 %v4443_v41, %v928_v18  ;;  %v4628_v18 = vadd.f32 %v4443_v41, %v932_v4 }
  0x26   :  { %3393 = vmatprep.subr.bf16.mxu0 %v3392_v32  ;;  %3546 = vpow2.f32 %v1162_v25 }
  0x27   :  { %v1063_v39 = vsub.f32 0.0, %v4563_v30  ;;  %3548 = vpow2.f32 %v1164_v37  ;;  %v1067_v37 = vsub.f32 0.0, %v4628_v18 }
  0x28   :  { %3008 = vmatmul.mubr.f32.gmra.mrb[2].mxu0 %v32_v35  ;;  %v4574_v35 = vadd.f32 %v4443_v41, %v929_v23  ;;  %v3420_v23 = vpack.c.bf16 %v1405_v9, %v1404_v8  ;;  %v51_v8 = vld [vmem:[%s6173_s0 + $0xb0] sm:$0xff] }
  0x29   :  { %3010 = vmatprep.mubr.f32.mxu0 %v33_v36  ;;  %3395 = vmatpush3.bf16.msra.mxu0 %v3392_v32  ;;  %v3408_v32 = vpack.c.bf16 %v1431_v20, %v1430_v19  ;;  %v1433_v36 = vld [vmem:[%s6174_s6 + $0x68] sm:$0xff]  ;;  %v1170_v45 = vmul.f32 1.442695, %v1063_v39  ;;  %v45_v20 = vld [vmem:[%s6173_s0 + $0x80] sm:$0xff]  ;;  %v47_v39 = vld [vmem:[%s6173_s0 + $0x90] sm:$0xff] }
  0x2a   :  { %3397 = vmatprep.subr.bf16.mxu0 %v4432_v38  ;;  %v1064_v42 = vsub.f32 0.0, %v4574_v35  ;;  %v3412_v48 = vpack.c.bf16 %v1433_v36, %v1432_v33 }
  0x2b   :  { %3457 = vmatprep.subr.bf16.mxu1 %v3408_v32 }
  0x2c   :  { %3011 = vmatmul.mubr.f32.gmra.mrb[4].mxu0 %v34_v50  ;;  %v1172_v49 = vmul.f32 1.442695, %v1064_v42  ;;  %v3533_v50 = vpop.eup %3532  ;;  %3465 = vmatpush3.bf16.msra.mxu1 %v3408_v32 }
  0x2d   :  { %3013 = vmatprep.mubr.f32.mxu0 %v35_v56  ;;  %3399 = vmatpush3.bf16.msra.mxu0 %v4432_v38  ;;  %v1166_v38 = vmul.f32 1.442695, %v1061_v29  ;;  %v3535_v56 = vpop.eup %3534 }
  0x2e   :  { %3401 = vmatprep.subr.bf16.mxu0 %v4489_v57  ;;  %v3537_v61 = vpop.eup %3536  ;;  %3458 = vmatprep.subr.bf16.mxu1 %v3412_v48 }
  0x2f   :  { %3550 = vpow2.f32 %v1166_v38  ;;  %v3539_v0 = vpop.eup %3538  ;;  %v1246_v3 = vadd.f32 1.0, %v3537_v61 }
  0x30   :  { %3014 = vmatmul.mubr.f32.gmra.mrb[6].mxu0 %v36_v63  ;;  %3552 = vpow2.f32 %v1168_v40  ;;  %v1245_v63 = vadd.f32 1.0, %v3535_v56  ;;  %v3541_v5 = vpop.eup %3540  ;;  %v1247_v10 = vadd.f32 1.0, %v3539_v0  ;;  %3466 = vmatpush3.bf16.msra.mxu1 %v3412_v48  ;;  %v1178_v56 = vmul.f32 1.442695, %v1067_v37 }
  0x31   :  { %3016 = vmatprep.mubr.f32.mxu0 %v37_v14  ;;  %3403 = vmatpush3.bf16.msra.mxu0 %v4489_v57  ;;  %v1244_v57 = vadd.f32 1.0, %v3533_v50  ;;  %3554 = vpow2.f32 %v1170_v45  ;;  %v3543_v12 = vpop.eup %3542  ;;  %v1248_v13 = vadd.f32 1.0, %v3541_v5  ;;  %v1407_v45 = vld [vmem:[%s6177_s5 + $0x18] sm:$0xff] }
  0x32   :  { %3405 = vmatprep.subr.bf16.mxu0 %v4491_v58  ;;  %3556 = vpow2.f32 %v1172_v49  ;;  %v3545_v15 = vpop.eup %3544  ;;  %v1249_v17 = vadd.f32 1.0, %v3543_v12  ;;  %3459 = vmatprep.subr.bf16.mxu1 %v3416_v2  ;;  %v1410_v12 = vld [vmem:[%s6177_s5 + $0x30] sm:$0xff] }
  0x33   :  { %3558 = vrcp.f32 %v1244_v57  ;;  %v3547_v19 = vpop.eup %3546  ;;  %v1250_v24 = vadd.f32 1.0, %v3545_v15  ;;  %v52_v15 = vld [vmem:[%s6173_s0 + $0xb8] sm:$0xff] }
  0x34   :  { %3017 = vmatmul.mubr.f32.gmra.mrb[8].mxu0 %v38_v27  ;;  %3560 = vrcp.f32 %v1245_v63  ;;  %v3549_v25 = vpop.eup %3548  ;;  %v1251_v27 = vadd.f32 1.0, %v3547_v19  ;;  %3467 = vmatpush3.bf16.msra.mxu1 %v3416_v2 }
  0x35   :  { %3019 = vmatprep.mubr.f32.mxu0 %v39_v31  ;;  %3407 = vmatpush3.bf16.msra.mxu0 %v4491_v58  ;;  %v931_v58 = vld [vmem:[%s6175_s1 + $0x170] sm:$0xff]  ;;  %3562 = vrcp.f32 %v1246_v3  ;;  %v1252_v31 = vadd.f32 1.0, %v3549_v25 }
  0x36   :  { %3409 = vmatprep.subr.bf16.mxu0 %v3408_v32  ;;  %v4622_v14 = vadd.f32 %v4443_v41, %v931_v58  ;;  %3564 = vrcp.f32 %v1247_v10  ;;  %3421 = vmatprep.subr.bf16.mxu1 %v3420_v23 }
  0x37   :  { %3566 = vrcp.f32 %v1248_v13 }
  0x38   :  { %3020 = vmatmul.mubr.f32.gmra.mrb[10].mxu0 %v40_v43  ;;  %3568 = vrcp.f32 %v1249_v17  ;;  %v1406_v43 = vld [vmem:[%s6177_s5 + $0x10] sm:$0xff] }
  0x39   :  { %3022 = vmatprep.mubr.f32.mxu0 %v41_v47  ;;  %3411 = vmatpush3.bf16.msra.mxu0 %v3408_v32  ;;  %v3551_v29 = vpop.eup %3550  ;;  %3570 = vrcp.f32 %v1250_v24  ;;  %v1066_v32 = vsub.f32 0.0, %v4622_v14  ;;  %v1174_v47 = vmul.f32 1.442695, %v1065_v28 }
  0x3a   :  { %3413 = vmatprep.subr.bf16.mxu0 %v3412_v48  ;;  %v3553_v33 = vpop.eup %3552  ;;  %v1253_v36 = vadd.f32 1.0, %v3551_v29  ;;  %3572 = vrcp.f32 %v1251_v27  ;;  %v55_v29 = vld [vmem:[%s6173_s0 + $0xd0] sm:$0xff] }
  0x3b   :  { %v3555_v38 = vpop.eup %3554  ;;  %v1254_v40 = vadd.f32 1.0, %v3553_v33  ;;  %3574 = vrcp.f32 %v1252_v31  ;;  %v1176_v49 = vmul.f32 1.442695, %v1066_v32 }
  0x3c   :  { %3023 = vmatmul.mubr.f32.gmra.mrb[12].mxu0 %v42_v62  ;;  %v3557_v42 = vpop.eup %3556  ;;  %3576 = vrcp.f32 %v1253_v36  ;;  %v3424_v62 = vpack.c.bf16 %v1407_v45, %v1406_v43  ;;  %v1255_v0 = vadd.f32 1.0, %v3555_v38  ;;  %v934_v45 = vld [vmem:[%s6175_s1 + $0x188] sm:$0xff] }
  0x3d   :  { %3025 = vmatprep.mubr.f32.mxu0 %v43_v1  ;;  %3415 = vmatpush3.bf16.msra.mxu0 %v3412_v48  ;;  %v3559_v48 = vpop.eup %3558  ;;  %3578 = vrcp.f32 %v1254_v40  ;;  %v1256_v3 = vadd.f32 1.0, %v3557_v42  ;;  %v933_v40 = vld [vmem:[%s6175_s1 + $0x180] sm:$0xff] }
  0x3e   :  { %3417 = vmatprep.subr.bf16.mxu0 %v3416_v2  ;;  %v3561_v50 = vpop.eup %3560  ;;  %v1372_v55 = vmul.f32 %v3559_v48, %v4452_v44  ;;  %3580 = vpow2.f32 %v1174_v47  ;;  %v4710_v43 = vadd.f32 %v4443_v41, %v933_v40  ;;  %v4719_v47 = vadd.f32 %v4443_v41, %v934_v45 }
  0x3f   :  { %v3563_v57 = vpop.eup %3562  ;;  %v1373_v61 = vmul.f32 %v3561_v50, %v4458_v46  ;;  %v1409_v46 = vld [vmem:[%s6177_s5 + $0x28] sm:$0xff]  ;;  %3582 = vpow2.f32 %v1176_v49  ;;  %v935_v49 = vld [vmem:[%s6175_s1 + $0x190] sm:$0xff]  ;;  %v60_v50 = vld [vmem:[%s6173_s0 + $0xf8] sm:$0xff] }
  0x40   :  { %3026 = vmatmul.mubr.f32.gmra.mrb[14].mxu0 %v44_v16  ;;  %v3565_v63 = vpop.eup %3564  ;;  %3180 = vmatprep.mubr.f32.mxu1 %v1372_v55  ;;  %v1374_v58 = vmul.f32 %v3563_v57, %v4474_v52  ;;  %v50_v52 = vld [vmem:[%s6173_s0 + $0xa8] sm:$0xff]  ;;  %3584 = vpow2.f32 %v1178_v56  ;;  %v1068_v48 = vsub.f32 0.0, %v4710_v43  ;;  %v4730_v55 = vadd.f32 %v4443_v41, %v935_v49  ;;  %v936_v56 = vld [vmem:[%s6175_s1 + $0x198] sm:$0xff] }
  0x41   :  { %3028 = vmatprep.mubr.f32.mxu0 %v45_v20  ;;  %3419 = vmatpush3.bf16.msra.mxu0 %v3416_v2  ;;  %v3567_v1 = vpop.eup %3566  ;;  %v1375_v44 = vmul.f32 %v3565_v63, %v4477_v53  ;;  %v1408_v2 = vld [vmem:[%s6177_s5 + $0x20] sm:$0xff]  ;;  %3586 = vrcp.f32 %v1255_v0 }
  0x42   :  { %3181 = vmatmul.mubr.f32.vlgmr.msra.gmra.mrb[0].mxu1 %v1373_v61  ;;  %v3569_v4 = vpop.eup %3568  ;;  %v1376_v5 = vmul.f32 %v3567_v1, %v4480_v54  ;;  %v3428_v9 = vpack.c.bf16 %v1409_v46, %v1408_v2  ;;  %3588 = vrcp.f32 %v1256_v3  ;;  %v1411_v54 = vld [vmem:[%s6177_s5 + $0x38] sm:$0xff]  ;;  %v1070_v0 = vsub.f32 0.0, %v4730_v55  ;;  %v937_v46 = vld [vmem:[%s6175_s1 + $0x1a0] sm:$0xff]  ;;  %v62_v3 = vld [vmem:[%s6173_s0 + $0x108] sm:$0xff] }
  0x43   :  { %3423 = vmatpush3.bf16.msra.mxu1 %v3420_v23  ;;  %v3571_v53 = vpop.eup %3570  ;;  %3183 = vmatprep.mubr.f32.mxu1 %v1374_v58  ;;  %v1377_v10 = vmul.f32 %v3569_v4, %v4495_v60  ;;  %v53_v60 = vld [vmem:[%s6173_s0 + $0xc0] sm:$0xff]  ;;  %v3432_v20 = vpack.c.bf16 %v1411_v54, %v1410_v12 }
  0x44   :  { %3029 = vmatmul.mubr.f32.gmra.mrb[16].mxu0 %v46_v34  ;;  %3425 = vmatprep.subr.bf16.mxu1 %v3424_v62  ;;  %v3573_v13 = vpop.eup %3572  ;;  %v1378_v16 = vmul.f32 %v3571_v53, %v4511_v6  ;;  %v54_v6 = vld [vmem:[%s6173_s0 + $0xc8] sm:$0xff]  ;;  %v1184_v4 = vmul.f32 1.442695, %v1070_v0  ;;  %v65_v54 = vld [vmem:[%s6173_s0 + $0x120] sm:$0xff] }
  0x45   :  { %3031 = vmatprep.mubr.f32.mxu0 %v47_v39  ;;  %v3575_v17 = vpop.eup %3574  ;;  %v1379_v24 = vmul.f32 %v3573_v13, %v4514_v7  ;;  %v57_v39 = vld [vmem:[%s6173_s0 + $0xe0] sm:$0xff] }
  0x46   :  { %3184 = vmatmul.mubr.f32.gmra.mrb[2].mxu1 %v1375_v44  ;;  %v3577_v19 = vpop.eup %3576  ;;  %v1380_v27 = vmul.f32 %v3575_v17, %v4543_v21  ;;  %v56_v21 = vld [vmem:[%s6173_s0 + $0xd8] sm:$0xff] }
  0x47   :  { %3186 = vmatprep.mubr.f32.mxu1 %v1376_v5  ;;  %3427 = vmatpush3.bf16.msra.mxu1 %v3424_v62  ;;  %v3579_v23 = vpop.eup %3578  ;;  %v1381_v7 = vmul.f32 %v3577_v19, %v4546_v22  ;;  %v4739_v62 = vadd.f32 %v4443_v41, %v936_v56  ;;  %v63_v5 = vld [vmem:[%s6173_s0 + $0x110] sm:$0xff]  ;;  %v940_v17 = vld [vmem:[%s6175_s1 + $0x1b8] sm:$0xff] }
  0x48   :  { %3032 = vmatmul.mubr.f32.gmra.mrb[18].mxu0 %v48_v51  ;;  %3429 = vmatprep.subr.bf16.mxu1 %v3428_v9  ;;  %v3581_v25 = vpop.eup %3580  ;;  %v1382_v37 = vmul.f32 %v3579_v23, %v4553_v26  ;;  %v58_v26 = vld [vmem:[%s6173_s0 + $0xe8] sm:$0xff]  ;;  %v1180_v51 = vmul.f32 1.442695, %v1068_v48  ;;  %v944_v48 = vld [vmem:[%s6175_s1 + $0x1d8] sm:$0xff] }
  0x49   :  { %3034 = vmatprep.mubr.f32.mxu0 %v49_v59  ;;  %v3583_v28 = vpop.eup %3582  ;;  %v1257_v31 = vadd.f32 1.0, %v3581_v25  ;;  %v61_v59 = vld [vmem:[%s6173_s0 + $0x100] sm:$0xff]  ;;  %v1071_v2 = vsub.f32 0.0, %v4739_v62  ;;  %v67_v25 = vld [vmem:[%s6173_s0 + $0x130] sm:$0xff]  ;;  %v4822_v49 = vadd.f32 %v4443_v41, %v944_v48 }
  0x4a   :  { %3187 = vmatmul.mubr.f32.gmra.mrb[4].mxu1 %v1377_v10  ;;  %v3585_v32 = vpop.eup %3584  ;;  %v1258_v33 = vadd.f32 1.0, %v3583_v28  ;;  %v64_v10 = vld [vmem:[%s6173_s0 + $0x118] sm:$0xff]  ;;  %v941_v28 = vld [vmem:[%s6175_s1 + $0x1c0] sm:$0xff] }
  0x4b   :  { %3189 = vmatprep.mubr.f32.mxu1 %v1378_v16  ;;  %3431 = vmatpush3.bf16.msra.mxu1 %v3428_v9  ;;  %3590 = vrcp.f32 %v1257_v31  ;;  %v1259_v34 = vadd.f32 1.0, %v3585_v32  ;;  %v3587_v36 = vpop.eup %3586  ;;  %v1186_v53 = vmul.f32 1.442695, %v1071_v2  ;;  %v4796_v32 = vadd.f32 %v4443_v41, %v941_v28  ;;  %v946_v2 = vld [vmem:[%s6175_s1 + $0x1e8] sm:$0xff] }
  0x4c   :  { %3035 = vmatmul.mubr.f32.gmra.mrb[20].mxu0 %v50_v52  ;;  %3433 = vmatprep.subr.bf16.mxu1 %v3432_v20  ;;  %3592 = vrcp.f32 %v1258_v33  ;;  %v3589_v38 = vpop.eup %3588  ;;  %v1383_v22 = vmul.f32 %v3587_v36, %v4563_v30  ;;  %v59_v30 = vld [vmem:[%s6173_s0 + $0xf0] sm:$0xff]  ;;  %v4753_v52 = vadd.f32 %v4443_v41, %v937_v46  ;;  %v942_v33 = vld [vmem:[%s6175_s1 + $0x1c8] sm:$0xff] }
  0x4d   :  { %3037 = vmatprep.mubr.f32.mxu0 %v51_v8  ;;  %3594 = vrcp.f32 %v1259_v34  ;;  %v1384_v42 = vmul.f32 %v3589_v38, %v4574_v35  ;;  %v1069_v35 = vsub.f32 0.0, %v4719_v47  ;;  %v4802_v34 = vadd.f32 %v4443_v41, %v942_v33 }
  0x4e   :  { %3190 = vmatmul.mubr.f32.gmra.mrb[6].mxu1 %v1379_v24  ;;  %3596 = vpow2.f32 %v1180_v51  ;;  %v70_v51 = vld [vmem:[%s6173_s0 + $0x148] sm:$0xff] }
  0x4f   :  { %3192 = vmatprep.mubr.f32.mxu1 %v1380_v27  ;;  %3435 = vmatpush3.bf16.msra.mxu1 %v3432_v20  ;;  %v1182_v61 = vmul.f32 1.442695, %v1069_v35  ;;  %v66_v20 = vld [vmem:[%s6173_s0 + $0x128] sm:$0xff]  ;;  %v1077_v40 = vsub.f32 0.0, %v4802_v34 }
  0x50   :  { %3038 = vmatmul.mubr.f32.gmra.mrb[22].mxu0 %v52_v15  ;;  %v939_v15 = vld [vmem:[%s6175_s1 + $0x1b0] sm:$0xff] }
  0x51   :  { %3040 = vmatprep.mubr.f32.mxu0 %v53_v60  ;;  %3598 = vpow2.f32 %v1182_v61  ;;  %v4776_v16 = vadd.f32 %v4443_v41, %v939_v15  ;;  %v4782_v60 = vadd.f32 %v4443_v41, %v940_v17  ;;  %v1198_v35 = vmul.f32 1.442695, %v1077_v40 }
  0x52   :  { %3193 = vmatmul.mubr.f32.gmra.mrb[8].mxu1 %v1381_v7  ;;  %3600 = vpow2.f32 %v1184_v4 }
  0x53   :  { %3195 = vmatprep.mubr.f32.mxu1 %v1382_v37  ;;  %3602 = vpow2.f32 %v1186_v53  ;;  %v1074_v23 = vsub.f32 0.0, %v4776_v16  ;;  %v1075_v27 = vsub.f32 0.0, %v4782_v60  ;;  %v1076_v37 = vsub.f32 0.0, %v4796_v32 }
  0x54   :  { %3041 = vmatmul.mubr.f32.gmra.mrb[24].mxu0 %v54_v6 }
  0x55   :  { %3043 = vmatprep.mubr.f32.mxu0 %v55_v29  ;;  %v3591_v57 = vpop.eup %3590  ;;  %v1192_v31 = vmul.f32 1.442695, %v1074_v23  ;;  %v1194_v7 = vmul.f32 1.442695, %v1075_v27  ;;  %v1196_v45 = vmul.f32 1.442695, %v1076_v37 }
  0x56   :  { %3196 = vmatmul.mubr.f32.gmra.mrb[10].mxu1 %v1383_v22  ;;  %v3593_v63 = vpop.eup %3592  ;;  %v1385_v58 = vmul.f32 %v3591_v57, %v4619_v11 }
  0x57   :  { %3198 = vmatprep.mubr.f32.mxu1 %v1384_v42  ;;  %v3595_v1 = vpop.eup %3594  ;;  %v1386_v44 = vmul.f32 %v3593_v63, %v4622_v14  ;;  %v938_v14 = vld [vmem:[%s6175_s1 + $0x1a8] sm:$0xff]  ;;  %v1079_v63 = vsub.f32 0.0, %v4822_v49 }
  0x58   :  { %3044 = vmatmul.mubr.f32.gmra.mrb[26].mxu0 %v56_v21  ;;  %v1387_v11 = vmul.f32 %v3595_v1, %v4628_v18  ;;  %v4762_v8 = vadd.f32 %v4443_v41, %v938_v14  ;;  %v1072_v18 = vsub.f32 0.0, %v4753_v52  ;;  %v3597_v19 = vpop.eup %3596  ;;  %v68_v21 = vld [vmem:[%s6173_s0 + $0x138] sm:$0xff] }
  0x59   :  { %3046 = vmatprep.mubr.f32.mxu0 %v57_v39  ;;  %v1260_v6 = vadd.f32 1.0, %v3597_v19  ;;  %v69_v39 = vld [vmem:[%s6173_s0 + $0x140] sm:$0xff]  ;;  %v1202_v46 = vmul.f32 1.442695, %v1079_v63 }
  0x5a   :  { %3199 = vmatmul.mubr.f32.gmra.mrb[12].mxu1 %v1385_v58  ;;  %v1073_v9 = vsub.f32 0.0, %v4762_v8  ;;  %v1188_v12 = vmul.f32 1.442695, %v1072_v18  ;;  %v945_v58 = vld [vmem:[%s6175_s1 + $0x1e0] sm:$0xff]  ;;  %v947_v18 = vld [vmem:[%s6175_s1 + $0x1f0] sm:$0xff] }
  0x5b   :  { %3201 = vmatprep.mubr.f32.mxu1 %v1386_v44  ;;  %v3599_v24 = vpop.eup %3598  ;;  %v4836_v44 = vadd.f32 %v4443_v41, %v945_v58 }
  0x5c   :  { %3047 = vmatmul.mubr.f32.gmra.mrb[28].mxu0 %v58_v26  ;;  %v1190_v13 = vmul.f32 1.442695, %v1073_v9  ;;  %3604 = vpow2.f32 %v1188_v12  ;;  %v1261_v29 = vadd.f32 1.0, %v3599_v24  ;;  %v3601_v36 = vpop.eup %3600  ;;  %v943_v26 = vld [vmem:[%s6175_s1 + $0x1d0] sm:$0xff] }
  0x5d   :  { %3049 = vmatprep.mubr.f32.mxu0 %v59_v30  ;;  %v3603_v38 = vpop.eup %3602  ;;  %v1262_v22 = vadd.f32 1.0, %v3601_v36  ;;  %v4816_v30 = vadd.f32 %v4443_v41, %v943_v26  ;;  %v1080_v4 = vsub.f32 0.0, %v4836_v44 }
  0x5e   :  { %3202 = vmatmul.mubr.f32.gmra.mrb[14].mxu1 %v1387_v11  ;;  %3606 = vpow2.f32 %v1190_v13  ;;  %v1263_v42 = vadd.f32 1.0, %v3603_v38  ;;  %v72_v11 = vld [vmem:[%s6173_s0 + $0x158] sm:$0xff] }
  0x5f   :  { %3608 = vrcp.f32 %v1260_v6  ;;  %v1078_v56 = vsub.f32 0.0, %v4816_v30  ;;  %v1204_v12 = vmul.f32 1.442695, %v1080_v4  ;;  %v948_v13 = vld [vmem:[%s6175_s1 + $0x1f8] sm:$0xff] }
  0x60   :  { %3050 = vmatmul.mubr.f32.gmra.mrb[30].mxu0 %v60_v50  ;;  %3610 = vrcp.f32 %v1261_v29  ;;  %v885_v29 = vld [vmem:[%s6175_s1] sm:$0xff] }
  0x61   :  { %3052 = vmatprep.mubr.f32.mxu0 %v61_v59  ;;  %3612 = vpow2.f32 %v1192_v31  ;;  %v71_v59 = vld [vmem:[%s6173_s0 + $0x150] sm:$0xff]  ;;  %v1200_v1 = vmul.f32 1.442695, %v1078_v56  ;;  %v4879_v36 = vadd.f32 %v4443_v41, %v885_v29 }
  0x62   :  { %3614 = vpow2.f32 %v1194_v7 }
  0x63   :  { %3616 = vrcp.f32 %v1262_v22 }
  0x64   :  { %3053 = vmatmul.mubr.f32.gmra.mrb[32].mxu0 %v62_v3  ;;  %3618 = vrcp.f32 %v1263_v42  ;;  %v4842_v3 = vadd.f32 %v4443_v41, %v946_v2  ;;  %v1020_v42 = vsub.f32 0.0, %v4879_v36 }
  0x65   :  { %3055 = vmatprep.mubr.f32.mxu0 %v63_v5  ;;  %3620 = vpow2.f32 %v1196_v45  ;;  %v73_v5 = vld [vmem:[%s6173_s0 + $0x160] sm:$0xff] }
  0x66   :  { %v3605_v50 = vpop.eup %3604  ;;  %3622 = vpow2.f32 %v1198_v35  ;;  %v1081_v53 = vsub.f32 0.0, %v4842_v3  ;;  %v1084_v56 = vmul.f32 1.442695, %v1020_v42 }
  0x67   :  { %v1264_v61 = vadd.f32 1.0, %v3605_v50 }
  0x68   :  { %3056 = vmatmul.mubr.f32.gmra.mrb[34].mxu0 %v64_v10  ;;  %v3607_v57 = vpop.eup %3606  ;;  %v1206_v19 = vmul.f32 1.442695, %v1081_v53  ;;  %v889_v53 = vld [vmem:[%s6175_s1 + $0x20] sm:$0xff] }
  0x69   :  { %3058 = vmatprep.mubr.f32.mxu0 %v65_v54  ;;  %v1265_v0 = vadd.f32 1.0, %v3607_v57  ;;  %3624 = vrcp.f32 %v1264_v61  ;;  %v3609_v14 = vpop.eup %3608  ;;  %v4857_v54 = vadd.f32 %v4443_v41, %v947_v18  ;;  %v887_v57 = vld [vmem:[%s6175_s1 + $0x10] sm:$0xff] }
  0x6a   :  { %v3611_v9 = vpop.eup %3610  ;;  %v1388_v10 = vmul.f32 %v3609_v14, %v4710_v43  ;;  %v74_v43 = vld [vmem:[%s6173_s0 + $0x168] sm:$0xff]  ;;  %v4902_v58 = vadd.f32 %v4443_v41, %v887_v57 }
  0x6b   :  { %3626 = vrcp.f32 %v1265_v0  ;;  %v3613_v15 = vpop.eup %3612  ;;  %v1389_v17 = vmul.f32 %v3611_v9, %v4719_v47  ;;  %v75_v47 = vld [vmem:[%s6173_s0 + $0x170] sm:$0xff]  ;;  %v888_v0 = vld [vmem:[%s6175_s1 + $0x18] sm:$0xff] }
  0x6c   :  { %3059 = vmatmul.mubr.f32.gmra.mrb[36].mxu0 %v66_v20  ;;  %3628 = vpow2.f32 %v1200_v1  ;;  %v4864_v20 = vadd.f32 %v4443_v41, %v948_v13  ;;  %v3615_v23 = vpop.eup %3614  ;;  %3204 = vmatprep.mubr.f32.mxu1 %v1388_v10  ;;  %v1266_v24 = vadd.f32 1.0, %v3613_v15  ;;  %v78_v1 = vld [vmem:[%s6173_s0 + $0x188] sm:$0xff]  ;;  %v1022_v4 = vsub.f32 0.0, %v4902_v58 }
  0x6d   :  { %3061 = vmatprep.mubr.f32.mxu0 %v67_v25  ;;  %3630 = vpow2.f32 %v1202_v46  ;;  %v1082_v25 = vsub.f32 0.0, %v4857_v54  ;;  %v3617_v6 = vpop.eup %3616  ;;  %3205 = vmatmul.mubr.f32.gmra.mrb[16].mxu1 %v1389_v17  ;;  %v1267_v27 = vadd.f32 1.0, %v3615_v23  ;;  %v79_v46 = vld [vmem:[%s6173_s0 + $0x190] sm:$0xff]  ;;  %v890_v13 = vld [vmem:[%s6175_s1 + $0x28] sm:$0xff]  ;;  %v80_v17 = vld [vmem:[%s6173_s0 + $0x198] sm:$0xff] }
  0x6e   :  { %3632 = vpow2.f32 %v1204_v12  ;;  %v1083_v28 = vsub.f32 0.0, %v4864_v20  ;;  %v3619_v31 = vpop.eup %3618  ;;  %v1390_v33 = vmul.f32 %v3617_v6, %v4730_v55  ;;  %v76_v55 = vld [vmem:[%s6173_s0 + $0x178] sm:$0xff]  ;;  %v1088_v10 = vmul.f32 1.442695, %v1022_v4 }
  0x6f   :  { %3634 = vpow2.f32 %v1206_v19  ;;  %v1208_v7 = vmul.f32 1.442695, %v1082_v25  ;;  %v3621_v37 = vpop.eup %3620  ;;  %v1391_v38 = vmul.f32 %v3619_v31, %v4739_v62  ;;  %v77_v62 = vld [vmem:[%s6173_s0 + $0x180] sm:$0xff]  ;;  %v4922_v12 = vadd.f32 %v4443_v41, %v889_v53 }
  0x70   :  { %3062 = vmatmul.mubr.f32.gmra.mrb[38].mxu0 %v68_v21  ;;  %3636 = vrcp.f32 %v1266_v24  ;;  %v886_v21 = vld [vmem:[%s6175_s1 + $0x8] sm:$0xff]  ;;  %v3623_v40 = vpop.eup %3622  ;;  %3207 = vmatprep.mubr.f32.mxu1 %v1390_v33  ;;  %v1268_v26 = vadd.f32 1.0, %v3621_v37  ;;  %v81_v25 = vld [vmem:[%s6173_s0 + $0x1a0] sm:$0xff] }
  0x71   :  { %3064 = vmatprep.mubr.f32.mxu0 %v69_v39  ;;  %3638 = vrcp.f32 %v1267_v27  ;;  %v1210_v39 = vmul.f32 1.442695, %v1083_v28  ;;  %v4886_v22 = vadd.f32 %v4443_v41, %v886_v21  ;;  %3208 = vmatmul.mubr.f32.gmra.mrb[18].mxu1 %v1391_v38  ;;  %v1269_v48 = vadd.f32 1.0, %v3623_v40  ;;  %v1412_v28 = vld [vmem:[%s6177_s5 + $0x40] sm:$0xff]  ;;  %v892_v38 = vld [vmem:[%s6175_s1 + $0x38] sm:$0xff] }
  0x72   :  { %3640 = vpow2.f32 %v1208_v7 }
  0x73   :  { %v3625_v45 = vpop.eup %3624  ;;  %3642 = vpow2.f32 %v1210_v39  ;;  %v1021_v35 = vsub.f32 0.0, %v4886_v22 }
  0x74   :  { %3065 = vmatmul.mubr.f32.gmra.mrb[40].mxu0 %v70_v51  ;;  %v1392_v51 = vmul.f32 %v3625_v45, %v4753_v52  ;;  %3644 = vrcp.f32 %v1268_v26  ;;  %v4958_v26 = vld [vmem:[%s6176_s4] ss:$0 sm:$0xff] }
  0x75   :  { %3067 = vmatprep.mubr.f32.mxu0 %v71_v59  ;;  %v3627_v50 = vpop.eup %3626  ;;  %3646 = vrcp.f32 %v1269_v48  ;;  %v1086_v63 = vmul.f32 1.442695, %v1021_v35  ;;  %v4968_v35 = vadd.f32 %v4958_v26, %v892_v38  ;;  %v897_v38 = vld [vmem:[%s6175_s1 + $0x60] sm:$0xff] }
  0x76   :  { %v3629_v59 = vpop.eup %3628  ;;  %v1393_v61 = vmul.f32 %v3627_v50, %v4762_v8  ;;  %3210 = vmatprep.mubr.f32.mxu1 %v1392_v51  ;;  %3648 = vpow2.f32 %v1084_v56  ;;  %v4911_v8 = vadd.f32 %v4443_v41, %v888_v0  ;;  %v1414_v51 = vld [vmem:[%s6177_s5 + $0x50] sm:$0xff]  ;;  %v1415_v56 = vld [vmem:[%s6177_s5 + $0x58] sm:$0xff] }
  0x77   :  { %v3631_v52 = vpop.eup %3630  ;;  %v1270_v2 = vadd.f32 1.0, %v3629_v59  ;;  %3650 = vpow2.f32 %v1086_v63  ;;  %v3440_v63 = vpack.c.bf16 %v1415_v56, %v1414_v51 }
  0x78   :  { %3068 = vmatmul.mubr.f32.gmra.mrb[42].mxu0 %v72_v11  ;;  %3211 = vmatmul.mubr.f32.gmra.mrb[20].mxu1 %v1393_v61  ;;  %v1271_v11 = vadd.f32 1.0, %v3631_v52  ;;  %v3633_v14 = vpop.eup %3632  ;;  %v1027_v52 = vsub.f32 0.0, %v4968_v35 }
  0x79   :  { %3070 = vmatprep.mubr.f32.mxu0 %v73_v5  ;;  %3652 = vrcp.f32 %v1270_v2  ;;  %v1023_v5 = vsub.f32 0.0, %v4911_v8  ;;  %v3635_v18 = vpop.eup %3634  ;;  %v1272_v9 = vadd.f32 1.0, %v3633_v14  ;;  %v84_v2 = vld [vmem:[%s6173_s0 + $0x1b8] sm:$0xff] }
  0x7a   :  { %3654 = vrcp.f32 %v1271_v11  ;;  %v3637_v15 = vpop.eup %3636  ;;  %v1273_v19 = vadd.f32 1.0, %v3635_v18  ;;  %v1098_v18 = vmul.f32 1.442695, %v1027_v52 }
  0x7b   :  { %v1090_v23 = vmul.f32 1.442695, %v1023_v5  ;;  %v3639_v24 = vpop.eup %3638  ;;  %v1394_v6 = vmul.f32 %v3637_v15, %v4776_v16  ;;  %3656 = vrcp.f32 %v1272_v9  ;;  %v891_v16 = vld [vmem:[%s6175_s1 + $0x30] sm:$0xff]  ;;  %v85_v5 = vld [vmem:[%s6173_s0 + $0x1c0] sm:$0xff] }
  0x7c   :  { %3071 = vmatmul.mubr.f32.gmra.mrb[44].mxu0 %v74_v43  ;;  %v4931_v43 = vadd.f32 %v4443_v41, %v890_v13  ;;  %v3641_v27 = vpop.eup %3640  ;;  %v1413_v41 = vld [vmem:[%s6177_s5 + $0x48] sm:$0xff]  ;;  %v1395_v29 = vmul.f32 %v3639_v24, %v4782_v60  ;;  %3658 = vrcp.f32 %v1273_v19  ;;  %v4961_v42 = vadd.f32 %v4958_v26, %v891_v16  ;;  %v895_v15 = vld [vmem:[%s6175_s1 + $0x50] sm:$0xff] }
  0x7d   :  { %3073 = vmatprep.mubr.f32.mxu0 %v75_v47  ;;  %v1024_v47 = vsub.f32 0.0, %v4922_v12  ;;  %v3643_v33 = vpop.eup %3642  ;;  %v3436_v7 = vpack.c.bf16 %v1413_v41, %v1412_v28  ;;  %3213 = vmatprep.mubr.f32.mxu1 %v1394_v6  ;;  %v1274_v21 = vadd.f32 1.0, %v3641_v27  ;;  %3660 = vpow2.f32 %v1088_v10  ;;  %v82_v60 = vld [vmem:[%s6173_s0 + $0x1a8] sm:$0xff] }
  0x7e   :  { %v1025_v31 = vsub.f32 0.0, %v4931_v43  ;;  %v3645_v39 = vpop.eup %3644  ;;  %3214 = vmatmul.mubr.f32.gmra.mrb[22].mxu1 %v1395_v29  ;;  %v1275_v40 = vadd.f32 1.0, %v3643_v33  ;;  %3662 = vpow2.f32 %v1090_v23  ;;  %v1026_v59 = vsub.f32 0.0, %v4961_v42  ;;  %v86_v24 = vld [vmem:[%s6173_s0 + $0x1c8] sm:$0xff]  ;;  %v87_v29 = vld [vmem:[%s6173_s0 + $0x1d0] sm:$0xff] }
  0x7f   :  { %v1092_v37 = vmul.f32 1.442695, %v1024_v47  ;;  %v3647_v45 = vpop.eup %3646  ;;  %3437 = vmatprep.subr.bf16.mxu1 %v3436_v7  ;;  %v1396_v48 = vmul.f32 %v3645_v39, %v4796_v32  ;;  %3664 = vrcp.f32 %v1274_v21  ;;  %v893_v32 = vld [vmem:[%s6175_s1 + $0x40] sm:$0xff]  ;;  %v5005_v19 = vadd.f32 %v4958_v26, %v895_v15  ;;  %v1417_v6 = vld [vmem:[%s6177_s5 + $0x68] sm:$0xff]  ;;  %v91_v15 = vld [vmem:[%s6173_s0 + $0x1f0] sm:$0xff] }
  0x80   :  { %3074 = vmatmul.mubr.f32.gmra.mrb[46].mxu0 %v76_v55  ;;  %v1094_v55 = vmul.f32 1.442695, %v1025_v31  ;;  %v3649_v50 = vpop.eup %3648  ;;  %3439 = vmatpush3.bf16.msra.mxu1 %v3436_v7  ;;  %v1397_v57 = vmul.f32 %v3647_v45, %v4802_v34  ;;  %3666 = vrcp.f32 %v1275_v40  ;;  %v1096_v11 = vmul.f32 1.442695, %v1026_v59 }
  0x81   :  { %3076 = vmatprep.mubr.f32.mxu0 %v77_v62  ;;  %v83_v62 = vld [vmem:[%s6173_s0 + $0x1b0] sm:$0xff]  ;;  %v3651_v61 = vpop.eup %3650  ;;  %3216 = vmatprep.mubr.f32.mxu1 %v1396_v48  ;;  %v1212_v0 = vadd.f32 1.0, %v3649_v50  ;;  %3668 = vpow2.f32 %v1092_v37  ;;  %v4989_v4 = vadd.f32 %v4958_v26, %v893_v32  ;;  %v1030_v7 = vsub.f32 0.0, %v5005_v19  ;;  %v1419_v50 = vld [vmem:[%s6177_s5 + $0x78] sm:$0xff]  ;;  %v89_v32 = vld [vmem:[%s6173_s0 + $0x1e0] sm:$0xff] }
  0x82   :  { %3217 = vmatmul.mubr.f32.gmra.mrb[24].mxu1 %v1397_v57  ;;  %3670 = vpow2.f32 %v1094_v55  ;;  %3441 = vmatprep.subr.bf16.mxu1 %v3440_v63  ;;  %v898_v55 = vld [vmem:[%s6175_s1 + $0x68] sm:$0xff]  ;;  %v1418_v48 = vld [vmem:[%s6177_s5 + $0x70] sm:$0xff] }
  0x83   :  { %v3653_v34 = vpop.eup %3652  ;;  %3672 = vrcp.f32 %v1212_v0  ;;  %v1028_v13 = vsub.f32 0.0, %v4989_v4  ;;  %v1104_v40 = vmul.f32 1.442695, %v1030_v7  ;;  %v5049_v57 = vadd.f32 %v4958_v26, %v898_v55 }
  0x84   :  { %3077 = vmatmul.mubr.f32.gmra.mrb[48].mxu0 %v78_v1  ;;  %v894_v1 = vld [vmem:[%s6175_s1 + $0x48] sm:$0xff]  ;;  %v3655_v14 = vpop.eup %3654  ;;  %v1398_v53 = vmul.f32 %v3653_v34, %v4816_v30  ;;  %3443 = vmatpush3.bf16.msra.mxu1 %v3440_v63  ;;  %v899_v34 = vld [vmem:[%s6175_s1 + $0x70] sm:$0xff] }
  0x85   :  { %3079 = vmatprep.mubr.f32.mxu0 %v79_v46  ;;  %v1213_v46 = vadd.f32 1.0, %v3651_v61  ;;  %v4996_v9 = vadd.f32 %v4958_v26, %v894_v1  ;;  %v1399_v10 = vmul.f32 %v3655_v14, %v4822_v49  ;;  %v896_v49 = vld [vmem:[%s6175_s1 + $0x58] sm:$0xff]  ;;  %v1100_v27 = vmul.f32 1.442695, %v1028_v13 }
  0x86   :  { %3219 = vmatprep.mubr.f32.mxu1 %v1398_v53  ;;  %v5021_v28 = vadd.f32 %v4958_v26, %v896_v49  ;;  %v3448_v61 = vpack.c.bf16 %v1419_v50, %v1418_v48  ;;  %v1033_v1 = vsub.f32 0.0, %v5049_v57  ;;  %v900_v14 = vld [vmem:[%s6175_s1 + $0x78] sm:$0xff]  ;;  %v90_v53 = vld [vmem:[%s6173_s0 + $0x1e8] sm:$0xff] }
  0x87   :  { %3674 = vrcp.f32 %v1213_v46  ;;  %v1029_v30 = vsub.f32 0.0, %v4996_v9  ;;  %3220 = vmatmul.mubr.f32.gmra.mrb[26].mxu1 %v1399_v10  ;;  %v5070_v10 = vadd.f32 %v4958_v26, %v900_v14 }
  0x88   :  { %3080 = vmatmul.mubr.f32.gmra.mrb[50].mxu0 %v80_v17  ;;  %v3657_v17 = vpop.eup %3656  ;;  %3676 = vpow2.f32 %v1096_v11 }
  0x89   :  { %3082 = vmatprep.mubr.f32.mxu0 %v81_v25  ;;  %v3659_v23 = vpop.eup %3658  ;;  %v1416_v25 = vld [vmem:[%s6177_s5 + $0x60] sm:$0xff]  ;;  %v1400_v47 = vmul.f32 %v3657_v17, %v4836_v44  ;;  %3678 = vpow2.f32 %v1098_v18  ;;  %v1102_v33 = vmul.f32 1.442695, %v1029_v30  ;;  %v1031_v44 = vsub.f32 0.0, %v5021_v28 }
  0x8a   :  { %v3661_v41 = vpop.eup %3660  ;;  %v3444_v31 = vpack.c.bf16 %v1417_v6, %v1416_v25  ;;  %v1401_v16 = vmul.f32 %v3659_v23, %v4842_v3  ;;  %3680 = vpow2.f32 %v1100_v27  ;;  %v5033_v3 = vadd.f32 %v4958_v26, %v897_v38  ;;  %v902_v27 = vld [vmem:[%s6175_s1 + $0x88] sm:$0xff] }
  0x8b   :  { %v3663_v21 = vpop.eup %3662  ;;  %3222 = vmatprep.mubr.f32.mxu1 %v1400_v47  ;;  %v1214_v37 = vadd.f32 1.0, %v3661_v41  ;;  %3682 = vpow2.f32 %v1102_v33  ;;  %v1106_v56 = vmul.f32 1.442695, %v1031_v44  ;;  %v1110_v18 = vmul.f32 1.442695, %v1033_v1 }
  0x8c   :  { %3083 = vmatmul.mubr.f32.gmra.mrb[52].mxu0 %v82_v60  ;;  %v3665_v39 = vpop.eup %3664  ;;  %3445 = vmatprep.subr.bf16.mxu1 %v3444_v31  ;;  %v1215_v60 = vadd.f32 1.0, %v3663_v21  ;;  %v1032_v0 = vsub.f32 0.0, %v5033_v3  ;;  %v1035_v23 = vsub.f32 0.0, %v5070_v10 }
  0x8d   :  { %3085 = vmatprep.mubr.f32.mxu0 %v83_v62  ;;  %v3667_v45 = vpop.eup %3666  ;;  %v88_v62 = vld [vmem:[%s6173_s0 + $0x1d8] sm:$0xff]  ;;  %3447 = vmatpush3.bf16.msra.mxu1 %v3444_v31  ;;  %v1402_v51 = vmul.f32 %v3665_v39, %v4857_v54  ;;  %3684 = vrcp.f32 %v1214_v37 }
  0x8e   :  { %v3669_v59 = vpop.eup %3668  ;;  %3223 = vmatmul.mubr.f32.gmra.mrb[28].mxu1 %v1401_v16  ;;  %v1403_v63 = vmul.f32 %v3667_v45, %v4864_v20  ;;  %3686 = vrcp.f32 %v1215_v60  ;;  %3449 = vmatprep.subr.bf16.mxu1 %v3448_v61  ;;  %v1108_v11 = vmul.f32 1.442695, %v1032_v0  ;;  %v5061_v20 = vadd.f32 %v4958_v26, %v899_v34  ;;  %v903_v60 = vld [vmem:[%s6175_s1 + $0x90] sm:$0xff] }
  0x8f   :  { %v3671_v52 = vpop.eup %3670  ;;  %3225 = vmatprep.mubr.f32.mxu1 %v1402_v51  ;;  %v1216_v54 = vadd.f32 1.0, %v3669_v59  ;;  %3688 = vpow2.f32 %v1104_v40  ;;  %v5091_v16 = vadd.f32 %v4958_v26, %v902_v27  ;;  %v1114_v21 = vmul.f32 1.442695, %v1035_v23 }
  0x90   :  { %3086 = vmatmul.mubr.f32.gmra.mrb[54].mxu0 %v84_v2  ;;  %v3673_v2 = vpop.eup %3672  ;;  %v1217_v46 = vadd.f32 1.0, %v3671_v52  ;;  %3690 = vpow2.f32 %v1106_v56  ;;  %v1034_v17 = vsub.f32 0.0, %v5061_v20  ;;  %v5100_v45 = vadd.f32 %v4958_v26, %v903_v60  ;;  %v905_v52 = vld [vmem:[%s6175_s1 + $0xa0] sm:$0xff] }
  0x91   :  { %3088 = vmatprep.mubr.f32.mxu0 %v85_v5  ;;  %v3675_v5 = vpop.eup %3674  ;;  %3451 = vmatpush3.bf16.msra.mxu1 %v3448_v61  ;;  %3692 = vrcp.f32 %v1216_v54  ;;  %v1340_v31 = vmul.f32 %v3673_v2, %v4879_v36  ;;  %v1037_v39 = vsub.f32 0.0, %v5091_v16  ;;  %v5116_v34 = vadd.f32 %v4958_v26, %v905_v52  ;;  %v906_v2 = vld [vmem:[%s6175_s1 + $0xa8] sm:$0xff] }
  0x92   :  { %v3677_v13 = vpop.eup %3676  ;;  %3226 = vmatmul.mubr.f32.gmra.mrb[30].mxu1 %v1403_v63  ;;  %3694 = vrcp.f32 %v1217_v46  ;;  %v1112_v6 = vmul.f32 1.442695, %v1034_v17  ;;  %v1341_v40 = vmul.f32 %v3675_v5, %v4886_v22  ;;  %v5123_v14 = vadd.f32 %v4958_v26, %v906_v2 }
  0x93   :  { %v3679_v30 = vpop.eup %3678  ;;  %v1218_v49 = vadd.f32 1.0, %v3677_v13  ;;  %3696 = vpow2.f32 %v1108_v11  ;;  %v1118_v22 = vmul.f32 1.442695, %v1037_v39 }
  0x94   :  { %3089 = vmatmul.mubr.f32.gmra.mrb[56].mxu0 %v86_v24  ;;  %v901_v24 = vld [vmem:[%s6175_s1 + $0x80] sm:$0xff]  ;;  %v1219_v25 = vadd.f32 1.0, %v3679_v30  ;;  %3698 = vpow2.f32 %v1110_v18  ;;  %v3681_v41 = vpop.eup %3680  ;;  %v1040_v18 = vsub.f32 0.0, %v5116_v34  ;;  %v1041_v17 = vsub.f32 0.0, %v5123_v14  ;;  %v907_v30 = vld [vmem:[%s6175_s1 + $0xb0] sm:$0xff] }
  0x95   :  { %3091 = vmatprep.mubr.f32.mxu0 %v87_v29  ;;  %v5081_v47 = vadd.f32 %v4958_v26, %v901_v24  ;;  %v92_v29 = vld [vmem:[%s6173_s0 + $0x1f8] sm:$0xff]  ;;  %3700 = vrcp.f32 %v1218_v49  ;;  %v3683_v33 = vpop.eup %3682  ;;  %v1220_v7 = vadd.f32 1.0, %v3681_v41  ;;  %v5132_v24 = vadd.f32 %v4958_v26, %v907_v30 }
  0x96   :  { %3702 = vrcp.f32 %v1219_v25  ;;  %v1221_v38 = vadd.f32 1.0, %v3683_v33  ;;  %v1124_v23 = vmul.f32 1.442695, %v1040_v18  ;;  %v908_v25 = vld [vmem:[%s6175_s1 + $0xb8] sm:$0xff]  ;;  %v1126_v41 = vmul.f32 1.442695, %v1041_v17 }
  0x97   :  { %v1036_v37 = vsub.f32 0.0, %v5081_v47  ;;  %v3685_v44 = vpop.eup %3684  ;;  %3704 = vpow2.f32 %v1112_v6  ;;  %v1042_v33 = vsub.f32 0.0, %v5132_v24  ;;  %v913_v18 = vld [vmem:[%s6175_s1 + $0xe0] sm:$0xff] }
  0x98   :  { %3092 = vmatmul.mubr.f32.gmra.mrb[58].mxu0 %v88_v62  ;;  %v3687_v36 = vpop.eup %3686  ;;  %3706 = vrcp.f32 %v1220_v7  ;;  %v904_v62 = vld [vmem:[%s6175_s1 + $0x98] sm:$0xff]  ;;  %v1342_v50 = vmul.f32 %v3685_v44, %v4902_v58  ;;  %v5181_v30 = vadd.f32 %v4958_v26, %v913_v18 }
  0x99   :  { %3094 = vmatprep.mubr.f32.mxu0 %v89_v32  ;;  %v1116_v55 = vmul.f32 1.442695, %v1036_v37  ;;  %v3689_v48 = vpop.eup %3688  ;;  %3708 = vrcp.f32 %v1221_v38  ;;  %v5107_v51 = vadd.f32 %v4958_v26, %v904_v62  ;;  %v1038_v32 = vsub.f32 0.0, %v5100_v45 }
  0x9a   :  { %v3691_v56 = vpop.eup %3690  ;;  %v1222_v59 = vadd.f32 1.0, %v3689_v48  ;;  %3710 = vpow2.f32 %v1114_v21  ;;  %v1343_v54 = vmul.f32 %v3687_v36, %v4911_v8  ;;  %v1128_v39 = vmul.f32 1.442695, %v1042_v33 }
  0x9b   :  { %v3693_v61 = vpop.eup %3692  ;;  %v1223_v63 = vadd.f32 1.0, %v3691_v56  ;;  %3712 = vpow2.f32 %v1116_v55  ;;  %v1039_v0 = vsub.f32 0.0, %v5107_v51  ;;  %v1120_v1 = vmul.f32 1.442695, %v1038_v32  ;;  %v911_v32 = vld [vmem:[%s6175_s1 + $0xd0] sm:$0xff] }
  0x9c   :  { %3095 = vmatmul.mubr.f32.gmra.mrb[60].mxu0 %v90_v53  ;;  %v3695_v58 = vpop.eup %3694  ;;  %3714 = vrcp.f32 %v1222_v59  ;;  %v1344_v11 = vmul.f32 %v3693_v61, %v4922_v12  ;;  %v5165_v52 = vadd.f32 %v4958_v26, %v911_v32 }
  0x9d   :  { %3097 = vmatprep.mubr.f32.mxu0 %v91_v15  ;;  %v3697_v46 = vpop.eup %3696  ;;  %3716 = vrcp.f32 %v1223_v63  ;;  %v1122_v8 = vmul.f32 1.442695, %v1039_v0  ;;  %v1345_v49 = vmul.f32 %v3695_v58, %v4931_v43 }
  0x9e   :  { %v3699_v5 = vpop.eup %3698  ;;  %v1224_v53 = vadd.f32 1.0, %v3697_v46  ;;  %3718 = vpow2.f32 %v1118_v22 }
  0x9f   :  { %v3701_v13 = vpop.eup %3700  ;;  %v1225_v15 = vadd.f32 1.0, %v3699_v5  ;;  %3720 = vpow2.f32 %v1120_v1 }
  0xa0   :  { %3098 = vmatmul.mubr.f32.gmra.mrb[62].mxu0 %v92_v29  ;;  %v3703_v12 = vpop.eup %3702  ;;  %3722 = vrcp.f32 %v1224_v53  ;;  %v1346_v27 = vmul.f32 %v3701_v13, %v4961_v42  ;;  %v5139_v29 = vadd.f32 %v4958_v26, %v908_v25  ;;  %v909_v42 = vld [vmem:[%s6175_s1 + $0xc0] sm:$0xff] }
  0xa1   :  { %3132 = vmatprep.mubr.f32.mxu0 %v1340_v31  ;;  %v3705_v6 = vpop.eup %3704  ;;  %3724 = vrcp.f32 %v1225_v15  ;;  %v1347_v21 = vmul.f32 %v3703_v12, %v4968_v35  ;;  %v5149_v60 = vadd.f32 %v4958_v26, %v909_v42  ;;  %v910_v35 = vld [vmem:[%s6175_s1 + $0xc8] sm:$0xff] }
  0xa2   :  { %v3707_v31 = vpop.eup %3706  ;;  %v1226_v43 = vadd.f32 1.0, %v3705_v6  ;;  %3726 = vpow2.f32 %v1122_v8  ;;  %v1043_v37 = vsub.f32 0.0, %v5139_v29  ;;  %v5155_v62 = vadd.f32 %v4958_v26, %v910_v35 }
  0xa3   :  { %v3709_v7 = vpop.eup %3708  ;;  %3728 = vpow2.f32 %v1124_v23  ;;  %v1348_v38 = vmul.f32 %v3707_v31, %v4989_v4  ;;  %v1044_v4 = vsub.f32 0.0, %v5149_v60 }
  0xa4   :  { %3133 = vmatmul.mubr.f32.vlgmr.msra.gmra.mrb[64].mxu0 %v1341_v40  ;;  %v3711_v44 = vpop.eup %3710  ;;  %3730 = vrcp.f32 %v1226_v43  ;;  %v1130_v55 = vmul.f32 1.442695, %v1043_v37  ;;  %v1349_v59 = vmul.f32 %v3709_v7, %v4996_v9  ;;  %v1045_v22 = vsub.f32 0.0, %v5155_v62  ;;  %v912_v9 = vld [vmem:[%s6175_s1 + $0xd8] sm:$0xff]  ;;  %v915_v7 = vld [vmem:[%s6175_s1 + $0xf0] sm:$0xff] }
  0xa5   :  { %3135 = vmatprep.mubr.f32.mxu0 %v1342_v50  ;;  %v3713_v36 = vpop.eup %3712  ;;  %v1227_v40 = vadd.f32 1.0, %v3711_v44  ;;  %3732 = vpow2.f32 %v1126_v41  ;;  %v1132_v0 = vmul.f32 1.442695, %v1044_v4  ;;  %v5171_v2 = vadd.f32 %v4958_v26, %v912_v9 }
  0xa6   :  { %v3715_v48 = vpop.eup %3714  ;;  %v1228_v50 = vadd.f32 1.0, %v3713_v36  ;;  %3734 = vpow2.f32 %v1128_v39  ;;  %v1134_v1 = vmul.f32 1.442695, %v1045_v22  ;;  %v5197_v44 = vadd.f32 %v4958_v26, %v915_v7 }
  0xa7   :  { %v3717_v56 = vpop.eup %3716  ;;  %3736 = vrcp.f32 %v1227_v40  ;;  %v1350_v63 = vmul.f32 %v3715_v48, %v5005_v19  ;;  %v1046_v19 = vsub.f32 0.0, %v5165_v52  ;;  %v1047_v8 = vsub.f32 0.0, %v5171_v2 }
  0xa8   :  { %3136 = vmatmul.mubr.f32.gmra.mrb[66].mxu0 %v1343_v54  ;;  %v3719_v61 = vpop.eup %3718  ;;  %3738 = vrcp.f32 %v1228_v50  ;;  %v1351_v53 = vmul.f32 %v3717_v56, %v5021_v28  ;;  %v914_v28 = vld [vmem:[%s6175_s1 + $0xe8] sm:$0xff]  ;;  %v1050_v40 = vsub.f32 0.0, %v5197_v44 }
  0xa9   :  { %3138 = vmatprep.mubr.f32.mxu0 %v1344_v11  ;;  %v3721_v58 = vpop.eup %3720  ;;  %v1229_v54 = vadd.f32 1.0, %v3719_v61  ;;  %3740 = vpow2.f32 %v1130_v55  ;;  %v1136_v17 = vmul.f32 1.442695, %v1046_v19  ;;  %v1138_v23 = vmul.f32 1.442695, %v1047_v8 }
  0xaa   :  { %v3723_v46 = vpop.eup %3722  ;;  %v1230_v11 = vadd.f32 1.0, %v3721_v58  ;;  %3742 = vpow2.f32 %v1132_v0  ;;  %v5187_v25 = vadd.f32 %v4958_v26, %v914_v28 }
  0xab   :  { %v3725_v5 = vpop.eup %3724  ;;  %3744 = vrcp.f32 %v1229_v54  ;;  %v1352_v15 = vmul.f32 %v3723_v46, %v5033_v3  ;;  %v1048_v3 = vsub.f32 0.0, %v5181_v30 }
  0xac   :  { %3139 = vmatmul.mubr.f32.gmra.mrb[68].mxu0 %v1345_v49  ;;  %v3727_v13 = vpop.eup %3726  ;;  %3746 = vrcp.f32 %v1230_v11  ;;  %v1353_v31 = vmul.f32 %v3725_v5, %v5049_v57  ;;  %v1049_v33 = vsub.f32 0.0, %v5187_v25  ;;  %v916_v57 = vld [vmem:[%s6175_s1 + $0xf8] sm:$0xff] }
  0xad   :  { %3141 = vmatprep.mubr.f32.mxu0 %v1346_v27  ;;  %v3729_v12 = vpop.eup %3728  ;;  %v1231_v49 = vadd.f32 1.0, %v3727_v13  ;;  %3748 = vpow2.f32 %v1134_v1  ;;  %v1140_v42 = vmul.f32 1.442695, %v1048_v3  ;;  %v5203_v35 = vadd.f32 %v4958_v26, %v916_v57 }
  0xae   :  { %v3731_v6 = vpop.eup %3730  ;;  %v1232_v27 = vadd.f32 1.0, %v3729_v12  ;;  %3750 = vpow2.f32 %v1136_v17  ;;  %v1142_v39 = vmul.f32 1.442695, %v1049_v33 }
  0xaf   :  { %v3733_v41 = vpop.eup %3732  ;;  %v1354_v43 = vmul.f32 %v3731_v6, %v5061_v20  ;;  %3752 = vrcp.f32 %v1231_v49  ;;  %v1051_v48 = vsub.f32 0.0, %v5203_v35 }
  0xb0   :  { %3142 = vmatmul.mubr.f32.gmra.mrb[70].mxu0 %v1347_v21  ;;  %v3735_v21 = vpop.eup %3734  ;;  %3754 = vrcp.f32 %v1232_v27  ;;  %v1233_v37 = vadd.f32 1.0, %v3733_v41 }
  0xb1   :  { %3144 = vmatprep.mubr.f32.mxu0 %v1348_v38  ;;  %v3737_v20 = vpop.eup %3736  ;;  %v1234_v38 = vadd.f32 1.0, %v3735_v21  ;;  %3756 = vpow2.f32 %v1138_v23  ;;  %v1146_v61 = vmul.f32 1.442695, %v1051_v48 }
  0xb2   :  { %v3739_v36 = vpop.eup %3738  ;;  %3758 = vrcp.f32 %v1233_v37  ;;  %v1355_v4 = vmul.f32 %v3737_v20, %v5070_v10 }
  0xb3   :  { %v3741_v55 = vpop.eup %3740  ;;  %3760 = vrcp.f32 %v1234_v38  ;;  %v1356_v26 = vmul.f32 %v3739_v36, %v5081_v47 }
  0xb4   :  { %3145 = vmatmul.mubr.f32.gmra.mrb[72].mxu0 %v1349_v59  ;;  %v3743_v50 = vpop.eup %3742  ;;  %v1235_v56 = vadd.f32 1.0, %v3741_v55  ;;  %3762 = vpow2.f32 %v1140_v42  ;;  %v1144_v59 = vmul.f32 1.442695, %v1050_v40 }
  0xb5   :  { %3147 = vmatprep.mubr.f32.mxu0 %v1350_v63  ;;  %v3745_v22 = vpop.eup %3744  ;;  %v1236_v32 = vadd.f32 1.0, %v3743_v50  ;;  %3764 = vpow2.f32 %v1142_v39 }
  0xb6   :  { %v3747_v63 = vpop.eup %3746  ;;  %3766 = vrcp.f32 %v1235_v56  ;;  %v1357_v58 = vmul.f32 %v3745_v22, %v5091_v16 }
  0xb7   :  { %v3749_v0 = vpop.eup %3748  ;;  %3768 = vrcp.f32 %v1236_v32  ;;  %v1358_v1 = vmul.f32 %v3747_v63, %v5100_v45 }
  0xb8   :  { %3148 = vmatmul.mubr.f32.gmra.mrb[74].mxu0 %v1351_v53  ;;  %v3751_v9 = vpop.eup %3750  ;;  %v1237_v54 = vadd.f32 1.0, %v3749_v0  ;;  %3770 = vpow2.f32 %v1144_v59 }
  0xb9   :  { %3150 = vmatprep.mubr.f32.mxu0 %v1352_v15  ;;  %v3753_v10 = vpop.eup %3752  ;;  %v1238_v46 = vadd.f32 1.0, %v3751_v9  ;;  %3772 = vpow2.f32 %v1146_v61 }
  0xba   :  { %v3755_v47 = vpop.eup %3754  ;;  %3774 = vrcp.f32 %v1237_v54  ;;  %v1359_v5 = vmul.f32 %v3753_v10, %v5107_v51 }
  0xbb   :  { %v3757_v11 = vpop.eup %3756  ;;  %3776 = vrcp.f32 %v1238_v46  ;;  %v1360_v16 = vmul.f32 %v3755_v47, %v5116_v34 }
  0xbc   :  { %3151 = vmatmul.mubr.f32.gmra.mrb[76].mxu0 %v1353_v31  ;;  %v3759_v19 = vpop.eup %3758  ;;  %v1239_v53 = vadd.f32 1.0, %v3757_v11 }
  0xbd   :  { %3153 = vmatprep.mubr.f32.mxu0 %v1354_v43  ;;  %v3761_v8 = vpop.eup %3760  ;;  %v1361_v17 = vmul.f32 %v3759_v19, %v5123_v14 }
  0xbe   :  { %v3763_v18 = vpop.eup %3762  ;;  %3778 = vrcp.f32 %v1239_v53  ;;  %v1362_v49 = vmul.f32 %v3761_v8, %v5132_v24 }
  0xbf   :  { %v3765_v13 = vpop.eup %3764  ;;  %v1240_v15 = vadd.f32 1.0, %v3763_v18 }
  0xc0   :  { %3154 = vmatmul.mubr.f32.gmra.mrb[78].mxu0 %v1355_v4  ;;  %v3767_v45 = vpop.eup %3766  ;;  %v1241_v28 = vadd.f32 1.0, %v3765_v13 }
  0xc1   :  { %3156 = vmatprep.mubr.f32.mxu0 %v1356_v26  ;;  %v3769_v12 = vpop.eup %3768  ;;  %3780 = vrcp.f32 %v1240_v15  ;;  %v1363_v34 = vmul.f32 %v3767_v45, %v5139_v29 }
  0xc2   :  { %v3771_v51 = vpop.eup %3770  ;;  %3782 = vrcp.f32 %v1241_v28  ;;  %v1364_v41 = vmul.f32 %v3769_v12, %v5149_v60 }
  0xc3   :  { %v3773_v23 = vpop.eup %3772  ;;  %v1242_v6 = vadd.f32 1.0, %v3771_v51 }
  0xc4   :  { %3157 = vmatmul.mubr.f32.gmra.mrb[80].mxu0 %v1357_v58  ;;  %v1243_v27 = vadd.f32 1.0, %v3773_v23  ;;  %v3775_v3 = vpop.eup %3774 }
  0xc5   :  { %3159 = vmatprep.mubr.f32.mxu0 %v1358_v1  ;;  %3784 = vrcp.f32 %v1242_v6  ;;  %v3777_v14 = vpop.eup %3776  ;;  %v1365_v31 = vmul.f32 %v3775_v3, %v5155_v62 }
  0xc6   :  { %3786 = vrcp.f32 %v1243_v27  ;;  %v1366_v43 = vmul.f32 %v3777_v14, %v5165_v52  ;;  %v5227_v52 = vld [vmem:[%s6178_s3] ss:$0 sm:$0xff] }
  0xc8   :  { %3160 = vmatmul.mubr.f32.gmra.mrb[82].mxu0 %v1359_v5  ;;  %v3779_v24 = vpop.eup %3778 }
  0xc9   :  { %3162 = vmatprep.mubr.f32.mxu0 %v1360_v16  ;;  %v1367_v7 = vmul.f32 %v3779_v24, %v5171_v2 }
  0xcb   :  { %v3781_v33 = vpop.eup %3780 }
  0xcc   :  { %3163 = vmatmul.mubr.f32.gmra.mrb[84].mxu0 %v1361_v17  ;;  %v3783_v29 = vpop.eup %3782  ;;  %v1368_v21 = vmul.f32 %v3781_v33, %v5181_v30 }
  0xcd   :  { %3165 = vmatprep.mubr.f32.mxu0 %v1362_v49  ;;  %v1369_v60 = vmul.f32 %v3783_v29, %v5187_v25 }
  0xcf   :  { %v3785_v37 = vpop.eup %3784 }
  0xd0   :  { %3166 = vmatmul.mubr.f32.gmra.mrb[86].mxu0 %v1363_v34  ;;  %v3787_v42 = vpop.eup %3786  ;;  %v1370_v62 = vmul.f32 %v3785_v37, %v5197_v44 }
  0xd1   :  { %3168 = vmatprep.mubr.f32.mxu0 %v1364_v41  ;;  %v1371_v57 = vmul.f32 %v3787_v42, %v5203_v35 }
  0xd4   :  { %3169 = vmatmul.mubr.f32.gmra.mrb[88].mxu0 %v1365_v31 }
  0xd5   :  { %3171 = vmatprep.mubr.f32.mxu0 %v1366_v43 }
  0xd8   :  { %3172 = vmatmul.mubr.f32.gmra.mrb[90].mxu0 %v1367_v7 }
  0xd9   :  { %3174 = vmatprep.mubr.f32.mxu0 %v1368_v21 }
  0xdc   :  { %3175 = vmatmul.mubr.f32.gmra.mrb[92].mxu0 %v1369_v60 }
  0xdd   :  { %3177 = vmatprep.mubr.f32.mxu0 %v1370_v62 }
  0xe0   :  { %3178 = vmatmul.mubr.f32.gmra.mrb[94].mxu0 %v1371_v57 }
  0xf7   :  { %v3006_v2 = vpop.f32.mrb[0].mxu0 }
  0xf8   :  { %v5230_v30 = vadd.f32 %v3006_v2, %v5227_v52  ;;  %v182_v20 = vpop.f32.mrb[1].mxu0 }
  0xf9   :  { %v5233_v25 = vadd.f32 %v5227_v52, %v182_v20 }
  0xfa   :  { %v502_v44 = vsub.f32 0.0, %v5230_v30 }
  0xfb   :  { %v501_v38 = vsub.f32 0.0, %v5233_v25  ;;  %v3009_v39 = vpop.f32.mrb[2].mxu0 }
  0xfc   :  { %v567_v35 = vmul.f32 1.442695, %v502_v44  ;;  %v5238_v36 = vadd.f32 %v3009_v39, %v5227_v52  ;;  %v192_v40 = vpop.f32.mrb[3].mxu0 }
  0xfd   :  { %v565_v55 = vmul.f32 1.442695, %v501_v38  ;;  %v5241_v48 = vadd.f32 %v5227_v52, %v192_v40 }
  0xfe   :  { %3788 = vpow2.f32 %v567_v35  ;;  %v504_v50 = vsub.f32 0.0, %v5238_v36 }
  0xff   :  { %3790 = vpow2.f32 %v565_v55  ;;  %v503_v4 = vsub.f32 0.0, %v5241_v48  ;;  %v3012_v56 = vpop.f32.mrb[4].mxu0 }
 0x100   :  { %v571_v59 = vmul.f32 1.442695, %v504_v50  ;;  %v5246_v22 = vadd.f32 %v3012_v56, %v5227_v52  ;;  %v202_v26 = vpop.f32.mrb[5].mxu0 }
 0x101   :  { %v569_v32 = vmul.f32 1.442695, %v503_v4  ;;  %v5249_v61 = vadd.f32 %v5227_v52, %v202_v26 }
 0x102   :  { %3792 = vpow2.f32 %v571_v59  ;;  %v506_v63 = vsub.f32 0.0, %v5246_v22 }
 0x103   :  { %3794 = vpow2.f32 %v569_v32  ;;  %v505_v0 = vsub.f32 0.0, %v5249_v61  ;;  %v3015_v9 = vpop.f32.mrb[6].mxu0 }
 0x104   :  { %v575_v58 = vmul.f32 1.442695, %v506_v63  ;;  %v5254_v54 = vadd.f32 %v3015_v9, %v5227_v52  ;;  %v212_v10 = vpop.f32.mrb[7].mxu0 }
 0x105   :  { %v573_v1 = vmul.f32 1.442695, %v505_v0  ;;  %v5257_v46 = vadd.f32 %v5227_v52, %v212_v10 }
 0x106   :  { %3796 = vpow2.f32 %v575_v58  ;;  %v508_v47 = vsub.f32 0.0, %v5254_v54 }
 0x107   :  { %3798 = vpow2.f32 %v573_v1  ;;  %v507_v11 = vsub.f32 0.0, %v5257_v46  ;;  %v3018_v19 = vpop.f32.mrb[8].mxu0 }
 0x108   :  { %v3789_v5 = vpop.eup %3788  ;;  %v579_v53 = vmul.f32 1.442695, %v508_v47  ;;  %v5262_v8 = vadd.f32 %v3018_v19, %v5227_v52  ;;  %v222_v16 = vpop.f32.mrb[9].mxu0 }
 0x109   :  { %v3791_v18 = vpop.eup %3790  ;;  %v694_v13 = vadd.f32 1.0, %v3789_v5  ;;  %v577_v15 = vmul.f32 1.442695, %v507_v11  ;;  %v5265_v45 = vadd.f32 %v5227_v52, %v222_v16 }
 0x10a   :  { %v693_v17 = vadd.f32 1.0, %v3791_v18  ;;  %3800 = vpow2.f32 %v579_v53  ;;  %v510_v28 = vsub.f32 0.0, %v5262_v8 }
 0x10b   :  { %3802 = vrcp.f32 %v694_v13  ;;  %v509_v12 = vsub.f32 0.0, %v5265_v45  ;;  %v3021_v49 = vpop.f32.mrb[10].mxu0 }
 0x10c   :  { %v3793_v51 = vpop.eup %3792  ;;  %3804 = vrcp.f32 %v693_v17  ;;  %v583_v23 = vmul.f32 1.442695, %v510_v28  ;;  %v5270_v6 = vadd.f32 %v3021_v49, %v5227_v52  ;;  %v232_v34 = vpop.f32.mrb[11].mxu0 }
 0x10d   :  { %v3795_v27 = vpop.eup %3794  ;;  %v696_v3 = vadd.f32 1.0, %v3793_v51  ;;  %3806 = vpow2.f32 %v577_v15  ;;  %v581_v41 = vmul.f32 1.442695, %v509_v12  ;;  %v5273_v14 = vadd.f32 %v5227_v52, %v232_v34 }
 0x10e   :  { %v695_v31 = vadd.f32 1.0, %v3795_v27  ;;  %3808 = vpow2.f32 %v583_v23  ;;  %v512_v24 = vsub.f32 0.0, %v5270_v6 }
 0x10f   :  { %3810 = vrcp.f32 %v696_v3  ;;  %v511_v43 = vsub.f32 0.0, %v5273_v14  ;;  %v3024_v33 = vpop.f32.mrb[12].mxu0 }
 0x110   :  { %v3797_v7 = vpop.eup %3796  ;;  %3812 = vrcp.f32 %v695_v31  ;;  %v587_v29 = vmul.f32 1.442695, %v512_v24  ;;  %v5278_v21 = vadd.f32 %v3024_v33, %v5227_v52  ;;  %v242_v37 = vpop.f32.mrb[13].mxu0 }
 0x111   :  { %v3799_v60 = vpop.eup %3798  ;;  %v698_v42 = vadd.f32 1.0, %v3797_v7  ;;  %3814 = vpow2.f32 %v581_v41  ;;  %v585_v62 = vmul.f32 1.442695, %v511_v43  ;;  %v5281_v57 = vadd.f32 %v5227_v52, %v242_v37 }
 0x112   :  { %v697_v2 = vadd.f32 1.0, %v3799_v60  ;;  %3816 = vpow2.f32 %v587_v29  ;;  %v514_v20 = vsub.f32 0.0, %v5278_v21 }
 0x113   :  { %3818 = vrcp.f32 %v698_v42  ;;  %v513_v44 = vsub.f32 0.0, %v5281_v57  ;;  %v3027_v38 = vpop.f32.mrb[14].mxu0 }
 0x114   :  { %v3801_v39 = vpop.eup %3800  ;;  %3820 = vrcp.f32 %v697_v2  ;;  %v591_v35 = vmul.f32 1.442695, %v514_v20  ;;  %v5286_v40 = vadd.f32 %v3027_v38, %v5227_v52  ;;  %v252_v55 = vpop.f32.mrb[15].mxu0 }
 0x115   :  { %v3803_v50 = vpop.eup %3802  ;;  %v700_v4 = vadd.f32 1.0, %v3801_v39  ;;  %3822 = vpow2.f32 %v585_v62  ;;  %v589_v56 = vmul.f32 1.442695, %v513_v44  ;;  %v5289_v59 = vadd.f32 %v5227_v52, %v252_v55 }
 0x116   :  { %v3805_v26 = vpop.eup %3804  ;;  %3824 = vpow2.f32 %v591_v35  ;;  %v516_v32 = vsub.f32 0.0, %v5286_v40  ;;  %v822_v0 = vmul.f32 %v3803_v50, %v5230_v30 }
 0x117   :  { %v3807_v63 = vpop.eup %3806  ;;  %v821_v9 = vmul.f32 %v3805_v26, %v5233_v25  ;;  %v515_v58 = vsub.f32 0.0, %v5289_v59  ;;  %v3030_v10 = vpop.f32.mrb[16].mxu0  ;;  %3826 = vpow2.f32 %v589_v56 }
 0x118   :  { %v3809_v1 = vpop.eup %3808  ;;  %v699_v47 = vadd.f32 1.0, %v3807_v63  ;;  %v595_v11 = vmul.f32 1.442695, %v516_v32  ;;  %v5296_v19 = vadd.f32 %v3030_v10, %v5227_v52  ;;  %v262_v5 = vpop.f32.mrb[17].mxu0  ;;  %3828 = vrcp.f32 %v700_v4 }
 0x119   :  { %v3811_v53 = vpop.eup %3810  ;;  %v702_v16 = vadd.f32 1.0, %v3809_v1  ;;  %v593_v18 = vmul.f32 1.442695, %v515_v58  ;;  %v5299_v13 = vadd.f32 %v5227_v52, %v262_v5  ;;  %3260 = vmatprep.mubr.f32.mxu1 %v821_v9 }
 0x11a   :  { %v3813_v30 = vpop.eup %3812  ;;  %3830 = vrcp.f32 %v699_v47  ;;  %v518_v25 = vsub.f32 0.0, %v5296_v19  ;;  %3261 = vmatmul.mubr.f32.vlgmr.msra.gmra.mrb[32].mxu1 %v822_v0  ;;  %v824_v17 = vmul.f32 %v3811_v53, %v5238_v36 }
 0x11b   :  { %v3815_v15 = vpop.eup %3814  ;;  %v823_v28 = vmul.f32 %v3813_v30, %v5241_v48  ;;  %3832 = vrcp.f32 %v702_v16  ;;  %v517_v12 = vsub.f32 0.0, %v5299_v13  ;;  %v3033_v49 = vpop.f32.mrb[18].mxu0 }
 0x11c   :  { %v3817_v51 = vpop.eup %3816  ;;  %v701_v23 = vadd.f32 1.0, %v3815_v15  ;;  %3834 = vpow2.f32 %v595_v11  ;;  %v599_v34 = vmul.f32 1.442695, %v518_v25  ;;  %v5306_v27 = vadd.f32 %v3033_v49, %v5227_v52  ;;  %v272_v3 = vpop.f32.mrb[19].mxu0 }
 0x11d   :  { %v3819_v41 = vpop.eup %3818  ;;  %v704_v31 = vadd.f32 1.0, %v3817_v51  ;;  %3836 = vpow2.f32 %v593_v18  ;;  %v597_v24 = vmul.f32 1.442695, %v517_v12  ;;  %v5309_v36 = vadd.f32 %v5227_v52, %v272_v3  ;;  %3263 = vmatprep.mubr.f32.mxu1 %v823_v28 }
 0x11e   :  { %v3821_v48 = vpop.eup %3820  ;;  %3838 = vrcp.f32 %v701_v23  ;;  %v520_v43 = vsub.f32 0.0, %v5306_v27  ;;  %3264 = vmatmul.mubr.f32.gmra.mrb[34].mxu1 %v824_v17  ;;  %v826_v7 = vmul.f32 %v3819_v41, %v5246_v22 }
 0x11f   :  { %v3823_v33 = vpop.eup %3822  ;;  %v825_v29 = vmul.f32 %v3821_v48, %v5249_v61  ;;  %3840 = vrcp.f32 %v704_v31  ;;  %v519_v37 = vsub.f32 0.0, %v5309_v36  ;;  %v3036_v60 = vpop.f32.mrb[20].mxu0 }
 0x120   :  { %v3825_v42 = vpop.eup %3824  ;;  %v703_v62 = vadd.f32 1.0, %v3823_v33  ;;  %3842 = vpow2.f32 %v599_v34  ;;  %v603_v2 = vmul.f32 1.442695, %v520_v43  ;;  %v5316_v20 = vadd.f32 %v3036_v60, %v5227_v52  ;;  %v282_v44 = vpop.f32.mrb[21].mxu0 }
 0x121   :  { %v706_v38 = vadd.f32 1.0, %v3825_v42  ;;  %3844 = vpow2.f32 %v597_v24  ;;  %v5319_v39 = vadd.f32 %v5227_v52, %v282_v44  ;;  %3266 = vmatprep.mubr.f32.mxu1 %v825_v29  ;;  %v3827_v22 = vpop.eup %3826  ;;  %v601_v61 = vmul.f32 1.442695, %v519_v37 }
 0x122   :  { %3846 = vrcp.f32 %v703_v62  ;;  %v522_v35 = vsub.f32 0.0, %v5316_v20  ;;  %3267 = vmatmul.mubr.f32.gmra.mrb[36].mxu1 %v826_v7  ;;  %v3829_v55 = vpop.eup %3828  ;;  %v705_v50 = vadd.f32 1.0, %v3827_v22 }
 0x123   :  { %3848 = vrcp.f32 %v706_v38  ;;  %v521_v4 = vsub.f32 0.0, %v5319_v39  ;;  %v3039_v56 = vpop.f32.mrb[22].mxu0  ;;  %v828_v11 = vmul.f32 %v3829_v55, %v5254_v54 }
 0x124   :  { %v3831_v26 = vpop.eup %3830  ;;  %3850 = vpow2.f32 %v603_v2  ;;  %v607_v32 = vmul.f32 1.442695, %v522_v35  ;;  %v5324_v63 = vadd.f32 %v3039_v56, %v5227_v52  ;;  %v292_v0 = vpop.f32.mrb[23].mxu0 }
 0x125   :  { %v3833_v9 = vpop.eup %3832  ;;  %v827_v58 = vmul.f32 %v3831_v26, %v5257_v46  ;;  %3852 = vrcp.f32 %v705_v50  ;;  %v605_v10 = vmul.f32 1.442695, %v521_v4  ;;  %v5328_v1 = vadd.f32 %v5227_v52, %v292_v0 }
 0x126   :  { %v3835_v47 = vpop.eup %3834  ;;  %3854 = vpow2.f32 %v601_v61  ;;  %v524_v5 = vsub.f32 0.0, %v5324_v63  ;;  %v830_v34 = vmul.f32 %v3833_v9, %v5262_v8 }
 0x127   :  { %v3837_v53 = vpop.eup %3836  ;;  %v708_v16 = vadd.f32 1.0, %v3835_v47  ;;  %3856 = vpow2.f32 %v607_v32  ;;  %v523_v18 = vsub.f32 0.0, %v5328_v1  ;;  %3269 = vmatprep.mubr.f32.mxu1 %v827_v58  ;;  %v3042_v30 = vpop.f32.mrb[24].mxu0 }
 0x128   :  { %v3839_v25 = vpop.eup %3838  ;;  %v707_v46 = vadd.f32 1.0, %v3837_v53  ;;  %3858 = vpow2.f32 %v605_v10  ;;  %v611_v15 = vmul.f32 1.442695, %v524_v5  ;;  %3270 = vmatmul.mubr.f32.gmra.mrb[38].mxu1 %v828_v11  ;;  %v5334_v17 = vadd.f32 %v3042_v30, %v5227_v52  ;;  %v302_v28 = vpop.f32.mrb[25].mxu0 }
 0x129   :  { %v3841_v54 = vpop.eup %3840  ;;  %v829_v12 = vmul.f32 %v3839_v25, %v5265_v45  ;;  %3860 = vrcp.f32 %v708_v16  ;;  %v609_v49 = vmul.f32 1.442695, %v523_v18  ;;  %v5338_v51 = vadd.f32 %v5227_v52, %v302_v28 }
 0x12a   :  { %v3843_v23 = vpop.eup %3842  ;;  %3862 = vrcp.f32 %v707_v46  ;;  %v526_v3 = vsub.f32 0.0, %v5334_v17  ;;  %v832_v2 = vmul.f32 %v3841_v54, %v5270_v6 }
 0x12b   :  { %v3845_v41 = vpop.eup %3844  ;;  %v710_v31 = vadd.f32 1.0, %v3843_v23  ;;  %3864 = vpow2.f32 %v611_v15  ;;  %v525_v24 = vsub.f32 0.0, %v5338_v51  ;;  %3272 = vmatprep.mubr.f32.mxu1 %v829_v12  ;;  %v3045_v48 = vpop.f32.mrb[26].mxu0 }
 0x12c   :  { %v3847_v43 = vpop.eup %3846  ;;  %v709_v45 = vadd.f32 1.0, %v3845_v41  ;;  %3866 = vpow2.f32 %v609_v49  ;;  %v615_v33 = vmul.f32 1.442695, %v526_v3  ;;  %3273 = vmatmul.mubr.f32.gmra.mrb[40].mxu1 %v830_v34  ;;  %v5344_v7 = vadd.f32 %v3045_v48, %v5227_v52  ;;  %v312_v29 = vpop.f32.mrb[27].mxu0 }
 0x12d   :  { %v3849_v8 = vpop.eup %3848  ;;  %v831_v37 = vmul.f32 %v3847_v43, %v5273_v14  ;;  %3868 = vrcp.f32 %v710_v31  ;;  %v613_v60 = vmul.f32 1.442695, %v525_v24  ;;  %v5348_v42 = vadd.f32 %v5227_v52, %v312_v29 }
 0x12e   :  { %v3851_v62 = vpop.eup %3850  ;;  %3870 = vrcp.f32 %v709_v45  ;;  %v528_v44 = vsub.f32 0.0, %v5344_v7  ;;  %v834_v26 = vmul.f32 %v3849_v8, %v5278_v21 }
 0x12f   :  { %v3853_v38 = vpop.eup %3852  ;;  %v712_v22 = vadd.f32 1.0, %v3851_v62  ;;  %3872 = vpow2.f32 %v615_v33  ;;  %v527_v61 = vsub.f32 0.0, %v5348_v42  ;;  %3275 = vmatprep.mubr.f32.mxu1 %v831_v37  ;;  %v3048_v35 = vpop.f32.mrb[28].mxu0 }
 0x130   :  { %v3855_v55 = vpop.eup %3854  ;;  %v833_v14 = vmul.f32 %v3853_v38, %v5281_v57  ;;  %3874 = vpow2.f32 %v613_v60  ;;  %v619_v50 = vmul.f32 1.442695, %v528_v44  ;;  %3276 = vmatmul.mubr.f32.gmra.mrb[42].mxu1 %v832_v2  ;;  %v5355_v4 = vadd.f32 %v3048_v35, %v5227_v52  ;;  %v322_v6 = vpop.f32.mrb[29].mxu0 }
 0x131   :  { %v3857_v56 = vpop.eup %3856  ;;  %3876 = vrcp.f32 %v712_v22  ;;  %v711_v32 = vadd.f32 1.0, %v3855_v55  ;;  %v5359_v0 = vadd.f32 %v5227_v52, %v322_v6  ;;  %v617_v10 = vmul.f32 1.442695, %v527_v61 }
 0x132   :  { %v3859_v9 = vpop.eup %3858  ;;  %v714_v58 = vadd.f32 1.0, %v3857_v56  ;;  %3878 = vpow2.f32 %v619_v50  ;;  %v530_v57 = vsub.f32 0.0, %v5355_v4  ;;  %3278 = vmatprep.mubr.f32.mxu1 %v833_v14 }
 0x133   :  { %v3861_v47 = vpop.eup %3860  ;;  %3880 = vrcp.f32 %v711_v32  ;;  %v713_v11 = vadd.f32 1.0, %v3859_v9  ;;  %v529_v5 = vsub.f32 0.0, %v5359_v0  ;;  %v3051_v53 = vpop.f32.mrb[30].mxu0 }
 0x134   :  { %v3863_v16 = vpop.eup %3862  ;;  %3882 = vrcp.f32 %v714_v58  ;;  %v623_v21 = vmul.f32 1.442695, %v530_v57  ;;  %3279 = vmatmul.mubr.f32.gmra.mrb[44].mxu1 %v834_v26  ;;  %v5364_v18 = vadd.f32 %v3051_v53, %v5227_v52  ;;  %v332_v30 = vpop.f32.mrb[31].mxu0  ;;  %v836_v46 = vmul.f32 %v3861_v47, %v5286_v40 }
 0x135   :  { %v3865_v25 = vpop.eup %3864  ;;  %v835_v15 = vmul.f32 %v3863_v16, %v5289_v59  ;;  %3884 = vrcp.f32 %v713_v11  ;;  %v5369_v28 = vadd.f32 %v5227_v52, %v332_v30  ;;  %v621_v49 = vmul.f32 1.442695, %v529_v5 }
 0x136   :  { %v3867_v54 = vpop.eup %3866  ;;  %v716_v12 = vadd.f32 1.0, %v3865_v25  ;;  %3886 = vpow2.f32 %v617_v10  ;;  %v532_v23 = vsub.f32 0.0, %v5364_v18 }
 0x137   :  { %v3869_v34 = vpop.eup %3868  ;;  %v715_v3 = vadd.f32 1.0, %v3867_v54  ;;  %3888 = vpow2.f32 %v623_v21  ;;  %v531_v41 = vsub.f32 0.0, %v5369_v28  ;;  %3281 = vmatprep.mubr.f32.mxu1 %v835_v15  ;;  %v3054_v31 = vpop.f32.mrb[32].mxu0 }
 0x138   :  { %v3871_v40 = vpop.eup %3870  ;;  %3890 = vrcp.f32 %v716_v12  ;;  %v627_v59 = vmul.f32 1.442695, %v532_v23  ;;  %3282 = vmatmul.mubr.f32.gmra.mrb[46].mxu1 %v836_v46  ;;  %v5374_v24 = vadd.f32 %v3054_v31, %v5227_v52  ;;  %v342_v48 = vpop.f32.mrb[33].mxu0  ;;  %v838_v45 = vmul.f32 %v3869_v34, %v5296_v19 }
 0x139   :  { %v3873_v43 = vpop.eup %3872  ;;  %v837_v33 = vmul.f32 %v3871_v40, %v5299_v13  ;;  %3892 = vrcp.f32 %v715_v3  ;;  %v5379_v29 = vadd.f32 %v5227_v52, %v342_v48  ;;  %v625_v60 = vmul.f32 1.442695, %v531_v41 }
 0x13a   :  { %v3875_v8 = vpop.eup %3874  ;;  %v718_v37 = vadd.f32 1.0, %v3873_v43  ;;  %3894 = vpow2.f32 %v621_v49  ;;  %v534_v62 = vsub.f32 0.0, %v5374_v24 }
 0x13b   :  { %v3877_v2 = vpop.eup %3876  ;;  %v717_v44 = vadd.f32 1.0, %v3875_v8  ;;  %3896 = vpow2.f32 %v627_v59  ;;  %v533_v38 = vsub.f32 0.0, %v5379_v29  ;;  %3284 = vmatprep.mubr.f32.mxu1 %v837_v33  ;;  %v3057_v22 = vpop.f32.mrb[34].mxu0 }
 0x13c   :  { %v3879_v19 = vpop.eup %3878  ;;  %3898 = vrcp.f32 %v718_v37  ;;  %v631_v13 = vmul.f32 1.442695, %v534_v62  ;;  %3285 = vmatmul.mubr.f32.gmra.mrb[48].mxu1 %v838_v45  ;;  %v5384_v61 = vadd.f32 %v3057_v22, %v5227_v52  ;;  %v352_v35 = vpop.f32.mrb[35].mxu0  ;;  %v840_v58 = vmul.f32 %v3877_v2, %v5306_v27 }
 0x13d   :  { %v3881_v55 = vpop.eup %3880  ;;  %3900 = vrcp.f32 %v717_v44  ;;  %v720_v14 = vadd.f32 1.0, %v3879_v19  ;;  %v629_v50 = vmul.f32 1.442695, %v533_v38  ;;  %v5387_v6 = vadd.f32 %v5227_v52, %v352_v35 }
 0x13e   :  { %v3883_v56 = vpop.eup %3882  ;;  %v839_v26 = vmul.f32 %v3881_v55, %v5309_v36  ;;  %3902 = vpow2.f32 %v625_v60  ;;  %v536_v32 = vsub.f32 0.0, %v5384_v61 }
 0x13f   :  { %v3885_v9 = vpop.eup %3884  ;;  %3904 = vrcp.f32 %v720_v14  ;;  %v535_v10 = vsub.f32 0.0, %v5387_v6  ;;  %v3060_v57 = vpop.f32.mrb[36].mxu0  ;;  %v842_v54 = vmul.f32 %v3883_v56, %v5316_v20 }
 0x140   :  { %v3887_v47 = vpop.eup %3886  ;;  %v841_v11 = vmul.f32 %v3885_v9, %v5319_v39  ;;  %3906 = vpow2.f32 %v631_v13  ;;  %v635_v5 = vmul.f32 1.442695, %v536_v32  ;;  %3287 = vmatprep.mubr.f32.mxu1 %v839_v26  ;;  %v5395_v53 = vadd.f32 %v3060_v57, %v5227_v52  ;;  %v362_v36 = vpop.f32.mrb[37].mxu0 }
 0x141   :  { %v3889_v16 = vpop.eup %3888  ;;  %v719_v21 = vadd.f32 1.0, %v3887_v47  ;;  %3908 = vpow2.f32 %v629_v50  ;;  %v633_v30 = vmul.f32 1.442695, %v535_v10  ;;  %3288 = vmatmul.mubr.f32.gmra.mrb[50].mxu1 %v840_v58  ;;  %v5398_v27 = vadd.f32 %v5227_v52, %v362_v36 }
 0x142   :  { %v3891_v25 = vpop.eup %3890  ;;  %v722_v46 = vadd.f32 1.0, %v3889_v16  ;;  %3910 = vpow2.f32 %v635_v5  ;;  %v538_v39 = vsub.f32 0.0, %v5395_v53  ;;  %3290 = vmatprep.mubr.f32.mxu1 %v841_v11 }
 0x143   :  { %v3893_v15 = vpop.eup %3892  ;;  %3912 = vrcp.f32 %v719_v21  ;;  %v537_v12 = vsub.f32 0.0, %v5398_v27  ;;  %v3063_v49 = vpop.f32.mrb[38].mxu0  ;;  %v844_v8 = vmul.f32 %v3891_v25, %v5324_v63 }
 0x144   :  { %v3895_v23 = vpop.eup %3894  ;;  %v843_v34 = vmul.f32 %v3893_v15, %v5328_v1  ;;  %3914 = vrcp.f32 %v722_v46  ;;  %v639_v3 = vmul.f32 1.442695, %v538_v39  ;;  %v5405_v41 = vadd.f32 %v3063_v49, %v5227_v52  ;;  %v372_v31 = vpop.f32.mrb[39].mxu0 }
 0x145   :  { %v3897_v40 = vpop.eup %3896  ;;  %v721_v59 = vadd.f32 1.0, %v3895_v23  ;;  %3916 = vpow2.f32 %v633_v30  ;;  %v637_v48 = vmul.f32 1.442695, %v537_v12  ;;  %3291 = vmatmul.mubr.f32.gmra.mrb[52].mxu1 %v842_v54  ;;  %v5408_v20 = vadd.f32 %v5227_v52, %v372_v31 }
 0x146   :  { %v3899_v43 = vpop.eup %3898  ;;  %v724_v45 = vadd.f32 1.0, %v3897_v40  ;;  %3918 = vpow2.f32 %v639_v3  ;;  %v540_v33 = vsub.f32 0.0, %v5405_v41  ;;  %3293 = vmatprep.mubr.f32.mxu1 %v843_v34 }
 0x147   :  { %v3901_v1 = vpop.eup %3900  ;;  %3920 = vrcp.f32 %v721_v59  ;;  %v539_v37 = vsub.f32 0.0, %v5408_v20  ;;  %v3066_v60 = vpop.f32.mrb[40].mxu0  ;;  %v846_v50 = vmul.f32 %v3899_v43, %v5334_v17 }
 0x148   :  { %v3903_v62 = vpop.eup %3902  ;;  %v845_v2 = vmul.f32 %v3901_v1, %v5338_v51  ;;  %3922 = vrcp.f32 %v724_v45  ;;  %v643_v44 = vmul.f32 1.442695, %v540_v33  ;;  %v5415_v38 = vadd.f32 %v3066_v60, %v5227_v52  ;;  %v382_v22 = vpop.f32.mrb[41].mxu0 }
 0x149   :  { %v3905_v19 = vpop.eup %3904  ;;  %v723_v13 = vadd.f32 1.0, %v3903_v62  ;;  %3924 = vpow2.f32 %v637_v48  ;;  %v641_v35 = vmul.f32 1.442695, %v539_v37  ;;  %3294 = vmatmul.mubr.f32.gmra.mrb[54].mxu1 %v844_v8  ;;  %v5418_v63 = vadd.f32 %v5227_v52, %v382_v22 }
 0x14a   :  { %v3907_v55 = vpop.eup %3906  ;;  %3926 = vpow2.f32 %v643_v44  ;;  %v542_v14 = vsub.f32 0.0, %v5415_v38  ;;  %3296 = vmatprep.mubr.f32.mxu1 %v845_v2  ;;  %v848_v46 = vmul.f32 %v3905_v19, %v5344_v7 }
 0x14b   :  { %v3909_v51 = vpop.eup %3908  ;;  %3928 = vrcp.f32 %v723_v13  ;;  %v726_v56 = vadd.f32 1.0, %v3907_v55  ;;  %v541_v26 = vsub.f32 0.0, %v5418_v63  ;;  %v3069_v32 = vpop.f32.mrb[42].mxu0 }
 0x14c   :  { %v3911_v9 = vpop.eup %3910  ;;  %v725_v58 = vadd.f32 1.0, %v3909_v51  ;;  %3930 = vpow2.f32 %v641_v35  ;;  %v647_v10 = vmul.f32 1.442695, %v542_v14  ;;  %v5424_v57 = vadd.f32 %v3069_v32, %v5227_v52  ;;  %v392_v47 = vpop.f32.mrb[43].mxu0 }
 0x14d   :  { %v3913_v11 = vpop.eup %3912  ;;  %3932 = vrcp.f32 %v726_v56  ;;  %v728_v5 = vadd.f32 1.0, %v3911_v9  ;;  %v645_v36 = vmul.f32 1.442695, %v541_v26  ;;  %3297 = vmatmul.mubr.f32.gmra.mrb[56].mxu1 %v846_v50  ;;  %v5427_v17 = vadd.f32 %v5227_v52, %v392_v47 }
 0x14e   :  { %v3915_v16 = vpop.eup %3914  ;;  %v847_v21 = vmul.f32 %v3913_v11, %v5348_v42  ;;  %3934 = vrcp.f32 %v725_v58  ;;  %v544_v30 = vsub.f32 0.0, %v5424_v57 }
 0x14f   :  { %v3917_v25 = vpop.eup %3916  ;;  %3936 = vrcp.f32 %v728_v5  ;;  %v543_v39 = vsub.f32 0.0, %v5427_v17  ;;  %v3072_v15 = vpop.f32.mrb[44].mxu0  ;;  %v850_v45 = vmul.f32 %v3915_v16, %v5355_v4 }
 0x150   :  { %v3919_v54 = vpop.eup %3918  ;;  %v727_v12 = vadd.f32 1.0, %v3917_v25  ;;  %3938 = vpow2.f32 %v647_v10  ;;  %v651_v49 = vmul.f32 1.442695, %v544_v30  ;;  %3299 = vmatprep.mubr.f32.mxu1 %v847_v21  ;;  %v5434_v23 = vadd.f32 %v3072_v15, %v5227_v52  ;;  %v402_v34 = vpop.f32.mrb[45].mxu0 }
 0x151   :  { %v3921_v42 = vpop.eup %3920  ;;  %v730_v3 = vadd.f32 1.0, %v3919_v54  ;;  %3940 = vpow2.f32 %v645_v36  ;;  %v649_v31 = vmul.f32 1.442695, %v543_v39  ;;  %3300 = vmatmul.mubr.f32.gmra.mrb[58].mxu1 %v848_v46  ;;  %v5437_v7 = vadd.f32 %v5227_v52, %v402_v34 }
 0x152   :  { %v3923_v40 = vpop.eup %3922  ;;  %v849_v59 = vmul.f32 %v3921_v42, %v5359_v0  ;;  %3942 = vrcp.f32 %v727_v12  ;;  %v546_v48 = vsub.f32 0.0, %v5434_v23 }
 0x153   :  { %v3925_v43 = vpop.eup %3924  ;;  %3944 = vrcp.f32 %v730_v3  ;;  %v545_v33 = vsub.f32 0.0, %v5437_v7  ;;  %v3075_v1 = vpop.f32.mrb[46].mxu0  ;;  %v852_v14 = vmul.f32 %v3923_v40, %v5364_v18 }
 0x154   :  { %v3927_v8 = vpop.eup %3926  ;;  %v729_v37 = vadd.f32 1.0, %v3925_v43  ;;  %3946 = vpow2.f32 %v651_v49  ;;  %v655_v60 = vmul.f32 1.442695, %v546_v48  ;;  %3302 = vmatprep.mubr.f32.mxu1 %v849_v59  ;;  %v5444_v62 = vadd.f32 %v3075_v1, %v5227_v52  ;;  %v412_v2 = vpop.f32.mrb[47].mxu0 }
 0x155   :  { %v3929_v0 = vpop.eup %3928  ;;  %v732_v44 = vadd.f32 1.0, %v3927_v8  ;;  %3948 = vpow2.f32 %v649_v31  ;;  %3303 = vmatmul.mubr.f32.gmra.mrb[60].mxu1 %v850_v45  ;;  %v5447_v22 = vadd.f32 %v5227_v52, %v412_v2  ;;  %v653_v13 = vmul.f32 1.442695, %v545_v33 }
 0x156   :  { %v3931_v4 = vpop.eup %3930  ;;  %v851_v19 = vmul.f32 %v3929_v0, %v5369_v28  ;;  %3950 = vrcp.f32 %v729_v37  ;;  %v548_v35 = vsub.f32 0.0, %v5444_v62 }
 0x157   :  { %v3933_v55 = vpop.eup %3932  ;;  %3952 = vrcp.f32 %v732_v44  ;;  %v731_v51 = vadd.f32 1.0, %v3931_v4  ;;  %v547_v50 = vsub.f32 0.0, %v5447_v22  ;;  %v3078_v56 = vpop.f32.mrb[48].mxu0 }
 0x158   :  { %v3935_v26 = vpop.eup %3934  ;;  %3954 = vpow2.f32 %v655_v60  ;;  %v659_v32 = vmul.f32 1.442695, %v548_v35  ;;  %3305 = vmatprep.mubr.f32.mxu1 %v851_v19  ;;  %v5454_v9 = vadd.f32 %v3078_v56, %v5227_v52  ;;  %v422_v28 = vpop.f32.mrb[49].mxu0  ;;  %v854_v16 = vmul.f32 %v3933_v55, %v5374_v24 }
 0x159   :  { %v3937_v58 = vpop.eup %3936  ;;  %v853_v10 = vmul.f32 %v3935_v26, %v5379_v29  ;;  %3956 = vrcp.f32 %v731_v51  ;;  %v657_v47 = vmul.f32 1.442695, %v547_v50  ;;  %3306 = vmatmul.mubr.f32.gmra.mrb[62].mxu1 %v852_v14  ;;  %v5458_v18 = vadd.f32 %v5227_v52, %v422_v28 }
 0x15a   :  { %v3939_v11 = vpop.eup %3938  ;;  %3958 = vpow2.f32 %v653_v13  ;;  %v550_v5 = vsub.f32 0.0, %v5454_v9  ;;  %v856_v40 = vmul.f32 %v3937_v58, %v5384_v61 }
 0x15b   :  { %v3941_v36 = vpop.eup %3940  ;;  %v734_v21 = vadd.f32 1.0, %v3939_v11  ;;  %3960 = vpow2.f32 %v659_v32  ;;  %v549_v30 = vsub.f32 0.0, %v5458_v18  ;;  %3308 = vmatprep.mubr.f32.mxu1 %v853_v10  ;;  %v3081_v25 = vpop.f32.mrb[50].mxu0 }
 0x15c   :  { %v3943_v29 = vpop.eup %3942  ;;  %v733_v46 = vadd.f32 1.0, %v3941_v36  ;;  %3962 = vpow2.f32 %v657_v47  ;;  %v663_v39 = vmul.f32 1.442695, %v550_v5  ;;  %v5464_v15 = vadd.f32 %v3081_v25, %v5227_v52  ;;  %v432_v54 = vpop.f32.mrb[51].mxu0 }
 0x15d   :  { %v3945_v12 = vpop.eup %3944  ;;  %v855_v49 = vmul.f32 %v3943_v29, %v5387_v6  ;;  %3964 = vrcp.f32 %v734_v21  ;;  %v661_v34 = vmul.f32 1.442695, %v549_v30  ;;  %3309 = vmatmul.mubr.f32.gmra.mrb[0].mxu1 %v854_v16  ;;  %v5468_v24 = vadd.f32 %v5227_v52, %v432_v54 }
 0x15e   :  { %v3947_v42 = vpop.eup %3946  ;;  %3966 = vrcp.f32 %v733_v46  ;;  %v552_v3 = vsub.f32 0.0, %v5464_v15  ;;  %v858_v19 = vmul.f32 %v3945_v12, %v5395_v53 }
 0x15f   :  { %v3949_v31 = vpop.eup %3948  ;;  %v736_v59 = vadd.f32 1.0, %v3947_v42  ;;  %3968 = vpow2.f32 %v663_v39  ;;  %v551_v48 = vsub.f32 0.0, %v5468_v24  ;;  %3311 = vmatprep.mubr.f32.mxu1 %v855_v49  ;;  %v3084_v43 = vpop.f32.mrb[52].mxu0 }
 0x160   :  { %v3951_v6 = vpop.eup %3950  ;;  %v735_v45 = vadd.f32 1.0, %v3949_v31  ;;  %3970 = vpow2.f32 %v661_v34  ;;  %v667_v33 = vmul.f32 1.442695, %v552_v3  ;;  %v5474_v1 = vadd.f32 %v3084_v43, %v5227_v52  ;;  %v442_v8 = vpop.f32.mrb[53].mxu0 }
 0x161   :  { %v3953_v37 = vpop.eup %3952  ;;  %v857_v60 = vmul.f32 %v3951_v6, %v5398_v27  ;;  %3972 = vrcp.f32 %v736_v59  ;;  %v665_v2 = vmul.f32 1.442695, %v551_v48  ;;  %3312 = vmatmul.mubr.f32.gmra.mrb[2].mxu1 %v856_v40  ;;  %v5478_v61 = vadd.f32 %v5227_v52, %v442_v8  ;;  %v5487_v52 = vld [vmem:[%s6178_s3] ss:$0 sm:$0xff] }
 0x162   :  { %v3955_v0 = vpop.eup %3954  ;;  %3974 = vrcp.f32 %v735_v45  ;;  %v554_v44 = vsub.f32 0.0, %v5474_v1  ;;  %v860_v11 = vmul.f32 %v3953_v37, %v5405_v41 }
 0x163   :  { %v3957_v4 = vpop.eup %3956  ;;  %v738_v13 = vadd.f32 1.0, %v3955_v0  ;;  %3976 = vpow2.f32 %v667_v33  ;;  %v553_v35 = vsub.f32 0.0, %v5478_v61  ;;  %3314 = vmatprep.mubr.f32.mxu1 %v857_v60  ;;  %v3087_v55 = vpop.f32.mrb[54].mxu0 }
 0x164   :  { %v3959_v27 = vpop.eup %3958  ;;  %v859_v14 = vmul.f32 %v3957_v4, %v5408_v20  ;;  %3978 = vpow2.f32 %v665_v2  ;;  %v671_v51 = vmul.f32 1.442695, %v554_v44  ;;  %v5490_v50 = vadd.f32 %v5487_v52, %v3087_v55  ;;  %v452_v53 = vpop.f32.mrb[55].mxu0 }
 0x165   :  { %v3961_v56 = vpop.eup %3960  ;;  %3980 = vrcp.f32 %v738_v13  ;;  %v737_v26 = vadd.f32 1.0, %v3959_v27  ;;  %3315 = vmatmul.mubr.f32.gmra.mrb[4].mxu1 %v858_v19  ;;  %v5493_v32 = vadd.f32 %v5487_v52, %v452_v53  ;;  %v669_v58 = vmul.f32 1.442695, %v553_v35 }
 0x166   :  { %v3963_v28 = vpop.eup %3962  ;;  %v740_v20 = vadd.f32 1.0, %v3961_v56  ;;  %3982 = vpow2.f32 %v671_v51  ;;  %v556_v10 = vsub.f32 0.0, %v5490_v50  ;;  %3317 = vmatprep.mubr.f32.mxu1 %v859_v14 }
 0x167   :  { %v3965_v47 = vpop.eup %3964  ;;  %3984 = vrcp.f32 %v737_v26  ;;  %v739_v5 = vadd.f32 1.0, %v3963_v28  ;;  %v555_v36 = vsub.f32 0.0, %v5493_v32  ;;  %v3090_v16 = vpop.f32.mrb[56].mxu0 }
 0x168   :  { %v3967_v21 = vpop.eup %3966  ;;  %3986 = vrcp.f32 %v740_v20  ;;  %v675_v30 = vmul.f32 1.442695, %v556_v10  ;;  %v5499_v25 = vadd.f32 %v5487_v52, %v3090_v16  ;;  %v462_v29 = vpop.f32.mrb[57].mxu0  ;;  %v862_v3 = vmul.f32 %v3965_v47, %v5415_v38 }
 0x169   :  { %v3969_v46 = vpop.eup %3968  ;;  %v861_v39 = vmul.f32 %v3967_v21, %v5418_v63  ;;  %3988 = vrcp.f32 %v739_v5  ;;  %3318 = vmatmul.mubr.f32.gmra.mrb[6].mxu1 %v860_v11  ;;  %v5503_v54 = vadd.f32 %v5487_v52, %v462_v29  ;;  %v673_v49 = vmul.f32 1.442695, %v555_v36 }
 0x16a   :  { %v3971_v41 = vpop.eup %3970  ;;  %v742_v12 = vadd.f32 1.0, %v3969_v46  ;;  %3990 = vpow2.f32 %v669_v58  ;;  %v558_v34 = vsub.f32 0.0, %v5499_v25 }
 0x16b   :  { %v3973_v42 = vpop.eup %3972  ;;  %v741_v31 = vadd.f32 1.0, %v3971_v41  ;;  %3992 = vpow2.f32 %v675_v30  ;;  %v557_v40 = vsub.f32 0.0, %v5503_v54  ;;  %3320 = vmatprep.mubr.f32.mxu1 %v861_v39  ;;  %v3093_v63 = vpop.f32.mrb[58].mxu0 }
 0x16c   :  { %v3975_v59 = vpop.eup %3974  ;;  %3994 = vrcp.f32 %v742_v12  ;;  %v679_v48 = vmul.f32 1.442695, %v558_v34  ;;  %v5509_v43 = vadd.f32 %v5487_v52, %v3093_v63  ;;  %v472_v6 = vpop.f32.mrb[59].mxu0  ;;  %v864_v44 = vmul.f32 %v3973_v42, %v5424_v57 }
 0x16d   :  { %v3977_v45 = vpop.eup %3976  ;;  %v863_v33 = vmul.f32 %v3975_v59, %v5427_v17  ;;  %3996 = vrcp.f32 %v741_v31  ;;  %3321 = vmatmul.mubr.f32.gmra.mrb[8].mxu1 %v862_v3  ;;  %v5513_v38 = vadd.f32 %v5487_v52, %v472_v6  ;;  %v677_v60 = vmul.f32 1.442695, %v557_v40 }
 0x16e   :  { %v3979_v8 = vpop.eup %3978  ;;  %v744_v37 = vadd.f32 1.0, %v3977_v45  ;;  %3998 = vpow2.f32 %v673_v49  ;;  %v560_v2 = vsub.f32 0.0, %v5509_v43 }
 0x16f   :  { %v3981_v0 = vpop.eup %3980  ;;  %v743_v4 = vadd.f32 1.0, %v3979_v8  ;;  %4000 = vpow2.f32 %v679_v48  ;;  %v559_v19 = vsub.f32 0.0, %v5513_v38  ;;  %3323 = vmatprep.mubr.f32.mxu1 %v863_v33  ;;  %v3096_v17 = vpop.f32.mrb[60].mxu0 }
 0x170   :  { %v3983_v13 = vpop.eup %3982  ;;  %4002 = vrcp.f32 %v744_v37  ;;  %v683_v35 = vmul.f32 1.442695, %v560_v2  ;;  %v5519_v55 = vadd.f32 %v5487_v52, %v3096_v17  ;;  %v482_v27 = vpop.f32.mrb[61].mxu0  ;;  %v866_v58 = vmul.f32 %v3981_v0, %v5434_v23 }
 0x171   :  { %v3985_v14 = vpop.eup %3984  ;;  %4004 = vrcp.f32 %v743_v4  ;;  %v746_v51 = vadd.f32 1.0, %v3983_v13  ;;  %v681_v53 = vmul.f32 1.442695, %v559_v19  ;;  %3324 = vmatmul.mubr.f32.gmra.mrb[10].mxu1 %v864_v44  ;;  %v5522_v57 = vadd.f32 %v5487_v52, %v482_v27 }
 0x172   :  { %v3987_v56 = vpop.eup %3986  ;;  %v865_v26 = vmul.f32 %v3985_v14, %v5437_v7  ;;  %4006 = vpow2.f32 %v677_v60  ;;  %v562_v28 = vsub.f32 0.0, %v5519_v55 }
 0x173   :  { %v3989_v20 = vpop.eup %3988  ;;  %4008 = vrcp.f32 %v746_v51  ;;  %v561_v10 = vsub.f32 0.0, %v5522_v57  ;;  %v3099_v47 = vpop.f32.mrb[62].mxu0  ;;  %v868_v12 = vmul.f32 %v3987_v56, %v5444_v62 }
 0x174   :  { %v3991_v11 = vpop.eup %3990  ;;  %v867_v5 = vmul.f32 %v3989_v20, %v5447_v22  ;;  %4010 = vpow2.f32 %v683_v35  ;;  %v687_v36 = vmul.f32 1.442695, %v562_v28  ;;  %3326 = vmatprep.mubr.f32.mxu1 %v865_v26  ;;  %v5530_v16 = vadd.f32 %v5487_v52, %v3099_v47  ;;  %v492_v7 = vpop.f32.mrb[63].mxu0 }
 0x175   :  { %v3993_v21 = vpop.eup %3992  ;;  %v745_v30 = vadd.f32 1.0, %v3991_v11  ;;  %4012 = vpow2.f32 %v681_v53  ;;  %v685_v29 = vmul.f32 1.442695, %v561_v10  ;;  %3327 = vmatmul.mubr.f32.gmra.mrb[12].mxu1 %v866_v58  ;;  %v5533_v23 = vadd.f32 %v5487_v52, %v492_v7 }
 0x176   :  { %v3995_v46 = vpop.eup %3994  ;;  %v748_v39 = vadd.f32 1.0, %v3993_v21  ;;  %4014 = vpow2.f32 %v687_v36  ;;  %v564_v22 = vsub.f32 0.0, %v5530_v16  ;;  %3329 = vmatprep.mubr.f32.mxu1 %v867_v5 }
 0x177   :  { %v3997_v41 = vpop.eup %3996  ;;  %4016 = vrcp.f32 %v745_v30  ;;  %v563_v49 = vsub.f32 0.0, %v5533_v23  ;;  %v5538_v34 = vpop.f32.mrb[64].mxu0  ;;  %v870_v45 = vmul.f32 %v3995_v46, %v5454_v9 }
 0x178   :  { %v3999_v42 = vpop.eup %3998  ;;  %v869_v3 = vmul.f32 %v3997_v41, %v5458_v18  ;;  %4018 = vrcp.f32 %v748_v39  ;;  %v691_v52 = vmul.f32 1.442695, %v564_v22  ;;  %v5541_v31 = vpop.f32.mrb[65].mxu0 }
 0x179   :  { %v4001_v40 = vpop.eup %4000  ;;  %v747_v63 = vadd.f32 1.0, %v3999_v42  ;;  %4020 = vpow2.f32 %v685_v29  ;;  %v689_v59 = vmul.f32 1.442695, %v563_v49  ;;  %3330 = vmatmul.mubr.f32.gmra.mrb[14].mxu1 %v868_v12 }
 0x17a   :  { %v4003_v48 = vpop.eup %4002  ;;  %v750_v6 = vadd.f32 1.0, %v4001_v40  ;;  %4022 = vpow2.f32 %v691_v52  ;;  %3332 = vmatprep.mubr.f32.mxu1 %v869_v3 }
 0x17b   :  { %v4005_v62 = vpop.eup %4004  ;;  %4024 = vrcp.f32 %v747_v63  ;;  %v5544_v33 = vpop.f32.mrb[66].mxu0  ;;  %v872_v4 = vmul.f32 %v4003_v48, %v5464_v15 }
 0x17c   :  { %v4007_v18 = vpop.eup %4006  ;;  %v871_v8 = vmul.f32 %v4005_v62, %v5468_v24  ;;  %v5547_v37 = vpop.f32.mrb[67].mxu0  ;;  %4026 = vpow2.f32 %v689_v59 }
 0x17d   :  { %v4009_v60 = vpop.eup %4008  ;;  %v749_v2 = vadd.f32 1.0, %v4007_v18  ;;  %3333 = vmatmul.mubr.f32.gmra.mrb[16].mxu1 %v870_v45  ;;  %4028 = vrcp.f32 %v750_v6 }
 0x17e   :  { %v4011_v0 = vpop.eup %4010  ;;  %3335 = vmatprep.mubr.f32.mxu1 %v871_v8  ;;  %v874_v56 = vmul.f32 %v4009_v60, %v5474_v1 }
 0x17f   :  { %v4013_v44 = vpop.eup %4012  ;;  %4030 = vrcp.f32 %v749_v2  ;;  %v752_v9 = vadd.f32 1.0, %v4011_v0  ;;  %v5550_v19 = vpop.f32.mrb[68].mxu0 }
 0x180   :  { %v4015_v17 = vpop.eup %4014  ;;  %v751_v13 = vadd.f32 1.0, %v4013_v44  ;;  %v5552_v35 = vpop.f32.mrb[69].mxu0 }
 0x181   :  { %v4017_v24 = vpop.eup %4016  ;;  %4032 = vrcp.f32 %v752_v9  ;;  %v754_v27 = vadd.f32 1.0, %v4015_v17  ;;  %3336 = vmatmul.mubr.f32.gmra.mrb[18].mxu1 %v872_v4 }
 0x182   :  { %v4019_v14 = vpop.eup %4018  ;;  %v873_v51 = vmul.f32 %v4017_v24, %v5478_v61  ;;  %4034 = vrcp.f32 %v751_v13  ;;  %v5621_v13 = vld [vmem:[%s6179_s7] ss:$0 sm:$0xff] }
 0x183   :  { %v4021_v53 = vpop.eup %4020  ;;  %v5556_v15 = vpop.f32.mrb[70].mxu0  ;;  %4036 = vrcp.f32 %v754_v27  ;;  %v876_v61 = vmul.f32 %v4019_v14, %v5490_v50 }
 0x184   :  { %v4023_v26 = vpop.eup %4022  ;;  %v753_v28 = vadd.f32 1.0, %v4021_v53  ;;  %3338 = vmatprep.mubr.f32.mxu1 %v873_v51  ;;  %v5558_v20 = vpop.f32.mrb[71].mxu0 }
 0x185   :  { %v4025_v58 = vpop.eup %4024  ;;  %v756_v10 = vadd.f32 1.0, %v4023_v26  ;;  %3339 = vmatmul.mubr.f32.gmra.mrb[20].mxu1 %v874_v56 }
 0x186   :  { %v875_v47 = vmul.f32 %v4025_v58, %v5493_v32  ;;  %4038 = vrcp.f32 %v753_v28  ;;  %v4027_v11 = vpop.eup %4026 }
 0x187   :  { %v5562_v5 = vpop.f32.mrb[72].mxu0  ;;  %v4029_v1 = vpop.eup %4028  ;;  %v755_v36 = vadd.f32 1.0, %v4027_v11  ;;  %4040 = vrcp.f32 %v756_v10 }
 0x188   :  { %3341 = vmatprep.mubr.f32.mxu1 %v875_v47  ;;  %v5564_v7 = vpop.f32.mrb[73].mxu0  ;;  %v878_v32 = vmul.f32 %v4029_v1, %v5499_v25 }
 0x189   :  { %v4031_v21 = vpop.eup %4030  ;;  %3342 = vmatmul.mubr.f32.gmra.mrb[22].mxu1 %v876_v61  ;;  %4042 = vrcp.f32 %v755_v36 }
 0x18a   :  { %v877_v30 = vmul.f32 %v4031_v21, %v5503_v54 }
 0x18b   :  { %v4033_v29 = vpop.eup %4032  ;;  %v5568_v46 = vpop.f32.mrb[74].mxu0 }
 0x18c   :  { %v4035_v39 = vpop.eup %4034  ;;  %3344 = vmatprep.mubr.f32.mxu1 %v877_v30  ;;  %v5570_v50 = vpop.f32.mrb[75].mxu0  ;;  %v880_v12 = vmul.f32 %v4033_v29, %v5509_v43 }
 0x18d   :  { %v879_v22 = vmul.f32 %v4035_v39, %v5513_v38  ;;  %3345 = vmatmul.mubr.f32.gmra.mrb[24].mxu1 %v878_v32  ;;  %v4037_v41 = vpop.eup %4036 }
 0x18e   :  { %v882_v52 = vmul.f32 %v4037_v41, %v5519_v55 }
 0x18f   :  { %3347 = vmatprep.mubr.f32.mxu1 %v879_v22  ;;  %v5574_v49 = vpop.f32.mrb[76].mxu0 }
 0x190   :  { %v4039_v54 = vpop.eup %4038  ;;  %v5576_v42 = vpop.f32.mrb[77].mxu0 }
 0x191   :  { %v881_v25 = vmul.f32 %v4039_v54, %v5522_v57  ;;  %3348 = vmatmul.mubr.f32.gmra.mrb[26].mxu1 %v880_v12  ;;  %v4041_v3 = vpop.eup %4040 }
 0x192   :  { %v884_v59 = vmul.f32 %v4041_v3, %v5530_v16 }
 0x193   :  { %3350 = vmatprep.mubr.f32.mxu1 %v881_v25  ;;  %v5580_v40 = vpop.f32.mrb[78].mxu0  ;;  %v4043_v38 = vpop.eup %4042 }
 0x194   :  { %v5582_v63 = vpop.f32.mrb[79].mxu0  ;;  %v883_v43 = vmul.f32 %v4043_v38, %v5533_v23 }
 0x195   :  { %3351 = vmatmul.mubr.f32.gmra.mrb[28].mxu1 %v882_v52 }
 0x196   :  { %3353 = vmatprep.mubr.f32.mxu1 %v883_v43 }
 0x197   :  { %v5586_v48 = vpop.f32.mrb[80].mxu0 }
 0x198   :  { %v5588_v6 = vpop.f32.mrb[81].mxu0 }
 0x199   :  { %3354 = vmatmul.mubr.f32.gmra.mrb[30].mxu1 %v884_v59 }
 0x19b   :  { %v5590_v57 = vpop.f32.mrb[82].mxu0 }
 0x19c   :  { %v5592_v55 = vpop.f32.mrb[83].mxu0 }
 0x19f   :  { %v5594_v62 = vpop.f32.mrb[84].mxu0 }
 0x1a0   :  { %v5596_v45 = vpop.f32.mrb[85].mxu0 }
 0x1a3   :  { %v5598_v18 = vpop.f32.mrb[86].mxu0 }
 0x1a4   :  { %v5600_v23 = vpop.f32.mrb[87].mxu0 }
 0x1a7   :  { %v5602_v8 = vpop.f32.mrb[88].mxu0 }
 0x1a8   :  { %v5604_v16 = vpop.f32.mrb[89].mxu0 }
 0x1ab   :  { %v5606_v60 = vpop.f32.mrb[90].mxu0 }
 0x1ac   :  { %v5608_v2 = vpop.f32.mrb[91].mxu0 }
 0x1af   :  { %v5610_v0 = vpop.f32.mrb[92].mxu0 }
 0x1b0   :  { %v5612_v44 = vpop.f32.mrb[93].mxu0 }
 0x1b3   :  { %v5614_v4 = vpop.f32.mrb[94].mxu0 }
 0x1b4   :  { %v5616_v9 = vpop.f32.mrb[95].mxu0 }
 0x1ed   :  { %v3262_v17 = vpop.f32.mrb[32].mxu1 }
 0x1ee   :  { %v1893_v24 = vadd.f32 %v3262_v17, %v5538_v34  ;;  %v1887_v27 = vpop.f32.mrb[33].mxu1 }
 0x1ef   :  { %v1888_v14 = vadd.f32 %v1887_v27, %v5541_v31 }
 0x1f0   :  { %v5626_v51 = vadd.f32 %v5621_v13, %v1893_v24 }
 0x1f1   :  { %v5629_v53 = vadd.f32 %v5621_v13, %v1888_v14  ;;  %v3265_v56 = vpop.f32.mrb[34].mxu1 }
 0x1f2   :  { %v2278_v26 = vsub.f32 0.0, %v5626_v51  ;;  %v1903_v28 = vadd.f32 %v3265_v56, %v5544_v33  ;;  %v1897_v58 = vpop.f32.mrb[35].mxu1 }
 0x1f3   :  { %v2277_v10 = vsub.f32 0.0, %v5629_v53  ;;  %v1898_v47 = vadd.f32 %v1897_v58, %v5547_v37 }
 0x1f4   :  { %v2343_v34 = vmul.f32 1.442695, %v2278_v26  ;;  %v5636_v11 = vadd.f32 %v5621_v13, %v1903_v28 }
 0x1f5   :  { %v2341_v31 = vmul.f32 1.442695, %v2277_v10  ;;  %v5639_v61 = vadd.f32 %v5621_v13, %v1898_v47  ;;  %v3268_v1 = vpop.f32.mrb[36].mxu1 }
 0x1f6   :  { %4044 = vpow2.f32 %v2343_v34  ;;  %v2280_v36 = vsub.f32 0.0, %v5636_v11  ;;  %v1913_v21 = vadd.f32 %v3268_v1, %v5550_v19  ;;  %v1907_v33 = vpop.f32.mrb[37].mxu1 }
 0x1f7   :  { %4046 = vpow2.f32 %v2341_v31  ;;  %v2279_v30 = vsub.f32 0.0, %v5639_v61  ;;  %v1908_v37 = vadd.f32 %v1907_v33, %v5552_v35 }
 0x1f8   :  { %v2347_v29 = vmul.f32 1.442695, %v2280_v36  ;;  %v5646_v32 = vadd.f32 %v5621_v13, %v1913_v21 }
 0x1f9   :  { %v2345_v39 = vmul.f32 1.442695, %v2279_v30  ;;  %v5649_v22 = vadd.f32 %v5621_v13, %v1908_v37 }
 0x1fa   :  { %4048 = vpow2.f32 %v2347_v29  ;;  %v2282_v41 = vsub.f32 0.0, %v5646_v32 }
 0x1fb   :  { %4050 = vpow2.f32 %v2345_v39  ;;  %v2281_v19 = vsub.f32 0.0, %v5649_v22  ;;  %v3271_v12 = vpop.f32.mrb[38].mxu1 }
 0x1fc   :  { %v2351_v54 = vmul.f32 1.442695, %v2282_v41  ;;  %v1923_v25 = vadd.f32 %v3271_v12, %v5556_v15  ;;  %v1917_v3 = vpop.f32.mrb[39].mxu1 }
 0x1fd   :  { %v2349_v35 = vmul.f32 1.442695, %v2281_v19  ;;  %v1918_v52 = vadd.f32 %v1917_v3, %v5558_v20 }
 0x1fe   :  { %4052 = vpow2.f32 %v2351_v54  ;;  %v5656_v38 = vadd.f32 %v5621_v13, %v1923_v25 }
 0x1ff   :  { %4054 = vpow2.f32 %v2349_v35  ;;  %v5659_v43 = vadd.f32 %v5621_v13, %v1918_v52  ;;  %v3274_v59 = vpop.f32.mrb[40].mxu1 }
 0x200   :  { %v4045_v17 = vpop.eup %4044  ;;  %v2284_v24 = vsub.f32 0.0, %v5656_v38  ;;  %v1933_v27 = vadd.f32 %v3274_v59, %v5562_v5  ;;  %v1927_v14 = vpop.f32.mrb[41].mxu1 }
 0x201   :  { %v4047_v15 = vpop.eup %4046  ;;  %v2470_v56 = vadd.f32 1.0, %v4045_v17  ;;  %v2283_v26 = vsub.f32 0.0, %v5659_v43  ;;  %v1928_v20 = vadd.f32 %v1927_v14, %v5564_v7 }
 0x202   :  { %v2469_v28 = vadd.f32 1.0, %v4047_v15  ;;  %v2355_v58 = vmul.f32 1.442695, %v2284_v24  ;;  %v5666_v10 = vadd.f32 %v5621_v13, %v1933_v27 }
 0x203   :  { %4056 = vrcp.f32 %v2470_v56  ;;  %v2353_v47 = vmul.f32 1.442695, %v2283_v26  ;;  %v5669_v34 = vadd.f32 %v5621_v13, %v1928_v20  ;;  %v3277_v31 = vpop.f32.mrb[42].mxu1 }
 0x204   :  { %v4049_v1 = vpop.eup %4048  ;;  %4058 = vrcp.f32 %v2469_v28  ;;  %v2286_v5 = vsub.f32 0.0, %v5666_v10  ;;  %v1943_v36 = vadd.f32 %v3277_v31, %v5568_v46  ;;  %v1937_v21 = vpop.f32.mrb[43].mxu1 }
 0x205   :  { %v4051_v33 = vpop.eup %4050  ;;  %v2472_v7 = vadd.f32 1.0, %v4049_v1  ;;  %4060 = vpow2.f32 %v2355_v58  ;;  %v2285_v30 = vsub.f32 0.0, %v5669_v34  ;;  %v1938_v37 = vadd.f32 %v1937_v21, %v5570_v50 }
 0x206   :  { %v2471_v29 = vadd.f32 1.0, %v4051_v33  ;;  %4062 = vpow2.f32 %v2353_v47  ;;  %v2359_v39 = vmul.f32 1.442695, %v2286_v5  ;;  %v5676_v41 = vadd.f32 %v5621_v13, %v1943_v36 }
 0x207   :  { %4064 = vrcp.f32 %v2472_v7  ;;  %v2357_v19 = vmul.f32 1.442695, %v2285_v30  ;;  %v5679_v12 = vadd.f32 %v5621_v13, %v1938_v37  ;;  %v3280_v46 = vpop.f32.mrb[44].mxu1 }
 0x208   :  { %v4053_v54 = vpop.eup %4052  ;;  %4066 = vrcp.f32 %v2471_v29  ;;  %v2288_v25 = vsub.f32 0.0, %v5676_v41  ;;  %v1953_v3 = vadd.f32 %v3280_v46, %v5574_v49  ;;  %v1947_v35 = vpop.f32.mrb[45].mxu1 }
 0x209   :  { %v4055_v50 = vpop.eup %4054  ;;  %v2474_v52 = vadd.f32 1.0, %v4053_v54  ;;  %4068 = vpow2.f32 %v2359_v39  ;;  %v2287_v59 = vsub.f32 0.0, %v5679_v12  ;;  %v1948_v17 = vadd.f32 %v1947_v35, %v5576_v42 }
 0x20a   :  { %v2473_v24 = vadd.f32 1.0, %v4055_v50  ;;  %4070 = vpow2.f32 %v2357_v19  ;;  %v2363_v27 = vmul.f32 1.442695, %v2288_v25  ;;  %v5686_v14 = vadd.f32 %v5621_v13, %v1953_v3 }
 0x20b   :  { %4072 = vrcp.f32 %v2474_v52  ;;  %v2361_v15 = vmul.f32 1.442695, %v2287_v59  ;;  %v5689_v56 = vadd.f32 %v5621_v13, %v1948_v17  ;;  %v3283_v49 = vpop.f32.mrb[46].mxu1 }
 0x20c   :  { %4074 = vrcp.f32 %v2473_v24  ;;  %v2290_v26 = vsub.f32 0.0, %v5686_v14  ;;  %v1963_v20 = vadd.f32 %v3283_v49, %v5580_v40  ;;  %v1957_v28 = vpop.f32.mrb[47].mxu1 }
 0x20d   :  { %v4057_v58 = vpop.eup %4056  ;;  %4076 = vpow2.f32 %v2363_v27  ;;  %v2289_v42 = vsub.f32 0.0, %v5689_v56  ;;  %v1958_v47 = vadd.f32 %v1957_v28, %v5582_v63 }
 0x20e   :  { %v4059_v31 = vpop.eup %4058  ;;  %v2598_v1 = vmul.f32 %v4057_v58, %v5626_v51  ;;  %4078 = vpow2.f32 %v2361_v15  ;;  %v2367_v5 = vmul.f32 1.442695, %v2290_v26  ;;  %v5697_v36 = vadd.f32 %v5621_v13, %v1963_v20 }
 0x20f   :  { %v4061_v21 = vpop.eup %4060  ;;  %v2597_v33 = vmul.f32 %v4059_v31, %v5629_v53  ;;  %v2365_v7 = vmul.f32 1.442695, %v2289_v42  ;;  %v5701_v40 = vadd.f32 %v5621_v13, %v1958_v47  ;;  %v3286_v30 = vpop.f32.mrb[48].mxu1 }
 0x210   :  { %v4063_v37 = vpop.eup %4062  ;;  %2662 = vst [vmem:[%s6180_s8 + $0x8] sm:$0xff] %v2598_v1  ;;  %v2476_v63 = vadd.f32 1.0, %v4061_v21  ;;  %4080 = vpow2.f32 %v2367_v5  ;;  %v2292_v51 = vsub.f32 0.0, %v5697_v36  ;;  %v1973_v29 = vadd.f32 %v3286_v30, %v5586_v48  ;;  %v1967_v39 = vpop.f32.mrb[49].mxu1 }
 0x211   :  { %v4065_v19 = vpop.eup %4064  ;;  %2661 = vst [vmem:[%s6180_s8] sm:$0xff] %v2597_v33  ;;  %v2475_v53 = vadd.f32 1.0, %v4063_v37  ;;  %4082 = vpow2.f32 %v2365_v7  ;;  %v2291_v46 = vsub.f32 0.0, %v5701_v40  ;;  %v1968_v54 = vadd.f32 %v1967_v39, %v5588_v6 }
 0x212   :  { %v4067_v25 = vpop.eup %4066  ;;  %v2600_v3 = vmul.f32 %v4065_v19, %v5636_v11  ;;  %4084 = vrcp.f32 %v2476_v63  ;;  %v2371_v35 = vmul.f32 1.442695, %v2292_v51  ;;  %v5715_v50 = vadd.f32 %v5621_v13, %v1973_v29 }
 0x213   :  { %v4069_v48 = vpop.eup %4068  ;;  %v2599_v52 = vmul.f32 %v4067_v25, %v5639_v61  ;;  %4086 = vrcp.f32 %v2475_v53  ;;  %v2369_v59 = vmul.f32 1.442695, %v2291_v46  ;;  %v5719_v17 = vadd.f32 %v5621_v13, %v1968_v54 }
 0x214   :  { %v4071_v24 = vpop.eup %4070  ;;  %2664 = vst [vmem:[%s6180_s8 + $0x18] sm:$0xff] %v2600_v3  ;;  %v2478_v6 = vadd.f32 1.0, %v4069_v48  ;;  %4088 = vpow2.f32 %v2371_v35  ;;  %v2294_v11 = vsub.f32 0.0, %v5715_v50  ;;  %v3289_v27 = vpop.f32.mrb[50].mxu1 }
 0x215   :  { %v4073_v15 = vpop.eup %4072  ;;  %2663 = vst [vmem:[%s6180_s8 + $0x10] sm:$0xff] %v2599_v52  ;;  %v2477_v61 = vadd.f32 1.0, %v4071_v24  ;;  %4090 = vpow2.f32 %v2369_v59  ;;  %v2293_v49 = vsub.f32 0.0, %v5719_v17  ;;  %v1983_v26 = vadd.f32 %v3289_v27, %v5590_v57  ;;  %v1977_v20 = vpop.f32.mrb[51].mxu1 }
 0x216   :  { %v4075_v28 = vpop.eup %4074  ;;  %v2602_v58 = vmul.f32 %v4073_v15, %v5646_v32  ;;  %4092 = vrcp.f32 %v2478_v6  ;;  %v2375_v42 = vmul.f32 1.442695, %v2294_v11  ;;  %v1978_v47 = vadd.f32 %v1977_v20, %v5592_v55 }
 0x217   :  { %v4077_v31 = vpop.eup %4076  ;;  %v2601_v1 = vmul.f32 %v4075_v28, %v5649_v22  ;;  %4094 = vrcp.f32 %v2477_v61  ;;  %v2373_v5 = vmul.f32 1.442695, %v2293_v49  ;;  %v5734_v21 = vadd.f32 %v5621_v13, %v1983_v26 }
 0x218   :  { %v4079_v33 = vpop.eup %4078  ;;  %2666 = vst [vmem:[%s6180_s8 + $0x28] sm:$0xff] %v2602_v58  ;;  %v2480_v57 = vadd.f32 1.0, %v4077_v31  ;;  %4096 = vpow2.f32 %v2375_v42  ;;  %v5740_v32 = vadd.f32 %v5621_v13, %v1978_v47  ;;  %v3292_v7 = vpop.f32.mrb[52].mxu1 }
 0x219   :  { %2665 = vst [vmem:[%s6180_s8 + $0x20] sm:$0xff] %v2601_v1  ;;  %v2479_v55 = vadd.f32 1.0, %v4079_v33  ;;  %4098 = vpow2.f32 %v2373_v5  ;;  %v2296_v22 = vsub.f32 0.0, %v5734_v21  ;;  %v1993_v30 = vadd.f32 %v3292_v7, %v5594_v62  ;;  %v1987_v37 = vpop.f32.mrb[53].mxu1 }
 0x21a   :  { %v4081_v63 = vpop.eup %4080  ;;  %4100 = vrcp.f32 %v2480_v57  ;;  %v2295_v51 = vsub.f32 0.0, %v5740_v32  ;;  %v1988_v29 = vadd.f32 %v1987_v37, %v5596_v45 }
 0x21b   :  { %v4083_v39 = vpop.eup %4082  ;;  %4102 = vrcp.f32 %v2479_v55  ;;  %v2482_v19 = vadd.f32 1.0, %v4081_v63  ;;  %v2379_v53 = vmul.f32 1.442695, %v2296_v22  ;;  %v5750_v46 = vadd.f32 %v5621_v13, %v1993_v30 }
 0x21c   :  { %v4085_v54 = vpop.eup %4084  ;;  %v2481_v25 = vadd.f32 1.0, %v4083_v39  ;;  %v2377_v3 = vmul.f32 1.442695, %v2295_v51  ;;  %v5753_v35 = vadd.f32 %v5621_v13, %v1988_v29  ;;  %v3295_v62 = vpop.f32.mrb[54].mxu1 }
 0x21d   :  { %v4087_v48 = vpop.eup %4086  ;;  %v2604_v52 = vmul.f32 %v4085_v54, %v5656_v38  ;;  %4104 = vrcp.f32 %v2482_v19  ;;  %v2298_v45 = vsub.f32 0.0, %v5750_v46  ;;  %v2003_v59 = vadd.f32 %v3295_v62, %v5598_v18  ;;  %v1997_v24 = vpop.f32.mrb[55].mxu1 }
 0x21e   :  { %v4089_v6 = vpop.eup %4088  ;;  %v2603_v11 = vmul.f32 %v4087_v48, %v5659_v43  ;;  %4106 = vrcp.f32 %v2481_v25  ;;  %v2297_v27 = vsub.f32 0.0, %v5753_v35  ;;  %v1998_v15 = vadd.f32 %v1997_v24, %v5600_v23 }
 0x21f   :  { %v4091_v61 = vpop.eup %4090  ;;  %2668 = vst [vmem:[%s6180_s8 + $0x38] sm:$0xff] %v2604_v52  ;;  %v2484_v38 = vadd.f32 1.0, %v4089_v6  ;;  %4108 = vpow2.f32 %v2379_v53  ;;  %v2383_v49 = vmul.f32 1.442695, %v2298_v45  ;;  %v5765_v26 = vadd.f32 %v5621_v13, %v2003_v59 }
 0x220   :  { %v4093_v18 = vpop.eup %4092  ;;  %2667 = vst [vmem:[%s6180_s8 + $0x30] sm:$0xff] %v2603_v11  ;;  %v2483_v43 = vadd.f32 1.0, %v4091_v61  ;;  %4110 = vpow2.f32 %v2377_v3  ;;  %v2381_v20 = vmul.f32 1.442695, %v2297_v27  ;;  %v5771_v23 = vadd.f32 %v5621_v13, %v1998_v15  ;;  %v3298_v28 = vpop.f32.mrb[56].mxu1 }
 0x221   :  { %v4095_v58 = vpop.eup %4094  ;;  %v2606_v42 = vmul.f32 %v4093_v18, %v5666_v10  ;;  %4112 = vrcp.f32 %v2484_v38  ;;  %v2300_v47 = vsub.f32 0.0, %v5765_v26  ;;  %v2013_v31 = vadd.f32 %v3298_v28, %v5602_v8  ;;  %v2007_v1 = vpop.f32.mrb[57].mxu1 }
 0x222   :  { %v4097_v5 = vpop.eup %4096  ;;  %v2605_v33 = vmul.f32 %v4095_v58, %v5669_v34  ;;  %4114 = vrcp.f32 %v2483_v43  ;;  %v2299_v57 = vsub.f32 0.0, %v5771_v23  ;;  %v2008_v7 = vadd.f32 %v2007_v1, %v5604_v16 }
 0x223   :  { %v4099_v55 = vpop.eup %4098  ;;  %2670 = vst [vmem:[%s6180_s8 + $0x48] sm:$0xff] %v2606_v42  ;;  %v2486_v10 = vadd.f32 1.0, %v4097_v5  ;;  %4116 = vpow2.f32 %v2383_v49  ;;  %v2387_v22 = vmul.f32 1.442695, %v2300_v47  ;;  %v5783_v30 = vadd.f32 %v5621_v13, %v2013_v31 }
 0x224   :  { %v4101_v8 = vpop.eup %4100  ;;  %2669 = vst [vmem:[%s6180_s8 + $0x40] sm:$0xff] %v2605_v33  ;;  %v2485_v34 = vadd.f32 1.0, %v4099_v55  ;;  %4118 = vpow2.f32 %v2381_v20  ;;  %v2385_v37 = vmul.f32 1.442695, %v2299_v57  ;;  %v5789_v16 = vadd.f32 %v5621_v13, %v2008_v7  ;;  %v3301_v63 = vpop.f32.mrb[58].mxu1 }
 0x225   :  { %v4103_v51 = vpop.eup %4102  ;;  %v2608_v29 = vmul.f32 %v4101_v8, %v5676_v41  ;;  %4120 = vrcp.f32 %v2486_v10  ;;  %v2302_v39 = vsub.f32 0.0, %v5783_v30  ;;  %v2023_v19 = vadd.f32 %v3301_v63, %v5606_v60  ;;  %v2017_v53 = vpop.f32.mrb[59].mxu1 }
 0x226   :  { %v2607_v54 = vmul.f32 %v4103_v51, %v5679_v12  ;;  %4122 = vrcp.f32 %v2485_v34  ;;  %v2301_v25 = vsub.f32 0.0, %v5789_v16  ;;  %v2018_v3 = vadd.f32 %v2017_v53, %v5608_v2 }
 0x227   :  { %v4105_v62 = vpop.eup %4104  ;;  %2672 = vst [vmem:[%s6180_s8 + $0x58] sm:$0xff] %v2608_v29  ;;  %4124 = vpow2.f32 %v2387_v22  ;;  %v2391_v41 = vmul.f32 1.442695, %v2302_v39  ;;  %v5801_v48 = vadd.f32 %v5621_v13, %v2023_v19 }
 0x228   :  { %v4107_v52 = vpop.eup %4106  ;;  %2671 = vst [vmem:[%s6180_s8 + $0x50] sm:$0xff] %v2607_v54  ;;  %v2610_v60 = vmul.f32 %v4105_v62, %v5686_v14  ;;  %4126 = vpow2.f32 %v2385_v37  ;;  %v2389_v12 = vmul.f32 1.442695, %v2301_v25  ;;  %v5808_v2 = vadd.f32 %v5621_v13, %v2018_v3  ;;  %v3304_v45 = vpop.f32.mrb[60].mxu1 }
 0x229   :  { %v4109_v59 = vpop.eup %4108  ;;  %v2609_v24 = vmul.f32 %v4107_v52, %v5689_v56  ;;  %4128 = vpow2.f32 %v2391_v41  ;;  %v2304_v6 = vsub.f32 0.0, %v5801_v48  ;;  %v2033_v11 = vadd.f32 %v3304_v45, %v5610_v0  ;;  %v2027_v27 = vpop.f32.mrb[61].mxu1 }
 0x22a   :  { %v4111_v15 = vpop.eup %4110  ;;  %2674 = vst [vmem:[%s6180_s8 + $0x68] sm:$0xff] %v2610_v60  ;;  %v2488_v14 = vadd.f32 1.0, %v4109_v59  ;;  %4130 = vpow2.f32 %v2389_v12  ;;  %v2303_v61 = vsub.f32 0.0, %v5808_v2  ;;  %v2028_v38 = vadd.f32 %v2027_v27, %v5612_v44 }
 0x22b   :  { %v4113_v49 = vpop.eup %4112  ;;  %2673 = vst [vmem:[%s6180_s8 + $0x60] sm:$0xff] %v2609_v24  ;;  %v2487_v56 = vadd.f32 1.0, %v4111_v15  ;;  %v2395_v18 = vmul.f32 1.442695, %v2304_v6  ;;  %v5822_v0 = vadd.f32 %v5621_v13, %v2033_v11 }
 0x22c   :  { %v4115_v43 = vpop.eup %4114  ;;  %v2612_v20 = vmul.f32 %v4113_v49, %v5697_v36  ;;  %4132 = vrcp.f32 %v2488_v14  ;;  %v2393_v28 = vmul.f32 1.442695, %v2303_v61  ;;  %v5826_v58 = vadd.f32 %v5621_v13, %v2028_v38  ;;  %v3307_v42 = vpop.f32.mrb[62].mxu1 }
 0x22d   :  { %v4117_v44 = vpop.eup %4116  ;;  %v2611_v47 = vmul.f32 %v4115_v43, %v5701_v40  ;;  %4134 = vrcp.f32 %v2487_v56  ;;  %v2306_v31 = vsub.f32 0.0, %v5822_v0  ;;  %v2043_v1 = vadd.f32 %v3307_v42, %v5614_v4  ;;  %v2037_v5 = vpop.f32.mrb[63].mxu1 }
 0x22e   :  { %v4119_v33 = vpop.eup %4118  ;;  %2676 = vst [vmem:[%s6180_s8 + $0x78] sm:$0xff] %v2612_v20  ;;  %v2490_v36 = vadd.f32 1.0, %v4117_v44  ;;  %4136 = vpow2.f32 %v2395_v18  ;;  %v2305_v57 = vsub.f32 0.0, %v5826_v58  ;;  %v2038_v7 = vadd.f32 %v2037_v5, %v5616_v9 }
 0x22f   :  { %v4121_v55 = vpop.eup %4120  ;;  %2675 = vst [vmem:[%s6180_s8 + $0x70] sm:$0xff] %v2611_v47  ;;  %v2489_v40 = vadd.f32 1.0, %v4119_v33  ;;  %4138 = vpow2.f32 %v2393_v28  ;;  %v2399_v4 = vmul.f32 1.442695, %v2306_v31  ;;  %v5840_v10 = vadd.f32 %v5621_v13, %v2043_v1 }
 0x230   :  { %v4123_v22 = vpop.eup %4122  ;;  %v2614_v8 = vmul.f32 %v4121_v55, %v5715_v50  ;;  %4140 = vrcp.f32 %v2490_v36  ;;  %v2397_v34 = vmul.f32 1.442695, %v2305_v57  ;;  %v5844_v37 = vadd.f32 %v5621_v13, %v2038_v7  ;;  %v3310_v9 = vpop.f32.mrb[0].mxu1 }
 0x231   :  { %v4125_v63 = vpop.eup %4124  ;;  %v2613_v51 = vmul.f32 %v4123_v22, %v5719_v17  ;;  %4142 = vrcp.f32 %v2489_v40  ;;  %v2308_v29 = vsub.f32 0.0, %v5840_v10  ;;  %v5849_v39 = vadd.f32 %v3310_v9, %v5621_v13  ;;  %v2047_v19 = vpop.f32.mrb[1].mxu1 }
 0x232   :  { %v4127_v53 = vpop.eup %4126  ;;  %2678 = vst [vmem:[%s6180_s8 + $0x88] sm:$0xff] %v2614_v8  ;;  %v2492_v50 = vadd.f32 1.0, %v4125_v63  ;;  %4144 = vpow2.f32 %v2399_v4  ;;  %v2307_v54 = vsub.f32 0.0, %v5844_v37  ;;  %v5856_v25 = vadd.f32 %v5621_v13, %v2047_v19 }
 0x233   :  { %v4129_v17 = vpop.eup %4128  ;;  %2677 = vst [vmem:[%s6180_s8 + $0x80] sm:$0xff] %v2613_v51  ;;  %v2491_v3 = vadd.f32 1.0, %v4127_v53  ;;  %4146 = vpow2.f32 %v2397_v34  ;;  %v2310_v62 = vsub.f32 0.0, %v5849_v39  ;;  %v2403_v60 = vmul.f32 1.442695, %v2308_v29 }
 0x234   :  { %v4131_v41 = vpop.eup %4130  ;;  %4148 = vrcp.f32 %v2492_v50  ;;  %v2494_v52 = vadd.f32 1.0, %v4129_v17  ;;  %v2309_v12 = vsub.f32 0.0, %v5856_v25  ;;  %v3313_v45 = vpop.f32.mrb[2].mxu1  ;;  %v2401_v24 = vmul.f32 1.442695, %v2307_v54 }
 0x235   :  { %4150 = vrcp.f32 %v2491_v3  ;;  %v2493_v59 = vadd.f32 1.0, %v4131_v41  ;;  %v5864_v6 = vadd.f32 %v3313_v45, %v5621_v13  ;;  %v2057_v11 = vpop.f32.mrb[3].mxu1  ;;  %v2407_v15 = vmul.f32 1.442695, %v2310_v62 }
 0x236   :  { %v4133_v27 = vpop.eup %4132  ;;  %4152 = vrcp.f32 %v2494_v52  ;;  %v5867_v14 = vadd.f32 %v5621_v13, %v2057_v11  ;;  %v2405_v43 = vmul.f32 1.442695, %v2309_v12 }
 0x237   :  { %v4135_v61 = vpop.eup %4134  ;;  %v2616_v38 = vmul.f32 %v4133_v27, %v5734_v21  ;;  %4154 = vrcp.f32 %v2493_v59  ;;  %v2312_v49 = vsub.f32 0.0, %v5864_v6 }
 0x238   :  { %v4137_v56 = vpop.eup %4136  ;;  %v2615_v18 = vmul.f32 %v4135_v61, %v5740_v32  ;;  %4156 = vpow2.f32 %v2403_v60  ;;  %v3316_v20 = vpop.f32.mrb[4].mxu1  ;;  %v2311_v44 = vsub.f32 0.0, %v5867_v14 }
 0x239   :  { %v4139_v28 = vpop.eup %4138  ;;  %2680 = vst [vmem:[%s6180_s8 + $0x98] sm:$0xff] %v2616_v38  ;;  %v2496_v42 = vadd.f32 1.0, %v4137_v56  ;;  %4158 = vpow2.f32 %v2401_v24  ;;  %v5877_v21 = vadd.f32 %v3316_v20, %v5621_v13  ;;  %v2067_v47 = vpop.f32.mrb[5].mxu1  ;;  %v2411_v1 = vmul.f32 1.442695, %v2312_v49 }
 0x23a   :  { %v4141_v31 = vpop.eup %4140  ;;  %2679 = vst [vmem:[%s6180_s8 + $0x90] sm:$0xff] %v2615_v18  ;;  %v2495_v32 = vadd.f32 1.0, %v4139_v28  ;;  %4160 = vpow2.f32 %v2407_v15  ;;  %v5883_v5 = vadd.f32 %v5621_v13, %v2067_v47  ;;  %v2409_v34 = vmul.f32 1.442695, %v2311_v44 }
 0x23b   :  { %v4143_v33 = vpop.eup %4142  ;;  %v2618_v36 = vmul.f32 %v4141_v31, %v5750_v46  ;;  %4162 = vrcp.f32 %v2496_v42  ;;  %v2314_v57 = vsub.f32 0.0, %v5877_v21 }
 0x23c   :  { %v4145_v7 = vpop.eup %4144  ;;  %v2617_v55 = vmul.f32 %v4143_v33, %v5753_v35  ;;  %4164 = vrcp.f32 %v2495_v32  ;;  %v2313_v40 = vsub.f32 0.0, %v5883_v5  ;;  %v3319_v4 = vpop.f32.mrb[6].mxu1 }
 0x23d   :  { %v4147_v22 = vpop.eup %4146  ;;  %2682 = vst [vmem:[%s6180_s8 + $0xa8] sm:$0xff] %v2618_v36  ;;  %v2498_v8 = vadd.f32 1.0, %v4145_v7  ;;  %4166 = vpow2.f32 %v2405_v43  ;;  %v5893_v46 = vadd.f32 %v3319_v4, %v5621_v13  ;;  %v2077_v9 = vpop.f32.mrb[7].mxu1  ;;  %v2415_v51 = vmul.f32 1.442695, %v2314_v57 }
 0x23e   :  { %v4149_v63 = vpop.eup %4148  ;;  %2681 = vst [vmem:[%s6180_s8 + $0xa0] sm:$0xff] %v2617_v55  ;;  %v2497_v35 = vadd.f32 1.0, %v4147_v22  ;;  %4168 = vpow2.f32 %v2411_v1  ;;  %v5899_v29 = vadd.f32 %v5621_v13, %v2077_v9  ;;  %v2413_v50 = vmul.f32 1.442695, %v2313_v40 }
 0x23f   :  { %v4151_v19 = vpop.eup %4150  ;;  %v2620_v53 = vmul.f32 %v4149_v63, %v5765_v26  ;;  %4170 = vrcp.f32 %v2498_v8  ;;  %v2316_v54 = vsub.f32 0.0, %v5893_v46 }
 0x240   :  { %v4153_v17 = vpop.eup %4152  ;;  %v2619_v3 = vmul.f32 %v4151_v19, %v5771_v23  ;;  %4172 = vrcp.f32 %v2497_v35  ;;  %v2315_v62 = vsub.f32 0.0, %v5899_v29  ;;  %v3322_v41 = vpop.f32.mrb[8].mxu1 }
 0x241   :  { %v4155_v52 = vpop.eup %4154  ;;  %2684 = vst [vmem:[%s6180_s8 + $0xb8] sm:$0xff] %v2620_v53  ;;  %v2622_v60 = vmul.f32 %v4153_v17, %v5783_v30  ;;  %4174 = vpow2.f32 %v2409_v34  ;;  %v2419_v26 = vmul.f32 1.442695, %v2316_v54  ;;  %v5910_v12 = vadd.f32 %v3322_v41, %v5621_v13  ;;  %v2087_v45 = vpop.f32.mrb[9].mxu1 }
 0x242   :  { %v4157_v59 = vpop.eup %4156  ;;  %2683 = vst [vmem:[%s6180_s8 + $0xb0] sm:$0xff] %v2619_v3  ;;  %v2621_v23 = vmul.f32 %v4155_v52, %v5789_v16  ;;  %4176 = vpow2.f32 %v2415_v51  ;;  %v5917_v24 = vadd.f32 %v5621_v13, %v2087_v45  ;;  %v2417_v16 = vmul.f32 1.442695, %v2315_v62 }
 0x243   :  { %v4159_v11 = vpop.eup %4158  ;;  %2686 = vst [vmem:[%s6180_s8 + $0xc8] sm:$0xff] %v2622_v60  ;;  %v2500_v30 = vadd.f32 1.0, %v4157_v59  ;;  %4178 = vpow2.f32 %v2413_v50  ;;  %v2318_v27 = vsub.f32 0.0, %v5910_v12 }
 0x244   :  { %v4161_v15 = vpop.eup %4160  ;;  %2685 = vst [vmem:[%s6180_s8 + $0xc0] sm:$0xff] %v2621_v23  ;;  %v2499_v61 = vadd.f32 1.0, %v4159_v11  ;;  %4180 = vpow2.f32 %v2419_v26  ;;  %v2317_v38 = vsub.f32 0.0, %v5917_v24  ;;  %v3325_v49 = vpop.f32.mrb[10].mxu1 }
 0x245   :  { %v4163_v56 = vpop.eup %4162  ;;  %4182 = vrcp.f32 %v2500_v30  ;;  %v2502_v18 = vadd.f32 1.0, %v4161_v15  ;;  %v2423_v43 = vmul.f32 1.442695, %v2318_v27  ;;  %v5928_v20 = vadd.f32 %v3325_v49, %v5621_v13  ;;  %v2097_v28 = vpop.f32.mrb[11].mxu1 }
 0x246   :  { %v4165_v42 = vpop.eup %4164  ;;  %v2624_v44 = vmul.f32 %v4163_v56, %v5801_v48  ;;  %4184 = vrcp.f32 %v2499_v61  ;;  %v5932_v47 = vadd.f32 %v5621_v13, %v2097_v28  ;;  %v2421_v57 = vmul.f32 1.442695, %v2317_v38 }
 0x247   :  { %v4167_v31 = vpop.eup %4166  ;;  %v2623_v32 = vmul.f32 %v4165_v42, %v5808_v2  ;;  %4186 = vrcp.f32 %v2502_v18  ;;  %v2320_v1 = vsub.f32 0.0, %v5928_v20 }
 0x248   :  { %v4169_v33 = vpop.eup %4168  ;;  %2688 = vst [vmem:[%s6180_s8 + $0xd8] sm:$0xff] %v2624_v44  ;;  %v2501_v36 = vadd.f32 1.0, %v4167_v31  ;;  %4188 = vpow2.f32 %v2417_v16  ;;  %v3328_v7 = vpop.f32.mrb[12].mxu1  ;;  %v2319_v34 = vsub.f32 0.0, %v5932_v47 }
 0x249   :  { %v4171_v48 = vpop.eup %4170  ;;  %2687 = vst [vmem:[%s6180_s8 + $0xd0] sm:$0xff] %v2623_v32  ;;  %v2504_v55 = vadd.f32 1.0, %v4169_v33  ;;  %4190 = vpow2.f32 %v2423_v43  ;;  %v2427_v2 = vmul.f32 1.442695, %v2320_v1  ;;  %v5943_v40 = vadd.f32 %v3328_v7, %v5621_v13  ;;  %v2107_v4 = vpop.f32.mrb[13].mxu1 }
 0x24a   :  { %v4173_v22 = vpop.eup %4172  ;;  %v2626_v8 = vmul.f32 %v4171_v48, %v5822_v0  ;;  %4192 = vrcp.f32 %v2501_v36  ;;  %v5948_v9 = vadd.f32 %v5621_v13, %v2107_v4  ;;  %v2425_v52 = vmul.f32 1.442695, %v2319_v34 }
 0x24b   :  { %v4175_v63 = vpop.eup %4174  ;;  %v2625_v35 = vmul.f32 %v4173_v22, %v5826_v58  ;;  %4194 = vrcp.f32 %v2504_v55  ;;  %v2322_v51 = vsub.f32 0.0, %v5943_v40 }
 0x24c   :  { %v4177_v19 = vpop.eup %4176  ;;  %2690 = vst [vmem:[%s6180_s8 + $0xe8] sm:$0xff] %v2626_v8  ;;  %v2503_v53 = vadd.f32 1.0, %v4175_v63  ;;  %4196 = vpow2.f32 %v2421_v57  ;;  %v2321_v0 = vsub.f32 0.0, %v5948_v9  ;;  %v3331_v50 = vpop.f32.mrb[14].mxu1 }
 0x24d   :  { %v4179_v54 = vpop.eup %4178  ;;  %2689 = vst [vmem:[%s6180_s8 + $0xe0] sm:$0xff] %v2625_v35  ;;  %v2506_v17 = vadd.f32 1.0, %v4177_v19  ;;  %4198 = vpow2.f32 %v2427_v2  ;;  %v5960_v58 = vadd.f32 %v3331_v50, %v5621_v13  ;;  %v2117_v3 = vpop.f32.mrb[15].mxu1  ;;  %v2431_v59 = vmul.f32 1.442695, %v2322_v51 }
 0x24e   :  { %v4181_v62 = vpop.eup %4180  ;;  %4200 = vrcp.f32 %v2503_v53  ;;  %v2505_v41 = vadd.f32 1.0, %v4179_v54  ;;  %v5963_v60 = vadd.f32 %v5621_v13, %v2117_v3  ;;  %v2429_v27 = vmul.f32 1.442695, %v2321_v0  ;;  %v6007_v50 = vld [vmem:[%s6179_s7] ss:$0 sm:$0xff] }
 0x24f   :  { %v4183_v26 = vpop.eup %4182  ;;  %4202 = vrcp.f32 %v2506_v17  ;;  %v2508_v45 = vadd.f32 1.0, %v4181_v62  ;;  %v2324_v23 = vsub.f32 0.0, %v5960_v58 }
 0x250   :  { %v4185_v11 = vpop.eup %4184  ;;  %v2628_v30 = vmul.f32 %v4183_v26, %v5840_v10  ;;  %4204 = vrcp.f32 %v2505_v41  ;;  %v2323_v15 = vsub.f32 0.0, %v5963_v60  ;;  %v3334_v61 = vpop.f32.mrb[16].mxu1 }
 0x251   :  { %v4187_v16 = vpop.eup %4186  ;;  %v2627_v38 = vmul.f32 %v4185_v11, %v5844_v37  ;;  %4206 = vrcp.f32 %v2508_v45  ;;  %v5970_v49 = vadd.f32 %v3334_v61, %v5621_v13  ;;  %v2127_v56 = vpop.f32.mrb[17].mxu1  ;;  %v2435_v42 = vmul.f32 1.442695, %v2324_v23 }
 0x252   :  { %v4189_v18 = vpop.eup %4188  ;;  %2692 = vst [vmem:[%s6180_s8 + $0xf8] sm:$0xff] %v2628_v30  ;;  %v2630_v10 = vmul.f32 %v4187_v16, %v5849_v39  ;;  %4208 = vpow2.f32 %v2425_v52  ;;  %v5977_v43 = vadd.f32 %v5621_v13, %v2127_v56  ;;  %v2433_v32 = vmul.f32 1.442695, %v2323_v15 }
 0x253   :  { %v4191_v28 = vpop.eup %4190  ;;  %2691 = vst [vmem:[%s6180_s8 + $0xf0] sm:$0xff] %v2627_v38  ;;  %v2507_v37 = vadd.f32 1.0, %v4189_v18  ;;  %4210 = vpow2.f32 %v2431_v59  ;;  %v2326_v44 = vsub.f32 0.0, %v5970_v49 }
 0x254   :  { %v4193_v31 = vpop.eup %4192  ;;  %2694 = vst [vmem:[%s6180_s8 + $0x108] sm:$0xff] %v2630_v10  ;;  %v2510_v39 = vadd.f32 1.0, %v4191_v28  ;;  %4212 = vpow2.f32 %v2429_v27  ;;  %v2325_v1 = vsub.f32 0.0, %v5977_v43  ;;  %v3337_v33 = vpop.f32.mrb[18].mxu1 }
 0x255   :  { %v4195_v36 = vpop.eup %4194  ;;  %v2629_v57 = vmul.f32 %v4193_v31, %v5856_v25  ;;  %4214 = vrcp.f32 %v2507_v37  ;;  %v5989_v7 = vadd.f32 %v3337_v33, %v5621_v13  ;;  %v2137_v48 = vpop.f32.mrb[19].mxu1  ;;  %v2439_v25 = vmul.f32 1.442695, %v2326_v44 }
 0x256   :  { %v4197_v55 = vpop.eup %4196  ;;  %v2632_v2 = vmul.f32 %v4195_v36, %v5864_v6  ;;  %4216 = vrcp.f32 %v2510_v39  ;;  %v5993_v4 = vadd.f32 %v5621_v13, %v2137_v48  ;;  %v2437_v35 = vmul.f32 1.442695, %v2325_v1 }
 0x257   :  { %v4199_v22 = vpop.eup %4198  ;;  %2693 = vst [vmem:[%s6180_s8 + $0x100] sm:$0xff] %v2629_v57  ;;  %v2509_v8 = vadd.f32 1.0, %v4197_v55  ;;  %4218 = vpow2.f32 %v2435_v42  ;;  %v2328_v34 = vsub.f32 0.0, %v5989_v7 }
 0x258   :  { %v4201_v63 = vpop.eup %4200  ;;  %2696 = vst [vmem:[%s6180_s8 + $0x118] sm:$0xff] %v2632_v2  ;;  %v2512_v6 = vadd.f32 1.0, %v4199_v22  ;;  %4220 = vpow2.f32 %v2433_v32  ;;  %v2327_v13 = vsub.f32 0.0, %v5993_v4  ;;  %v3340_v51 = vpop.f32.mrb[20].mxu1 }
 0x259   :  { %v4203_v19 = vpop.eup %4202  ;;  %v2631_v53 = vmul.f32 %v4201_v63, %v5867_v14  ;;  %4222 = vrcp.f32 %v2509_v8  ;;  %v2443_v0 = vmul.f32 1.442695, %v2328_v34  ;;  %v6010_v54 = vadd.f32 %v6007_v50, %v3340_v51  ;;  %v2147_v17 = vpop.f32.mrb[21].mxu1 }
 0x25a   :  { %v4205_v3 = vpop.eup %4204  ;;  %v2634_v62 = vmul.f32 %v4203_v19, %v5877_v21  ;;  %4224 = vrcp.f32 %v2512_v6  ;;  %v2441_v41 = vmul.f32 1.442695, %v2327_v13  ;;  %v6014_v52 = vadd.f32 %v6007_v50, %v2147_v17 }
 0x25b   :  { %v4207_v14 = vpop.eup %4206  ;;  %2695 = vst [vmem:[%s6180_s8 + $0x110] sm:$0xff] %v2631_v53  ;;  %v2633_v26 = vmul.f32 %v4205_v3, %v5883_v5  ;;  %4226 = vpow2.f32 %v2439_v25  ;;  %v2330_v45 = vsub.f32 0.0, %v6010_v54 }
 0x25c   :  { %v4209_v59 = vpop.eup %4208  ;;  %2698 = vst [vmem:[%s6180_s8 + $0x128] sm:$0xff] %v2634_v62  ;;  %v2636_v21 = vmul.f32 %v4207_v14, %v5893_v46  ;;  %4228 = vpow2.f32 %v2437_v35  ;;  %v2329_v23 = vsub.f32 0.0, %v6014_v52  ;;  %v3343_v11 = vpop.f32.mrb[22].mxu1 }
 0x25d   :  { %v4211_v30 = vpop.eup %4210  ;;  %2697 = vst [vmem:[%s6180_s8 + $0x120] sm:$0xff] %v2633_v26  ;;  %v2511_v5 = vadd.f32 1.0, %v4209_v59  ;;  %4230 = vpow2.f32 %v2443_v0  ;;  %v6030_v27 = vadd.f32 %v6007_v50, %v3343_v11  ;;  %v2157_v15 = vpop.f32.mrb[23].mxu1  ;;  %v2447_v16 = vmul.f32 1.442695, %v2330_v45 }
 0x25e   :  { %v4213_v61 = vpop.eup %4212  ;;  %2700 = vst [vmem:[%s6180_s8 + $0x138] sm:$0xff] %v2636_v21  ;;  %v2514_v46 = vadd.f32 1.0, %v4211_v30  ;;  %4232 = vpow2.f32 %v2441_v41  ;;  %v6036_v38 = vadd.f32 %v6007_v50, %v2157_v15  ;;  %v2445_v10 = vmul.f32 1.442695, %v2329_v23 }
 0x25f   :  { %v4215_v56 = vpop.eup %4214  ;;  %4234 = vrcp.f32 %v2511_v5  ;;  %v2513_v18 = vadd.f32 1.0, %v4213_v61  ;;  %v2332_v28 = vsub.f32 0.0, %v6030_v27 }
 0x260   :  { %v4217_v37 = vpop.eup %4216  ;;  %v2635_v42 = vmul.f32 %v4215_v56, %v5899_v29  ;;  %4236 = vrcp.f32 %v2514_v46  ;;  %v2331_v44 = vsub.f32 0.0, %v6036_v38  ;;  %v3346_v31 = vpop.f32.mrb[24].mxu1 }
 0x261   :  { %v4219_v39 = vpop.eup %4218  ;;  %v2638_v32 = vmul.f32 %v4217_v37, %v5910_v12  ;;  %4238 = vrcp.f32 %v2513_v18  ;;  %v6043_v1 = vadd.f32 %v6007_v50, %v3346_v31  ;;  %v2167_v33 = vpop.f32.mrb[25].mxu1  ;;  %v2451_v29 = vmul.f32 1.442695, %v2332_v28 }
 0x262   :  { %v4221_v36 = vpop.eup %4220  ;;  %2699 = vst [vmem:[%s6180_s8 + $0x130] sm:$0xff] %v2635_v42  ;;  %v2516_v57 = vadd.f32 1.0, %v4219_v39  ;;  %4240 = vpow2.f32 %v2447_v16  ;;  %v6049_v48 = vadd.f32 %v6007_v50, %v2167_v33  ;;  %v2449_v2 = vmul.f32 1.442695, %v2331_v44 }
 0x263   :  { %v4223_v55 = vpop.eup %4222  ;;  %2702 = vst [vmem:[%s6180_s8 + $0x148] sm:$0xff] %v2638_v32  ;;  %v2515_v12 = vadd.f32 1.0, %v4221_v36  ;;  %4242 = vpow2.f32 %v2445_v10  ;;  %v2334_v25 = vsub.f32 0.0, %v6043_v1 }
 0x264   :  { %v4225_v22 = vpop.eup %4224  ;;  %v2637_v8 = vmul.f32 %v4223_v55, %v5917_v24  ;;  %4244 = vrcp.f32 %v2516_v57  ;;  %v3349_v34 = vpop.f32.mrb[26].mxu1  ;;  %v2333_v35 = vsub.f32 0.0, %v6049_v48 }
 0x265   :  { %v4227_v63 = vpop.eup %4226  ;;  %v2640_v6 = vmul.f32 %v4225_v22, %v5928_v20  ;;  %4246 = vrcp.f32 %v2515_v12  ;;  %v6059_v13 = vadd.f32 %v6007_v50, %v3349_v34  ;;  %v2177_v51 = vpop.f32.mrb[27].mxu1  ;;  %v2455_v41 = vmul.f32 1.442695, %v2334_v25 }
 0x266   :  { %v4229_v19 = vpop.eup %4228  ;;  %2701 = vst [vmem:[%s6180_s8 + $0x140] sm:$0xff] %v2637_v8  ;;  %v2518_v24 = vadd.f32 1.0, %v4227_v63  ;;  %4248 = vpow2.f32 %v2451_v29  ;;  %v6065_v53 = vadd.f32 %v6007_v50, %v2177_v51  ;;  %v2453_v21 = vmul.f32 1.442695, %v2333_v35 }
 0x267   :  { %v4231_v0 = vpop.eup %4230  ;;  %2704 = vst [vmem:[%s6180_s8 + $0x158] sm:$0xff] %v2640_v6  ;;  %v2517_v20 = vadd.f32 1.0, %v4229_v19  ;;  %4250 = vpow2.f32 %v2449_v2  ;;  %v2336_v17 = vsub.f32 0.0, %v6059_v13 }
 0x268   :  { %v4233_v3 = vpop.eup %4232  ;;  %4252 = vrcp.f32 %v2518_v24  ;;  %v2520_v62 = vadd.f32 1.0, %v4231_v0  ;;  %v2335_v14 = vsub.f32 0.0, %v6065_v53  ;;  %v3352_v26 = vpop.f32.mrb[28].mxu1 }
 0x269   :  { %v4235_v45 = vpop.eup %4234  ;;  %4254 = vrcp.f32 %v2517_v20  ;;  %v2519_v59 = vadd.f32 1.0, %v4233_v3  ;;  %v6073_v23 = vadd.f32 %v6007_v50, %v3352_v26  ;;  %v2187_v11 = vpop.f32.mrb[29].mxu1  ;;  %v2459_v15 = vmul.f32 1.442695, %v2336_v17 }
 0x26a   :  { %v4237_v30 = vpop.eup %4236  ;;  %v2639_v5 = vmul.f32 %v4235_v45, %v5932_v47  ;;  %4256 = vrcp.f32 %v2520_v62  ;;  %v6077_v61 = vadd.f32 %v6007_v50, %v2187_v11  ;;  %v2457_v47 = vmul.f32 1.442695, %v2335_v14 }
 0x26b   :  { %v4239_v46 = vpop.eup %4238  ;;  %v2642_v16 = vmul.f32 %v4237_v30, %v5943_v40  ;;  %4258 = vrcp.f32 %v2519_v59  ;;  %v2338_v56 = vsub.f32 0.0, %v6073_v23 }
 0x26c   :  { %v4241_v18 = vpop.eup %4240  ;;  %2703 = vst [vmem:[%s6180_s8 + $0x150] sm:$0xff] %v2639_v5  ;;  %v2641_v10 = vmul.f32 %v4239_v46, %v5948_v9  ;;  %4260 = vpow2.f32 %v2455_v41  ;;  %v3355_v28 = vpop.f32.mrb[30].mxu1  ;;  %v2337_v40 = vsub.f32 0.0, %v6077_v61 }
 0x26d   :  { %v4243_v37 = vpop.eup %4242  ;;  %2706 = vst [vmem:[%s6180_s8 + $0x168] sm:$0xff] %v2642_v16  ;;  %v2522_v42 = vadd.f32 1.0, %v4241_v18  ;;  %4262 = vpow2.f32 %v2453_v21  ;;  %v6090_v44 = vadd.f32 %v6007_v50, %v3355_v28  ;;  %v2197_v31 = vpop.f32.mrb[31].mxu1  ;;  %v2463_v32 = vmul.f32 1.442695, %v2338_v56 }
 0x26e   :  { %v4245_v39 = vpop.eup %4244  ;;  %2705 = vst [vmem:[%s6180_s8 + $0x160] sm:$0xff] %v2641_v10  ;;  %v2521_v9 = vadd.f32 1.0, %v4243_v37  ;;  %4264 = vpow2.f32 %v2459_v15  ;;  %v6096_v33 = vadd.f32 %v6007_v50, %v2197_v31  ;;  %v2461_v50 = vmul.f32 1.442695, %v2337_v40 }
 0x26f   :  { %v4247_v36 = vpop.eup %4246  ;;  %v2644_v57 = vmul.f32 %v4245_v39, %v5960_v58  ;;  %4266 = vrcp.f32 %v2522_v42  ;;  %v2340_v29 = vsub.f32 0.0, %v6090_v44 }
 0x270   :  { %v4249_v55 = vpop.eup %4248  ;;  %v2643_v12 = vmul.f32 %v4247_v36, %v5963_v60  ;;  %4268 = vrcp.f32 %v2521_v9  ;;  %v2339_v2 = vsub.f32 0.0, %v6096_v33 }
 0x271   :  { %v4251_v22 = vpop.eup %4250  ;;  %2708 = vst [vmem:[%s6180_s8 + $0x178] sm:$0xff] %v2644_v57  ;;  %v2524_v8 = vadd.f32 1.0, %v4249_v55  ;;  %4270 = vpow2.f32 %v2457_v47  ;;  %v2467_v34 = vmul.f32 1.442695, %v2340_v29 }
 0x272   :  { %v4253_v25 = vpop.eup %4252  ;;  %2707 = vst [vmem:[%s6180_s8 + $0x170] sm:$0xff] %v2643_v12  ;;  %v2523_v58 = vadd.f32 1.0, %v4251_v22  ;;  %4272 = vpow2.f32 %v2463_v32  ;;  %v2465_v6 = vmul.f32 1.442695, %v2339_v2 }
 0x273   :  { %v4255_v60 = vpop.eup %4254  ;;  %v2646_v63 = vmul.f32 %v4253_v25, %v5970_v49  ;;  %4274 = vrcp.f32 %v2524_v8 }
 0x274   :  { %v4257_v35 = vpop.eup %4256  ;;  %v2645_v51 = vmul.f32 %v4255_v60, %v5977_v43  ;;  %4276 = vrcp.f32 %v2523_v58 }
 0x275   :  { %v4259_v19 = vpop.eup %4258  ;;  %2710 = vst [vmem:[%s6180_s8 + $0x188] sm:$0xff] %v2646_v63  ;;  %v2648_v24 = vmul.f32 %v4257_v35, %v5989_v7  ;;  %4278 = vpow2.f32 %v2461_v50 }
 0x276   :  { %v4261_v0 = vpop.eup %4260  ;;  %2709 = vst [vmem:[%s6180_s8 + $0x180] sm:$0xff] %v2645_v51  ;;  %v2647_v49 = vmul.f32 %v4259_v19, %v5993_v4  ;;  %4280 = vpow2.f32 %v2467_v34 }
 0x277   :  { %v4263_v20 = vpop.eup %4262  ;;  %2712 = vst [vmem:[%s6180_s8 + $0x198] sm:$0xff] %v2648_v24  ;;  %v2526_v43 = vadd.f32 1.0, %v4261_v0  ;;  %4282 = vpow2.f32 %v2465_v6 }
 0x278   :  { %v4265_v17 = vpop.eup %4264  ;;  %2711 = vst [vmem:[%s6180_s8 + $0x190] sm:$0xff] %v2647_v49  ;;  %v2525_v7 = vadd.f32 1.0, %v4263_v20 }
 0x279   :  { %v4267_v3 = vpop.eup %4266  ;;  %4284 = vrcp.f32 %v2526_v43  ;;  %v2528_v62 = vadd.f32 1.0, %v4265_v17 }
 0x27a   :  { %v4269_v41 = vpop.eup %4268  ;;  %v2650_v4 = vmul.f32 %v4267_v3, %v6010_v54  ;;  %4286 = vrcp.f32 %v2525_v7 }
 0x27b   :  { %v4271_v14 = vpop.eup %4270  ;;  %v2649_v26 = vmul.f32 %v4269_v41, %v6014_v52  ;;  %4288 = vrcp.f32 %v2528_v62 }
 0x27c   :  { %v4273_v45 = vpop.eup %4272  ;;  %2714 = vst [vmem:[%s6180_s8 + $0x1a8] sm:$0xff] %v2650_v4  ;;  %v2527_v59 = vadd.f32 1.0, %v4271_v14 }
 0x27d   :  { %v4275_v21 = vpop.eup %4274  ;;  %2713 = vst [vmem:[%s6180_s8 + $0x1a0] sm:$0xff] %v2649_v26  ;;  %v2530_v11 = vadd.f32 1.0, %v4273_v45 }
 0x27e   :  { %v4277_v30 = vpop.eup %4276  ;;  %v2652_v54 = vmul.f32 %v4275_v21, %v6030_v27  ;;  %4290 = vrcp.f32 %v2527_v59 }
 0x27f   :  { %v4279_v5 = vpop.eup %4278  ;;  %v2651_v52 = vmul.f32 %v4277_v30, %v6036_v38  ;;  %4292 = vrcp.f32 %v2530_v11 }
 0x280   :  { %v4281_v15 = vpop.eup %4280  ;;  %2716 = vst [vmem:[%s6180_s8 + $0x1b8] sm:$0xff] %v2652_v54  ;;  %v2529_v46 = vadd.f32 1.0, %v4279_v5 }
 0x281   :  { %v4283_v16 = vpop.eup %4282  ;;  %2715 = vst [vmem:[%s6180_s8 + $0x1b0] sm:$0xff] %v2651_v52  ;;  %v2532_v56 = vadd.f32 1.0, %v4281_v15 }
 0x282   :  { %4294 = vrcp.f32 %v2529_v46  ;;  %v2531_v18 = vadd.f32 1.0, %v4283_v16 }
 0x283   :  { %v4285_v27 = vpop.eup %4284  ;;  %4296 = vrcp.f32 %v2532_v56 }
 0x284   :  { %v4287_v10 = vpop.eup %4286  ;;  %v2654_v38 = vmul.f32 %v4285_v27, %v6043_v1  ;;  %4298 = vrcp.f32 %v2531_v18 }
 0x285   :  { %v4289_v47 = vpop.eup %4288  ;;  %v2653_v28 = vmul.f32 %v4287_v10, %v6049_v48 }
 0x286   :  { %2718 = vst [vmem:[%s6180_s8 + $0x1c8] sm:$0xff] %v2654_v38  ;;  %v2656_v37 = vmul.f32 %v4289_v47, %v6059_v13 }
 0x287   :  { %2717 = vst [vmem:[%s6180_s8 + $0x1c0] sm:$0xff] %v2653_v28 }
 0x288   :  { %v4291_v42 = vpop.eup %4290  ;;  %2720 = vst [vmem:[%s6180_s8 + $0x1d8] sm:$0xff] %v2656_v37 }
 0x289   :  { %v4293_v1 = vpop.eup %4292  ;;  %v2655_v40 = vmul.f32 %v4291_v42, %v6065_v53 }
 0x28a   :  { %v2658_v48 = vmul.f32 %v4293_v1, %v6073_v23 }
 0x28b   :  { %2719 = vst [vmem:[%s6180_s8 + $0x1d0] sm:$0xff] %v2655_v40 }
 0x28c   :  { %v4295_v31 = vpop.eup %4294  ;;  %2722 = vst [vmem:[%s6180_s8 + $0x1e8] sm:$0xff] %v2658_v48 }
 0x28d   :  { %v4297_v13 = vpop.eup %4296  ;;  %v2657_v39 = vmul.f32 %v4295_v31, %v6077_v61 }
 0x28e   :  { %v4299_v9 = vpop.eup %4298  ;;  %v2660_v32 = vmul.f32 %v4297_v13, %v6090_v44 }
 0x28f   :  { %2721 = vst [vmem:[%s6180_s8 + $0x1e0] sm:$0xff] %v2657_v39  ;;  %v2659_v53 = vmul.f32 %v4299_v9, %v6096_v33 }
 0x290   :  { %2724 = vst [vmem:[%s6180_s8 + $0x1f8] sm:$0xff] %v2660_v32 }
 0x291   :  { %2723 = vst [vmem:[%s6180_s8 + $0x1f0] sm:$0xff] %v2659_v53 }

// kernel: csp_forward.4
= control target key start
LH: loop header
LB: loop body
LE: loop exit
PB: predicated region body
PF: predicated region fallthrough
CT: control target
= control target key end

     0   :  { %s7604_s0 = inlined_call_operand.vmem [shape: f32[2,16,16,128], index: 0, kind: input, shape index: {}]   ;;  %s7605_s1 = inlined_call_operand.hbm [shape: f32[2,128,128], index: 1, kind: input, shape index: {}]   ;;  %s7606_s2 = inlined_call_operand.vmem [shape: f32[2,1,128], index: 2, kind: input, shape index: {}]   ;;  %s7607_s3 = inlined_call_operand.vmem [shape: f32[2,1152,128], index: 3, kind: input, shape index: {}]   ;;  %s7608_s4 = inlined_call_operand.vmem [shape: f32[2,1,128], index: 4, kind: input, shape index: {}]   ;;  %s7609_s5 = inlined_call_operand.vmem [shape: f32[2,16,16,128], index: 5, kind: output, shape index: {}]  }
   0x1   :  { %7625 = sst [smem:[#allocation17_spill]] %s7605_s1 }
   0x2   :  { %10 = vsyncpa [#allocation5], 0 }
   0x3   :  { %12 = vsyncpa [#allocation5 + $0x1], 0  ;;  %s6480_s18 = smov 0   ;;  %s6482_s19 = smov 0  }
   0x4   :  { %s6484_s20 = smov 0   ;;  %s6486_s21 = smov 0  }
   0x5   :  { %s6488_s22 = smov 0   ;;  %s6490_s23 = smov 0  }
   0x6   :  { %s6492_s24 = smov 0   ;;  %s6494_s25 = smov 0  }
   0x7 LB: > { %s4106_s26 = sadd.s32 4294967295, %s6444_s25   ;;  %s27_s27 = sadd.s32 1, %s6436_s23  ;;  %s6444_s25 = sphi %s6494_s25, %s18_s25   ;;  %s6440_s24 = sphi %s6492_s24, %s7656_s24   ;;  %s6436_s23 = sphi %s6490_s23, %s7655_s23   ;;  %s6432_s22 = sphi %s6488_s22, %s7654_s22   ;;  %s6428_s21 = sphi %s6486_s21, %s7653_s21   ;;  %s6424_s20 = sphi %s6484_s20, %s7652_s20   ;;  %s6420_s19 = sphi %s6482_s19, %s7651_s19   ;;  %s6416_s18 = sphi %s6480_s18, %s7650_s18  }
   0x8   : > { %p28_p0 = scmp.ge.s32.totalorder %s27_s27, 2  ;;  %s30_s28 = sadd.s32 1, %s6440_s24 }
   0x9   : > { %s63_s29 = sadd.s32 1, %s6424_s20  ;;  %p70_p1 = scmp.ne.s32.totalorder %s6424_s20, %s6420_s19 }
   0xa   : > { %s7658_s27 = smov (%p28_p0, %s27_s27), 0  ;;  %s7660_s28 = smov (!%p28_p0, %s30_s28), %s6440_s24 }
   0xb   : > { %s60_s30 = ssub.s32 %s6436_s23, %s7658_s27  ;;  %p71_p2 = scmp.eq.s32.totalorder %s6444_s25, 0 }
   0xc   : > { %p32_p3 = scmp.ge.s32.totalorder %s7660_s28, 2  ;;  %p61_p4 = scmp.eq.s32.totalorder %s60_s30, 0 }
   0xd   : > { %p6530_p5 = por %p71_p2, %p70_p1  ;;  %p76_p6 = scmp.ne.s32.totalorder %s6420_s19, %s6416_s18 }
   0xe   : > { %s7662_s28 = smov (%p32_p3, %s7660_s28), 0  ;;  %p77_p7 = scmp.eq.s32.totalorder %s4106_s26, 0 }
   0xf   : > { %7627 = sst [smem:[#allocation7_spill]] %s7662_s28  ;;  %p5992_p8 = scmp.lt.s32.totalorder %s6444_s25, 4 }
  0x10   : > { %s6538_s7 = scalar_select %p61_p4, %s6424_s20, %s63_s29  }
  0x11   : > { %s212_s8 = sand.u32 1, %s6424_s20   ;;  %p6542_p9 = por %p77_p7, %p76_p6 }
  0x12   : > { %s4110_s10 = sshll.u32 %s212_s8, 7  ;;  %s4126_s11 = sshll.u32 %s6436_s23, 11 }
  0x13   : > { %s7629_s1 = sld [smem:[#allocation17_spill]]  ;;  %s216_s15 = scalar_lea.vmem [#allocation4], %s4110_s10 }
  0x14   : > { %s223_s16 = sshll.u32 %s216_s15, 4  ;;  %p6554_p10 = pnand %p5992_p8, %p6530_p5  ;;  %s6558_s16 = int_to_ptr.vmem [resolvable:$true] %s223_s16 }
  0x15   : > { %s6560_s18 = scalar_lea.sflag [#allocation5], %s212_s8 }
  0x16   : > { %p6350_p12 = pneg %p6554_p10 }
  0x19   : > { %s6550_s14 = scalar_lea.hbm %s7629_s1, %s4126_s11  ;;  %s6353_s6 = scalar_lea.hbm %s7629_s1, 4096 }
  0x1a   : > { %s6348_s26 = scalar_lea.hbm %s6550_s14, 2048  ;;  %p6354_p1 = scmp.lt.u32.totalorder %s6550_s14, %s7629_s1 }
  0x1b   : > { %p6349_p11 = scmp.ne.s32.totalorder %s6550_s14, %s6348_s26  ;;  %p6355_p2 = scmp.lt.u32.totalorder %s6353_s6, %s6348_s26 }
  0x1c   : > { %p6357_p4 = scmp.lt.u32.totalorder %s6348_s26, %s6550_s14 }
  0x1d   : > { %p6351_p13 = pnand %p6350_p12, %p6349_p11  ;;  %p6356_p3 = por %p6355_p2, %p6354_p1 }
  0x1f   : > { %p6352_p0 = pneg %p6351_p13  ;;  %p6358_p5 = por %p6357_p4, %p6356_p3 }
  0x21   : > { %p6359_p6 = pnand %p6358_p5, %p6352_p0 }
  0x23   : > { %6362 = shalt.err (!%p6359_p6)
}
  0x24   : > { %s6363_s8 = scalar_lea.vmem %s6558_s16, 2048  ;;  %s6446_s12 = smov [#allocation4]  }
  0x25   : > { %p6364_p7 = scmp.ne.s32.totalorder %s6558_s16, %s6363_s8  ;;  %s6368_s13 = sshll.u32 %s6446_s12, 4  ;;  %s6369_s13 = int_to_ptr.vmem [resolvable:$false] %s6368_s13 }
  0x26   : > { %s6370_s15 = scalar_lea.vmem %s6369_s13, 4096  ;;  %p6371_p13 = scmp.lt.s32.totalorder %s6558_s16, %s6369_s13 }
  0x27   : > { %p6366_p8 = pnand %p6364_p7, %p6350_p12  ;;  %p6372_p1 = scmp.lt.s32.totalorder %s6370_s15, %s6363_s8 }
  0x29   : > { %p6367_p11 = pneg %p6366_p8  ;;  %p6373_p2 = por %p6372_p1, %p6371_p13 }
  0x2b   : > { %p6374_p3 = pnand %p6373_p2, %p6367_p11 }
  0x2d   : > { %6377 = shalt.err (!%p6374_p3)
}
  0x2e   : > { %s6447_s26 = smov 128   ;;  %s6448_s29 = smov 8  }
  0x2f   : > { %5991 = dma.hbm_to_vmem [thread:$0]  (!%p6554_p10), %s6550_s14, 2048, %s6558_s16, %s6560_s18, %s6447_s26, %s6447_s26, %s6448_s29  }
  0x30   : > { %p4113_p12 = scmp.ge.s32.totalorder %s6444_s25, 1  ;;  %p251_p0 = scmp.lt.s32.totalorder %s6444_s25, 5 }
  0x32   : > { %p252_p4 = pnand %p4113_p12, %p251_p0 }
  0x34   : > { %255 = sbr.rel (%p252_p4) target bundleno = 969 (0x3c9), region = 40 }
  0x3b   : > { %s257_s30 = sand.u32 1, %s6420_s19  }
  0x3c   : > { %s4114_s6 = sshll.u32 %s257_s30, 7  ;;  %s258_s10 = scalar_lea.sflag [#allocation5], %s257_s30 }
  0x3d   : > { %s6591_s11 = scalar_lea.vmem [#allocation4], %s4114_s6 }
  0x3e   : > { %6411 = dma.done.wait (%p6542_p9), %s258_s10, 2048  }
  0x3f   : > { %6413 = vsyncadd (%p6542_p9), %s258_s10, 4294965248  ;;  %p304_p10 = scmp.lt.s32.totalorder %s6432_s22, 1  ;;  %p309_p5 = scmp.lt.s32.totalorder %s6428_s21, 1 }
  0x40   : > { %p4120_p9 = scmp.ne.s32.totalorder %s6428_s21, 0 }
  0x41   : > { %s7664_s22 = smov (!%p304_p10, %s6432_s22), 1  ;;  %v6449_v3 = vmov (!%p4120_p9), 0.0  }
  0x42   : > { %s6601_s14 = scalar_select %p309_p5, %s6428_s21, 1 }
  0x43   : > { %s4127_s16 = sshll.u32 %s7664_s22, 8  ;;  %328 = sbr.rel (%p4120_p9) target bundleno = 105 (0x69), region = 48  ;;  %393 = vst [vmem:[#allocation3] sm:$0xff] (!%p4120_p9), %v6449_v3  ;;  %394 = vst [vmem:[#allocation3 + $0x8] sm:$0xff] (!%p4120_p9), %v6449_v3 }
  0x44   : > { %s6606_s8 = scalar_lea.vmem %s7604_s0, %s4127_s16  ;;  %s311_s13 = scalar_lea.vmem %s7606_s2, %s6601_s14  ;;  %395 = vst [vmem:[#allocation3 + $0x10] sm:$0x3] (!%p4120_p9), %v6449_v3  ;;  %397 = vst [vmem:[#allocation3 + $0x198] sm:$0xff] (!%p4120_p9), %v6449_v3 }
  0x45   : > { %s5985_s15 = smul.u32 1152, %s6601_s14  ;;  %s319_s30 = scalar_lea.vmem %s7608_s4, %s6601_s14  ;;  %v329_v0 = vld [vmem:[%s6606_s8] sm:$0xff] (!%p4120_p9)  ;;  %v330_v1 = vld [vmem:[%s6606_s8 + $0x8] sm:$0xff] (!%p4120_p9)  ;;  %v331_v2 = vld [vmem:[%s6606_s8 + $0x10] sm:$0xff] (!%p4120_p9)  ;;  %398 = vst [vmem:[#allocation3 + $0x1a0] sm:$0xff] (!%p4120_p9), %v6449_v3 }
  0x46   : > { %s6620_s1 = scalar_lea.vmem %s7609_s5, %s4127_s16  ;;  %399 = vst [vmem:[#allocation3 + $0x1a8] sm:$0x3] (!%p4120_p9), %v6449_v3  ;;  %401 = vst [vmem:[#allocation3 + $0x18] sm:$0x1] (!%p4120_p9), %v6449_v3  ;;  %v332_v4 = vld [vmem:[%s6606_s8 + $0x18] sm:$0xff] (!%p4120_p9)  ;;  %v333_v5 = vld [vmem:[%s6606_s8 + $0x20] sm:$0xff] (!%p4120_p9) }
  0x47   : > { %s6625_s17 = scalar_lea.vmem %s7607_s3, %s5985_s15  ;;  %402 = vst [vmem:[#allocation3 + $0x30] sm:$0x1] (!%p4120_p9), %v6449_v3  ;;  %403 = vst [vmem:[#allocation3 + $0x48] sm:$0x1] (!%p4120_p9), %v6449_v3  ;;  %v334_v6 = vld [vmem:[%s6606_s8 + $0x28] sm:$0xff] (!%p4120_p9)  ;;  %v335_v7 = vld [vmem:[%s6606_s8 + $0x30] sm:$0xff] (!%p4120_p9) }
  0x48   : > { %404 = vst [vmem:[#allocation3 + $0x60] sm:$0x1] (!%p4120_p9), %v6449_v3  ;;  %405 = vst [vmem:[#allocation3 + $0x78] sm:$0x1] (!%p4120_p9), %v6449_v3  ;;  %v336_v8 = vld [vmem:[%s6606_s8 + $0x38] sm:$0xff] (!%p4120_p9)  ;;  %v337_v9 = vld [vmem:[%s6606_s8 + $0x40] sm:$0xff] (!%p4120_p9) }
  0x49   : > { %406 = vst [vmem:[#allocation3 + $0x90] sm:$0x1] (!%p4120_p9), %v6449_v3  ;;  %407 = vst [vmem:[#allocation3 + $0xa8] sm:$0x1] (!%p4120_p9), %v6449_v3  ;;  %v338_v10 = vld [vmem:[%s6606_s8 + $0x48] sm:$0xff] (!%p4120_p9)  ;;  %v339_v11 = vld [vmem:[%s6606_s8 + $0x50] sm:$0xff] (!%p4120_p9) }
  0x4a   : > { %408 = vst [vmem:[#allocation3 + $0xc0] sm:$0x1] %v6449_v3  ;;  %409 = vst [vmem:[#allocation3 + $0xd8] sm:$0x1] %v6449_v3  ;;  %v340_v12 = vld [vmem:[%s6606_s8 + $0x58] sm:$0xff]  ;;  %v341_v13 = vld [vmem:[%s6606_s8 + $0x60] sm:$0xff] }
  0x4b   : > { %410 = vst [vmem:[#allocation3 + $0xf0] sm:$0x1] %v6449_v3  ;;  %411 = vst [vmem:[#allocation3 + $0x108] sm:$0x1] %v6449_v3  ;;  %v342_v14 = vld [vmem:[%s6606_s8 + $0x68] sm:$0xff]  ;;  %v343_v15 = vld [vmem:[%s6606_s8 + $0x70] sm:$0xff] }
  0x4c   : > { %412 = vst [vmem:[#allocation3 + $0x120] sm:$0x1] %v6449_v3  ;;  %413 = vst [vmem:[#allocation3 + $0x138] sm:$0x1] %v6449_v3  ;;  %v344_v16 = vld [vmem:[%s6606_s8 + $0x78] sm:$0xff]  ;;  %v345_v17 = vld [vmem:[%s6606_s8 + $0x80] sm:$0xff] }
  0x4d   : > { %414 = vst [vmem:[#allocation3 + $0x150] sm:$0x1] %v6449_v3  ;;  %415 = vst [vmem:[#allocation3 + $0x168] sm:$0x1] %v6449_v3  ;;  %v346_v18 = vld [vmem:[%s6606_s8 + $0x88] sm:$0xff]  ;;  %v347_v19 = vld [vmem:[%s6606_s8 + $0x90] sm:$0xff] }
  0x4e   : > { %416 = vst [vmem:[#allocation3 + $0x180] sm:$0x1] %v6449_v3  ;;  %419 = vst [vmem:[#allocation3 + $0x29] sm:$0x1] %v6449_v3  ;;  %v348_v20 = vld [vmem:[%s6606_s8 + $0x98] sm:$0xff]  ;;  %v349_v21 = vld [vmem:[%s6606_s8 + $0xa0] sm:$0xff] }
  0x4f   : > { %420 = vst [vmem:[#allocation3 + $0x41] sm:$0x1] %v6449_v3  ;;  %421 = vst [vmem:[#allocation3 + $0x59] sm:$0x1] %v6449_v3  ;;  %v350_v22 = vld [vmem:[%s6606_s8 + $0xa8] sm:$0xff]  ;;  %v351_v23 = vld [vmem:[%s6606_s8 + $0xb0] sm:$0xff] }
  0x50   : > { %422 = vst [vmem:[#allocation3 + $0x71] sm:$0x1] %v6449_v3  ;;  %423 = vst [vmem:[#allocation3 + $0x89] sm:$0x1] %v6449_v3  ;;  %v352_v24 = vld [vmem:[%s6606_s8 + $0xb8] sm:$0xff]  ;;  %v353_v25 = vld [vmem:[%s6606_s8 + $0xc0] sm:$0xff] }
  0x51   : > { %424 = vst [vmem:[#allocation3 + $0xa1] sm:$0x1] %v6449_v3  ;;  %425 = vst [vmem:[#allocation3 + $0xb9] sm:$0x1] %v6449_v3  ;;  %v354_v26 = vld [vmem:[%s6606_s8 + $0xc8] sm:$0xff]  ;;  %v355_v27 = vld [vmem:[%s6606_s8 + $0xd0] sm:$0xff] }
  0x52   : > { %426 = vst [vmem:[#allocation3 + $0xd1] sm:$0x1] %v6449_v3  ;;  %427 = vst [vmem:[#allocation3 + $0xe9] sm:$0x1] %v6449_v3  ;;  %v356_v28 = vld [vmem:[%s6606_s8 + $0xd8] sm:$0xff]  ;;  %v357_v29 = vld [vmem:[%s6606_s8 + $0xe0] sm:$0xff] }
  0x53   : > { %428 = vst [vmem:[#allocation3 + $0x101] sm:$0x1] %v6449_v3  ;;  %429 = vst [vmem:[#allocation3 + $0x119] sm:$0x1] %v6449_v3  ;;  %v358_v30 = vld [vmem:[%s6606_s8 + $0xe8] sm:$0xff]  ;;  %v359_v31 = vld [vmem:[%s6606_s8 + $0xf0] sm:$0xff] }
  0x54   : > { %430 = vst [vmem:[#allocation3 + $0x131] sm:$0x1] %v6449_v3  ;;  %431 = vst [vmem:[#allocation3 + $0x149] sm:$0x1] %v6449_v3  ;;  %v360_v32 = vld [vmem:[%s6606_s8 + $0xf8] sm:$0xff] }
  0x55   : > { %432 = vst [vmem:[#allocation3 + $0x161] sm:$0x1] %v6449_v3  ;;  %433 = vst [vmem:[#allocation3 + $0x179] sm:$0x1] %v6449_v3 }
  0x56   : > { %434 = vst [vmem:[#allocation3 + $0x191] sm:$0x1] %v6449_v3  ;;  %361 = vst [vmem:[#allocation2] sm:$0xff] %v329_v0 }
  0x57   : > { %362 = vst [vmem:[#allocation2 + $0x8] sm:$0xff] %v330_v1  ;;  %363 = vst [vmem:[#allocation2 + $0x10] sm:$0xff] %v331_v2 }
  0x58   : > { %400 = vst [vmem:[#allocation3] sm:$0x1] %v6449_v3  ;;  %417 = vst [vmem:[#allocation3 + $0x198] sm:$0x1] %v6449_v3 }
  0x59   : > { %418 = vst [vmem:[#allocation3 + $0x11] sm:$0x1] %v6449_v3  ;;  %435 = vst [vmem:[#allocation3 + $0x1a9] sm:$0x1] %v6449_v3 }
  0x5a   : > { %364 = vst [vmem:[#allocation2 + $0x18] sm:$0xff] %v332_v4  ;;  %365 = vst [vmem:[#allocation2 + $0x20] sm:$0xff] %v333_v5 }
  0x5b   : > { %366 = vst [vmem:[#allocation2 + $0x28] sm:$0xff] %v334_v6  ;;  %367 = vst [vmem:[#allocation2 + $0x30] sm:$0xff] %v335_v7 }
  0x5c   : > { %368 = vst [vmem:[#allocation2 + $0x38] sm:$0xff] %v336_v8  ;;  %369 = vst [vmem:[#allocation2 + $0x40] sm:$0xff] %v337_v9 }
  0x5d   : > { %370 = vst [vmem:[#allocation2 + $0x48] sm:$0xff] %v338_v10  ;;  %371 = vst [vmem:[#allocation2 + $0x50] sm:$0xff] %v339_v11 }
  0x5e   : > { %372 = vst [vmem:[#allocation2 + $0x58] sm:$0xff] %v340_v12  ;;  %373 = vst [vmem:[#allocation2 + $0x60] sm:$0xff] %v341_v13 }
  0x5f   : > { %374 = vst [vmem:[#allocation2 + $0x68] sm:$0xff] %v342_v14  ;;  %375 = vst [vmem:[#allocation2 + $0x70] sm:$0xff] %v343_v15 }
  0x60   : > { %376 = vst [vmem:[#allocation2 + $0x78] sm:$0xff] %v344_v16  ;;  %377 = vst [vmem:[#allocation2 + $0x80] sm:$0xff] %v345_v17 }
  0x61   : > { %378 = vst [vmem:[#allocation2 + $0x88] sm:$0xff] %v346_v18  ;;  %379 = vst [vmem:[#allocation2 + $0x90] sm:$0xff] %v347_v19 }
  0x62   : > { %380 = vst [vmem:[#allocation2 + $0x98] sm:$0xff] %v348_v20  ;;  %381 = vst [vmem:[#allocation2 + $0xa0] sm:$0xff] %v349_v21 }
  0x63   : > { %382 = vst [vmem:[#allocation2 + $0xa8] sm:$0xff] %v350_v22  ;;  %383 = vst [vmem:[#allocation2 + $0xb0] sm:$0xff] %v351_v23 }
  0x64   : > { %384 = vst [vmem:[#allocation2 + $0xb8] sm:$0xff] %v352_v24  ;;  %385 = vst [vmem:[#allocation2 + $0xc0] sm:$0xff] %v353_v25 }
  0x65   : > { %386 = vst [vmem:[#allocation2 + $0xc8] sm:$0xff] %v354_v26  ;;  %387 = vst [vmem:[#allocation2 + $0xd0] sm:$0xff] %v355_v27 }
  0x66   : > { %388 = vst [vmem:[#allocation2 + $0xd8] sm:$0xff] %v356_v28  ;;  %389 = vst [vmem:[#allocation2 + $0xe0] sm:$0xff] %v357_v29 }
  0x67   : > { %390 = vst [vmem:[#allocation2 + $0xe8] sm:$0xff] %v358_v30  ;;  %391 = vst [vmem:[#allocation2 + $0xf0] sm:$0xff] %v359_v31 }
  0x68   : > { %392 = vst [vmem:[#allocation2 + $0xf8] sm:$0xff] %v360_v32 }
  0x69 PF: > { %v468_v33 = vld [vmem:[%s6591_s11] sm:$0xff]  ;;  %v469_v34 = vld [vmem:[%s6591_s11 + $0x8] sm:$0xff]  ;;  %v470_v35 = vld [vmem:[%s6591_s11 + $0x10] sm:$0xff]  ;;  %p4123_p6 = scmp.ne.s32.totalorder %s6428_s21, 1 }
  0x6a   : > { %v5409_v36 = vpack.c.bf16 %v469_v34, %v468_v33  ;;  %v471_v37 = vld [vmem:[%s6591_s11 + $0x18] sm:$0xff]  ;;  %v472_v39 = vld [vmem:[%s6591_s11 + $0x20] sm:$0xff]  ;;  %v473_v40 = vld [vmem:[%s6591_s11 + $0x28] sm:$0xff] }
  0x6b   : > { %v5413_v38 = vpack.c.bf16 %v471_v37, %v470_v35  ;;  %v5417_v41 = vpack.c.bf16 %v473_v40, %v472_v39  ;;  %v436_v42 = vld [vmem:[#allocation2] sm:$0xff]  ;;  %v475_v44 = vld [vmem:[%s6591_s11 + $0x38] sm:$0xff]  ;;  %v476_v46 = vld [vmem:[%s6591_s11 + $0x40] sm:$0xff] }
  0x6c   : > { %5410 = vmatprep.subr.bf16.mxu0 %v5409_v36  ;;  %v474_v43 = vld [vmem:[%s6591_s11 + $0x30] sm:$0xff]  ;;  %4641 = vmatprep.mubr.f32.mxu0 %v436_v42  ;;  %v477_v47 = vld [vmem:[%s6591_s11 + $0x48] sm:$0xff]  ;;  %v479_v50 = vld [vmem:[%s6591_s11 + $0x58] sm:$0xff] }
  0x6d   : > { %5412 = vmatpush3.bf16.msra.mxu0 %v5409_v36  ;;  %v5421_v45 = vpack.c.bf16 %v475_v44, %v474_v43  ;;  %v5425_v48 = vpack.c.bf16 %v477_v47, %v476_v46  ;;  %v478_v49 = vld [vmem:[%s6591_s11 + $0x50] sm:$0xff]  ;;  %v480_v52 = vld [vmem:[%s6591_s11 + $0x60] sm:$0xff]  ;;  %v481_v53 = vld [vmem:[%s6591_s11 + $0x68] sm:$0xff] }
  0x6e   : > { %5414 = vmatprep.subr.bf16.mxu0 %v5413_v38  ;;  %v5429_v51 = vpack.c.bf16 %v479_v50, %v478_v49  ;;  %v5433_v54 = vpack.c.bf16 %v481_v53, %v480_v52  ;;  %v482_v55 = vld [vmem:[%s6591_s11 + $0x70] sm:$0xff]  ;;  %v483_v56 = vld [vmem:[%s6591_s11 + $0x78] sm:$0xff]  ;;  %v438_v59 = vld [vmem:[#allocation2 + $0x10] sm:$0xff] }
  0x6f   : > { %v5437_v57 = vpack.c.bf16 %v483_v56, %v482_v55  ;;  %v437_v58 = vld [vmem:[#allocation2 + $0x8] sm:$0xff]  ;;  %v439_v60 = vld [vmem:[#allocation2 + $0x18] sm:$0xff]  ;;  %v440_v61 = vld [vmem:[#allocation2 + $0x20] sm:$0xff] }
  0x70   : > { %v441_v62 = vld [vmem:[#allocation2 + $0x28] sm:$0xff]  ;;  %v442_v63 = vld [vmem:[#allocation2 + $0x30] sm:$0xff]  ;;  %v443_v0 = vld [vmem:[#allocation2 + $0x38] sm:$0xff] }
  0x71   : > { %5416 = vmatpush3.bf16.msra.mxu0 %v5413_v38  ;;  %v444_v1 = vld [vmem:[#allocation2 + $0x40] sm:$0xff]  ;;  %v445_v2 = vld [vmem:[#allocation2 + $0x48] sm:$0xff]  ;;  %v446_v3 = vld [vmem:[#allocation2 + $0x50] sm:$0xff] }
  0x72   : > { %5418 = vmatprep.subr.bf16.mxu0 %v5417_v41  ;;  %v447_v4 = vld [vmem:[#allocation2 + $0x58] sm:$0xff]  ;;  %v448_v5 = vld [vmem:[#allocation2 + $0x60] sm:$0xff]  ;;  %v449_v6 = vld [vmem:[#allocation2 + $0x68] sm:$0xff] }
  0x73   : > { %v450_v7 = vld [vmem:[#allocation2 + $0x70] sm:$0xff]  ;;  %v451_v8 = vld [vmem:[#allocation2 + $0x78] sm:$0xff]  ;;  %v452_v9 = vld [vmem:[#allocation2 + $0x80] sm:$0xff] }
  0x74   : > { %v453_v10 = vld [vmem:[#allocation2 + $0x88] sm:$0xff]  ;;  %v454_v11 = vld [vmem:[#allocation2 + $0x90] sm:$0xff]  ;;  %v455_v12 = vld [vmem:[#allocation2 + $0x98] sm:$0xff] }
  0x75   : > { %5420 = vmatpush3.bf16.msra.mxu0 %v5417_v41  ;;  %v456_v13 = vld [vmem:[#allocation2 + $0xa0] sm:$0xff]  ;;  %v457_v14 = vld [vmem:[#allocation2 + $0xa8] sm:$0xff]  ;;  %v458_v15 = vld [vmem:[#allocation2 + $0xb0] sm:$0xff] }
  0x76   : > { %5422 = vmatprep.subr.bf16.mxu0 %v5421_v45  ;;  %v459_v16 = vld [vmem:[#allocation2 + $0xb8] sm:$0xff]  ;;  %v460_v17 = vld [vmem:[#allocation2 + $0xc0] sm:$0xff]  ;;  %v461_v18 = vld [vmem:[#allocation2 + $0xc8] sm:$0xff] }
  0x77   : > { %v462_v19 = vld [vmem:[#allocation2 + $0xd0] sm:$0xff]  ;;  %v463_v20 = vld [vmem:[#allocation2 + $0xd8] sm:$0xff]  ;;  %v464_v21 = vld [vmem:[#allocation2 + $0xe0] sm:$0xff] }
  0x78   : > { %v465_v22 = vld [vmem:[#allocation2 + $0xe8] sm:$0xff]  ;;  %v466_v23 = vld [vmem:[#allocation2 + $0xf0] sm:$0xff]  ;;  %v467_v24 = vld [vmem:[#allocation2 + $0xf8] sm:$0xff] }
  0x79   : > { %5424 = vmatpush3.bf16.msra.mxu0 %v5421_v45  ;;  %v1021_v25 = vld [vmem:[%s6625_s17 + $0x80] sm:$0xff]  ;;  %v1022_v26 = vld [vmem:[%s6625_s17 + $0x88] sm:$0xff]  ;;  %v1023_v31 = vld [vmem:[%s6625_s17 + $0x90] sm:$0xff] }
  0x7a   : > { %5426 = vmatprep.subr.bf16.mxu0 %v5425_v48  ;;  %v5441_v27 = vpack.c.bf16 %v1022_v26, %v1021_v25  ;;  %v2129_v28 = vld [vmem:[%s6625_s17 + $0x200] sm:$0xff]  ;;  %v2130_v29 = vld [vmem:[%s6625_s17 + $0x208] sm:$0xff]  ;;  %v1024_v32 = vld [vmem:[%s6625_s17 + $0x98] sm:$0xff] }
  0x7b   : > { %v5569_v30 = vpack.c.bf16 %v2130_v29, %v2129_v28  ;;  %v5445_v33 = vpack.c.bf16 %v1024_v32, %v1023_v31  ;;  %v2131_v34 = vld [vmem:[%s6625_s17 + $0x210] sm:$0xff]  ;;  %v2132_v35 = vld [vmem:[%s6625_s17 + $0x218] sm:$0xff]  ;;  %v1025_v36 = vld [vmem:[%s6625_s17 + $0xa0] sm:$0xff] }
  0x7c   : > { %v5573_v37 = vpack.c.bf16 %v2132_v35, %v2131_v34  ;;  %v1026_v38 = vld [vmem:[%s6625_s17 + $0xa8] sm:$0xff]  ;;  %v2133_v40 = vld [vmem:[%s6625_s17 + $0x220] sm:$0xff]  ;;  %v1027_v42 = vld [vmem:[%s6625_s17 + $0xb0] sm:$0xff] }
  0x7d   : > { %5428 = vmatpush3.bf16.msra.mxu0 %v5425_v48  ;;  %5570 = vmatprep.subr.bf16.mxu1 %v5569_v30  ;;  %v5449_v39 = vpack.c.bf16 %v1026_v38, %v1025_v36  ;;  %v2134_v41 = vld [vmem:[%s6625_s17 + $0x228] sm:$0xff]  ;;  %v1028_v44 = vld [vmem:[%s6625_s17 + $0xb8] sm:$0xff]  ;;  %v2135_v46 = vld [vmem:[%s6625_s17 + $0x230] sm:$0xff] }
  0x7e   : > { %5430 = vmatprep.subr.bf16.mxu0 %v5429_v51  ;;  %5572 = vmatpush3.bf16.msra.mxu1 %v5569_v30  ;;  %v5577_v43 = vpack.c.bf16 %v2134_v41, %v2133_v40  ;;  %v5453_v45 = vpack.c.bf16 %v1028_v44, %v1027_v42  ;;  %v2136_v47 = vld [vmem:[%s6625_s17 + $0x238] sm:$0xff]  ;;  %v1029_v48 = vld [vmem:[%s6625_s17 + $0xc0] sm:$0xff]  ;;  %v1030_v50 = vld [vmem:[%s6625_s17 + $0xc8] sm:$0xff] }
  0x7f   : > { %5574 = vmatprep.subr.bf16.mxu1 %v5573_v37  ;;  %v5581_v49 = vpack.c.bf16 %v2136_v47, %v2135_v46  ;;  %v2137_v52 = vld [vmem:[%s6625_s17 + $0x240] sm:$0xff]  ;;  %v2138_v53 = vld [vmem:[%s6625_s17 + $0x248] sm:$0xff]  ;;  %v1032_v56 = vld [vmem:[%s6625_s17 + $0xd8] sm:$0xff] }
  0x80   : > { %v5585_v55 = vpack.c.bf16 %v2138_v53, %v2137_v52  ;;  %v981_v26 = vld [vmem:[%s6625_s17 + $0x40] sm:$0xff]  ;;  %v983_v29 = vld [vmem:[%s6625_s17 + $0x50] sm:$0xff]  ;;  %v984_v30 = vld [vmem:[%s6625_s17 + $0x58] sm:$0xff] }
  0x81   : > { %5432 = vmatpush3.bf16.msra.mxu0 %v5429_v51  ;;  %v5457_v51 = vpack.c.bf16 %v1030_v50, %v1029_v48  ;;  %v5493_v31 = vpack.c.bf16 %v984_v30, %v983_v29  ;;  %v985_v32 = vld [vmem:[%s6625_s17 + $0x60] sm:$0xff]  ;;  %v987_v35 = vld [vmem:[%s6625_s17 + $0x70] sm:$0xff]  ;;  %v988_v36 = vld [vmem:[%s6625_s17 + $0x78] sm:$0xff] }
  0x82   : > { %5434 = vmatprep.subr.bf16.mxu0 %v5433_v54  ;;  %5576 = vmatpush3.bf16.msra.mxu1 %v5573_v37  ;;  %v5501_v37 = vpack.c.bf16 %v988_v36, %v987_v35  ;;  %v6734_v38 = vld [vmem:[%s311_s13] ss:$0 sm:$0xff]  ;;  %v1520_v41 = vld [vmem:[%s6625_s17 + $0x108] sm:$0xff] }
  0x83   : > { %5578 = vmatprep.subr.bf16.mxu1 %v5577_v43  ;;  %v1519_v40 = vld [vmem:[%s6625_s17 + $0x100] sm:$0xff] }
  0x84   : > { %v6741_v44 = vpack.c.bf16 %v1520_v41, %v1519_v40 }
  0x85   : > { %5436 = vmatpush3.bf16.msra.mxu0 %v5433_v54  ;;  %v1031_v54 = vld [vmem:[%s6625_s17 + $0xd0] sm:$0xff] }
  0x86   : > { %5438 = vmatprep.subr.bf16.mxu0 %v5437_v57  ;;  %5580 = vmatpush3.bf16.msra.mxu1 %v5577_v43 }
  0x87   : > { %5582 = vmatprep.subr.bf16.mxu1 %v5581_v49 }
  0x89   : > { %5440 = vmatpush3.bf16.msra.mxu0 %v5437_v57  ;;  %v5461_v57 = vpack.c.bf16 %v1032_v56, %v1031_v54 }
  0x8a   : > { %5442 = vmatprep.subr.bf16.mxu0 %v5441_v27  ;;  %5584 = vmatpush3.bf16.msra.mxu1 %v5581_v49 }
  0x8b   : > { %5586 = vmatprep.subr.bf16.mxu1 %v5585_v55 }
  0x8c   : > { %4642 = vmatmul.mubr.f32.vlgmr.msra.gmra.mrb[0].mxu0 %v437_v58  ;;  %v2139_v58 = vld [vmem:[%s6625_s17 + $0x250] sm:$0xff] }
  0x8d   : > { %4644 = vmatprep.mubr.f32.mxu0 %v438_v59  ;;  %5444 = vmatpush3.bf16.msra.mxu0 %v5441_v27  ;;  %v2140_v59 = vld [vmem:[%s6625_s17 + $0x258] sm:$0xff]  ;;  %v982_v27 = vld [vmem:[%s6625_s17 + $0x48] sm:$0xff] }
  0x8e   : > { %5446 = vmatprep.subr.bf16.mxu0 %v5445_v33  ;;  %5588 = vmatpush3.bf16.msra.mxu1 %v5585_v55  ;;  %v5489_v28 = vpack.c.bf16 %v982_v27, %v981_v26 }
  0x90   : > { %4645 = vmatmul.mubr.f32.gmra.mrb[2].mxu0 %v439_v60  ;;  %v1033_v60 = vld [vmem:[%s6625_s17 + $0xe0] sm:$0xff] }
  0x91   : > { %4647 = vmatprep.mubr.f32.mxu0 %v440_v61  ;;  %5448 = vmatpush3.bf16.msra.mxu0 %v5445_v33  ;;  %v5589_v61 = vpack.c.bf16 %v2140_v59, %v2139_v58  ;;  %v986_v33 = vld [vmem:[%s6625_s17 + $0x68] sm:$0xff] }
  0x92   : > { %5450 = vmatprep.subr.bf16.mxu0 %v5449_v39  ;;  %v5497_v34 = vpack.c.bf16 %v986_v33, %v985_v32 }
  0x93   : > { %5590 = vmatprep.subr.bf16.mxu1 %v5589_v61 }
  0x94   : > { %4648 = vmatmul.mubr.f32.gmra.mrb[4].mxu0 %v441_v62  ;;  %v1034_v62 = vld [vmem:[%s6625_s17 + $0xe8] sm:$0xff]  ;;  %5592 = vmatpush3.bf16.msra.mxu1 %v5589_v61 }
  0x95   : > { %4650 = vmatprep.mubr.f32.mxu0 %v442_v63  ;;  %5452 = vmatpush3.bf16.msra.mxu0 %v5449_v39  ;;  %v5465_v63 = vpack.c.bf16 %v1034_v62, %v1033_v60 }
  0x96   : > { %5454 = vmatprep.subr.bf16.mxu0 %v5453_v45 }
  0x98   : > { %4651 = vmatmul.mubr.f32.gmra.mrb[6].mxu0 %v443_v0  ;;  %v2141_v0 = vld [vmem:[%s6625_s17 + $0x260] sm:$0xff] }
  0x99   : > { %4653 = vmatprep.mubr.f32.mxu0 %v444_v1  ;;  %5456 = vmatpush3.bf16.msra.mxu0 %v5453_v45  ;;  %v2142_v1 = vld [vmem:[%s6625_s17 + $0x268] sm:$0xff] }
  0x9a   : > { %5458 = vmatprep.subr.bf16.mxu0 %v5457_v51 }
  0x9c   : > { %4654 = vmatmul.mubr.f32.gmra.mrb[8].mxu0 %v445_v2  ;;  %v1035_v2 = vld [vmem:[%s6625_s17 + $0xf0] sm:$0xff] }
  0x9d   : > { %4656 = vmatprep.mubr.f32.mxu0 %v446_v3  ;;  %5460 = vmatpush3.bf16.msra.mxu0 %v5457_v51  ;;  %v5593_v3 = vpack.c.bf16 %v2142_v1, %v2141_v0 }
  0x9e   : > { %5462 = vmatprep.subr.bf16.mxu0 %v5461_v57 }
  0x9f   : > { %5594 = vmatprep.subr.bf16.mxu1 %v5593_v3 }
  0xa0   : > { %4657 = vmatmul.mubr.f32.gmra.mrb[10].mxu0 %v447_v4  ;;  %v1036_v4 = vld [vmem:[%s6625_s17 + $0xf8] sm:$0xff]  ;;  %5596 = vmatpush3.bf16.msra.mxu1 %v5593_v3 }
  0xa1   : > { %4659 = vmatprep.mubr.f32.mxu0 %v448_v5  ;;  %5464 = vmatpush3.bf16.msra.mxu0 %v5461_v57  ;;  %v5469_v5 = vpack.c.bf16 %v1036_v4, %v1035_v2 }
  0xa2   : > { %5466 = vmatprep.subr.bf16.mxu0 %v5465_v63 }
  0xa4   : > { %4660 = vmatmul.mubr.f32.gmra.mrb[12].mxu0 %v449_v6  ;;  %v2143_v6 = vld [vmem:[%s6625_s17 + $0x270] sm:$0xff] }
  0xa5   : > { %4662 = vmatprep.mubr.f32.mxu0 %v450_v7  ;;  %5468 = vmatpush3.bf16.msra.mxu0 %v5465_v63  ;;  %v2144_v7 = vld [vmem:[%s6625_s17 + $0x278] sm:$0xff] }
  0xa6   : > { %5470 = vmatprep.subr.bf16.mxu0 %v5469_v5 }
  0xa8   : > { %4663 = vmatmul.mubr.f32.gmra.mrb[14].mxu0 %v451_v8  ;;  %v989_v8 = vld [vmem:[#allocation3 + $0x1] sm:$0xff] }
  0xa9   : > { %4665 = vmatprep.mubr.f32.mxu0 %v452_v9  ;;  %5472 = vmatpush3.bf16.msra.mxu0 %v5469_v5  ;;  %v5597_v9 = vpack.c.bf16 %v2144_v7, %v2143_v6 }
  0xab   : > { %5598 = vmatprep.subr.bf16.mxu1 %v5597_v9 }
  0xac   : > { %4666 = vmatmul.mubr.f32.gmra.mrb[16].mxu0 %v453_v10  ;;  %v990_v10 = vld [vmem:[#allocation3 + $0x9] sm:$0xff]  ;;  %5600 = vmatpush3.bf16.msra.mxu1 %v5597_v9 }
  0xad   : > { %4668 = vmatprep.mubr.f32.mxu0 %v454_v11  ;;  %v973_v11 = vld [vmem:[%s6625_s17] sm:$0xff] }
  0xb0   : > { %4669 = vmatmul.mubr.f32.gmra.mrb[18].mxu0 %v455_v12  ;;  %v974_v12 = vld [vmem:[%s6625_s17 + $0x8] sm:$0xff] }
  0xb1   : > { %4671 = vmatprep.mubr.f32.mxu0 %v456_v13  ;;  %v5473_v13 = vpack.c.bf16 %v974_v12, %v973_v11 }
  0xb3   : > { %5474 = vmatprep.subr.bf16.mxu0 %v5473_v13 }
  0xb4   : > { %4672 = vmatmul.mubr.f32.gmra.mrb[20].mxu0 %v457_v14  ;;  %v2434_v14 = vld [vmem:[%s6625_s17 + $0x280] sm:$0xff] }
  0xb5   : > { %4674 = vmatprep.mubr.f32.mxu0 %v458_v15  ;;  %v2435_v15 = vld [vmem:[%s6625_s17 + $0x288] sm:$0xff] }
  0xb8   : > { %4675 = vmatmul.mubr.f32.gmra.mrb[22].mxu0 %v459_v16  ;;  %v975_v16 = vld [vmem:[%s6625_s17 + $0x10] sm:$0xff] }
  0xb9   : > { %4677 = vmatprep.mubr.f32.mxu0 %v460_v17  ;;  %v6713_v17 = vpack.c.bf16 %v2435_v15, %v2434_v14 }
  0xbb   : > { %5602 = vmatprep.subr.bf16.mxu1 %v6713_v17 }
  0xbc   : > { %4678 = vmatmul.mubr.f32.gmra.mrb[24].mxu0 %v461_v18  ;;  %v976_v18 = vld [vmem:[%s6625_s17 + $0x18] sm:$0xff] }
  0xbd   : > { %4680 = vmatprep.mubr.f32.mxu0 %v462_v19  ;;  %v5477_v19 = vpack.c.bf16 %v976_v18, %v975_v16 }
  0xc0   : > { %4681 = vmatmul.mubr.f32.gmra.mrb[26].mxu0 %v463_v20  ;;  %v977_v20 = vld [vmem:[%s6625_s17 + $0x20] sm:$0xff] }
  0xc1   : > { %4683 = vmatprep.mubr.f32.mxu0 %v464_v21  ;;  %v978_v21 = vld [vmem:[%s6625_s17 + $0x28] sm:$0xff] }
  0xc4   : > { %4684 = vmatmul.mubr.f32.gmra.mrb[28].mxu0 %v465_v22  ;;  %v5481_v22 = vpack.c.bf16 %v978_v21, %v977_v20 }
  0xc5   : > { %4686 = vmatprep.mubr.f32.mxu0 %v466_v23  ;;  %v979_v23 = vld [vmem:[%s6625_s17 + $0x30] sm:$0xff] }
  0xc8   : > { %4687 = vmatmul.mubr.f32.gmra.mrb[30].mxu0 %v467_v24  ;;  %v980_v24 = vld [vmem:[%s6625_s17 + $0x38] sm:$0xff] }
  0xc9   : > { %4721 = vmatprep.mubr.f32.mxu0 %v989_v8  ;;  %v5485_v25 = vpack.c.bf16 %v980_v24, %v979_v23 }
  0xcc   : > { %4722 = vmatmul.mubr.f32.vlgmr.msra.gmra.mrb[32].mxu0 %v990_v10 }
  0xcd   : > { %5476 = vmatpush3.bf16.msra.mxu0 %v5473_v13 }
  0xce   : > { %5478 = vmatprep.subr.bf16.mxu0 %v5477_v19 }
  0xd1   : > { %5480 = vmatpush3.bf16.msra.mxu0 %v5477_v19 }
  0xd2   : > { %5482 = vmatprep.subr.bf16.mxu0 %v5481_v22 }
  0xd5   : > { %5484 = vmatpush3.bf16.msra.mxu0 %v5481_v22 }
  0xd6   : > { %5486 = vmatprep.subr.bf16.mxu0 %v5485_v25 }
  0xd9   : > { %5488 = vmatpush3.bf16.msra.mxu0 %v5485_v25 }
  0xda   : > { %5490 = vmatprep.subr.bf16.mxu0 %v5489_v28 }
  0xdd   : > { %5492 = vmatpush3.bf16.msra.mxu0 %v5489_v28 }
  0xde   : > { %5494 = vmatprep.subr.bf16.mxu0 %v5493_v31 }
  0xe1   : > { %5496 = vmatpush3.bf16.msra.mxu0 %v5493_v31 }
  0xe2   : > { %5498 = vmatprep.subr.bf16.mxu0 %v5497_v34 }
  0xe5   : > { %5500 = vmatpush3.bf16.msra.mxu0 %v5497_v34 }
  0xe6   : > { %5502 = vmatprep.subr.bf16.mxu0 %v5501_v37 }
  0xe9   : > { %5504 = vmatpush3.bf16.msra.mxu0 %v5501_v37 }
  0xea   : > { %5506 = vmatprep.subr.bf16.mxu0 %v6741_v44 }
 0x15f   : > { %v4643_v39 = vpop.f32.mrb[0].mxu0 }
 0x160   : > { %v6739_v42 = vadd.f32 %v4643_v39, %v6734_v38  ;;  %v557_v43 = vpop.f32.mrb[1].mxu0 }
 0x161   : > { %v6744_v45 = vadd.f32 %v6734_v38, %v557_v43 }
 0x162   : > { %v717_v46 = vsub.f32 0.0, %v6739_v42 }
 0x163   : > { %v716_v47 = vsub.f32 0.0, %v6744_v45  ;;  %v4646_v48 = vpop.f32.mrb[2].mxu0 }
 0x164   : > { %v750_v49 = vmul.f32 1.442695, %v717_v46  ;;  %v6750_v50 = vadd.f32 %v4646_v48, %v6734_v38  ;;  %v567_v51 = vpop.f32.mrb[3].mxu0 }
 0x165   : > { %v748_v52 = vmul.f32 1.442695, %v716_v47  ;;  %v6753_v53 = vadd.f32 %v6734_v38, %v567_v51 }
 0x166   : > { %6060 = vpow2.f32 %v750_v49  ;;  %v719_v54 = vsub.f32 0.0, %v6750_v50 }
 0x167   : > { %6062 = vpow2.f32 %v748_v52  ;;  %v718_v55 = vsub.f32 0.0, %v6753_v53  ;;  %v4649_v56 = vpop.f32.mrb[4].mxu0 }
 0x168   : > { %v754_v57 = vmul.f32 1.442695, %v719_v54  ;;  %v6758_v58 = vadd.f32 %v4649_v56, %v6734_v38  ;;  %v577_v59 = vpop.f32.mrb[5].mxu0  ;;  %v2436_v56 = vld [vmem:[%s6625_s17 + $0x290] sm:$0xff] }
 0x169   : > { %v752_v60 = vmul.f32 1.442695, %v718_v55  ;;  %v6761_v61 = vadd.f32 %v6734_v38, %v577_v59 }
 0x16a   : > { %6064 = vpow2.f32 %v754_v57  ;;  %v721_v62 = vsub.f32 0.0, %v6758_v58  ;;  %v2437_v57 = vld [vmem:[%s6625_s17 + $0x298] sm:$0xff] }
 0x16b   : > { %6066 = vpow2.f32 %v752_v60  ;;  %v720_v63 = vsub.f32 0.0, %v6761_v61  ;;  %v4652_v0 = vpop.f32.mrb[6].mxu0 }
 0x16c   : > { %v758_v1 = vmul.f32 1.442695, %v721_v62  ;;  %v6766_v2 = vadd.f32 %v4652_v0, %v6734_v38  ;;  %v587_v3 = vpop.f32.mrb[7].mxu0 }
 0x16d   : > { %v756_v4 = vmul.f32 1.442695, %v720_v63  ;;  %v6769_v5 = vadd.f32 %v6734_v38, %v587_v3 }
 0x16e   : > { %6068 = vpow2.f32 %v758_v1  ;;  %v723_v6 = vsub.f32 0.0, %v6766_v2 }
 0x16f   : > { %6070 = vpow2.f32 %v756_v4  ;;  %v722_v7 = vsub.f32 0.0, %v6769_v5  ;;  %v4655_v8 = vpop.f32.mrb[8].mxu0 }
 0x170   : > { %v6061_v9 = vpop.eup %6060  ;;  %v762_v10 = vmul.f32 1.442695, %v723_v6  ;;  %v6774_v11 = vadd.f32 %v4655_v8, %v6734_v38  ;;  %v597_v12 = vpop.f32.mrb[9].mxu0 }
 0x171   : > { %v6063_v13 = vpop.eup %6062  ;;  %v813_v14 = vadd.f32 1.0, %v6061_v9  ;;  %v760_v15 = vmul.f32 1.442695, %v722_v7  ;;  %v6777_v16 = vadd.f32 %v6734_v38, %v597_v12  ;;  %v5605_v9 = vpack.c.bf16 %v2437_v57, %v2436_v56 }
 0x172   : > { %v812_v18 = vadd.f32 1.0, %v6063_v13  ;;  %6072 = vpow2.f32 %v762_v10  ;;  %v725_v19 = vsub.f32 0.0, %v6774_v11 }
 0x173   : > { %6074 = vrcp.f32 %v813_v14  ;;  %v724_v20 = vsub.f32 0.0, %v6777_v16  ;;  %v4658_v21 = vpop.f32.mrb[10].mxu0 }
 0x174   : > { %v6065_v22 = vpop.eup %6064  ;;  %6076 = vrcp.f32 %v812_v18  ;;  %v766_v23 = vmul.f32 1.442695, %v725_v19  ;;  %v6782_v24 = vadd.f32 %v4658_v21, %v6734_v38  ;;  %v607_v25 = vpop.f32.mrb[11].mxu0  ;;  %v2439_v18 = vld [vmem:[%s6625_s17 + $0x2a8] sm:$0xff] }
 0x175   : > { %v6067_v26 = vpop.eup %6066  ;;  %v815_v27 = vadd.f32 1.0, %v6065_v22  ;;  %6078 = vpow2.f32 %v760_v15  ;;  %v764_v28 = vmul.f32 1.442695, %v724_v20  ;;  %v6785_v29 = vadd.f32 %v6734_v38, %v607_v25  ;;  %v2438_v15 = vld [vmem:[%s6625_s17 + $0x2a0] sm:$0xff] }
 0x176   : > { %v814_v30 = vadd.f32 1.0, %v6067_v26  ;;  %6080 = vpow2.f32 %v766_v23  ;;  %v727_v31 = vsub.f32 0.0, %v6782_v24 }
 0x177   : > { %6082 = vrcp.f32 %v815_v27  ;;  %v726_v32 = vsub.f32 0.0, %v6785_v29  ;;  %v4661_v33 = vpop.f32.mrb[12].mxu0 }
 0x178   : > { %v6069_v34 = vpop.eup %6068  ;;  %6084 = vrcp.f32 %v814_v30  ;;  %v770_v35 = vmul.f32 1.442695, %v727_v31  ;;  %v6790_v36 = vadd.f32 %v4661_v33, %v6734_v38  ;;  %v617_v37 = vpop.f32.mrb[13].mxu0  ;;  %v5609_v31 = vpack.c.bf16 %v2439_v18, %v2438_v15 }
 0x179   : > { %v6071_v39 = vpop.eup %6070  ;;  %v817_v40 = vadd.f32 1.0, %v6069_v34  ;;  %6086 = vpow2.f32 %v764_v28  ;;  %v768_v41 = vmul.f32 1.442695, %v726_v32  ;;  %v6793_v43 = vadd.f32 %v6734_v38, %v617_v37  ;;  %v2440_v37 = vld [vmem:[%s6625_s17 + $0x2b0] sm:$0xff] }
 0x17a   : > { %v816_v46 = vadd.f32 1.0, %v6071_v39  ;;  %6088 = vpow2.f32 %v770_v35  ;;  %v729_v47 = vsub.f32 0.0, %v6790_v36  ;;  %v2441_v39 = vld [vmem:[%s6625_s17 + $0x2b8] sm:$0xff] }
 0x17b   : > { %6090 = vrcp.f32 %v817_v40  ;;  %v728_v48 = vsub.f32 0.0, %v6793_v43  ;;  %v4664_v49 = vpop.f32.mrb[14].mxu0  ;;  %v6834_v56 = vpack.c.bf16 %v2441_v39, %v2440_v37 }
 0x17c   : > { %v6073_v51 = vpop.eup %6072  ;;  %6092 = vrcp.f32 %v816_v46  ;;  %v774_v52 = vmul.f32 1.442695, %v729_v47  ;;  %v6798_v54 = vadd.f32 %v4664_v49, %v6734_v38  ;;  %v627_v55 = vpop.f32.mrb[15].mxu0 }
 0x17d   : > { %v6075_v59 = vpop.eup %6074  ;;  %v819_v60 = vadd.f32 1.0, %v6073_v51  ;;  %6094 = vpow2.f32 %v768_v41  ;;  %v772_v62 = vmul.f32 1.442695, %v728_v48  ;;  %v6803_v63 = vadd.f32 %v6734_v38, %v627_v55 }
 0x17e   : > { %v6077_v0 = vpop.eup %6076  ;;  %v877_v1 = vmul.f32 %v6075_v59, %v6739_v42  ;;  %6096 = vpow2.f32 %v774_v52  ;;  %v731_v3 = vsub.f32 0.0, %v6798_v54 }
 0x17f   : > { %v6079_v4 = vpop.eup %6078  ;;  %v876_v6 = vmul.f32 %v6077_v0, %v6744_v45  ;;  %6098 = vrcp.f32 %v819_v60  ;;  %v730_v7 = vsub.f32 0.0, %v6803_v63  ;;  %v4667_v8 = vpop.f32.mrb[16].mxu0 }
 0x180   : > { %v6081_v10 = vpop.eup %6080  ;;  %910 = vst [vmem:[#allocation3 + $0x21] sm:$0xff] %v877_v1  ;;  %v818_v12 = vadd.f32 1.0, %v6079_v4  ;;  %6100 = vpow2.f32 %v772_v62  ;;  %v778_v13 = vmul.f32 1.442695, %v731_v3  ;;  %v6810_v42 = vadd.f32 %v4667_v8, %v6734_v38  ;;  %v637_v14 = vpop.f32.mrb[17].mxu0 }
 0x181   : > { %v6083_v19 = vpop.eup %6082  ;;  %909 = vst [vmem:[#allocation3 + $0x19] sm:$0xff] %v876_v6  ;;  %v821_v20 = vadd.f32 1.0, %v6081_v10  ;;  %v776_v45 = vmul.f32 1.442695, %v730_v7  ;;  %v6815_v21 = vadd.f32 %v6734_v38, %v637_v14  ;;  %4724 = vmatprep.mubr.f32.mxu0 %v876_v6  ;;  %5041 = vmatprep.mubr.f32.mxu1 %v876_v6 }
 0x182   : > { %v6085_v22 = vpop.eup %6084  ;;  %v879_v23 = vmul.f32 %v6083_v19, %v6750_v50  ;;  %6102 = vrcp.f32 %v818_v12  ;;  %v733_v25 = vsub.f32 0.0, %v6810_v42  ;;  %4725 = vmatmul.mubr.f32.gmra.mrb[34].mxu0 %v877_v1  ;;  %5042 = vmatmul.mubr.f32.vlgmr.msra.gmra.mrb[0].mxu1 %v877_v1  ;;  %v2442_v12 = vld [vmem:[%s6625_s17 + $0x2c0] sm:$0xff] }
 0x183   : > { %v6087_v26 = vpop.eup %6086  ;;  %v878_v27 = vmul.f32 %v6085_v22, %v6753_v53  ;;  %6104 = vrcp.f32 %v821_v20  ;;  %v732_v28 = vsub.f32 0.0, %v6815_v21  ;;  %v4670_v30 = vpop.f32.mrb[18].mxu0  ;;  %5604 = vmatpush3.bf16.msra.mxu1 %v6713_v17 }
 0x184   : > { %v6089_v32 = vpop.eup %6088  ;;  %912 = vst [vmem:[#allocation3 + $0x39] sm:$0xff] %v879_v23  ;;  %v820_v50 = vadd.f32 1.0, %v6087_v26  ;;  %6106 = vpow2.f32 %v778_v13  ;;  %v782_v33 = vmul.f32 1.442695, %v733_v25  ;;  %v6823_v34 = vadd.f32 %v4670_v30, %v6734_v38  ;;  %v647_v35 = vpop.f32.mrb[19].mxu0  ;;  %5606 = vmatprep.subr.bf16.mxu1 %v5605_v9  ;;  %v2443_v13 = vld [vmem:[%s6625_s17 + $0x2c8] sm:$0xff] }
 0x185   : > { %v6091_v53 = vpop.eup %6090  ;;  %911 = vst [vmem:[#allocation3 + $0x31] sm:$0xff] %v878_v27  ;;  %v823_v40 = vadd.f32 1.0, %v6089_v32  ;;  %6108 = vpow2.f32 %v776_v45  ;;  %v780_v41 = vmul.f32 1.442695, %v732_v28  ;;  %v6828_v17 = vadd.f32 %v6734_v38, %v647_v35  ;;  %4727 = vmatprep.mubr.f32.mxu0 %v878_v27  ;;  %5044 = vmatprep.mubr.f32.mxu1 %v878_v27  ;;  %v2444_v32 = vld [vmem:[%s6625_s17 + $0x2d0] sm:$0xff] }
 0x186   : > { %v6093_v46 = vpop.eup %6092  ;;  %v881_v47 = vmul.f32 %v6091_v53, %v6758_v58  ;;  %6110 = vrcp.f32 %v820_v50  ;;  %v735_v48 = vsub.f32 0.0, %v6823_v34  ;;  %4728 = vmatmul.mubr.f32.gmra.mrb[36].mxu0 %v879_v23  ;;  %5045 = vmatmul.mubr.f32.gmra.mrb[2].mxu1 %v879_v23  ;;  %v5617_v27 = vpack.c.bf16 %v2443_v13, %v2442_v12  ;;  %v2445_v50 = vld [vmem:[%s6625_s17 + $0x2d8] sm:$0xff]  ;;  %v2448_v12 = vld [vmem:[%s6625_s17 + $0x2f0] sm:$0xff] }
 0x187   : > { %v6095_v49 = vpop.eup %6094  ;;  %v880_v51 = vmul.f32 %v6093_v46, %v6761_v61  ;;  %6112 = vrcp.f32 %v823_v40  ;;  %v734_v52 = vsub.f32 0.0, %v6828_v17  ;;  %v4673_v55 = vpop.f32.mrb[20].mxu0  ;;  %5608 = vmatpush3.bf16.msra.mxu1 %v5605_v9  ;;  %v2449_v13 = vld [vmem:[%s6625_s17 + $0x2f8] sm:$0xff] }
 0x188   : > { %v6097_v57 = vpop.eup %6096  ;;  %914 = vst [vmem:[#allocation3 + $0x51] sm:$0xff] %v881_v47  ;;  %v822_v59 = vadd.f32 1.0, %v6095_v49  ;;  %6114 = vpow2.f32 %v782_v33  ;;  %v786_v58 = vmul.f32 1.442695, %v735_v48  ;;  %v6837_v60 = vadd.f32 %v4673_v55, %v6734_v38  ;;  %v657_v62 = vpop.f32.mrb[21].mxu0  ;;  %5610 = vmatprep.subr.bf16.mxu1 %v5609_v31 }
 0x189   : > { %v6099_v0 = vpop.eup %6098  ;;  %913 = vst [vmem:[#allocation3 + $0x49] sm:$0xff] %v880_v51  ;;  %v825_v61 = vadd.f32 1.0, %v6097_v57  ;;  %6116 = vpow2.f32 %v780_v41  ;;  %v6840_v1 = vadd.f32 %v6734_v38, %v657_v62  ;;  %4730 = vmatprep.mubr.f32.mxu0 %v880_v51  ;;  %5047 = vmatprep.mubr.f32.mxu1 %v880_v51  ;;  %v784_v6 = vmul.f32 1.442695, %v734_v52 }
 0x18a   : > { %v6101_v3 = vpop.eup %6100  ;;  %v883_v4 = vmul.f32 %v6099_v0, %v6766_v2  ;;  %6118 = vrcp.f32 %v822_v59  ;;  %v737_v7 = vsub.f32 0.0, %v6837_v60  ;;  %4731 = vmatmul.mubr.f32.gmra.mrb[38].mxu0 %v881_v47  ;;  %5048 = vmatmul.mubr.f32.gmra.mrb[4].mxu1 %v881_v47  ;;  %v5621_v51 = vpack.c.bf16 %v2445_v50, %v2444_v32  ;;  %v2446_v0 = vld [vmem:[%s6625_s17 + $0x2e0] sm:$0xff] }
 0x18b   : > { %6120 = vrcp.f32 %v825_v61  ;;  %v824_v8 = vadd.f32 1.0, %v6101_v3  ;;  %v736_v9 = vsub.f32 0.0, %v6840_v1  ;;  %v4676_v10 = vpop.f32.mrb[22].mxu0  ;;  %5612 = vmatpush3.bf16.msra.mxu1 %v5609_v31  ;;  %v2447_v61 = vld [vmem:[%s6625_s17 + $0x2e8] sm:$0xff]  ;;  %v2740_v50 = vld [vmem:[%s6625_s17 + $0x300] sm:$0xff] }
 0x18c   : > { %v6103_v14 = vpop.eup %6102  ;;  %916 = vst [vmem:[#allocation3 + $0x69] sm:$0xff] %v883_v4  ;;  %6122 = vpow2.f32 %v786_v58  ;;  %v790_v15 = vmul.f32 1.442695, %v737_v7  ;;  %v6848_v2 = vadd.f32 %v4676_v10, %v6734_v38  ;;  %v667_v18 = vpop.f32.mrb[23].mxu0  ;;  %5614 = vmatprep.subr.bf16.mxu1 %v6834_v56 }
 0x18d   : > { %v6105_v19 = vpop.eup %6104  ;;  %v882_v20 = vmul.f32 %v6103_v14, %v6769_v5  ;;  %6124 = vrcp.f32 %v824_v8  ;;  %v788_v45 = vmul.f32 1.442695, %v736_v9  ;;  %v6853_v22 = vadd.f32 %v6734_v38, %v667_v18 }
 0x18e   : > { %v6107_v23 = vpop.eup %6106  ;;  %v885_v25 = vmul.f32 %v6105_v19, %v6774_v11  ;;  %6126 = vpow2.f32 %v784_v6  ;;  %v739_v26 = vsub.f32 0.0, %v6848_v2  ;;  %v5625_v19 = vpack.c.bf16 %v2447_v61, %v2446_v0 }
 0x18f   : > { %v6109_v28 = vpop.eup %6108  ;;  %915 = vst [vmem:[#allocation3 + $0x61] sm:$0xff] %v882_v20  ;;  %v827_v30 = vadd.f32 1.0, %v6107_v23  ;;  %6128 = vpow2.f32 %v790_v15  ;;  %v738_v5 = vsub.f32 0.0, %v6853_v22  ;;  %v4679_v31 = vpop.f32.mrb[24].mxu0  ;;  %4733 = vmatprep.mubr.f32.mxu0 %v882_v20  ;;  %5050 = vmatprep.mubr.f32.mxu1 %v882_v20 }
 0x190   : > { %v6111_v33 = vpop.eup %6110  ;;  %918 = vst [vmem:[#allocation3 + $0x81] sm:$0xff] %v885_v25  ;;  %v826_v35 = vadd.f32 1.0, %v6109_v28  ;;  %6130 = vpow2.f32 %v788_v45  ;;  %v794_v11 = vmul.f32 1.442695, %v739_v26  ;;  %v6861_v37 = vadd.f32 %v4679_v31, %v6734_v38  ;;  %v677_v39 = vpop.f32.mrb[25].mxu0  ;;  %4734 = vmatmul.mubr.f32.gmra.mrb[40].mxu0 %v883_v4  ;;  %5051 = vmatmul.mubr.f32.gmra.mrb[6].mxu1 %v883_v4 }
 0x191   : > { %v6113_v53 = vpop.eup %6112  ;;  %v884_v40 = vmul.f32 %v6111_v33, %v6777_v16  ;;  %6132 = vrcp.f32 %v827_v30  ;;  %v792_v41 = vmul.f32 1.442695, %v738_v5  ;;  %v6865_v46 = vadd.f32 %v6734_v38, %v677_v39  ;;  %5616 = vmatpush3.bf16.msra.mxu1 %v6834_v56  ;;  %v2741_v33 = vld [vmem:[%s6625_s17 + $0x308] sm:$0xff] }
 0x192   : > { %v6115_v47 = vpop.eup %6114  ;;  %v887_v48 = vmul.f32 %v6113_v53, %v6782_v24  ;;  %6134 = vrcp.f32 %v826_v35  ;;  %v741_v49 = vsub.f32 0.0, %v6861_v37  ;;  %5618 = vmatprep.subr.bf16.mxu1 %v5617_v27  ;;  %v5629_v30 = vpack.c.bf16 %v2449_v13, %v2448_v12 }
 0x193   : > { %v6117_v52 = vpop.eup %6116  ;;  %917 = vst [vmem:[#allocation3 + $0x79] sm:$0xff] %v884_v40  ;;  %v829_v55 = vadd.f32 1.0, %v6115_v47  ;;  %6136 = vpow2.f32 %v794_v11  ;;  %v740_v16 = vsub.f32 0.0, %v6865_v46  ;;  %v4682_v57 = vpop.f32.mrb[26].mxu0  ;;  %4736 = vmatprep.mubr.f32.mxu0 %v884_v40  ;;  %5053 = vmatprep.mubr.f32.mxu1 %v884_v40 }
 0x194   : > { %v6119_v56 = vpop.eup %6118  ;;  %920 = vst [vmem:[#allocation3 + $0x99] sm:$0xff] %v887_v48  ;;  %v828_v59 = vadd.f32 1.0, %v6117_v52  ;;  %6138 = vpow2.f32 %v792_v41  ;;  %v798_v24 = vmul.f32 1.442695, %v741_v49  ;;  %v6872_v58 = vadd.f32 %v4682_v57, %v6734_v38  ;;  %v687_v62 = vpop.f32.mrb[27].mxu0  ;;  %4737 = vmatmul.mubr.f32.gmra.mrb[42].mxu0 %v885_v25  ;;  %5054 = vmatmul.mubr.f32.gmra.mrb[8].mxu1 %v885_v25 }
 0x195   : > { %v6121_v3 = vpop.eup %6120  ;;  %v886_v4 = vmul.f32 %v6119_v56, %v6785_v29  ;;  %6140 = vrcp.f32 %v829_v55  ;;  %v796_v6 = vmul.f32 1.442695, %v740_v16  ;;  %v6878_v7 = vadd.f32 %v6734_v38, %v687_v62  ;;  %5620 = vmatpush3.bf16.msra.mxu1 %v5617_v27 }
 0x196   : > { %v6123_v8 = vpop.eup %6122  ;;  %v889_v9 = vmul.f32 %v6121_v3, %v6790_v36  ;;  %6142 = vrcp.f32 %v828_v59  ;;  %v743_v10 = vsub.f32 0.0, %v6872_v58  ;;  %5622 = vmatprep.subr.bf16.mxu1 %v5621_v51  ;;  %v6904_v16 = vpack.c.bf16 %v2741_v33, %v2740_v50 }
 0x197   : > { %v6125_v14 = vpop.eup %6124  ;;  %919 = vst [vmem:[#allocation3 + $0x91] sm:$0xff] %v886_v4  ;;  %v831_v15 = vadd.f32 1.0, %v6123_v8  ;;  %6144 = vpow2.f32 %v798_v24  ;;  %v742_v29 = vsub.f32 0.0, %v6878_v7  ;;  %v4685_v18 = vpop.f32.mrb[28].mxu0  ;;  %4739 = vmatprep.mubr.f32.mxu0 %v886_v4  ;;  %5056 = vmatprep.mubr.f32.mxu1 %v886_v4 }
 0x198   : > { %v6127_v20 = vpop.eup %6126  ;;  %922 = vst [vmem:[#allocation3 + $0xb1] sm:$0xff] %v889_v9  ;;  %v888_v36 = vmul.f32 %v6125_v14, %v6793_v43  ;;  %6146 = vpow2.f32 %v796_v6  ;;  %v802_v45 = vmul.f32 1.442695, %v743_v10  ;;  %v6887_v23 = vadd.f32 %v4685_v18, %v6734_v38  ;;  %v697_v25 = vpop.f32.mrb[29].mxu0  ;;  %4740 = vmatmul.mubr.f32.gmra.mrb[44].mxu0 %v887_v48  ;;  %5057 = vmatmul.mubr.f32.gmra.mrb[10].mxu1 %v887_v48 }
 0x199   : > { %v6129_v26 = vpop.eup %6128  ;;  %6148 = vrcp.f32 %v831_v15  ;;  %v830_v27 = vadd.f32 1.0, %v6127_v20  ;;  %v6890_v28 = vadd.f32 %v6734_v38, %v697_v25  ;;  %5624 = vmatpush3.bf16.msra.mxu1 %v5621_v51  ;;  %v800_v31 = vmul.f32 1.442695, %v742_v29 }
 0x19a   : > { %v6131_v5 = vpop.eup %6130  ;;  %921 = vst [vmem:[#allocation3 + $0xa9] sm:$0xff] %v888_v36  ;;  %v833_v43 = vadd.f32 1.0, %v6129_v26  ;;  %6150 = vpow2.f32 %v802_v45  ;;  %v745_v32 = vsub.f32 0.0, %v6887_v23  ;;  %4742 = vmatprep.mubr.f32.mxu0 %v888_v36  ;;  %5059 = vmatprep.mubr.f32.mxu1 %v888_v36 }
 0x19b   : > { %v6133_v35 = vpop.eup %6132  ;;  %6152 = vrcp.f32 %v830_v27  ;;  %v832_v11 = vadd.f32 1.0, %v6131_v5  ;;  %v744_v39 = vsub.f32 0.0, %v6890_v28  ;;  %v4688_v53 = vpop.f32.mrb[30].mxu0  ;;  %5626 = vmatprep.subr.bf16.mxu1 %v5625_v19 }
 0x19c   : > { %v6135_v40 = vpop.eup %6134  ;;  %v891_v41 = vmul.f32 %v6133_v35, %v6798_v54  ;;  %6154 = vrcp.f32 %v833_v43  ;;  %v806_v47 = vmul.f32 1.442695, %v745_v32  ;;  %v6898_v48 = vadd.f32 %v4688_v53, %v6734_v38  ;;  %v707_v49 = vpop.f32.mrb[31].mxu0  ;;  %4743 = vmatmul.mubr.f32.gmra.mrb[46].mxu0 %v889_v9  ;;  %5060 = vmatmul.mubr.f32.gmra.mrb[12].mxu1 %v889_v9 }
 0x19d   : > { %v6137_v51 = vpop.eup %6136  ;;  %v890_v52 = vmul.f32 %v6135_v40, %v6803_v63  ;;  %6156 = vrcp.f32 %v832_v11  ;;  %v6902_v55 = vadd.f32 %v6734_v38, %v707_v49  ;;  %5628 = vmatpush3.bf16.msra.mxu1 %v5625_v19  ;;  %v804_v56 = vmul.f32 1.442695, %v744_v39  ;;  %v941_v49 = vld [vmem:[#allocation3] sm:$0xff] }
 0x19e   : > { %v6139_v57 = vpop.eup %6138  ;;  %924 = vst [vmem:[#allocation3 + $0xc9] sm:$0xff] %v891_v41  ;;  %v835_v54 = vadd.f32 1.0, %v6137_v51  ;;  %6158 = vpow2.f32 %v800_v31  ;;  %v747_v59 = vsub.f32 0.0, %v6898_v48  ;;  %5630 = vmatprep.subr.bf16.mxu1 %v5629_v30  ;;  %v1522_v51 = vld [vmem:[%s6625_s17 + $0x118] sm:$0xff] }
 0x19f   : > { %v6141_v24 = vpop.eup %6140  ;;  %923 = vst [vmem:[#allocation3 + $0xc1] sm:$0xff] %v890_v52  ;;  %v834_v62 = vadd.f32 1.0, %v6139_v57  ;;  %6160 = vpow2.f32 %v806_v47  ;;  %v746_v63 = vsub.f32 0.0, %v6902_v55  ;;  %4745 = vmatprep.mubr.f32.mxu0 %v890_v52  ;;  %5062 = vmatprep.mubr.f32.mxu1 %v890_v52  ;;  %v942_v57 = vld [vmem:[#allocation3 + $0x8] sm:$0xff] }
 0x1a0   : > { %v6143_v38 = vpop.eup %6142  ;;  %v893_v0 = vmul.f32 %v6141_v24, %v6810_v42  ;;  %6162 = vrcp.f32 %v835_v54  ;;  %v810_v61 = vmul.f32 1.442695, %v747_v59  ;;  %4746 = vmatmul.mubr.f32.gmra.mrb[48].mxu0 %v891_v41  ;;  %5063 = vmatmul.mubr.f32.gmra.mrb[14].mxu1 %v891_v41  ;;  %v6931_v59 = vld [vmem:[#allocation3 + $0x1a] sm:$0xff] }
 0x1a1   : > { %v6145_v3 = vpop.eup %6144  ;;  %v892_v4 = vmul.f32 %v6143_v38, %v6815_v21  ;;  %6164 = vrcp.f32 %v834_v62  ;;  %5632 = vmatpush3.bf16.msra.mxu1 %v5629_v30  ;;  %v808_v9 = vmul.f32 1.442695, %v746_v63  ;;  %v1523_v24 = vld [vmem:[%s6625_s17 + $0x120] sm:$0xff]  ;;  %v1524_v38 = vld [vmem:[%s6625_s17 + $0x128] sm:$0xff] }
 0x1a2   : > { %v6147_v6 = vpop.eup %6146  ;;  %926 = vst [vmem:[#allocation3 + $0xe1] sm:$0xff] %v893_v0  ;;  %v837_v8 = vadd.f32 1.0, %v6145_v3  ;;  %6166 = vpow2.f32 %v804_v56  ;;  %5634 = vmatprep.subr.bf16.mxu1 %v6904_v16  ;;  %v6929_v56 = vld [vmem:[#allocation3 + $0x18] sm:$0xff]  ;;  %v6937_v62 = vld [vmem:[#allocation3 + $0x20] sm:$0xff]  ;;  %v2745_v3 = vld [vmem:[%s6625_s17 + $0x328] sm:$0xff] }
 0x1a3   : > { %v6149_v10 = vpop.eup %6148  ;;  %925 = vst [vmem:[#allocation3 + $0xd9] sm:$0xff] %v892_v4  ;;  %v836_v12 = vadd.f32 1.0, %v6147_v6  ;;  %6168 = vpow2.f32 %v810_v61  ;;  %4748 = vmatprep.mubr.f32.mxu0 %v892_v4  ;;  %5065 = vmatprep.mubr.f32.mxu1 %v892_v4  ;;  %7631 = vst [vmem:[#allocation8_spill] sm:$0xff] %v6929_v56  ;;  %v6939_v63 = vld [vmem:[#allocation3 + $0x22] sm:$0xff]  ;;  %v2746_v4 = vld [vmem:[%s6625_s17 + $0x330] sm:$0xff]  ;;  %v5513_v6 = vpack.c.bf16 %v1524_v38, %v1523_v24 }
 0x1a4   : > { %v6151_v42 = vpop.eup %6150  ;;  %v895_v13 = vmul.f32 %v6149_v10, %v6823_v34  ;;  %6170 = vrcp.f32 %v837_v8  ;;  %4749 = vmatmul.mubr.f32.gmra.mrb[50].mxu0 %v893_v0  ;;  %5066 = vmatmul.mubr.f32.gmra.mrb[16].mxu1 %v893_v0  ;;  %7632 = vst [vmem:[#allocation9_spill] sm:$0xff] %v6937_v62  ;;  %v6944_v0 = vld [vmem:[#allocation3 + $0x30] sm:$0xff]  ;;  %v2744_v61 = vld [vmem:[%s6625_s17 + $0x320] sm:$0xff] }
 0x1a5   : > { %v6153_v21 = vpop.eup %6152  ;;  %6172 = vrcp.f32 %v836_v12  ;;  %v839_v14 = vadd.f32 1.0, %v6151_v42  ;;  %v1525_v8 = vld [vmem:[%s6625_s17 + $0x130] sm:$0xff]  ;;  %v6957_v10 = vld [vmem:[#allocation3 + $0x3a] sm:$0xff]  ;;  %v5641_v12 = vpack.c.bf16 %v2745_v3, %v2744_v61  ;;  %v6962_v42 = vld [vmem:[#allocation3 + $0x48] sm:$0xff] }
 0x1a6   : > { %v6155_v15 = vpop.eup %6154  ;;  %928 = vst [vmem:[#allocation3 + $0xf9] sm:$0xff] %v895_v13  ;;  %v894_v29 = vmul.f32 %v6153_v21, %v6828_v17  ;;  %6174 = vpow2.f32 %v808_v9  ;;  %v6955_v9 = vld [vmem:[#allocation3 + $0x38] sm:$0xff]  ;;  %v1824_v38 = vld [vmem:[%s6625_s17 + $0x180] sm:$0xff]  ;;  %v1825_v61 = vld [vmem:[%s6625_s17 + $0x188] sm:$0xff] }
 0x1a7   : > { %v6157_v18 = vpop.eup %6156  ;;  %v897_v19 = vmul.f32 %v6155_v15, %v6837_v60  ;;  %6176 = vrcp.f32 %v839_v14  ;;  %v2747_v21 = vld [vmem:[%s6625_s17 + $0x338] sm:$0xff]  ;;  %v2748_v14 = vld [vmem:[%s6625_s17 + $0x340] sm:$0xff] }
 0x1a8   : > { %v6159_v20 = vpop.eup %6158  ;;  %927 = vst [vmem:[#allocation3 + $0xf1] sm:$0xff] %v894_v29  ;;  %v896_v36 = vmul.f32 %v6157_v18, %v6840_v1  ;;  %4751 = vmatprep.mubr.f32.mxu0 %v894_v29  ;;  %5068 = vmatprep.mubr.f32.mxu1 %v894_v29  ;;  %v1527_v29 = vld [vmem:[%s6625_s17 + $0x140] sm:$0xff]  ;;  %v6971_v18 = vld [vmem:[#allocation3 + $0x50] sm:$0xff] }
 0x1a9   : > { %v6161_v34 = vpop.eup %6160  ;;  %930 = vst [vmem:[#allocation3 + $0x111] sm:$0xff] %v897_v19  ;;  %v838_v45 = vadd.f32 1.0, %v6159_v20  ;;  %4752 = vmatmul.mubr.f32.gmra.mrb[52].mxu0 %v895_v13  ;;  %5069 = vmatmul.mubr.f32.gmra.mrb[18].mxu1 %v895_v13  ;;  %v6964_v13 = vld [vmem:[#allocation3 + $0x4a] sm:$0xff]  ;;  %v5645_v20 = vpack.c.bf16 %v2747_v21, %v2746_v4  ;;  %v7042_v3 = vld [vmem:[#allocation3 + $0xc0] sm:$0xff] }
 0x1aa   : > { %v6163_v25 = vpop.eup %6162  ;;  %929 = vst [vmem:[#allocation3 + $0x109] sm:$0xff] %v896_v36  ;;  %v841_v26 = vadd.f32 1.0, %v6161_v34  ;;  %4754 = vmatprep.mubr.f32.mxu0 %v896_v36  ;;  %5071 = vmatprep.mubr.f32.mxu1 %v896_v36  ;;  %v1528_v36 = vld [vmem:[%s6625_s17 + $0x148] sm:$0xff]  ;;  %v6978_v34 = vld [vmem:[#allocation3 + $0x60] sm:$0xff] }
 0x1ab   : > { %v6165_v17 = vpop.eup %6164  ;;  %v899_v60 = vmul.f32 %v6163_v25, %v6848_v2  ;;  %6178 = vrcp.f32 %v838_v45  ;;  %v6980_v45 = vld [vmem:[#allocation3 + $0x62] sm:$0xff] }
 0x1ac   : > { %v6167_v27 = vpop.eup %6166  ;;  %v898_v30 = vmul.f32 %v6165_v17, %v6853_v22  ;;  %6180 = vrcp.f32 %v841_v26  ;;  %v2749_v25 = vld [vmem:[%s6625_s17 + $0x348] sm:$0xff]  ;;  %v2750_v26 = vld [vmem:[%s6625_s17 + $0x350] sm:$0xff]  ;;  %v5521_v17 = vpack.c.bf16 %v1528_v36, %v1527_v29  ;;  %v7066_v29 = vld [vmem:[#allocation3 + $0xe0] sm:$0xff] }
 0x1ad   : > { %v6169_v1 = vpop.eup %6168  ;;  %932 = vst [vmem:[#allocation3 + $0x129] sm:$0xff] %v899_v60  ;;  %v840_v5 = vadd.f32 1.0, %v6167_v27  ;;  %4755 = vmatmul.mubr.f32.gmra.mrb[54].mxu0 %v897_v19  ;;  %5072 = vmatmul.mubr.f32.gmra.mrb[20].mxu1 %v897_v19  ;;  %v6973_v19 = vld [vmem:[#allocation3 + $0x52] sm:$0xff]  ;;  %v6987_v27 = vld [vmem:[#allocation3 + $0x68] sm:$0xff] }
 0x1ae   : > { %v6171_v43 = vpop.eup %6170  ;;  %931 = vst [vmem:[#allocation3 + $0x121] sm:$0xff] %v898_v30  ;;  %v843_v31 = vadd.f32 1.0, %v6169_v1  ;;  %4757 = vmatprep.mubr.f32.mxu0 %v898_v30  ;;  %5074 = vmatprep.mubr.f32.mxu1 %v898_v30  ;;  %v6989_v30 = vld [vmem:[#allocation3 + $0x6a] sm:$0xff]  ;;  %v5649_v1 = vpack.c.bf16 %v2749_v25, %v2748_v14  ;;  %v7044_v4 = vld [vmem:[#allocation3 + $0xc2] sm:$0xff]  ;;  %v7059_v14 = vld [vmem:[#allocation3 + $0xd8] sm:$0xff] }
 0x1af   : > { %v6173_v32 = vpop.eup %6172  ;;  %v901_v50 = vmul.f32 %v6171_v43, %v6861_v37  ;;  %6182 = vrcp.f32 %v840_v5  ;;  %v1530_v5 = vld [vmem:[%s6625_s17 + $0x158] sm:$0xff]  ;;  %v7073_v36 = vld [vmem:[#allocation3 + $0xf0] sm:$0xff] }
 0x1b0   : > { %v6175_v2 = vpop.eup %6174  ;;  %v900_v33 = vmul.f32 %v6173_v32, %v6865_v46  ;;  %6184 = vrcp.f32 %v843_v31  ;;  %v6994_v43 = vld [vmem:[#allocation3 + $0x78] sm:$0xff] }
 0x1b1   : > { %v6177_v22 = vpop.eup %6176  ;;  %934 = vst [vmem:[#allocation3 + $0x141] sm:$0xff] %v901_v50  ;;  %v842_v35 = vadd.f32 1.0, %v6175_v2  ;;  %4758 = vmatmul.mubr.f32.gmra.mrb[56].mxu0 %v899_v60  ;;  %5075 = vmatmul.mubr.f32.gmra.mrb[22].mxu1 %v899_v60  ;;  %v1529_v60 = vld [vmem:[%s6625_s17 + $0x150] sm:$0xff]  ;;  %v6996_v31 = vld [vmem:[#allocation3 + $0x7a] sm:$0xff] }
 0x1b2   : > { %933 = vst [vmem:[#allocation3 + $0x139] sm:$0xff] %v900_v33  ;;  %v903_v11 = vmul.f32 %v6177_v22, %v6872_v58  ;;  %4760 = vmatprep.mubr.f32.mxu0 %v900_v33  ;;  %5077 = vmatprep.mubr.f32.mxu1 %v900_v33  ;;  %v2751_v32 = vld [vmem:[%s6625_s17 + $0x358] sm:$0xff]  ;;  %v5525_v2 = vpack.c.bf16 %v1530_v5, %v1529_v60  ;;  %v1531_v33 = vld [vmem:[%s6625_s17 + $0x160] sm:$0xff]  ;;  %v7085_v60 = vld [vmem:[#allocation3 + $0x108] sm:$0xff] }
 0x1b3   : > { %6186 = vrcp.f32 %v842_v35  ;;  %v7003_v22 = vld [vmem:[#allocation3 + $0x80] sm:$0xff]  ;;  %v7075_v25 = vld [vmem:[#allocation3 + $0xf2] sm:$0xff] }
 0x1b4   : > { %936 = vst [vmem:[#allocation3 + $0x159] sm:$0xff] %v903_v11  ;;  %v7005_v35 = vld [vmem:[#allocation3 + $0x82] sm:$0xff]  ;;  %v7091_v5 = vld [vmem:[#allocation3 + $0x110] sm:$0xff] }
 0x1b5   : > { %v6179_v39 = vpop.eup %6178  ;;  %4761 = vmatmul.mubr.f32.gmra.mrb[58].mxu0 %v901_v50  ;;  %5078 = vmatmul.mubr.f32.gmra.mrb[24].mxu1 %v901_v50  ;;  %v2752_v50 = vld [vmem:[%s6625_s17 + $0x360] sm:$0xff] }
 0x1b6   : > { %v6181_v37 = vpop.eup %6180  ;;  %v902_v53 = vmul.f32 %v6179_v39, %v6878_v7  ;;  %v1532_v39 = vld [vmem:[%s6625_s17 + $0x168] sm:$0xff] }
 0x1b7   : > { %v905_v46 = vmul.f32 %v6181_v37, %v6887_v23  ;;  %v1521_v23 = vld [vmem:[%s6625_s17 + $0x110] sm:$0xff] }
 0x1b8   : > { %935 = vst [vmem:[#allocation3 + $0x151] sm:$0xff] %v902_v53  ;;  %4763 = vmatprep.mubr.f32.mxu0 %v902_v53  ;;  %5080 = vmatprep.mubr.f32.mxu1 %v902_v53  ;;  %v5509_v54 = vpack.c.bf16 %v1522_v51, %v1521_v23  ;;  %v7010_v37 = vld [vmem:[#allocation3 + $0x90] sm:$0xff]  ;;  %v1534_v23 = vld [vmem:[%s6625_s17 + $0x178] sm:$0xff]  ;;  %v7026_v51 = vld [vmem:[#allocation3 + $0xa8] sm:$0xff] }
 0x1b9   : > { %v6183_v40 = vpop.eup %6182  ;;  %938 = vst [vmem:[#allocation3 + $0x171] sm:$0xff] %v905_v46  ;;  %4764 = vmatmul.mubr.f32.gmra.mrb[60].mxu0 %v903_v11  ;;  %5081 = vmatmul.mubr.f32.gmra.mrb[26].mxu1 %v903_v11  ;;  %v5653_v11 = vpack.c.bf16 %v2751_v32, %v2750_v26  ;;  %v7012_v53 = vld [vmem:[#allocation3 + $0x92] sm:$0xff] }
 0x1ba   : > { %v6185_v58 = vpop.eup %6184  ;;  %v904_v41 = vmul.f32 %v6183_v40, %v6890_v28  ;;  %v2742_v28 = vld [vmem:[%s6625_s17 + $0x310] sm:$0xff]  ;;  %v5529_v40 = vpack.c.bf16 %v1532_v39, %v1531_v33  ;;  %v7079_v26 = vld [vmem:[#allocation3 + $0xf8] sm:$0xff]  ;;  %v7103_v33 = vld [vmem:[#allocation3 + $0x128] sm:$0xff] }
 0x1bb   : > { %v907_v47 = vmul.f32 %v6185_v58, %v6898_v48  ;;  %v2743_v48 = vld [vmem:[%s6625_s17 + $0x318] sm:$0xff]  ;;  %v2754_v58 = vld [vmem:[%s6625_s17 + $0x370] sm:$0xff] }
 0x1bc   : > { %937 = vst [vmem:[#allocation3 + $0x169] sm:$0xff] %v904_v41  ;;  %4766 = vmatprep.mubr.f32.mxu0 %v904_v41  ;;  %5083 = vmatprep.mubr.f32.mxu1 %v904_v41  ;;  %v1533_v41 = vld [vmem:[%s6625_s17 + $0x170] sm:$0xff]  ;;  %v7109_v39 = vld [vmem:[#allocation3 + $0x138] sm:$0xff] }
 0x1bd   : > { %v6187_v7 = vpop.eup %6186  ;;  %940 = vst [vmem:[#allocation3 + $0x189] sm:$0xff] %v907_v47  ;;  %4767 = vmatmul.mubr.f32.gmra.mrb[62].mxu0 %v905_v46  ;;  %5084 = vmatmul.mubr.f32.gmra.mrb[28].mxu1 %v905_v46  ;;  %v2753_v46 = vld [vmem:[%s6625_s17 + $0x368] sm:$0xff]  ;;  %v7093_v32 = vld [vmem:[#allocation3 + $0x112] sm:$0xff] }
 0x1be   : > { %v906_v52 = vmul.f32 %v6187_v7, %v6902_v55  ;;  %4801 = vmatprep.mubr.f32.mxu0 %v941_v49  ;;  %v5637_v55 = vpack.c.bf16 %v2743_v48, %v2742_v28  ;;  %v7021_v49 = vld [vmem:[#allocation3 + $0x9a] sm:$0xff]  ;;  %v5657_v7 = vpack.c.bf16 %v2753_v46, %v2752_v50  ;;  %v7033_v28 = vld [vmem:[#allocation3 + $0xb2] sm:$0xff]  ;;  %v5533_v48 = vpack.c.bf16 %v1534_v23, %v1533_v41 }
 0x1bf   : > { %v7097_v50 = vld [vmem:[#allocation3 + $0x120] sm:$0xff]  ;;  %v7121_v41 = vld [vmem:[#allocation3 + $0x150] sm:$0xff]  ;;  %v7127_v23 = vld [vmem:[#allocation3 + $0x158] sm:$0xff] }
 0x1c0   : > { %939 = vst [vmem:[#allocation3 + $0x181] sm:$0xff] %v906_v52  ;;  %5086 = vmatprep.mubr.f32.mxu1 %v906_v52  ;;  %v7028_v52 = vld [vmem:[#allocation3 + $0xaa] sm:$0xff]  ;;  %v7111_v46 = vld [vmem:[#allocation3 + $0x13a] sm:$0xff]  ;;  %7634 = vst [vmem:[#allocation11_spill] sm:$0xff] %v7127_v23 }
 0x1c1   : > { %4802 = vmatmul.mubr.f32.vlgmr.msra.gmra.mrb[32].mxu0 %v942_v57  ;;  %5087 = vmatmul.mubr.f32.gmra.mrb[30].mxu1 %v907_v47  ;;  %v7019_v47 = vld [vmem:[#allocation3 + $0x98] sm:$0xff] }
 0x1c2   : > { %4804 = vmatprep.mubr.f32.mxu0 %v6929_v56  ;;  %5121 = vmatprep.mubr.f32.mxu1 %v6931_v59  ;;  %v2755_v57 = vld [vmem:[%s6625_s17 + $0x378] sm:$0xff] }
 0x1c3   : > { %5508 = vmatpush3.bf16.msra.mxu0 %v6741_v44  ;;  %v6950_v44 = vld [vmem:[#allocation3 + $0x32] sm:$0xff]  ;;  %v5661_v24 = vpack.c.bf16 %v2755_v57, %v2754_v58  ;;  %v7117_v58 = vld [vmem:[#allocation3 + $0x142] sm:$0xff]  ;;  %v7129_v57 = vld [vmem:[#allocation3 + $0x15a] sm:$0xff] }
 0x1c4   : > { %5510 = vmatprep.subr.bf16.mxu0 %v5509_v54  ;;  %7635 = vst [vmem:[#allocation12_spill] sm:$0xff] %v7129_v57  ;;  %v1827_v56 = vld [vmem:[%s6625_s17 + $0x198] sm:$0xff] }
 0x1c5   : > { %4805 = vmatmul.mubr.f32.gmra.mrb[34].mxu0 %v6937_v62  ;;  %5122 = vmatmul.mubr.f32.vlgmr.msra.gmra.mrb[0].mxu1 %v6939_v63  ;;  %v1826_v62 = vld [vmem:[%s6625_s17 + $0x190] sm:$0xff] }
 0x1c6   : > { %5636 = vmatpush3.bf16.msra.mxu1 %v6904_v16  ;;  %4807 = vmatprep.mubr.f32.mxu0 %v6944_v0  ;;  %v1526_v16 = vld [vmem:[%s6625_s17 + $0x138] sm:$0xff] }
 0x1c7   : > { %5124 = vmatprep.mubr.f32.mxu1 %v6950_v44  ;;  %5638 = vmatprep.subr.bf16.mxu1 %v5637_v55  ;;  %v5517_v15 = vpack.c.bf16 %v1526_v16, %v1525_v8  ;;  %v7049_v8 = vpack.c.bf16 %v1825_v61, %v1824_v38  ;;  %v7053_v16 = vld [vmem:[#allocation3 + $0xca] sm:$0xff]  ;;  %v7141_v61 = vld [vmem:[#allocation3 + $0x172] sm:$0xff] }
 0x1c8   : > { %5512 = vmatpush3.bf16.msra.mxu0 %v5509_v54  ;;  %v3045_v54 = vld [vmem:[%s6625_s17 + $0x380] sm:$0xff]  ;;  %v7139_v38 = vld [vmem:[#allocation3 + $0x170] sm:$0xff]  ;;  %7638 = vst [vmem:[#allocation15_spill] sm:$0xff] %v7141_v61 }
 0x1c9   : > { %4808 = vmatmul.mubr.f32.gmra.mrb[36].mxu0 %v6955_v9  ;;  %5125 = vmatmul.mubr.f32.gmra.mrb[2].mxu1 %v6957_v10 }
 0x1ca   : > { %4810 = vmatprep.mubr.f32.mxu0 %v6962_v42  ;;  %5127 = vmatprep.mubr.f32.mxu1 %v6964_v13 }
 0x1cb   : > { %5640 = vmatpush3.bf16.msra.mxu1 %v5637_v55  ;;  %5514 = vmatprep.subr.bf16.mxu0 %v5513_v6  ;;  %v7036_v55 = vld [vmem:[#allocation3 + $0xb0] sm:$0xff] }
 0x1cc   : > { %5642 = vmatprep.subr.bf16.mxu1 %v5641_v12  ;;  %5516 = vmatpush3.bf16.msra.mxu0 %v5513_v6  ;;  %v3046_v6 = vld [vmem:[%s6625_s17 + $0x388] sm:$0xff] }
 0x1cd   : > { %4811 = vmatmul.mubr.f32.gmra.mrb[38].mxu0 %v6971_v18  ;;  %5128 = vmatmul.mubr.f32.gmra.mrb[4].mxu1 %v6973_v19  ;;  %v7055_v21 = vpack.c.bf16 %v3046_v6, %v3045_v54  ;;  %v7135_v54 = vld [vmem:[#allocation3 + $0x16a] sm:$0xff]  ;;  %v7145_v6 = vld [vmem:[#allocation3 + $0x182] sm:$0xff] }
 0x1ce   : > { %4813 = vmatprep.mubr.f32.mxu0 %v6978_v34  ;;  %5130 = vmatprep.mubr.f32.mxu1 %v6980_v45  ;;  %7637 = vst [vmem:[#allocation14_spill] sm:$0xff] %v7135_v54  ;;  %7639 = vst [vmem:[#allocation16_spill] sm:$0xff] %v7145_v6 }
 0x1cf   : > { %5644 = vmatpush3.bf16.msra.mxu1 %v5641_v12  ;;  %5518 = vmatprep.subr.bf16.mxu0 %v5517_v15  ;;  %v7051_v12 = vld [vmem:[#allocation3 + $0xc8] sm:$0xff] }
 0x1d0   : > { %5646 = vmatprep.subr.bf16.mxu1 %v5645_v20  ;;  %5520 = vmatpush3.bf16.msra.mxu0 %v5517_v15  ;;  %v7061_v15 = vld [vmem:[#allocation3 + $0xda] sm:$0xff] }
 0x1d1   : > { %4814 = vmatmul.mubr.f32.gmra.mrb[40].mxu0 %v6987_v27  ;;  %5131 = vmatmul.mubr.f32.gmra.mrb[6].mxu1 %v6989_v30 }
 0x1d2   : > { %4816 = vmatprep.mubr.f32.mxu0 %v6994_v43  ;;  %5133 = vmatprep.mubr.f32.mxu1 %v6996_v31 }
 0x1d3   : > { %5648 = vmatpush3.bf16.msra.mxu1 %v5645_v20  ;;  %5522 = vmatprep.subr.bf16.mxu0 %v5521_v17  ;;  %v7068_v20 = vld [vmem:[#allocation3 + $0xe2] sm:$0xff] }
 0x1d4   : > { %5650 = vmatprep.subr.bf16.mxu1 %v5649_v1  ;;  %5524 = vmatpush3.bf16.msra.mxu0 %v5521_v17  ;;  %v7081_v17 = vld [vmem:[#allocation3 + $0xfa] sm:$0xff] }
 0x1d5   : > { %4817 = vmatmul.mubr.f32.gmra.mrb[42].mxu0 %v7003_v22  ;;  %5134 = vmatmul.mubr.f32.gmra.mrb[8].mxu1 %v7005_v35 }
 0x1d6   : > { %4819 = vmatprep.mubr.f32.mxu0 %v7010_v37  ;;  %5136 = vmatprep.mubr.f32.mxu1 %v7012_v53 }
 0x1d7   : > { %5652 = vmatpush3.bf16.msra.mxu1 %v5649_v1  ;;  %5526 = vmatprep.subr.bf16.mxu0 %v5525_v2  ;;  %v7087_v1 = vld [vmem:[#allocation3 + $0x10a] sm:$0xff] }
 0x1d8   : > { %5654 = vmatprep.subr.bf16.mxu1 %v5653_v11  ;;  %5528 = vmatpush3.bf16.msra.mxu0 %v5525_v2  ;;  %v7099_v2 = vld [vmem:[#allocation3 + $0x122] sm:$0xff] }
 0x1d9   : > { %4820 = vmatmul.mubr.f32.gmra.mrb[44].mxu0 %v7019_v47  ;;  %5137 = vmatmul.mubr.f32.gmra.mrb[10].mxu1 %v7021_v49 }
 0x1da   : > { %4822 = vmatprep.mubr.f32.mxu0 %v7026_v51  ;;  %5139 = vmatprep.mubr.f32.mxu1 %v7028_v52 }
 0x1db   : > { %5656 = vmatpush3.bf16.msra.mxu1 %v5653_v11  ;;  %5530 = vmatprep.subr.bf16.mxu0 %v5529_v40  ;;  %v7105_v11 = vld [vmem:[#allocation3 + $0x12a] sm:$0xff] }
 0x1dc   : > { %5658 = vmatprep.subr.bf16.mxu1 %v5657_v7  ;;  %5532 = vmatpush3.bf16.msra.mxu0 %v5529_v40  ;;  %v7115_v40 = vld [vmem:[#allocation3 + $0x140] sm:$0xff] }
 0x1dd   : > { %4823 = vmatmul.mubr.f32.gmra.mrb[46].mxu0 %v7036_v55  ;;  %5140 = vmatmul.mubr.f32.gmra.mrb[12].mxu1 %v7033_v28 }
 0x1de   : > { %4825 = vmatprep.mubr.f32.mxu0 %v7042_v3  ;;  %5142 = vmatprep.mubr.f32.mxu1 %v7044_v4 }
 0x1df   : > { %5660 = vmatpush3.bf16.msra.mxu1 %v5657_v7  ;;  %5534 = vmatprep.subr.bf16.mxu0 %v5533_v48  ;;  %v7123_v7 = vld [vmem:[#allocation3 + $0x152] sm:$0xff] }
 0x1e0   : > { %5662 = vmatprep.subr.bf16.mxu1 %v5661_v24  ;;  %5536 = vmatpush3.bf16.msra.mxu0 %v5533_v48  ;;  %7633 = vst [vmem:[#allocation10_spill] sm:$0xff] %v7123_v7  ;;  %v7133_v48 = vld [vmem:[#allocation3 + $0x168] sm:$0xff] }
 0x1e1   : > { %4826 = vmatmul.mubr.f32.gmra.mrb[48].mxu0 %v7051_v12  ;;  %5143 = vmatmul.mubr.f32.gmra.mrb[14].mxu1 %v7053_v16  ;;  %7636 = vst [vmem:[#allocation13_spill] sm:$0xff] %v7133_v48 }
 0x1e2   : > { %4828 = vmatprep.mubr.f32.mxu0 %v7059_v14  ;;  %5145 = vmatprep.mubr.f32.mxu1 %v7061_v15 }
 0x1e3   : > { %5664 = vmatpush3.bf16.msra.mxu1 %v5661_v24  ;;  %5538 = vmatprep.subr.bf16.mxu0 %v7049_v8  ;;  %v1487_v24 = vld [vmem:[#allocation3 + $0x2] sm:$0xff] }
 0x1e4   : > { %5666 = vmatprep.subr.bf16.mxu1 %v7055_v21 }
 0x1e5   : > { %4829 = vmatmul.mubr.f32.gmra.mrb[50].mxu0 %v7066_v29  ;;  %5146 = vmatmul.mubr.f32.gmra.mrb[16].mxu1 %v7068_v20 }
 0x1e6   : > { %4831 = vmatprep.mubr.f32.mxu0 %v7073_v36  ;;  %5148 = vmatprep.mubr.f32.mxu1 %v7075_v25 }
 0x1e9   : > { %4832 = vmatmul.mubr.f32.gmra.mrb[52].mxu0 %v7079_v26  ;;  %5149 = vmatmul.mubr.f32.gmra.mrb[18].mxu1 %v7081_v17 }
 0x1ea   : > { %4834 = vmatprep.mubr.f32.mxu0 %v7085_v60  ;;  %5151 = vmatprep.mubr.f32.mxu1 %v7087_v1 }
 0x1ed   : > { %4835 = vmatmul.mubr.f32.gmra.mrb[54].mxu0 %v7091_v5  ;;  %5152 = vmatmul.mubr.f32.gmra.mrb[20].mxu1 %v7093_v32 }
 0x1ee   : > { %4837 = vmatprep.mubr.f32.mxu0 %v7097_v50  ;;  %5154 = vmatprep.mubr.f32.mxu1 %v7099_v2 }
 0x1f1   : > { %4838 = vmatmul.mubr.f32.gmra.mrb[56].mxu0 %v7103_v33  ;;  %5155 = vmatmul.mubr.f32.gmra.mrb[22].mxu1 %v7105_v11 }
 0x1f2   : > { %4840 = vmatprep.mubr.f32.mxu0 %v7109_v39  ;;  %5157 = vmatprep.mubr.f32.mxu1 %v7111_v46 }
 0x1f5   : > { %4841 = vmatmul.mubr.f32.gmra.mrb[58].mxu0 %v7115_v40  ;;  %5158 = vmatmul.mubr.f32.gmra.mrb[24].mxu1 %v7117_v58 }
 0x1f6   : > { %4843 = vmatprep.mubr.f32.mxu0 %v7121_v41  ;;  %5160 = vmatprep.mubr.f32.mxu1 %v7123_v7  ;;  %v3048_v7 = vld [vmem:[%s6625_s17 + $0x398] sm:$0xff] }
 0x1f9   : > { %4844 = vmatmul.mubr.f32.gmra.mrb[60].mxu0 %v7127_v23  ;;  %5161 = vmatmul.mubr.f32.gmra.mrb[26].mxu1 %v7129_v57  ;;  %v1488_v57 = vld [vmem:[#allocation3 + $0xa] sm:$0xff]  ;;  %v5541_v23 = vpack.c.bf16 %v1827_v56, %v1826_v62  ;;  %v3049_v56 = vld [vmem:[%s6625_s17 + $0x3a0] sm:$0xff] }
 0x1fa   : > { %4846 = vmatprep.mubr.f32.mxu0 %v7133_v48  ;;  %5163 = vmatprep.mubr.f32.mxu1 %v7135_v54  ;;  %v7150_v54 = vld [vmem:[#allocation3 + $0x18a] sm:$0xff] }
 0x1fb   : > { %v3047_v48 = vld [vmem:[%s6625_s17 + $0x390] sm:$0xff]  ;;  %v3050_v62 = vld [vmem:[%s6625_s17 + $0x3a8] sm:$0xff] }
 0x1fd   : > { %4847 = vmatmul.mubr.f32.gmra.mrb[62].mxu0 %v7139_v38  ;;  %5164 = vmatmul.mubr.f32.gmra.mrb[28].mxu1 %v7141_v61  ;;  %v5669_v61 = vpack.c.bf16 %v3048_v7, %v3047_v48  ;;  %v1830_v7 = vld [vmem:[%s6625_s17 + $0x1b0] sm:$0xff]  ;;  %v1832_v48 = vld [vmem:[%s6625_s17 + $0x1c0] sm:$0xff] }
 0x1fe   : > { %5166 = vmatprep.mubr.f32.mxu1 %v7145_v6  ;;  %4881 = vmatprep.mubr.f32.mxu0 %v1487_v24  ;;  %v1828_v24 = vld [vmem:[%s6625_s17 + $0x1a0] sm:$0xff]  ;;  %v1829_v6 = vld [vmem:[%s6625_s17 + $0x1a8] sm:$0xff] }
 0x201   : > { %4882 = vmatmul.mubr.f32.vlgmr.msra.gmra.mrb[32].mxu0 %v1488_v57  ;;  %5167 = vmatmul.mubr.f32.gmra.mrb[30].mxu1 %v7150_v54  ;;  %v1831_v57 = vld [vmem:[%s6625_s17 + $0x1b8] sm:$0xff] }
 0x202   : > { %4884 = vmatprep.mubr.f32.mxu0 %v6931_v59  ;;  %5201 = vmatprep.mubr.f32.mxu1 %v6944_v0  ;;  %v5545_v59 = vpack.c.bf16 %v1829_v6, %v1828_v24  ;;  %v3053_v6 = vld [vmem:[%s6625_s17 + $0x3c0] sm:$0xff] }
 0x203   : > { %5540 = vmatpush3.bf16.msra.mxu0 %v7049_v8  ;;  %v5673_v8 = vpack.c.bf16 %v3050_v62, %v3049_v56  ;;  %v1834_v56 = vld [vmem:[%s6625_s17 + $0x1d0] sm:$0xff] }
 0x204   : > { %5542 = vmatprep.subr.bf16.mxu0 %v5541_v23  ;;  %v3055_v62 = vld [vmem:[%s6625_s17 + $0x3d0] sm:$0xff] }
 0x205   : > { %4885 = vmatmul.mubr.f32.gmra.mrb[34].mxu0 %v6939_v63  ;;  %5202 = vmatmul.mubr.f32.vlgmr.msra.gmra.mrb[0].mxu1 %v6955_v9  ;;  %v3051_v63 = vld [vmem:[%s6625_s17 + $0x3b0] sm:$0xff] }
 0x206   : > { %5668 = vmatpush3.bf16.msra.mxu1 %v7055_v21  ;;  %4887 = vmatprep.mubr.f32.mxu0 %v6950_v44  ;;  %v3052_v21 = vld [vmem:[%s6625_s17 + $0x3b8] sm:$0xff]  ;;  %v5549_v44 = vpack.c.bf16 %v1831_v57, %v1830_v7  ;;  %v1836_v7 = vld [vmem:[%s6625_s17 + $0x1e0] sm:$0xff] }
 0x207   : > { %5204 = vmatprep.mubr.f32.mxu1 %v6962_v42  ;;  %5670 = vmatprep.subr.bf16.mxu1 %v5669_v61  ;;  %v3057_v57 = vld [vmem:[%s6625_s17 + $0x3e0] sm:$0xff] }
 0x208   : > { %5544 = vmatpush3.bf16.msra.mxu0 %v5541_v23  ;;  %v5677_v23 = vpack.c.bf16 %v3052_v21, %v3051_v63 }
 0x209   : > { %4888 = vmatmul.mubr.f32.gmra.mrb[36].mxu0 %v6957_v10  ;;  %5205 = vmatmul.mubr.f32.gmra.mrb[2].mxu1 %v6971_v18  ;;  %v1833_v10 = vld [vmem:[%s6625_s17 + $0x1c8] sm:$0xff] }
 0x20a   : > { %4890 = vmatprep.mubr.f32.mxu0 %v6964_v13  ;;  %5207 = vmatprep.mubr.f32.mxu1 %v6978_v34  ;;  %v3054_v13 = vld [vmem:[%s6625_s17 + $0x3c8] sm:$0xff] }
 0x20b   : > { %5672 = vmatpush3.bf16.msra.mxu1 %v5669_v61  ;;  %5546 = vmatprep.subr.bf16.mxu0 %v5545_v59  ;;  %v5553_v61 = vpack.c.bf16 %v1833_v10, %v1832_v48  ;;  %v5681_v24 = vpack.c.bf16 %v3054_v13, %v3053_v6  ;;  %v3060_v48 = vld [vmem:[%s6625_s17 + $0x3f8] sm:$0xff]  ;;  %v3350_v6 = vld [vmem:[%s6625_s17 + $0x400] sm:$0xff] }
 0x20c   : > { %5674 = vmatprep.subr.bf16.mxu1 %v5673_v8  ;;  %5548 = vmatpush3.bf16.msra.mxu0 %v5545_v59  ;;  %v7239_v13 = vld [vmem:[#allocation3 + $0x180] sm:$0xff] }
 0x20d   : > { %4891 = vmatmul.mubr.f32.gmra.mrb[38].mxu0 %v6973_v19  ;;  %5208 = vmatmul.mubr.f32.gmra.mrb[4].mxu1 %v6987_v27  ;;  %v1835_v19 = vld [vmem:[%s6625_s17 + $0x1d8] sm:$0xff] }
 0x20e   : > { %4893 = vmatprep.mubr.f32.mxu0 %v6980_v45  ;;  %5210 = vmatprep.mubr.f32.mxu1 %v6994_v43  ;;  %v3056_v45 = vld [vmem:[%s6625_s17 + $0x3d8] sm:$0xff]  ;;  %v5557_v59 = vpack.c.bf16 %v1835_v19, %v1834_v56  ;;  %v7243_v56 = vld [vmem:[#allocation3 + $0x188] sm:$0xff] }
 0x20f   : > { %5676 = vmatpush3.bf16.msra.mxu1 %v5673_v8  ;;  %5550 = vmatprep.subr.bf16.mxu0 %v5549_v44  ;;  %v5685_v8 = vpack.c.bf16 %v3056_v45, %v3055_v62  ;;  %v7645_v19 = vld [vmem:[#allocation15_spill] sm:$0xff]  ;;  %v7646_v62 = vld [vmem:[#allocation8_spill] sm:$0xff]  ;;  %v2739_v45 = vld [vmem:[#allocation3 + $0x1a0] sm:$0xff] }
 0x210   : > { %5678 = vmatprep.subr.bf16.mxu1 %v5677_v23  ;;  %5552 = vmatpush3.bf16.msra.mxu0 %v5549_v44  ;;  %v1838_v44 = vld [vmem:[%s6625_s17 + $0x1f0] sm:$0xff] }
 0x211   : > { %4894 = vmatmul.mubr.f32.gmra.mrb[40].mxu0 %v6989_v30  ;;  %5211 = vmatmul.mubr.f32.gmra.mrb[6].mxu1 %v7003_v22  ;;  %v1837_v30 = vld [vmem:[%s6625_s17 + $0x1e8] sm:$0xff] }
 0x212   : > { %4896 = vmatprep.mubr.f32.mxu0 %v6996_v31  ;;  %5213 = vmatprep.mubr.f32.mxu1 %v7010_v37  ;;  %v3058_v31 = vld [vmem:[%s6625_s17 + $0x3e8] sm:$0xff]  ;;  %v5561_v63 = vpack.c.bf16 %v1837_v30, %v1836_v7  ;;  %v7647_v7 = vld [vmem:[#allocation9_spill] sm:$0xff] }
 0x213   : > { %5680 = vmatpush3.bf16.msra.mxu1 %v5677_v23  ;;  %5554 = vmatprep.subr.bf16.mxu0 %v5553_v61  ;;  %v5689_v21 = vpack.c.bf16 %v3058_v31, %v3057_v57  ;;  %v1839_v23 = vld [vmem:[%s6625_s17 + $0x1f8] sm:$0xff] }
 0x214   : > { %5682 = vmatprep.subr.bf16.mxu1 %v5681_v24  ;;  %5556 = vmatpush3.bf16.msra.mxu0 %v5553_v61  ;;  %v7644_v61 = vld [vmem:[#allocation14_spill] sm:$0xff]  ;;  %v3013_v30 = vld [vmem:[#allocation3 + $0x31] sm:$0xff] }
 0x215   : > { %4897 = vmatmul.mubr.f32.gmra.mrb[42].mxu0 %v7005_v35  ;;  %5214 = vmatmul.mubr.f32.gmra.mrb[8].mxu1 %v7019_v47  ;;  %v3059_v35 = vld [vmem:[%s6625_s17 + $0x3f0] sm:$0xff]  ;;  %v3014_v31 = vld [vmem:[#allocation3 + $0x39] sm:$0xff] }
 0x216   : > { %4899 = vmatprep.mubr.f32.mxu0 %v7012_v53  ;;  %5216 = vmatprep.mubr.f32.mxu1 %v7026_v51  ;;  %v5565_v53 = vpack.c.bf16 %v1839_v23, %v1838_v44  ;;  %v5693_v10 = vpack.c.bf16 %v3060_v48, %v3059_v35  ;;  %v3015_v44 = vld [vmem:[#allocation3 + $0x49] sm:$0xff]  ;;  %v3016_v23 = vld [vmem:[#allocation3 + $0x51] sm:$0xff] }
 0x217   : > { %5684 = vmatpush3.bf16.msra.mxu1 %v5681_v24  ;;  %5558 = vmatprep.subr.bf16.mxu0 %v5557_v59  ;;  %v2738_v24 = vld [vmem:[#allocation3 + $0x198] sm:$0xff]  ;;  %v3356_v48 = vld [vmem:[%s6625_s17 + $0x430] sm:$0xff] }
 0x218   : > { %5686 = vmatprep.subr.bf16.mxu1 %v5685_v8  ;;  %5560 = vmatpush3.bf16.msra.mxu0 %v5557_v59  ;;  %v3352_v59 = vld [vmem:[%s6625_s17 + $0x410] sm:$0xff] }
 0x219   : > { %4900 = vmatmul.mubr.f32.gmra.mrb[44].mxu0 %v7021_v49  ;;  %5217 = vmatmul.mubr.f32.gmra.mrb[10].mxu1 %v7036_v55  ;;  %v3351_v49 = vld [vmem:[%s6625_s17 + $0x408] sm:$0xff] }
 0x21a   : > { %4902 = vmatprep.mubr.f32.mxu0 %v7028_v52  ;;  %5219 = vmatprep.mubr.f32.mxu1 %v7042_v3  ;;  %v5697_v52 = vpack.c.bf16 %v3351_v49, %v3350_v6  ;;  %v3358_v6 = vld [vmem:[%s6625_s17 + $0x440] sm:$0xff]  ;;  %v3359_v49 = vld [vmem:[%s6625_s17 + $0x448] sm:$0xff] }
 0x21b   : > { %5688 = vmatpush3.bf16.msra.mxu1 %v5685_v8  ;;  %5562 = vmatprep.subr.bf16.mxu0 %v5561_v63  ;;  %v3353_v8 = vld [vmem:[%s6625_s17 + $0x418] sm:$0xff] }
 0x21c   : > { %5690 = vmatprep.subr.bf16.mxu1 %v5689_v21  ;;  %5564 = vmatpush3.bf16.msra.mxu0 %v5561_v63  ;;  %v5701_v57 = vpack.c.bf16 %v3353_v8, %v3352_v59  ;;  %v3354_v63 = vld [vmem:[%s6625_s17 + $0x420] sm:$0xff]  ;;  %v3363_v8 = vld [vmem:[%s6625_s17 + $0x468] sm:$0xff] }
 0x21d   : > { %4903 = vmatmul.mubr.f32.gmra.mrb[46].mxu0 %v7033_v28  ;;  %5220 = vmatmul.mubr.f32.gmra.mrb[12].mxu1 %v7051_v12  ;;  %v7640_v28 = vld [vmem:[#allocation11_spill] sm:$0xff]  ;;  %v3362_v59 = vld [vmem:[%s6625_s17 + $0x460] sm:$0xff] }
 0x21e   : > { %4905 = vmatprep.mubr.f32.mxu0 %v7044_v4  ;;  %5222 = vmatprep.mubr.f32.mxu1 %v7059_v14  ;;  %v7641_v4 = vld [vmem:[#allocation10_spill] sm:$0xff] }
 0x21f   : > { %5692 = vmatpush3.bf16.msra.mxu1 %v5689_v21  ;;  %5566 = vmatprep.subr.bf16.mxu0 %v5565_v53  ;;  %v3355_v21 = vld [vmem:[%s6625_s17 + $0x428] sm:$0xff] }
 0x220   : > { %5694 = vmatprep.subr.bf16.mxu1 %v5693_v10  ;;  %5568 = vmatpush3.bf16.msra.mxu0 %v5565_v53  ;;  %v5705_v35 = vpack.c.bf16 %v3355_v21, %v3354_v63  ;;  %v3357_v53 = vld [vmem:[%s6625_s17 + $0x438] sm:$0xff]  ;;  %v3033_v21 = vld [vmem:[#allocation3 + $0x121] sm:$0xff] }
 0x221   : > { %4906 = vmatmul.mubr.f32.gmra.mrb[48].mxu0 %v7053_v16  ;;  %5223 = vmatmul.mubr.f32.gmra.mrb[14].mxu1 %v7066_v29  ;;  %v7642_v16 = vld [vmem:[#allocation13_spill] sm:$0xff] }
 0x222   : > { %4908 = vmatprep.mubr.f32.mxu0 %v7061_v15  ;;  %5225 = vmatprep.mubr.f32.mxu1 %v7073_v36  ;;  %v7643_v15 = vld [vmem:[#allocation12_spill] sm:$0xff] }
 0x223   : > { %5696 = vmatpush3.bf16.msra.mxu1 %v5693_v10  ;;  %v3019_v10 = vld [vmem:[#allocation3 + $0x79] sm:$0xff]  ;;  %v3029_v63 = vld [vmem:[#allocation3 + $0xf1] sm:$0xff] }
 0x224   : > { %5698 = vmatprep.subr.bf16.mxu1 %v5697_v52 }
 0x225   : > { %4909 = vmatmul.mubr.f32.gmra.mrb[50].mxu0 %v7068_v20  ;;  %5226 = vmatmul.mubr.f32.gmra.mrb[16].mxu1 %v7079_v26 }
 0x226   : > { %4911 = vmatprep.mubr.f32.mxu0 %v7075_v25  ;;  %5228 = vmatprep.mubr.f32.mxu1 %v7085_v60 }
 0x229   : > { %4912 = vmatmul.mubr.f32.gmra.mrb[52].mxu0 %v7081_v17  ;;  %5229 = vmatmul.mubr.f32.gmra.mrb[18].mxu1 %v7091_v5 }
 0x22a   : > { %4914 = vmatprep.mubr.f32.mxu0 %v7087_v1  ;;  %5231 = vmatprep.mubr.f32.mxu1 %v7097_v50 }
 0x22d   : > { %4915 = vmatmul.mubr.f32.gmra.mrb[54].mxu0 %v7093_v32  ;;  %5232 = vmatmul.mubr.f32.gmra.mrb[20].mxu1 %v7103_v33 }
 0x22e   : > { %4917 = vmatprep.mubr.f32.mxu0 %v7099_v2  ;;  %5234 = vmatprep.mubr.f32.mxu1 %v7109_v39 }
 0x231   : > { %4918 = vmatmul.mubr.f32.gmra.mrb[56].mxu0 %v7105_v11  ;;  %5235 = vmatmul.mubr.f32.gmra.mrb[22].mxu1 %v7115_v40 }
 0x232   : > { %4920 = vmatprep.mubr.f32.mxu0 %v7111_v46  ;;  %5237 = vmatprep.mubr.f32.mxu1 %v7121_v41 }
 0x235   : > { %4921 = vmatmul.mubr.f32.gmra.mrb[58].mxu0 %v7117_v58  ;;  %5238 = vmatmul.mubr.f32.gmra.mrb[24].mxu1 %v7640_v28 }
 0x236   : > { %4923 = vmatprep.mubr.f32.mxu0 %v7641_v4  ;;  %5240 = vmatprep.mubr.f32.mxu1 %v7642_v16 }
 0x239   : > { %4924 = vmatmul.mubr.f32.gmra.mrb[60].mxu0 %v7643_v15  ;;  %5241 = vmatmul.mubr.f32.gmra.mrb[26].mxu1 %v7139_v38 }
 0x23a   : > { %4926 = vmatprep.mubr.f32.mxu0 %v7644_v61  ;;  %5243 = vmatprep.mubr.f32.mxu1 %v7239_v13 }
 0x23d   : > { %4927 = vmatmul.mubr.f32.gmra.mrb[62].mxu0 %v7645_v19  ;;  %5244 = vmatmul.mubr.f32.gmra.mrb[28].mxu1 %v7243_v56 }
 0x23e   : > { %4961 = vmatprep.mubr.f32.mxu0 %v7646_v62  ;;  %5246 = vmatprep.mubr.f32.mxu1 %v2738_v24  ;;  %v3360_v24 = vld [vmem:[%s6625_s17 + $0x450] sm:$0xff]  ;;  %v3361_v62 = vld [vmem:[%s6625_s17 + $0x458] sm:$0xff] }
 0x241   : > { %4962 = vmatmul.mubr.f32.vlgmr.msra.gmra.mrb[32].mxu0 %v7647_v7  ;;  %5247 = vmatmul.mubr.f32.gmra.mrb[30].mxu1 %v2739_v45  ;;  %v3023_v45 = vld [vmem:[#allocation3 + $0xa9] sm:$0xff]  ;;  %v3025_v7 = vld [vmem:[#allocation3 + $0xc1] sm:$0xff] }
 0x242   : > { %4964 = vmatprep.mubr.f32.mxu0 %v6944_v0  ;;  %5281 = vmatprep.mubr.f32.mxu1 %v3013_v30  ;;  %v3017_v0 = vld [vmem:[#allocation3 + $0x61] sm:$0xff]  ;;  %v3364_v30 = vld [vmem:[%s6625_s17 + $0x470] sm:$0xff] }
 0x245   : > { %4965 = vmatmul.mubr.f32.gmra.mrb[34].mxu0 %v6955_v9  ;;  %5282 = vmatmul.mubr.f32.vlgmr.msra.gmra.mrb[0].mxu1 %v3014_v31  ;;  %v3018_v9 = vld [vmem:[#allocation3 + $0x69] sm:$0xff] }
 0x246   : > { %5700 = vmatpush3.bf16.msra.mxu1 %v5697_v52  ;;  %4967 = vmatprep.mubr.f32.mxu0 %v6962_v42  ;;  %v5709_v42 = vpack.c.bf16 %v3357_v53, %v3356_v48  ;;  %v3021_v52 = vld [vmem:[#allocation3 + $0x91] sm:$0xff]  ;;  %v3325_v48 = vld [vmem:[#allocation3 + $0x82] sm:$0xff]  ;;  %v3327_v53 = vld [vmem:[#allocation3 + $0x9a] sm:$0xff] }
 0x247   : > { %5284 = vmatprep.mubr.f32.mxu1 %v3015_v44  ;;  %5702 = vmatprep.subr.bf16.mxu1 %v5701_v57  ;;  %v3042_v44 = vld [vmem:[#allocation3 + $0x189] sm:$0xff] }
 0x249   : > { %4968 = vmatmul.mubr.f32.gmra.mrb[36].mxu0 %v6971_v18  ;;  %5285 = vmatmul.mubr.f32.gmra.mrb[2].mxu1 %v3016_v23  ;;  %v3020_v18 = vld [vmem:[#allocation3 + $0x81] sm:$0xff]  ;;  %v3320_v23 = vld [vmem:[#allocation3 + $0x4a] sm:$0xff] }
 0x24a   : > { %4970 = vmatprep.mubr.f32.mxu0 %v6978_v34  ;;  %5287 = vmatprep.mubr.f32.mxu1 %v3017_v0  ;;  %v5713_v34 = vpack.c.bf16 %v3359_v49, %v3358_v6  ;;  %v3324_v0 = vld [vmem:[#allocation3 + $0x7a] sm:$0xff]  ;;  %v3331_v6 = vld [vmem:[#allocation3 + $0xca] sm:$0xff] }
 0x24b   : > { %5704 = vmatpush3.bf16.msra.mxu1 %v5701_v57  ;;  %v3365_v57 = vld [vmem:[%s6625_s17 + $0x478] sm:$0xff] }
 0x24c   : > { %5706 = vmatprep.subr.bf16.mxu1 %v5705_v35  ;;  %v5725_v31 = vpack.c.bf16 %v3365_v57, %v3364_v30  ;;  %v3332_v49 = vld [vmem:[#allocation3 + $0xda] sm:$0xff] }
 0x24d   : > { %4971 = vmatmul.mubr.f32.gmra.mrb[38].mxu0 %v6987_v27  ;;  %5288 = vmatmul.mubr.f32.gmra.mrb[4].mxu1 %v3018_v9  ;;  %v3022_v27 = vld [vmem:[#allocation3 + $0x99] sm:$0xff]  ;;  %v3328_v9 = vld [vmem:[#allocation3 + $0xaa] sm:$0xff] }
 0x24e   : > { %4973 = vmatprep.mubr.f32.mxu0 %v6994_v43  ;;  %5290 = vmatprep.mubr.f32.mxu1 %v3019_v10  ;;  %v5717_v43 = vpack.c.bf16 %v3361_v62, %v3360_v24  ;;  %v3330_v10 = vld [vmem:[#allocation3 + $0xc2] sm:$0xff] }
 0x24f   : > { %5708 = vmatpush3.bf16.msra.mxu1 %v5705_v35  ;;  %v3322_v35 = vld [vmem:[#allocation3 + $0x62] sm:$0xff] }
 0x250   : > { %5710 = vmatprep.subr.bf16.mxu1 %v5709_v42 }
 0x251   : > { %4974 = vmatmul.mubr.f32.gmra.mrb[40].mxu0 %v7003_v22  ;;  %5291 = vmatmul.mubr.f32.gmra.mrb[6].mxu1 %v3020_v18  ;;  %v3024_v22 = vld [vmem:[#allocation3 + $0xb1] sm:$0xff] }
 0x252   : > { %4976 = vmatprep.mubr.f32.mxu0 %v7010_v37  ;;  %5293 = vmatprep.mubr.f32.mxu1 %v3021_v52  ;;  %v5721_v37 = vpack.c.bf16 %v3363_v8, %v3362_v59 }
 0x253   : > { %5712 = vmatpush3.bf16.msra.mxu1 %v5709_v42  ;;  %v3329_v42 = vld [vmem:[#allocation3 + $0xb2] sm:$0xff] }
 0x254   : > { %5714 = vmatprep.subr.bf16.mxu1 %v5713_v34 }
 0x255   : > { %4977 = vmatmul.mubr.f32.gmra.mrb[42].mxu0 %v7019_v47  ;;  %5294 = vmatmul.mubr.f32.gmra.mrb[8].mxu1 %v3022_v27  ;;  %v3026_v47 = vld [vmem:[#allocation3 + $0xc9] sm:$0xff] }
 0x256   : > { %4979 = vmatprep.mubr.f32.mxu0 %v7026_v51  ;;  %5296 = vmatprep.mubr.f32.mxu1 %v3023_v45  ;;  %v3027_v51 = vld [vmem:[#allocation3 + $0xd9] sm:$0xff] }
 0x257   : > { %5716 = vmatpush3.bf16.msra.mxu1 %v5713_v34 }
 0x258   : > { %5718 = vmatprep.subr.bf16.mxu1 %v5717_v43 }
 0x259   : > { %4980 = vmatmul.mubr.f32.gmra.mrb[44].mxu0 %v7036_v55  ;;  %5297 = vmatmul.mubr.f32.gmra.mrb[10].mxu1 %v3024_v22  ;;  %v3028_v55 = vld [vmem:[#allocation3 + $0xe1] sm:$0xff] }
 0x25a   : > { %4982 = vmatprep.mubr.f32.mxu0 %v7042_v3  ;;  %5299 = vmatprep.mubr.f32.mxu1 %v3025_v7  ;;  %v3030_v3 = vld [vmem:[#allocation3 + $0xf9] sm:$0xff] }
 0x25b   : > { %5720 = vmatpush3.bf16.msra.mxu1 %v5717_v43 }
 0x25c   : > { %5722 = vmatprep.subr.bf16.mxu1 %v5721_v37 }
 0x25d   : > { %4983 = vmatmul.mubr.f32.gmra.mrb[46].mxu0 %v7051_v12  ;;  %5300 = vmatmul.mubr.f32.gmra.mrb[12].mxu1 %v3026_v47  ;;  %v3031_v12 = vld [vmem:[#allocation3 + $0x109] sm:$0xff] }
 0x25e   : > { %4985 = vmatprep.mubr.f32.mxu0 %v7059_v14  ;;  %5302 = vmatprep.mubr.f32.mxu1 %v3027_v51  ;;  %v3032_v14 = vld [vmem:[#allocation3 + $0x111] sm:$0xff] }
 0x25f   : > { %5724 = vmatpush3.bf16.msra.mxu1 %v5721_v37 }
 0x260   : > { %5726 = vmatprep.subr.bf16.mxu1 %v5725_v31 }
 0x261   : > { %4986 = vmatmul.mubr.f32.gmra.mrb[48].mxu0 %v7066_v29  ;;  %5303 = vmatmul.mubr.f32.gmra.mrb[14].mxu1 %v3028_v55  ;;  %v3034_v29 = vld [vmem:[#allocation3 + $0x129] sm:$0xff] }
 0x262   : > { %4988 = vmatprep.mubr.f32.mxu0 %v7073_v36  ;;  %5305 = vmatprep.mubr.f32.mxu1 %v3029_v63  ;;  %v3035_v36 = vld [vmem:[#allocation3 + $0x139] sm:$0xff] }
 0x263   : > { %5728 = vmatpush3.bf16.msra.mxu1 %v5725_v31 }
 0x265   : > { %4989 = vmatmul.mubr.f32.gmra.mrb[50].mxu0 %v7079_v26  ;;  %5306 = vmatmul.mubr.f32.gmra.mrb[16].mxu1 %v3030_v3  ;;  %v3036_v26 = vld [vmem:[#allocation3 + $0x141] sm:$0xff] }
 0x266   : > { %4991 = vmatprep.mubr.f32.mxu0 %v7085_v60  ;;  %5308 = vmatprep.mubr.f32.mxu1 %v3031_v12  ;;  %v3037_v60 = vld [vmem:[#allocation3 + $0x151] sm:$0xff] }
 0x269   : > { %4992 = vmatmul.mubr.f32.gmra.mrb[52].mxu0 %v7091_v5  ;;  %5309 = vmatmul.mubr.f32.gmra.mrb[18].mxu1 %v3032_v14  ;;  %v3038_v5 = vld [vmem:[#allocation3 + $0x159] sm:$0xff] }
 0x26a   : > { %4994 = vmatprep.mubr.f32.mxu0 %v7097_v50  ;;  %5311 = vmatprep.mubr.f32.mxu1 %v3033_v21  ;;  %v3039_v50 = vld [vmem:[#allocation3 + $0x169] sm:$0xff]  ;;  %v7361_v14 = vld [vmem:[%s319_s30] ss:$0 sm:$0xff] }
 0x26d   : > { %4995 = vmatmul.mubr.f32.gmra.mrb[54].mxu0 %v7103_v33  ;;  %5312 = vmatmul.mubr.f32.gmra.mrb[20].mxu1 %v3034_v29  ;;  %v3040_v33 = vld [vmem:[#allocation3 + $0x171] sm:$0xff] }
 0x26e   : > { %4997 = vmatprep.mubr.f32.mxu0 %v7109_v39  ;;  %5314 = vmatprep.mubr.f32.mxu1 %v3035_v36  ;;  %v3041_v39 = vld [vmem:[#allocation3 + $0x181] sm:$0xff] }
 0x271   : > { %4998 = vmatmul.mubr.f32.gmra.mrb[56].mxu0 %v7115_v40  ;;  %5315 = vmatmul.mubr.f32.gmra.mrb[22].mxu1 %v3036_v26  ;;  %v3043_v40 = vld [vmem:[#allocation3 + $0x199] sm:$0xff] }
 0x272   : > { %5000 = vmatprep.mubr.f32.mxu0 %v7121_v41  ;;  %5317 = vmatprep.mubr.f32.mxu1 %v3037_v60  ;;  %v3044_v41 = vld [vmem:[#allocation3 + $0x1a1] sm:$0xff] }
 0x275   : > { %5001 = vmatmul.mubr.f32.gmra.mrb[58].mxu0 %v7640_v28  ;;  %5318 = vmatmul.mubr.f32.gmra.mrb[24].mxu1 %v3038_v5  ;;  %v3318_v28 = vld [vmem:[#allocation3 + $0x32] sm:$0xff] }
 0x276   : > { %5003 = vmatprep.mubr.f32.mxu0 %v7642_v16  ;;  %5320 = vmatprep.mubr.f32.mxu1 %v3039_v50  ;;  %v3319_v16 = vld [vmem:[#allocation3 + $0x3a] sm:$0xff] }
 0x279   : > { %5004 = vmatmul.mubr.f32.gmra.mrb[60].mxu0 %v7139_v38  ;;  %5321 = vmatmul.mubr.f32.gmra.mrb[26].mxu1 %v3040_v33  ;;  %v3321_v38 = vld [vmem:[#allocation3 + $0x52] sm:$0xff] }
 0x27a   : > { %5006 = vmatprep.mubr.f32.mxu0 %v7239_v13  ;;  %5323 = vmatprep.mubr.f32.mxu1 %v3041_v39  ;;  %v3323_v13 = vld [vmem:[#allocation3 + $0x6a] sm:$0xff] }
 0x27d   : > { %5007 = vmatmul.mubr.f32.gmra.mrb[62].mxu0 %v7243_v56  ;;  %5324 = vmatmul.mubr.f32.gmra.mrb[28].mxu1 %v3042_v44  ;;  %v3326_v56 = vld [vmem:[#allocation3 + $0x92] sm:$0xff] }
 0x27e   : > { %5326 = vmatprep.mubr.f32.mxu1 %v3043_v40 }
 0x281   : > { %5327 = vmatmul.mubr.f32.gmra.mrb[30].mxu1 %v3044_v41 }
 0x282   : > { %5361 = vmatprep.mubr.f32.mxu1 %v3318_v28 }
 0x285   : > { %5362 = vmatmul.mubr.f32.vlgmr.msra.gmra.mrb[0].mxu1 %v3319_v16 }
 0x286   : > { %5364 = vmatprep.mubr.f32.mxu1 %v3320_v23 }
 0x289   : > { %5365 = vmatmul.mubr.f32.gmra.mrb[2].mxu1 %v3321_v38 }
 0x28a   : > { %5367 = vmatprep.mubr.f32.mxu1 %v3322_v35 }
 0x28d   : > { %5368 = vmatmul.mubr.f32.gmra.mrb[4].mxu1 %v3323_v13 }
 0x28e   : > { %5370 = vmatprep.mubr.f32.mxu1 %v3324_v0 }
 0x291   : > { %5371 = vmatmul.mubr.f32.gmra.mrb[6].mxu1 %v3325_v48 }
 0x292   : > { %5373 = vmatprep.mubr.f32.mxu1 %v3326_v56 }
 0x295   : > { %5374 = vmatmul.mubr.f32.gmra.mrb[8].mxu1 %v3327_v53 }
 0x296   : > { %5376 = vmatprep.mubr.f32.mxu1 %v3328_v9 }
 0x299   : > { %5377 = vmatmul.mubr.f32.gmra.mrb[10].mxu1 %v3329_v42 }
 0x29a   : > { %5379 = vmatprep.mubr.f32.mxu1 %v3330_v10 }
 0x29d   : > { %5380 = vmatmul.mubr.f32.gmra.mrb[12].mxu1 %v3331_v6 }
 0x29e   : > { %5382 = vmatprep.mubr.f32.mxu1 %v3332_v49 }
 0x2a1   : > { %5383 = vmatmul.mubr.f32.gmra.mrb[14].mxu1 %v7068_v20  ;;  %v7648_v20 = vld [vmem:[#allocation16_spill] sm:$0xff] }
 0x2a2   : > { %5385 = vmatprep.mubr.f32.mxu1 %v7075_v25  ;;  %v3348_v25 = vld [vmem:[#allocation3 + $0x19a] sm:$0xff] }
 0x2a5   : > { %5386 = vmatmul.mubr.f32.gmra.mrb[16].mxu1 %v7081_v17  ;;  %v3349_v17 = vld [vmem:[#allocation3 + $0x1a2] sm:$0xff] }
 0x2a6   : > { %5388 = vmatprep.mubr.f32.mxu1 %v7087_v1 }
 0x2a9   : > { %5389 = vmatmul.mubr.f32.gmra.mrb[18].mxu1 %v7093_v32 }
 0x2aa   : > { %5391 = vmatprep.mubr.f32.mxu1 %v7099_v2 }
 0x2ad   : > { %5392 = vmatmul.mubr.f32.gmra.mrb[20].mxu1 %v7105_v11 }
 0x2ae   : > { %5394 = vmatprep.mubr.f32.mxu1 %v7111_v46 }
 0x2b1   : > { %5395 = vmatmul.mubr.f32.gmra.mrb[22].mxu1 %v7117_v58 }
 0x2b2   : > { %5397 = vmatprep.mubr.f32.mxu1 %v7641_v4 }
 0x2b5   : > { %5398 = vmatmul.mubr.f32.gmra.mrb[24].mxu1 %v7643_v15 }
 0x2b6   : > { %5400 = vmatprep.mubr.f32.mxu1 %v7644_v61 }
 0x2b9   : > { %5401 = vmatmul.mubr.f32.gmra.mrb[26].mxu1 %v7645_v19 }
 0x2ba   : > { %5403 = vmatprep.mubr.f32.mxu1 %v7648_v20 }
 0x2bd   : > { %5404 = vmatmul.mubr.f32.gmra.mrb[28].mxu1 %v7150_v54 }
 0x2be   : > { %5406 = vmatprep.mubr.f32.mxu1 %v3348_v25 }
 0x2c1   : > { %5407 = vmatmul.mubr.f32.gmra.mrb[30].mxu1 %v3349_v17 }
 0x314   : > { %v4963_v1 = vpop.f32.mrb[32].mxu0 }
 0x315   : > { %v1906_v32 = vpop.f32.mrb[33].mxu0 }
 0x318   : > { %v4966_v2 = vpop.f32.mrb[34].mxu0 }
 0x319   : > { %v1916_v11 = vpop.f32.mrb[35].mxu0 }
 0x31c   : > { %v4969_v46 = vpop.f32.mrb[36].mxu0 }
 0x31d   : > { %v1926_v58 = vpop.f32.mrb[37].mxu0 }
 0x320   : > { %v4972_v4 = vpop.f32.mrb[38].mxu0 }
 0x321   : > { %v1936_v15 = vpop.f32.mrb[39].mxu0 }
 0x324   : > { %v7308_v18 = vpop.f32.mrb[40].mxu0 }
 0x325   : > { %v7310_v61 = vpop.f32.mrb[41].mxu0 }
 0x328   : > { %v7312_v19 = vpop.f32.mrb[42].mxu0 }
 0x329   : > { %v7314_v34 = vpop.f32.mrb[43].mxu0 }
 0x32c   : > { %v7316_v54 = vpop.f32.mrb[44].mxu0 }
 0x32d   : > { %v7318_v52 = vpop.f32.mrb[45].mxu0 }
 0x330   : > { %v7320_v24 = vpop.f32.mrb[46].mxu0 }
 0x331   : > { %v7322_v62 = vpop.f32.mrb[47].mxu0 }
 0x334   : > { %v7324_v27 = vpop.f32.mrb[48].mxu0 }
 0x335   : > { %v7326_v43 = vpop.f32.mrb[49].mxu0 }
 0x338   : > { %v7328_v45 = vpop.f32.mrb[50].mxu0 }
 0x339   : > { %v7330_v59 = vpop.f32.mrb[51].mxu0 }
 0x33c   : > { %v7332_v8 = vpop.f32.mrb[52].mxu0 }
 0x33d   : > { %v7334_v22 = vpop.f32.mrb[53].mxu0 }
 0x340   : > { %v7336_v37 = vpop.f32.mrb[54].mxu0 }
 0x341   : > { %v7338_v7 = vpop.f32.mrb[55].mxu0 }
 0x344   : > { %v7340_v30 = vpop.f32.mrb[56].mxu0 }
 0x345   : > { %v7342_v57 = vpop.f32.mrb[57].mxu0 }
 0x348   : > { %v7344_v47 = vpop.f32.mrb[58].mxu0 }
 0x349   : > { %v7346_v31 = vpop.f32.mrb[59].mxu0 }
 0x34c   : > { %v7348_v51 = vpop.f32.mrb[60].mxu0 }
 0x34d   : > { %v7350_v55 = vpop.f32.mrb[61].mxu0 }
 0x350   : > { %v7352_v63 = vpop.f32.mrb[62].mxu0 }
 0x351   : > { %v7354_v3 = vpop.f32.mrb[63].mxu0 }
 0x358   : > { %v5363_v12 = vpop.f32.mrb[0].mxu1 }
 0x359   : > { %v5729_v21 = vadd.f32 %v5363_v12, %v4963_v1  ;;  %v3432_v29 = vpop.f32.mrb[1].mxu1 }
 0x35a   : > { %v5730_v36 = vadd.f32 %v3432_v29, %v1906_v32 }
 0x35b   : > { %v7364_v26 = vadd.f32 %v5729_v21, %v7361_v14 }
 0x35c   : > { %v7367_v60 = vadd.f32 %v5730_v36, %v7361_v14  ;;  %v5366_v5 = vpop.f32.mrb[2].mxu1 }
 0x35d   : > { %v3663_v50 = vsub.f32 0.0, %v7364_v26  ;;  %v5731_v33 = vadd.f32 %v5366_v5, %v4966_v2  ;;  %v3442_v39 = vpop.f32.mrb[3].mxu1 }
 0x35e   : > { %v3662_v40 = vsub.f32 0.0, %v7367_v60  ;;  %v5732_v44 = vadd.f32 %v3442_v39, %v1916_v11 }
 0x35f   : > { %v3696_v41 = vmul.f32 1.442695, %v3663_v50  ;;  %v7372_v28 = vadd.f32 %v5731_v33, %v7361_v14 }
 0x360   : > { %v3694_v16 = vmul.f32 1.442695, %v3662_v40  ;;  %v7375_v23 = vadd.f32 %v5732_v44, %v7361_v14  ;;  %v5369_v38 = vpop.f32.mrb[4].mxu1 }
 0x361   : > { %6188 = vpow2.f32 %v3696_v41  ;;  %v3665_v35 = vsub.f32 0.0, %v7372_v28  ;;  %v5733_v13 = vadd.f32 %v5369_v38, %v4969_v46  ;;  %v3452_v0 = vpop.f32.mrb[5].mxu1 }
 0x362   : > { %6190 = vpow2.f32 %v3694_v16  ;;  %v3664_v48 = vsub.f32 0.0, %v7375_v23  ;;  %v5734_v56 = vadd.f32 %v3452_v0, %v1926_v58 }
 0x363   : > { %v3700_v53 = vmul.f32 1.442695, %v3665_v35  ;;  %v7380_v9 = vadd.f32 %v5733_v13, %v7361_v14 }
 0x364   : > { %v3698_v42 = vmul.f32 1.442695, %v3664_v48  ;;  %v7383_v10 = vadd.f32 %v5734_v56, %v7361_v14  ;;  %v5372_v6 = vpop.f32.mrb[6].mxu1 }
 0x365   : > { %6192 = vpow2.f32 %v3700_v53  ;;  %v3667_v49 = vsub.f32 0.0, %v7380_v9  ;;  %v5735_v20 = vadd.f32 %v5372_v6, %v4972_v4  ;;  %v3462_v25 = vpop.f32.mrb[7].mxu1 }
 0x366   : > { %6194 = vpow2.f32 %v3698_v42  ;;  %v3666_v17 = vsub.f32 0.0, %v7383_v10  ;;  %v5736_v1 = vadd.f32 %v3462_v25, %v1936_v15 }
 0x367   : > { %v3704_v32 = vmul.f32 1.442695, %v3667_v49  ;;  %v7388_v2 = vadd.f32 %v5735_v20, %v7361_v14 }
 0x368   : > { %v3702_v11 = vmul.f32 1.442695, %v3666_v17  ;;  %v7391_v46 = vadd.f32 %v5736_v1, %v7361_v14  ;;  %v5375_v58 = vpop.f32.mrb[8].mxu1 }
 0x369   : > { %6196 = vpow2.f32 %v3704_v32  ;;  %v3669_v12 = vsub.f32 0.0, %v7388_v2  ;;  %v5737_v21 = vadd.f32 %v5375_v58, %v7308_v18  ;;  %v3472_v4 = vpop.f32.mrb[9].mxu1 }
 0x36a   : > { %6198 = vpow2.f32 %v3702_v11  ;;  %v3668_v29 = vsub.f32 0.0, %v7391_v46  ;;  %v5738_v15 = vadd.f32 %v3472_v4, %v7310_v61 }
 0x36b   : > { %v6189_v36 = vpop.eup %6188  ;;  %v3708_v5 = vmul.f32 1.442695, %v3669_v12  ;;  %v7398_v50 = vadd.f32 %v5737_v21, %v7361_v14 }
 0x36c   : > { %v6191_v33 = vpop.eup %6190  ;;  %v3759_v39 = vadd.f32 1.0, %v6189_v36  ;;  %v3706_v40 = vmul.f32 1.442695, %v3668_v29  ;;  %v7401_v44 = vadd.f32 %v5738_v15, %v7361_v14  ;;  %v5378_v41 = vpop.f32.mrb[10].mxu1 }
 0x36d   : > { %v3758_v16 = vadd.f32 1.0, %v6191_v33  ;;  %6200 = vpow2.f32 %v3708_v5  ;;  %v3671_v18 = vsub.f32 0.0, %v7398_v50  ;;  %v5739_v38 = vadd.f32 %v5378_v41, %v7312_v19  ;;  %v3482_v35 = vpop.f32.mrb[11].mxu1 }
 0x36e   : > { %6202 = vrcp.f32 %v3759_v39  ;;  %v3670_v61 = vsub.f32 0.0, %v7401_v44  ;;  %v5740_v13 = vadd.f32 %v3482_v35, %v7314_v34 }
 0x36f   : > { %v6193_v0 = vpop.eup %6192  ;;  %6204 = vrcp.f32 %v3758_v16  ;;  %v3712_v48 = vmul.f32 1.442695, %v3671_v18  ;;  %v7408_v56 = vadd.f32 %v5739_v38, %v7361_v14 }
 0x370   : > { %v6195_v53 = vpop.eup %6194  ;;  %v3761_v42 = vadd.f32 1.0, %v6193_v0  ;;  %6206 = vpow2.f32 %v3706_v40  ;;  %v3710_v6 = vmul.f32 1.442695, %v3670_v61  ;;  %v7411_v49 = vadd.f32 %v5740_v13, %v7361_v14  ;;  %v5381_v19 = vpop.f32.mrb[12].mxu1 }
 0x371   : > { %v3760_v20 = vadd.f32 1.0, %v6195_v53  ;;  %6208 = vpow2.f32 %v3712_v48  ;;  %v3673_v25 = vsub.f32 0.0, %v7408_v56  ;;  %v5741_v34 = vadd.f32 %v5381_v19, %v7316_v54  ;;  %v3492_v17 = vpop.f32.mrb[13].mxu1 }
 0x372   : > { %6210 = vrcp.f32 %v3761_v42  ;;  %v3672_v1 = vsub.f32 0.0, %v7411_v49  ;;  %v5742_v32 = vadd.f32 %v3492_v17, %v7318_v52  ;;  %v6316_v17 = vld [vmem:[#allocation2 + $0x8] sm:$0xff] }
 0x373   : > { %v6197_v11 = vpop.eup %6196  ;;  %6212 = vrcp.f32 %v3760_v20  ;;  %v3716_v58 = vmul.f32 1.442695, %v3673_v25  ;;  %v7418_v12 = vadd.f32 %v5741_v34, %v7361_v14 }
 0x374   : > { %v6199_v21 = vpop.eup %6198  ;;  %v3763_v4 = vadd.f32 1.0, %v6197_v11  ;;  %6214 = vpow2.f32 %v3710_v6  ;;  %v3714_v29 = vmul.f32 1.442695, %v3672_v1  ;;  %v7421_v15 = vadd.f32 %v5742_v32, %v7361_v14  ;;  %v5384_v54 = vpop.f32.mrb[14].mxu1 }
 0x375   : > { %v3762_v36 = vadd.f32 1.0, %v6199_v21  ;;  %6216 = vpow2.f32 %v3716_v58  ;;  %v3675_v5 = vsub.f32 0.0, %v7418_v12  ;;  %v5743_v52 = vadd.f32 %v5384_v54, %v7320_v24  ;;  %v3502_v33 = vpop.f32.mrb[15].mxu1  ;;  %v6317_v58 = vld [vmem:[#allocation2] sm:$0xff] }
 0x376   : > { %6218 = vrcp.f32 %v3763_v4  ;;  %v3674_v39 = vsub.f32 0.0, %v7421_v15  ;;  %v5744_v40 = vadd.f32 %v3502_v33, %v7322_v62 }
 0x377   : > { %v6201_v41 = vpop.eup %6200  ;;  %6220 = vrcp.f32 %v3762_v36  ;;  %v3720_v16 = vmul.f32 1.442695, %v3675_v5  ;;  %v7428_v18 = vadd.f32 %v5743_v52, %v7361_v14 }
 0x378   : > { %v6203_v38 = vpop.eup %6202  ;;  %v3765_v35 = vadd.f32 1.0, %v6201_v41  ;;  %6222 = vpow2.f32 %v3714_v29  ;;  %v3718_v61 = vmul.f32 1.442695, %v3674_v39  ;;  %v7431_v13 = vadd.f32 %v5744_v40, %v7361_v14  ;;  %v5387_v24 = vpop.f32.mrb[16].mxu1 }
 0x379   : > { %v6205_v0 = vpop.eup %6204  ;;  %v3823_v48 = vmul.f32 %v6203_v38, %v7364_v26  ;;  %6224 = vpow2.f32 %v3720_v16  ;;  %v3677_v62 = vsub.f32 0.0, %v7428_v18  ;;  %v5745_v53 = vadd.f32 %v5387_v24, %v7324_v27  ;;  %v3512_v42 = vpop.f32.mrb[17].mxu1  ;;  %v6318_v38 = vld [vmem:[#allocation2 + $0x18] sm:$0xff] }
 0x37a   : > { %v6207_v6 = vpop.eup %6206  ;;  %v3822_v19 = vmul.f32 %v6205_v0, %v7367_v60  ;;  %6226 = vrcp.f32 %v3765_v35  ;;  %v3676_v20 = vsub.f32 0.0, %v7431_v13  ;;  %v5746_v25 = vadd.f32 %v3512_v42, %v7326_v43  ;;  %v6319_v0 = vld [vmem:[#allocation2 + $0x10] sm:$0xff] }
 0x37b   : > { %v6209_v34 = vpop.eup %6208  ;;  %v3855_v1 = vadd.f32 %v6316_v17, %v3823_v48  ;;  %v3764_v32 = vadd.f32 1.0, %v6207_v6  ;;  %6228 = vpow2.f32 %v3718_v61  ;;  %v3724_v26 = vmul.f32 1.442695, %v3677_v62 }
 0x37c   : > { %v6211_v11 = vpop.eup %6210  ;;  %v3854_v21 = vadd.f32 %v6317_v58, %v3822_v19  ;;  %v3767_v4 = vadd.f32 1.0, %v6209_v34  ;;  %v3722_v27 = vmul.f32 1.442695, %v3676_v20  ;;  %v7440_v29 = vadd.f32 %v5745_v53, %v7361_v14  ;;  %v5390_v60 = vpop.f32.mrb[18].mxu1 }
 0x37d   : > { %v6213_v54 = vpop.eup %6212  ;;  %3887 = vst [vmem:[#allocation2 + $0x8] sm:$0xff] %v3855_v1  ;;  %v3825_v36 = vmul.f32 %v6211_v11, %v7372_v28  ;;  %6230 = vrcp.f32 %v3764_v32  ;;  %v7444_v43 = vadd.f32 %v5746_v25, %v7361_v14  ;;  %v5747_v5 = vadd.f32 %v5390_v60, %v7328_v45  ;;  %v3522_v52 = vpop.f32.mrb[19].mxu1  ;;  %v6320_v32 = vld [vmem:[#allocation2 + $0x28] sm:$0xff] }
 0x37e   : > { %v6215_v33 = vpop.eup %6214  ;;  %3886 = vst [vmem:[#allocation2] sm:$0xff] %v3854_v21  ;;  %v3824_v39 = vmul.f32 %v6213_v54, %v7375_v23  ;;  %6232 = vrcp.f32 %v3767_v4  ;;  %v3679_v40 = vsub.f32 0.0, %v7440_v29  ;;  %v5748_v41 = vadd.f32 %v3522_v52, %v7330_v59  ;;  %v6321_v21 = vld [vmem:[#allocation2 + $0x20] sm:$0xff] }
 0x37f   : > { %v6217_v16 = vpop.eup %6216  ;;  %v3857_v35 = vadd.f32 %v6318_v38, %v3825_v36  ;;  %v3766_v28 = vadd.f32 1.0, %v6215_v33  ;;  %6234 = vpow2.f32 %v3724_v26  ;;  %v3678_v61 = vsub.f32 0.0, %v7444_v43 }
 0x380   : > { %v6219_v24 = vpop.eup %6218  ;;  %v3856_v45 = vadd.f32 %v6319_v0, %v3824_v39  ;;  %v3769_v48 = vadd.f32 1.0, %v6217_v16  ;;  %6236 = vpow2.f32 %v3722_v27  ;;  %v3728_v62 = vmul.f32 1.442695, %v3679_v40  ;;  %v5393_v53 = vpop.f32.mrb[20].mxu1  ;;  %v6322_v16 = vld [vmem:[#allocation2 + $0x38] sm:$0xff] }
 0x381   : > { %v6221_v23 = vpop.eup %6220  ;;  %3889 = vst [vmem:[#allocation2 + $0x18] sm:$0xff] %v3857_v35  ;;  %v3827_v42 = vmul.f32 %v6219_v24, %v7380_v9  ;;  %6238 = vrcp.f32 %v3766_v28  ;;  %v3726_v59 = vmul.f32 1.442695, %v3678_v61  ;;  %v7453_v6 = vadd.f32 %v5747_v5, %v7361_v14  ;;  %v3532_v19 = vpop.f32.mrb[21].mxu1 }
 0x382   : > { %v6223_v20 = vpop.eup %6222  ;;  %3888 = vst [vmem:[#allocation2 + $0x10] sm:$0xff] %v3856_v45  ;;  %v3826_v25 = vmul.f32 %v6221_v23, %v7383_v10  ;;  %6240 = vrcp.f32 %v3769_v48  ;;  %v7457_v34 = vadd.f32 %v5748_v41, %v7361_v14  ;;  %v5749_v17 = vadd.f32 %v5393_v53, %v7332_v8 }
 0x383   : > { %v6225_v1 = vpop.eup %6224  ;;  %v3859_v26 = vadd.f32 %v6320_v32, %v3827_v42  ;;  %v3768_v9 = vadd.f32 1.0, %v6223_v20  ;;  %6242 = vpow2.f32 %v3728_v62  ;;  %v3681_v11 = vsub.f32 0.0, %v7453_v6  ;;  %v6323_v42 = vld [vmem:[#allocation2 + $0x30] sm:$0xff] }
 0x384   : > { %v6227_v58 = vpop.eup %6226  ;;  %v3858_v4 = vadd.f32 %v6321_v21, %v3826_v25  ;;  %v3771_v27 = vadd.f32 1.0, %v6225_v1  ;;  %6244 = vpow2.f32 %v3726_v59  ;;  %v3680_v10 = vsub.f32 0.0, %v7457_v34  ;;  %v5396_v60 = vpop.f32.mrb[22].mxu1  ;;  %v6324_v25 = vld [vmem:[#allocation2 + $0x48] sm:$0xff] }
 0x385   : > { %v6229_v54 = vpop.eup %6228  ;;  %3891 = vst [vmem:[#allocation2 + $0x28] sm:$0xff] %v3859_v26  ;;  %v3829_v36 = vmul.f32 %v6227_v58, %v7388_v2  ;;  %6246 = vrcp.f32 %v3768_v9  ;;  %v3732_v8 = vmul.f32 1.442695, %v3681_v11  ;;  %v7464_v5 = vadd.f32 %v5749_v17, %v7361_v14  ;;  %v3542_v52 = vpop.f32.mrb[23].mxu1 }
 0x386   : > { %3890 = vst [vmem:[#allocation2 + $0x20] sm:$0xff] %v3858_v4  ;;  %6248 = vrcp.f32 %v3771_v27  ;;  %v3770_v33 = vadd.f32 1.0, %v6229_v54  ;;  %v3730_v39 = vmul.f32 1.442695, %v3680_v10  ;;  %v5750_v40 = vadd.f32 %v3532_v19, %v7334_v22 }
 0x387   : > { %v6231_v41 = vpop.eup %6230  ;;  %v3861_v38 = vadd.f32 %v6322_v16, %v3829_v36  ;;  %6250 = vpow2.f32 %v3732_v8  ;;  %v3683_v35 = vsub.f32 0.0, %v7464_v5  ;;  %v5751_v2 = vadd.f32 %v5396_v60, %v7336_v37  ;;  %v6325_v36 = vld [vmem:[#allocation2 + $0x40] sm:$0xff] }
 0x388   : > { %v6233_v28 = vpop.eup %6232  ;;  %v3828_v61 = vmul.f32 %v6231_v41, %v7391_v46  ;;  %6252 = vrcp.f32 %v3770_v33  ;;  %v7471_v24 = vadd.f32 %v5750_v40, %v7361_v14  ;;  %v5752_v0 = vadd.f32 %v3542_v52, %v7338_v7  ;;  %v5399_v45 = vpop.f32.mrb[24].mxu1 }
 0x389   : > { %v6235_v48 = vpop.eup %6234  ;;  %3893 = vst [vmem:[#allocation2 + $0x38] sm:$0xff] %v3861_v38  ;;  %v3831_v22 = vmul.f32 %v6233_v28, %v7398_v50  ;;  %6254 = vpow2.f32 %v3730_v39  ;;  %v3736_v62 = vmul.f32 1.442695, %v3683_v35  ;;  %v7476_v53 = vadd.f32 %v5751_v2, %v7361_v14  ;;  %v3552_v37 = vpop.f32.mrb[25].mxu1  ;;  %v6326_v39 = vld [vmem:[#allocation2 + $0x58] sm:$0xff] }
 0x38a   : > { %v6237_v23 = vpop.eup %6236  ;;  %v3860_v46 = vadd.f32 %v6323_v42, %v3828_v61  ;;  %v3773_v59 = vadd.f32 1.0, %v6235_v48  ;;  %v3682_v19 = vsub.f32 0.0, %v7471_v24  ;;  %v7480_v20 = vadd.f32 %v5752_v0, %v7361_v14 }
 0x38b   : > { %v6239_v7 = vpop.eup %6238  ;;  %v3863_v17 = vadd.f32 %v6324_v25, %v3831_v22  ;;  %v3772_v1 = vadd.f32 1.0, %v6237_v23  ;;  %6256 = vpow2.f32 %v3736_v62  ;;  %v3685_v50 = vsub.f32 0.0, %v7476_v53  ;;  %v6327_v62 = vld [vmem:[#allocation2 + $0x50] sm:$0xff] }
 0x38c   : > { %v6241_v32 = vpop.eup %6240  ;;  %3892 = vst [vmem:[#allocation2 + $0x30] sm:$0xff] %v3860_v46  ;;  %v3830_v26 = vmul.f32 %v6239_v7, %v7401_v44  ;;  %6258 = vrcp.f32 %v3773_v59  ;;  %v3734_v9 = vmul.f32 1.442695, %v3682_v19  ;;  %v3684_v11 = vsub.f32 0.0, %v7480_v20  ;;  %v5402_v58 = vpop.f32.mrb[26].mxu1 }
 0x38d   : > { %v6243_v21 = vpop.eup %6242  ;;  %3895 = vst [vmem:[#allocation2 + $0x48] sm:$0xff] %v3863_v17  ;;  %v3833_v4 = vmul.f32 %v6241_v32, %v7408_v56  ;;  %6260 = vrcp.f32 %v3772_v1  ;;  %v3740_v27 = vmul.f32 1.442695, %v3685_v50  ;;  %v5753_v10 = vadd.f32 %v5399_v45, %v7340_v30  ;;  %v3562_v60 = vpop.f32.mrb[27].mxu1  ;;  %v6329_v1 = vld [vmem:[#allocation2 + $0x60] sm:$0xff] }
 0x38e   : > { %v6245_v54 = vpop.eup %6244  ;;  %v3862_v8 = vadd.f32 %v6325_v36, %v3830_v26  ;;  %v3775_v52 = vadd.f32 1.0, %v6243_v21  ;;  %6262 = vpow2.f32 %v3734_v9  ;;  %v3738_v44 = vmul.f32 1.442695, %v3684_v11 }
 0x38f   : > { %v6247_v33 = vpop.eup %6246  ;;  %v3865_v40 = vadd.f32 %v6326_v39, %v3833_v4  ;;  %v3774_v41 = vadd.f32 1.0, %v6245_v54  ;;  %6264 = vpow2.f32 %v3740_v27  ;;  %v7488_v16 = vadd.f32 %v5753_v10, %v7361_v14 }
 0x390   : > { %v6249_v56 = vpop.eup %6248  ;;  %3894 = vst [vmem:[#allocation2 + $0x40] sm:$0xff] %v3862_v8  ;;  %v3832_v38 = vmul.f32 %v6247_v33, %v7411_v49  ;;  %6266 = vrcp.f32 %v3775_v52  ;;  %v5754_v30 = vadd.f32 %v3552_v37, %v7342_v57  ;;  %v5755_v35 = vadd.f32 %v5402_v58, %v7344_v47  ;;  %v5405_v2 = vpop.f32.mrb[28].mxu1  ;;  %v6328_v37 = vld [vmem:[#allocation2 + $0x68] sm:$0xff]  ;;  %v6330_v33 = vld [vmem:[#allocation2 + $0x78] sm:$0xff] }
 0x391   : > { %v6251_v28 = vpop.eup %6250  ;;  %3897 = vst [vmem:[#allocation2 + $0x58] sm:$0xff] %v3865_v40  ;;  %v3835_v61 = vmul.f32 %v6249_v56, %v7418_v12  ;;  %6268 = vrcp.f32 %v3774_v41  ;;  %v3687_v0 = vsub.f32 0.0, %v7488_v16  ;;  %v5756_v45 = vadd.f32 %v3562_v60, %v7346_v31  ;;  %v3572_v48 = vpop.f32.mrb[29].mxu1  ;;  %v6331_v56 = vld [vmem:[#allocation2 + $0x70] sm:$0xff] }
 0x392   : > { %v6253_v22 = vpop.eup %6252  ;;  %v3864_v23 = vadd.f32 %v6327_v62, %v3832_v38  ;;  %v3777_v49 = vadd.f32 1.0, %v6251_v28  ;;  %6270 = vpow2.f32 %v3738_v44  ;;  %v7497_v57 = vadd.f32 %v5754_v30, %v7361_v14 }
 0x393   : > { %v6255_v47 = vpop.eup %6254  ;;  %v3867_v42 = vadd.f32 %v6328_v37, %v3835_v61  ;;  %v3834_v46 = vmul.f32 %v6253_v22, %v7421_v15  ;;  %v3744_v12 = vmul.f32 1.442695, %v3687_v0  ;;  %v7501_v59 = vadd.f32 %v5755_v35, %v7361_v14 }
 0x394   : > { %3896 = vst [vmem:[#allocation2 + $0x50] sm:$0xff] %v3864_v23  ;;  %6272 = vrcp.f32 %v3777_v49  ;;  %v3776_v31 = vadd.f32 1.0, %v6255_v47  ;;  %v3686_v19 = vsub.f32 0.0, %v7497_v57  ;;  %v7505_v7 = vadd.f32 %v5756_v45, %v7361_v14  ;;  %v5408_v25 = vpop.f32.mrb[30].mxu1  ;;  %v6333_v49 = vld [vmem:[#allocation2 + $0x80] sm:$0xff] }
 0x395   : > { %v6257_v17 = vpop.eup %6256  ;;  %3899 = vst [vmem:[#allocation2 + $0x68] sm:$0xff] %v3867_v42  ;;  %v3866_v50 = vadd.f32 %v6329_v1, %v3834_v46  ;;  %6274 = vpow2.f32 %v3744_v12  ;;  %v3689_v15 = vsub.f32 0.0, %v7501_v59  ;;  %v5757_v32 = vadd.f32 %v5405_v2, %v7348_v51  ;;  %v3582_v26 = vpop.f32.mrb[31].mxu1 }
 0x396   : > { %v6259_v9 = vpop.eup %6258  ;;  %6276 = vrcp.f32 %v3776_v31  ;;  %v3779_v11 = vadd.f32 1.0, %v6257_v17  ;;  %v3742_v58 = vmul.f32 1.442695, %v3686_v19  ;;  %v3688_v21 = vsub.f32 0.0, %v7505_v7 }
 0x397   : > { %v6261_v4 = vpop.eup %6260  ;;  %3898 = vst [vmem:[#allocation2 + $0x60] sm:$0xff] %v3866_v50  ;;  %v3837_v27 = vmul.f32 %v6259_v9, %v7428_v18  ;;  %v3748_v10 = vmul.f32 1.442695, %v3689_v15  ;;  %v7512_v60 = vadd.f32 %v5757_v32, %v7361_v14  ;;  %v5758_v54 = vadd.f32 %v3572_v48, %v7350_v55  ;;  %v6332_v48 = vld [vmem:[#allocation2 + $0x88] sm:$0xff]  ;;  %v6335_v32 = vld [vmem:[#allocation2 + $0x90] sm:$0xff] }
 0x398   : > { %v6263_v36 = vpop.eup %6262  ;;  %v3836_v51 = vmul.f32 %v6261_v4, %v7431_v13  ;;  %6278 = vrcp.f32 %v3779_v11  ;;  %v3746_v8 = vmul.f32 1.442695, %v3688_v21  ;;  %v5759_v52 = vadd.f32 %v5408_v25, %v7352_v63  ;;  %v6334_v25 = vld [vmem:[#allocation2 + $0x98] sm:$0xff]  ;;  %v6336_v21 = vld [vmem:[#allocation2 + $0xa8] sm:$0xff] }
 0x399   : > { %v6265_v44 = vpop.eup %6264  ;;  %v3869_v39 = vadd.f32 %v6330_v33, %v3837_v27  ;;  %v3778_v40 = vadd.f32 1.0, %v6263_v36  ;;  %6280 = vpow2.f32 %v3742_v58  ;;  %v3691_v18 = vsub.f32 0.0, %v7512_v60  ;;  %v6338_v33 = vld [vmem:[#allocation2 + $0xb8] sm:$0xff] }
 0x39a   : > { %v6267_v41 = vpop.eup %6266  ;;  %v3868_v38 = vadd.f32 %v6331_v56, %v3836_v51  ;;  %v3781_v30 = vadd.f32 1.0, %v6265_v44  ;;  %6282 = vpow2.f32 %v3748_v10  ;;  %v7519_v55 = vadd.f32 %v5758_v54, %v7361_v14 }
 0x39b   : > { %v6269_v13 = vpop.eup %6268  ;;  %3901 = vst [vmem:[#allocation2 + $0x78] sm:$0xff] %v3869_v39  ;;  %v3839_v35 = vmul.f32 %v6267_v41, %v7440_v29  ;;  %6284 = vrcp.f32 %v3778_v40  ;;  %v3752_v63 = vmul.f32 1.442695, %v3691_v18  ;;  %v7523_v2 = vadd.f32 %v5759_v52, %v7361_v14 }
 0x39c   : > { %v6271_v28 = vpop.eup %6270  ;;  %3900 = vst [vmem:[#allocation2 + $0x70] sm:$0xff] %v3868_v38  ;;  %v3838_v61 = vmul.f32 %v6269_v13, %v7444_v43  ;;  %6286 = vrcp.f32 %v3781_v30  ;;  %v3690_v0 = vsub.f32 0.0, %v7519_v55  ;;  %v5760_v45 = vadd.f32 %v3582_v26, %v7354_v3 }
 0x39d   : > { %v3871_v22 = vadd.f32 %v6332_v48, %v3839_v35  ;;  %v3780_v62 = vadd.f32 1.0, %v6271_v28  ;;  %6288 = vpow2.f32 %v3746_v8  ;;  %v3693_v29 = vsub.f32 0.0, %v7523_v2  ;;  %v6337_v8 = vld [vmem:[#allocation2 + $0xa0] sm:$0xff]  ;;  %v6340_v28 = vld [vmem:[#allocation2 + $0xc8] sm:$0xff] }
 0x39e   : > { %v6273_v23 = vpop.eup %6272  ;;  %v3870_v47 = vadd.f32 %v6333_v49, %v3838_v61  ;;  %6290 = vpow2.f32 %v3752_v63  ;;  %v3750_v37 = vmul.f32 1.442695, %v3690_v0  ;;  %v7530_v42 = vadd.f32 %v5760_v45, %v7361_v14  ;;  %v6342_v49 = vld [vmem:[#allocation2 + $0xd8] sm:$0xff] }
 0x39f   : > { %v6275_v43 = vpop.eup %6274  ;;  %3903 = vst [vmem:[#allocation2 + $0x88] sm:$0xff] %v3871_v22  ;;  %v3841_v46 = vmul.f32 %v6273_v23, %v7453_v6  ;;  %6292 = vrcp.f32 %v3780_v62  ;;  %v3756_v3 = vmul.f32 1.442695, %v3693_v29  ;;  %v6341_v62 = vld [vmem:[#allocation2 + $0xc0] sm:$0xff] }
 0x3a0   : > { %v6277_v12 = vpop.eup %6276  ;;  %3902 = vst [vmem:[#allocation2 + $0x80] sm:$0xff] %v3870_v47  ;;  %v3783_v31 = vadd.f32 1.0, %v6275_v43  ;;  %6294 = vpow2.f32 %v3750_v37  ;;  %v3692_v19 = vsub.f32 0.0, %v7530_v42 }
 0x3a1   : > { %v3873_v17 = vadd.f32 %v6334_v25, %v3841_v46  ;;  %v3840_v1 = vmul.f32 %v6277_v12, %v7457_v34  ;;  %6296 = vpow2.f32 %v3756_v3  ;;  %v6343_v3 = vld [vmem:[#allocation2 + $0xd0] sm:$0xff] }
 0x3a2   : > { %v6279_v50 = vpop.eup %6278  ;;  %6298 = vrcp.f32 %v3783_v31  ;;  %v3754_v14 = vmul.f32 1.442695, %v3692_v19 }
 0x3a3   : > { %v6281_v15 = vpop.eup %6280  ;;  %3905 = vst [vmem:[#allocation2 + $0x98] sm:$0xff] %v3873_v17  ;;  %v3872_v6 = vadd.f32 %v6335_v32, %v3840_v1  ;;  %v3843_v26 = vmul.f32 %v6279_v50, %v7464_v5  ;;  %v6345_v17 = vld [vmem:[#allocation2 + $0xe0] sm:$0xff] }
 0x3a4   : > { %v6283_v9 = vpop.eup %6282  ;;  %v3782_v11 = vadd.f32 1.0, %v6281_v15  ;;  %6300 = vpow2.f32 %v3754_v14  ;;  %v6346_v14 = vld [vmem:[#allocation2 + $0xf8] sm:$0xff]  ;;  %v6347_v15 = vld [vmem:[#allocation2 + $0xf0] sm:$0xff] }
 0x3a5   : > { %v6285_v58 = vpop.eup %6284  ;;  %3904 = vst [vmem:[#allocation2 + $0x90] sm:$0xff] %v3872_v6  ;;  %v3875_v4 = vadd.f32 %v6336_v21, %v3843_v26  ;;  %v3785_v27 = vadd.f32 1.0, %v6283_v9  ;;  %v3924_v6 = vld [vmem:[#allocation2 + $0x10] sm:$0xff] (!%p4123_p6)  ;;  %v3926_v26 = vld [vmem:[#allocation2 + $0x20] sm:$0xff] (!%p4123_p6)  ;;  %v3927_v9 = vld [vmem:[#allocation2 + $0x28] sm:$0xff] (!%p4123_p6) }
 0x3a6   : > { %v6287_v10 = vpop.eup %6286  ;;  %v3842_v34 = vmul.f32 %v6285_v58, %v7471_v24  ;;  %6302 = vrcp.f32 %v3782_v11  ;;  %3956 = vst [vmem:[%s6620_s1 + $0x10] sm:$0xff] (!%p4123_p6), %v3924_v6  ;;  %3958 = vst [vmem:[%s6620_s1 + $0x20] sm:$0xff] (!%p4123_p6), %v3926_v26  ;;  %v3928_v11 = vld [vmem:[#allocation2 + $0x30] sm:$0xff] (!%p4123_p6)  ;;  %v3929_v58 = vld [vmem:[#allocation2 + $0x38] sm:$0xff] (!%p4123_p6) }
 0x3a7   : > { %v6289_v54 = vpop.eup %6288  ;;  %3907 = vst [vmem:[#allocation2 + $0xa8] sm:$0xff] %v3875_v4  ;;  %v3845_v36 = vmul.f32 %v6287_v10, %v7476_v53  ;;  %6304 = vrcp.f32 %v3785_v27  ;;  %v6339_v53 = vld [vmem:[#allocation2 + $0xb0] sm:$0xff]  ;;  %3959 = vst [vmem:[%s6620_s1 + $0x28] sm:$0xff] (!%p4123_p6), %v3927_v9  ;;  %v3930_v21 = vld [vmem:[#allocation2 + $0x40] sm:$0xff] (!%p4123_p6) }
 0x3a8   : > { %v6291_v51 = vpop.eup %6290  ;;  %v3874_v5 = vadd.f32 %v6337_v8, %v3842_v34  ;;  %v3784_v52 = vadd.f32 1.0, %v6289_v54  ;;  %3960 = vst [vmem:[%s6620_s1 + $0x30] sm:$0xff] (!%p4123_p6), %v3928_v11  ;;  %3961 = vst [vmem:[%s6620_s1 + $0x38] sm:$0xff] (!%p4123_p6), %v3929_v58  ;;  %v3931_v4 = vld [vmem:[#allocation2 + $0x48] sm:$0xff] (!%p4123_p6)  ;;  %v3932_v27 = vld [vmem:[#allocation2 + $0x50] sm:$0xff] (!%p4123_p6) }
 0x3a9   : > { %v6293_v44 = vpop.eup %6292  ;;  %v3877_v39 = vadd.f32 %v6338_v33, %v3845_v36  ;;  %v3787_v40 = vadd.f32 1.0, %v6291_v51  ;;  %3962 = vst [vmem:[%s6620_s1 + $0x40] sm:$0xff] (!%p4123_p6), %v3930_v21  ;;  %v3933_v10 = vld [vmem:[#allocation2 + $0x58] sm:$0xff] (!%p4123_p6)  ;;  %3963 = vst [vmem:[%s6620_s1 + $0x48] sm:$0xff] (!%p4123_p6), %v3931_v4  ;;  %v3934_v34 = vld [vmem:[#allocation2 + $0x60] sm:$0xff] (!%p4123_p6) }
 0x3aa   : > { %v6295_v18 = vpop.eup %6294  ;;  %3906 = vst [vmem:[#allocation2 + $0xa0] sm:$0xff] %v3874_v5  ;;  %v3844_v41 = vmul.f32 %v6293_v44, %v7480_v20  ;;  %6306 = vrcp.f32 %v3784_v52  ;;  %3964 = vst [vmem:[%s6620_s1 + $0x50] sm:$0xff] (!%p4123_p6), %v3932_v27  ;;  %v3935_v54 = vld [vmem:[#allocation2 + $0x68] sm:$0xff] (!%p4123_p6)  ;;  %v3936_v36 = vld [vmem:[#allocation2 + $0x70] sm:$0xff] (!%p4123_p6) }
 0x3ab   : > { %v6297_v24 = vpop.eup %6296  ;;  %3909 = vst [vmem:[#allocation2 + $0xb8] sm:$0xff] %v3877_v39  ;;  %6308 = vrcp.f32 %v3787_v40  ;;  %v3786_v56 = vadd.f32 1.0, %v6295_v18  ;;  %3965 = vst [vmem:[%s6620_s1 + $0x58] sm:$0xff] (!%p4123_p6), %v3933_v10  ;;  %v3937_v51 = vld [vmem:[#allocation2 + $0x78] sm:$0xff] (!%p4123_p6)  ;;  %v3938_v8 = vld [vmem:[#allocation2 + $0x80] sm:$0xff] (!%p4123_p6) }
 0x3ac   : > { %v6299_v38 = vpop.eup %6298  ;;  %v3876_v30 = vadd.f32 %v6339_v53, %v3844_v41  ;;  %v3789_v13 = vadd.f32 1.0, %v6297_v24  ;;  %3966 = vst [vmem:[%s6620_s1 + $0x60] sm:$0xff] (!%p4123_p6), %v3934_v34  ;;  %3967 = vst [vmem:[%s6620_s1 + $0x68] sm:$0xff] (!%p4123_p6), %v3935_v54  ;;  %v3939_v5 = vld [vmem:[#allocation2 + $0x88] sm:$0xff] (!%p4123_p6)  ;;  %v3940_v52 = vld [vmem:[#allocation2 + $0x90] sm:$0xff] (!%p4123_p6) }
 0x3ad   : > { %v3847_v35 = vmul.f32 %v6299_v38, %v7488_v16  ;;  %6310 = vrcp.f32 %v3786_v56  ;;  %3968 = vst [vmem:[%s6620_s1 + $0x70] sm:$0xff] (!%p4123_p6), %v3936_v36  ;;  %3969 = vst [vmem:[%s6620_s1 + $0x78] sm:$0xff] (!%p4123_p6), %v3937_v51  ;;  %v3941_v44 = vld [vmem:[#allocation2 + $0x98] sm:$0xff] (!%p4123_p6) }
 0x3ae   : > { %v6301_v63 = vpop.eup %6300  ;;  %3908 = vst [vmem:[#allocation2 + $0xb0] sm:$0xff] %v3876_v30  ;;  %6312 = vrcp.f32 %v3789_v13  ;;  %3970 = vst [vmem:[%s6620_s1 + $0x80] sm:$0xff] (!%p4123_p6), %v3938_v8  ;;  %v3943_v39 = vld [vmem:[#allocation2 + $0xa8] sm:$0xff] (!%p4123_p6) }
 0x3af   : > { %v3879_v61 = vadd.f32 %v6340_v28, %v3847_v35  ;;  %v3788_v0 = vadd.f32 1.0, %v6301_v63  ;;  %3971 = vst [vmem:[%s6620_s1 + $0x88] sm:$0xff] (!%p4123_p6), %v3939_v5  ;;  %3972 = vst [vmem:[%s6620_s1 + $0x90] sm:$0xff] (!%p4123_p6), %v3940_v52 }
 0x3b0   : > { %v6303_v45 = vpop.eup %6302  ;;  %3973 = vst [vmem:[%s6620_s1 + $0x98] sm:$0xff] (!%p4123_p6), %v3941_v44  ;;  %3975 = vst [vmem:[%s6620_s1 + $0xa8] sm:$0xff] (!%p4123_p6), %v3943_v39 }
 0x3b1   : > { %v6305_v20 = vpop.eup %6304  ;;  %3911 = vst [vmem:[#allocation2 + $0xc8] sm:$0xff] %v3879_v61  ;;  %v3846_v48 = vmul.f32 %v6303_v45, %v7497_v57  ;;  %6314 = vrcp.f32 %v3788_v0  ;;  %v6344_v57 = vld [vmem:[#allocation2 + $0xe8] sm:$0xff]  ;;  %v3942_v33 = vld [vmem:[#allocation2 + $0xa0] sm:$0xff] (!%p4123_p6) }
 0x3b2   : > { %v3849_v22 = vmul.f32 %v6305_v20, %v7501_v59  ;;  %3974 = vst [vmem:[%s6620_s1 + $0xa0] sm:$0xff] (!%p4123_p6), %v3942_v33  ;;  %v3945_v18 = vld [vmem:[#allocation2 + $0xb8] sm:$0xff] (!%p4123_p6) }
 0x3b3   : > { %v3878_v29 = vadd.f32 %v6341_v62, %v3846_v48  ;;  %3977 = vst [vmem:[%s6620_s1 + $0xb8] sm:$0xff] (!%p4123_p6), %v3945_v18 }
 0x3b4   : > { %v6307_v23 = vpop.eup %6306  ;;  %v3881_v16 = vadd.f32 %v6342_v49, %v3849_v22 }
 0x3b5   : > { %v6309_v47 = vpop.eup %6308  ;;  %3910 = vst [vmem:[#allocation2 + $0xc0] sm:$0xff] %v3878_v29  ;;  %v3848_v37 = vmul.f32 %v6307_v23, %v7505_v7  ;;  %v3944_v40 = vld [vmem:[#allocation2 + $0xb0] sm:$0xff] (!%p4123_p6) }
 0x3b6   : > { %3913 = vst [vmem:[#allocation2 + $0xd8] sm:$0xff] %v3881_v16  ;;  %v3851_v43 = vmul.f32 %v6309_v47, %v7512_v60  ;;  %3976 = vst [vmem:[%s6620_s1 + $0xb0] sm:$0xff] (!%p4123_p6), %v3944_v40 }
 0x3b7   : > { %v6311_v46 = vpop.eup %6310  ;;  %v3880_v12 = vadd.f32 %v6343_v3, %v3848_v37 }
 0x3b8   : > { %v6313_v31 = vpop.eup %6312  ;;  %v3883_v19 = vadd.f32 %v6344_v57, %v3851_v43  ;;  %v3850_v59 = vmul.f32 %v6311_v46, %v7519_v55  ;;  %v3922_v55 = vld [vmem:[#allocation2] sm:$0xff] (!%p4123_p6)  ;;  %v3947_v24 = vld [vmem:[#allocation2 + $0xc8] sm:$0xff] (!%p4123_p6) }
 0x3b9   : > { %3912 = vst [vmem:[#allocation2 + $0xd0] sm:$0xff] %v3880_v12  ;;  %v3853_v25 = vmul.f32 %v6313_v31, %v7523_v2  ;;  %v3923_v2 = vld [vmem:[#allocation2 + $0x8] sm:$0xff] (!%p4123_p6)  ;;  %3954 = vst [vmem:[%s6620_s1] sm:$0xff] (!%p4123_p6), %v3922_v55 }
 0x3ba   : > { %3915 = vst [vmem:[#allocation2 + $0xe8] sm:$0xff] %v3883_v19  ;;  %v3882_v1 = vadd.f32 %v6345_v17, %v3850_v59  ;;  %3921 = sbr.rel (%p4123_p6) target bundleno = 969 (0x3c9), region = 52  ;;  %3955 = vst [vmem:[%s6620_s1 + $0x8] sm:$0xff] (!%p4123_p6), %v3923_v2 }
 0x3bb   : > { %v6315_v50 = vpop.eup %6314  ;;  %v3885_v7 = vadd.f32 %v6346_v14, %v3853_v25  ;;  %3979 = vst [vmem:[%s6620_s1 + $0xc8] sm:$0xff] (!%p4123_p6), %v3947_v24 }
 0x3bc   : > { %3914 = vst [vmem:[#allocation2 + $0xe0] sm:$0xff] %v3882_v1  ;;  %v3852_v60 = vmul.f32 %v6315_v50, %v7530_v42  ;;  %v3925_v42 = vld [vmem:[#allocation2 + $0x18] sm:$0xff] (!%p4123_p6)  ;;  %v3946_v41 = vld [vmem:[#allocation2 + $0xc0] sm:$0xff] (!%p4123_p6) }
 0x3bd   : > { %3917 = vst [vmem:[#allocation2 + $0xf8] sm:$0xff] %v3885_v7  ;;  %3957 = vst [vmem:[%s6620_s1 + $0x18] sm:$0xff] (!%p4123_p6), %v3925_v42  ;;  %v3949_v38 = vld [vmem:[#allocation2 + $0xd8] sm:$0xff] (!%p4123_p6) }
 0x3be   : > { %v3884_v32 = vadd.f32 %v6347_v15, %v3852_v60  ;;  %3978 = vst [vmem:[%s6620_s1 + $0xc0] sm:$0xff] (!%p4123_p6), %v3946_v41  ;;  %3981 = vst [vmem:[%s6620_s1 + $0xd8] sm:$0xff] (!%p4123_p6), %v3949_v38 }
 0x3c0   : > { %3916 = vst [vmem:[#allocation2 + $0xf0] sm:$0xff] %v3884_v32  ;;  %v3948_v56 = vld [vmem:[#allocation2 + $0xd0] sm:$0xff] (!%p4123_p6) }
 0x3c1   : > { %3980 = vst [vmem:[%s6620_s1 + $0xd0] sm:$0xff] %v3948_v56  ;;  %v3951_v30 = vld [vmem:[#allocation2 + $0xe8] sm:$0xff] }
 0x3c2   : > { %3983 = vst [vmem:[%s6620_s1 + $0xe8] sm:$0xff] %v3951_v30 }
 0x3c3   : > { %v3950_v53 = vld [vmem:[#allocation2 + $0xe0] sm:$0xff] }
 0x3c4   : > { %3982 = vst [vmem:[%s6620_s1 + $0xe0] sm:$0xff] %v3950_v53  ;;  %v3953_v35 = vld [vmem:[#allocation2 + $0xf8] sm:$0xff] }
 0x3c5   : > { %3985 = vst [vmem:[%s6620_s1 + $0xf8] sm:$0xff] %v3953_v35 }
 0x3c7   : > { %v3952_v13 = vld [vmem:[#allocation2 + $0xf0] sm:$0xff] }
 0x3c8   : > { %3984 = vst [vmem:[%s6620_s1 + $0xf0] sm:$0xff] %v3952_v13 }
 0x3c9 PF: > { %s18_s25 = sadd.s32 1, %s6444_s25   ;;  %s7649_s14 = sld [smem:[#allocation7_spill]] }
 0x3ca   : > { %p15_p7 = scmp.ge.s32.totalorder %s18_s25, 6   ;;  %s7650_s18 = smov %s6420_s19 }
 0x3cb   : > { %s7651_s19 = smov %s6424_s20  ;;  %s7652_s20 = smov %s6538_s7 }
 0x3cc   : > { %s7653_s21 = smov %s6436_s23  ;;  %s7654_s22 = smov %s6440_s24 }
 0x3cd   : > { %s7655_s23 = smov %s7658_s27  ;;  %17 = sbr.rel (!%p15_p7) target bundleno = 7 (0x7), region = 103 }
 0x3cf   : > { %s7656_s24 = smov %s7649_s14 }
 0x3d4   :  { %4007 = vsyncpa [#allocation5], 1 }
 0x3d5   :  { %4009 = vsyncpa [#allocation5 + $0x1], 1 }

</bundles_post_ra>
